<compile_context>
chip_gen: v5e
topology: v5e:2x2
jax: 0.10.0
libtpu: 0.0.40
codegen_flags: <defaults>
</compile_context>

<pallas_src>
import jax
import jax.numpy as jnp
from jax.experimental import pallas as pl
from jax.experimental.pallas import tpu as pltpu


# ---------------------------------------------------------------------------
# Kernel 1/2: fused conv (as im2col matmul) + bias + ReLU + 2x2 max-pool + BN
# ---------------------------------------------------------------------------
def _conv_pool_bn_kernel(p_ref, w_ref, b_ref, scale_ref, shift_ref, o_ref):
    """p_ref: (1, 4, M, K) -- 4 pool-tap patch groups for one batch element.
    w_ref: (K, C), b/scale/shift: (1, C), o_ref: (1, M, C).
    Computes BN(max_pool(relu(patches @ w + b))) entirely in VMEM."""
    w = w_ref[...]
    b = b_ref[...]

    def tap(g):  # conv + bias + ReLU for pool tap g (static unroll)
        acc = jnp.dot(p_ref[0, g, :, :], w, preferred_element_type=jnp.float32)
        return jnp.maximum(acc + b, 0.0)

    m = jnp.maximum(jnp.maximum(tap(0), tap(1)), jnp.maximum(tap(2), tap(3)))
    o_ref[0, :, :] = m * scale_ref[...] + shift_ref[...]


def conv_pool_bn(p, w, b, scale, shift):
    """p: (N, 4, M, K) tap-grouped im2col patches -> (N, M, C) pooled+BN output."""
    N, G, M, K = p.shape
    C = w.shape[1]
    return pl.pallas_call(
        _conv_pool_bn_kernel,
        out_shape=jax.ShapeDtypeStruct((N, M, C), jnp.float32),
        grid=(N,),
        in_specs=[
            pl.BlockSpec((1, G, M, K), lambda n: (n, 0, 0, 0)),
            pl.BlockSpec((K, C), lambda n: (0, 0)),
            pl.BlockSpec((1, C), lambda n: (0, 0)),
            pl.BlockSpec((1, C), lambda n: (0, 0)),
            pl.BlockSpec((1, C), lambda n: (0, 0)),
        ],
        out_specs=pl.BlockSpec((1, M, C), lambda n: (n, 0, 0)),
        compiler_params=pltpu.CompilerParams(
            dimension_semantics=("parallel",)),
    )(p, w, b, scale, shift)


# ---------------------------------------------------------------------------
# Kernel 3: the whole 5-layer MLP in one kernel (weights resident in VMEM)
# ---------------------------------------------------------------------------
def _mlp_kernel(x_ref, w0_ref, b0_ref, w1_ref, b1_ref, w2_ref, b2_ref,
                w3_ref, b3_ref, w4_ref, b4_ref, o_ref):
    def layer(h, w_ref, b_ref, relu):
        acc = jnp.dot(h.astype(jnp.bfloat16), w_ref[...],
                      preferred_element_type=jnp.float32)
        acc = acc + b_ref[...]
        return jnp.maximum(acc, 0.0) if relu else acc

    h = x_ref[...]
    h = layer(h, w0_ref, b0_ref, True)   # 2048 -> 800   (+ Dropout = identity)
    h = layer(h, w1_ref, b1_ref, True)   # 800  -> 400
    h = layer(h, w2_ref, b2_ref, True)   # 400  -> 400
    h = layer(h, w3_ref, b3_ref, True)   # 400  -> 200
    o_ref[...] = layer(h, w4_ref, b4_ref, False)  # 200 -> 10


def mlp(feat, params):
    """feat: (M, 2048) f32 (M padded to >= 8).  Returns (M, 10) f32 logits."""
    M = feat.shape[0]
    args = [feat]
    in_specs = [pl.BlockSpec(feat.shape, lambda i: (0, 0))]
    for idx in range(5):
        w = params[f"lw{idx}"]
        b = params[f"lb{idx}"]
        args += [w, b]
        in_specs += [pl.BlockSpec(w.shape, lambda i: (0, 0)),
                     pl.BlockSpec(b.shape, lambda i: (0, 0))]
    return pl.pallas_call(
        _mlp_kernel,
        out_shape=jax.ShapeDtypeStruct((M, 10), jnp.float32),
        grid=(1,),
        in_specs=in_specs,
        out_specs=pl.BlockSpec((M, 10), lambda i: (0, 0)),
        compiler_params=pltpu.CompilerParams(
            dimension_semantics=("arbitrary",),
            vmem_limit_bytes=32 * 1024 * 1024),
    )(*args)


# ---------------------------------------------------------------------------
# Glue: tap-grouped im2col (tiny XLA slices; the 4 groups partition the conv
# output positions, so no data is duplicated for the pooling).
# ---------------------------------------------------------------------------
def _im2col_pool_groups_conv1(xp, n, po):
    """xp: (N, 32, 32) padded input.  Returns (N, 4, po*po, 25)."""
    groups = []
    for di in range(2):
        for dj in range(2):
            cols = [
                xp[:, di + i: di + i + 2 * po - 1: 2,
                      dj + j: dj + j + 2 * po - 1: 2]
                for i in range(5) for j in range(5)
            ]
            groups.append(jnp.stack(cols, axis=-1).reshape(n, po * po, 25))
    return jnp.stack(groups, axis=1)


def _im2col_pool_groups_conv2(yp, n, po):
    """yp: (N, 18, 18, 16) padded pooled conv1 output.  Returns (N, 4, po*po, 64)."""
    groups = []
    for di in range(2):
        for dj in range(2):
            cols = [
                yp[:, di + i: di + i + 2 * po - 1: 2,
                      dj + j: dj + j + 2 * po - 1: 2, :]
                for i in range(2) for j in range(2)
            ]
            groups.append(jnp.concatenate(cols, axis=-1).reshape(n, po * po, 64))
    return jnp.stack(groups, axis=1)


# ---------------------------------------------------------------------------
# Parameters (deterministic, synthetic)
# ---------------------------------------------------------------------------
def init_params(key):
    keys = jax.random.split(key, 16)

    def rnd(k, shape, scale=0.05, dtype=jnp.float32):
        return (scale * jax.random.normal(k, shape)).astype(dtype)

    params = {}
    # Conv weights stored in im2col (HWIO-flattened) order:
    #   w1[i*5 + j, cout]            <-> torch conv1.weight[cout, 0, i, j]
    #   w2[(i*2 + j)*16 + cin, cout] <-> torch conv2.weight[cout, cin, i, j]
    params["w1"] = rnd(keys[0], (5 * 5 * 1, 16))
    params["b1"] = rnd(keys[1], (1, 16))
    params["w2"] = rnd(keys[2], (2 * 2 * 16, 32))
    params["b2"] = rnd(keys[3], (1, 32))

    # BatchNorm2d(16)/(32), eval mode, folded: y = x*scale + shift
    eps = 1e-5
    for name, c in (("bn1", 16), ("bn2", 32)):
        gamma = jnp.ones((c,), jnp.float32)
        beta = jnp.zeros((c,), jnp.float32)
        running_mean = jnp.zeros((c,), jnp.float32)
        running_var = jnp.ones((c,), jnp.float32)
        scale = gamma / jnp.sqrt(running_var + eps)
        params[f"{name}_scale"] = scale.reshape(1, c)
        params[f"{name}_shift"] = (beta - running_mean * scale).reshape(1, c)

    # MLP 2048 -> 800 -> 400 -> 400 -> 200 -> 10.  Weights in bf16 (MXU operands,
    # half the HBM bytes), biases in f32.  lw0 rows are stored in NHWC-flatten
    # order (h*256 + w*32 + c) -- i.e. the rows of the equivalent torch weight
    # (NCHW flatten: c*64 + h*8 + w) permuted offline -- so no runtime transpose
    # is needed between the conv stage and the MLP.
    dims = [(32 * 8 * 8, 800), (800, 400), (400, 400), (400, 200), (200, 10)]
    for idx, (din, dout) in enumerate(dims):
        params[f"lw{idx}"] = rnd(keys[4 + 2 * idx], (din, dout), dtype=jnp.bfloat16)
        params[f"lb{idx}"] = rnd(keys[5 + 2 * idx], (1, dout))
    return params


# ---------------------------------------------------------------------------
# Forward pass
# ---------------------------------------------------------------------------
def forward(x_nchw, params):
    N = x_nchw.shape[0]

    # ---- conv1 stage: Conv2d(1,16,5,1,2) + ReLU + MaxPool2d(2) + BatchNorm2d(16)
    x = x_nchw[:, 0]                                   # (N, 28, 28)
    xp = jnp.pad(x, ((0, 0), (2, 2), (2, 2)))          # (N, 32, 32)
    p1 = _im2col_pool_groups_conv1(xp, N, 14)          # (N, 4, 196, 25)
    y1 = conv_pool_bn(p1, params["w1"], params["b1"],
                      params["bn1_scale"], params["bn1_shift"])   # (N, 196, 16)

    # ---- conv2 stage: Conv2d(16,32,2,1,2) + ReLU + MaxPool2d(2) + BatchNorm2d(32)
    # conv2 output is 17x17; MaxPool2d(2) floors to 8x8, so only positions 0..15 are
    # used -- the tap-grouped patch construction below only generates those.
    y1 = y1.reshape(N, 14, 14, 16)
    yp = jnp.pad(y1, ((0, 0), (2, 2), (2, 2), (0, 0)))  # (N, 18, 18, 16)
    p2 = _im2col_pool_groups_conv2(yp, N, 8)            # (N, 4, 64, 64)
    y2 = conv_pool_bn(p2, params["w2"], params["b2"],
                      params["bn2_scale"], params["bn2_shift"])   # (N, 64, 32)

    # ---- MLP (flatten permutation is baked into lw0; Dropout is identity at inference)
    feat = y2.reshape(N, 32 * 8 * 8)                    # (N, 2048), lane-dense
    m_pad = max(8, N)                                   # fill a full sublane
    if m_pad > N:
        feat = jnp.pad(feat, ((0, m_pad - N), (0, 0)))
    out = mlp(feat, params)                             # (m_pad, 10)
    return out[:N]


if __name__ == "__main__":
    # 28x28 input is forced by the 32*8*8 flatten in the module.
    x = jax.random.normal(jax.random.PRNGKey(0), (2, 1, 28, 28), dtype=jnp.float32)
    params = init_params(jax.random.PRNGKey(42))

    out = jax.block_until_ready(jax.jit(forward)(x, params))
    assert out.shape == (2, 10) and out.dtype == jnp.float32
    print("KERNEL_OK")
</pallas_src>

<mosaic_0001>
module attributes {stable_mosaic.version = 11 : i64} {
  func.func @_conv_pool_bn_kernel(%arg0: i32, %arg1: memref<1x4x196x25xf32, #tpu.memory_space<vmem>>, %arg2: memref<25x16xf32, #tpu.memory_space<vmem>>, %arg3: memref<1x16xf32, #tpu.memory_space<vmem>>, %arg4: memref<1x16xf32, #tpu.memory_space<vmem>>, %arg5: memref<1x16xf32, #tpu.memory_space<vmem>>, %arg6: memref<1x196x16xf32, #tpu.memory_space<vmem>>) attributes {dimension_semantics = [#tpu.dimension_semantics<parallel>], iteration_bounds = array<i64: 2>, scalar_prefetch = 0 : i64, scratch_operands = 0 : i64, tpu.core_type = #tpu.core_type<tc>, window_params = [{transform_indices = @transform_0, window_bounds = array<i64: 1, 4, 196, 25>}, {pipeline_mode = #tpu.pipeline_mode<synchronous>, transform_indices = @transform_1, window_bounds = array<i64: 25, 16>}, {pipeline_mode = #tpu.pipeline_mode<synchronous>, transform_indices = @transform_2, window_bounds = array<i64: 1, 16>}, {pipeline_mode = #tpu.pipeline_mode<synchronous>, transform_indices = @transform_3, window_bounds = array<i64: 1, 16>}, {pipeline_mode = #tpu.pipeline_mode<synchronous>, transform_indices = @transform_4, window_bounds = array<i64: 1, 16>}, {transform_indices = @transform_5, window_bounds = array<i64: 1, 196, 16>}]} {
    %c0 = arith.constant 0 : index
    %c0_0 = arith.constant 0 : index
    %0 = vector.load %arg2[%c0, %c0_0] : memref<25x16xf32, #tpu.memory_space<vmem>>, vector<25x16xf32>
    %c0_1 = arith.constant 0 : index
    %c0_2 = arith.constant 0 : index
    %1 = vector.load %arg3[%c0_1, %c0_2] : memref<1x16xf32, #tpu.memory_space<vmem>>, vector<1x16xf32>
    %c0_3 = arith.constant 0 : index
    %c0_4 = arith.constant 0 : index
    %c0_5 = arith.constant 0 : index
    %c0_6 = arith.constant 0 : index
    %2 = vector.load %arg1[%c0_3, %c0_4, %c0_5, %c0_6] : memref<1x4x196x25xf32, #tpu.memory_space<vmem>>, vector<1x1x196x25xf32>
    %3 = vector.shape_cast %2 : vector<1x1x196x25xf32> to vector<196x25xf32>
    %cst = arith.constant dense<0.000000e+00> : vector<196x16xf32>
    %4 = tpu.matmul %3, %0, %cst {dimension_numbers = #tpu.dot_dimension_numbers<[1], [0], [0], [1], [0, 0, 1, 1], [], []>} : vector<196x25xf32>, vector<25x16xf32>, vector<196x16xf32> -> vector<196x16xf32>
    %5 = vector.broadcast %1 : vector<1x16xf32> to vector<196x16xf32>
    %6 = arith.addf %4, %5 : vector<196x16xf32>
    %cst_7 = arith.constant 0.000000e+00 : f32
    %7 = vector.broadcast %cst_7 : f32 to vector<196x16xf32>
    %8 = arith.maximumf %6, %7 : vector<196x16xf32>
    %c0_8 = arith.constant 0 : index
    %c1 = arith.constant 1 : index
    %c0_9 = arith.constant 0 : index
    %c0_10 = arith.constant 0 : index
    %9 = vector.load %arg1[%c0_8, %c1, %c0_9, %c0_10] : memref<1x4x196x25xf32, #tpu.memory_space<vmem>>, vector<1x1x196x25xf32>
    %10 = vector.shape_cast %9 : vector<1x1x196x25xf32> to vector<196x25xf32>
    %cst_11 = arith.constant dense<0.000000e+00> : vector<196x16xf32>
    %11 = tpu.matmul %10, %0, %cst_11 {dimension_numbers = #tpu.dot_dimension_numbers<[1], [0], [0], [1], [0, 0, 1, 1], [], []>} : vector<196x25xf32>, vector<25x16xf32>, vector<196x16xf32> -> vector<196x16xf32>
    %12 = vector.broadcast %1 : vector<1x16xf32> to vector<196x16xf32>
    %13 = arith.addf %11, %12 : vector<196x16xf32>
    %cst_12 = arith.constant 0.000000e+00 : f32
    %14 = vector.broadcast %cst_12 : f32 to vector<196x16xf32>
    %15 = arith.maximumf %13, %14 : vector<196x16xf32>
    %16 = arith.maximumf %8, %15 : vector<196x16xf32>
    %c0_13 = arith.constant 0 : index
    %c2 = arith.constant 2 : index
    %c0_14 = arith.constant 0 : index
    %c0_15 = arith.constant 0 : index
    %17 = vector.load %arg1[%c0_13, %c2, %c0_14, %c0_15] : memref<1x4x196x25xf32, #tpu.memory_space<vmem>>, vector<1x1x196x25xf32>
    %18 = vector.shape_cast %17 : vector<1x1x196x25xf32> to vector<196x25xf32>
    %cst_16 = arith.constant dense<0.000000e+00> : vector<196x16xf32>
    %19 = tpu.matmul %18, %0, %cst_16 {dimension_numbers = #tpu.dot_dimension_numbers<[1], [0], [0], [1], [0, 0, 1, 1], [], []>} : vector<196x25xf32>, vector<25x16xf32>, vector<196x16xf32> -> vector<196x16xf32>
    %20 = vector.broadcast %1 : vector<1x16xf32> to vector<196x16xf32>
    %21 = arith.addf %19, %20 : vector<196x16xf32>
    %cst_17 = arith.constant 0.000000e+00 : f32
    %22 = vector.broadcast %cst_17 : f32 to vector<196x16xf32>
    %23 = arith.maximumf %21, %22 : vector<196x16xf32>
    %c0_18 = arith.constant 0 : index
    %c3 = arith.constant 3 : index
    %c0_19 = arith.constant 0 : index
    %c0_20 = arith.constant 0 : index
    %24 = vector.load %arg1[%c0_18, %c3, %c0_19, %c0_20] : memref<1x4x196x25xf32, #tpu.memory_space<vmem>>, vector<1x1x196x25xf32>
    %25 = vector.shape_cast %24 : vector<1x1x196x25xf32> to vector<196x25xf32>
    %cst_21 = arith.constant dense<0.000000e+00> : vector<196x16xf32>
    %26 = tpu.matmul %25, %0, %cst_21 {dimension_numbers = #tpu.dot_dimension_numbers<[1], [0], [0], [1], [0, 0, 1, 1], [], []>} : vector<196x25xf32>, vector<25x16xf32>, vector<196x16xf32> -> vector<196x16xf32>
    %27 = vector.broadcast %1 : vector<1x16xf32> to vector<196x16xf32>
    %28 = arith.addf %26, %27 : vector<196x16xf32>
    %cst_22 = arith.constant 0.000000e+00 : f32
    %29 = vector.broadcast %cst_22 : f32 to vector<196x16xf32>
    %30 = arith.maximumf %28, %29 : vector<196x16xf32>
    %31 = arith.maximumf %23, %30 : vector<196x16xf32>
    %32 = arith.maximumf %16, %31 : vector<196x16xf32>
    %c0_23 = arith.constant 0 : index
    %c0_24 = arith.constant 0 : index
    %33 = vector.load %arg4[%c0_23, %c0_24] : memref<1x16xf32, #tpu.memory_space<vmem>>, vector<1x16xf32>
    %34 = vector.broadcast %33 : vector<1x16xf32> to vector<196x16xf32>
    %35 = arith.mulf %32, %34 : vector<196x16xf32>
    %c0_25 = arith.constant 0 : index
    %c0_26 = arith.constant 0 : index
    %36 = vector.load %arg5[%c0_25, %c0_26] : memref<1x16xf32, #tpu.memory_space<vmem>>, vector<1x16xf32>
    %37 = vector.broadcast %36 : vector<1x16xf32> to vector<196x16xf32>
    %38 = arith.addf %35, %37 : vector<196x16xf32>
    %c0_27 = arith.constant 0 : index
    %c0_28 = arith.constant 0 : index
    %c0_29 = arith.constant 0 : index
    %39 = vector.load %arg6[%c0_27, %c0_28, %c0_29] : memref<1x196x16xf32, #tpu.memory_space<vmem>>, vector<1x196x16xf32>
    %40 = vector.shape_cast %39 : vector<1x196x16xf32> to vector<196x16xf32>
    %41 = vector.shape_cast %38 : vector<196x16xf32> to vector<1x196x16xf32>
    tpu.vector_store %arg6[%c0_27, %c0_28, %c0_29], %41 {strides = array<i32>} : memref<1x196x16xf32, #tpu.memory_space<vmem>>, vector<1x196x16xf32>,
    return
  }
  func.func @transform_0(%arg0: i32) -> (i32, i32, i32, i32) {
    %c0_i32 = arith.constant 0 : i32
    %c0_i32_0 = arith.constant 0 : i32
    %c0_i32_1 = arith.constant 0 : i32
    %c0_i32_2 = arith.constant 0 : i32
    return %arg0, %c0_i32, %c0_i32_0, %c0_i32_1 : i32, i32, i32, i32
  }
  func.func @transform_1(%arg0: i32) -> (i32, i32) {
    %c0_i32 = arith.constant 0 : i32
    %c0_i32_0 = arith.constant 0 : i32
    %c0_i32_1 = arith.constant 0 : i32
    return %c0_i32, %c0_i32_0 : i32, i32
  }
  func.func @transform_2(%arg0: i32) -> (i32, i32) {
    %c0_i32 = arith.constant 0 : i32
    %c0_i32_0 = arith.constant 0 : i32
    %c0_i32_1 = arith.constant 0 : i32
    return %c0_i32, %c0_i32_0 : i32, i32
  }
  func.func @transform_3(%arg0: i32) -> (i32, i32) {
    %c0_i32 = arith.constant 0 : i32
    %c0_i32_0 = arith.constant 0 : i32
    %c0_i32_1 = arith.constant 0 : i32
    return %c0_i32, %c0_i32_0 : i32, i32
  }
  func.func @transform_4(%arg0: i32) -> (i32, i32) {
    %c0_i32 = arith.constant 0 : i32
    %c0_i32_0 = arith.constant 0 : i32
    %c0_i32_1 = arith.constant 0 : i32
    return %c0_i32, %c0_i32_0 : i32, i32
  }
  func.func @transform_5(%arg0: i32) -> (i32, i32, i32) {
    %c0_i32 = arith.constant 0 : i32
    %c0_i32_0 = arith.constant 0 : i32
    %c0_i32_1 = arith.constant 0 : i32
    return %arg0, %c0_i32, %c0_i32_0 : i32, i32, i32
  }
}

module attributes {stable_mosaic.version = 11 : i64} {
  func.func @_conv_pool_bn_kernel(%arg0: i32, %arg1: memref<1x4x64x64xf32, #tpu.memory_space<vmem>>, %arg2: memref<64x32xf32, #tpu.memory_space<vmem>>, %arg3: memref<1x32xf32, #tpu.memory_space<vmem>>, %arg4: memref<1x32xf32, #tpu.memory_space<vmem>>, %arg5: memref<1x32xf32, #tpu.memory_space<vmem>>, %arg6: memref<1x64x32xf32, #tpu.memory_space<vmem>>) attributes {dimension_semantics = [#tpu.dimension_semantics<parallel>], iteration_bounds = array<i64: 2>, scalar_prefetch = 0 : i64, scratch_operands = 0 : i64, tpu.core_type = #tpu.core_type<tc>, window_params = [{transform_indices = @transform_0, window_bounds = array<i64: 1, 4, 64, 64>}, {pipeline_mode = #tpu.pipeline_mode<synchronous>, transform_indices = @transform_1, window_bounds = array<i64: 64, 32>}, {pipeline_mode = #tpu.pipeline_mode<synchronous>, transform_indices = @transform_2, window_bounds = array<i64: 1, 32>}, {pipeline_mode = #tpu.pipeline_mode<synchronous>, transform_indices = @transform_3, window_bounds = array<i64: 1, 32>}, {pipeline_mode = #tpu.pipeline_mode<synchronous>, transform_indices = @transform_4, window_bounds = array<i64: 1, 32>}, {transform_indices = @transform_5, window_bounds = array<i64: 1, 64, 32>}]} {
    %c0 = arith.constant 0 : index
    %c0_0 = arith.constant 0 : index
    %0 = vector.load %arg2[%c0, %c0_0] : memref<64x32xf32, #tpu.memory_space<vmem>>, vector<64x32xf32>
    %c0_1 = arith.constant 0 : index
    %c0_2 = arith.constant 0 : index
    %1 = vector.load %arg3[%c0_1, %c0_2] : memref<1x32xf32, #tpu.memory_space<vmem>>, vector<1x32xf32>
    %c0_3 = arith.constant 0 : index
    %c0_4 = arith.constant 0 : index
    %c0_5 = arith.constant 0 : index
    %c0_6 = arith.constant 0 : index
    %2 = vector.load %arg1[%c0_3, %c0_4, %c0_5, %c0_6] : memref<1x4x64x64xf32, #tpu.memory_space<vmem>>, vector<1x1x64x64xf32>
    %3 = vector.shape_cast %2 : vector<1x1x64x64xf32> to vector<64x64xf32>
    %cst = arith.constant dense<0.000000e+00> : vector<64x32xf32>
    %4 = tpu.matmul %3, %0, %cst {dimension_numbers = #tpu.dot_dimension_numbers<[1], [0], [0], [1], [0, 0, 1, 1], [], []>} : vector<64x64xf32>, vector<64x32xf32>, vector<64x32xf32> -> vector<64x32xf32>
    %5 = vector.broadcast %1 : vector<1x32xf32> to vector<64x32xf32>
    %6 = arith.addf %4, %5 : vector<64x32xf32>
    %cst_7 = arith.constant 0.000000e+00 : f32
    %7 = vector.broadcast %cst_7 : f32 to vector<64x32xf32>
    %8 = arith.maximumf %6, %7 : vector<64x32xf32>
    %c0_8 = arith.constant 0 : index
    %c1 = arith.constant 1 : index
    %c0_9 = arith.constant 0 : index
    %c0_10 = arith.constant 0 : index
    %9 = vector.load %arg1[%c0_8, %c1, %c0_9, %c0_10] : memref<1x4x64x64xf32, #tpu.memory_space<vmem>>, vector<1x1x64x64xf32>
    %10 = vector.shape_cast %9 : vector<1x1x64x64xf32> to vector<64x64xf32>
    %cst_11 = arith.constant dense<0.000000e+00> : vector<64x32xf32>
    %11 = tpu.matmul %10, %0, %cst_11 {dimension_numbers = #tpu.dot_dimension_numbers<[1], [0], [0], [1], [0, 0, 1, 1], [], []>} : vector<64x64xf32>, vector<64x32xf32>, vector<64x32xf32> -> vector<64x32xf32>
    %12 = vector.broadcast %1 : vector<1x32xf32> to vector<64x32xf32>
    %13 = arith.addf %11, %12 : vector<64x32xf32>
    %cst_12 = arith.constant 0.000000e+00 : f32
    %14 = vector.broadcast %cst_12 : f32 to vector<64x32xf32>
    %15 = arith.maximumf %13, %14 : vector<64x32xf32>
    %16 = arith.maximumf %8, %15 : vector<64x32xf32>
    %c0_13 = arith.constant 0 : index
    %c2 = arith.constant 2 : index
    %c0_14 = arith.constant 0 : index
    %c0_15 = arith.constant 0 : index
    %17 = vector.load %arg1[%c0_13, %c2, %c0_14, %c0_15] : memref<1x4x64x64xf32, #tpu.memory_space<vmem>>, vector<1x1x64x64xf32>
    %18 = vector.shape_cast %17 : vector<1x1x64x64xf32> to vector<64x64xf32>
    %cst_16 = arith.constant dense<0.000000e+00> : vector<64x32xf32>
    %19 = tpu.matmul %18, %0, %cst_16 {dimension_numbers = #tpu.dot_dimension_numbers<[1], [0], [0], [1], [0, 0, 1, 1], [], []>} : vector<64x64xf32>, vector<64x32xf32>, vector<64x32xf32> -> vector<64x32xf32>
    %20 = vector.broadcast %1 : vector<1x32xf32> to vector<64x32xf32>
    %21 = arith.addf %19, %20 : vector<64x32xf32>
    %cst_17 = arith.constant 0.000000e+00 : f32
    %22 = vector.broadcast %cst_17 : f32 to vector<64x32xf32>
    %23 = arith.maximumf %21, %22 : vector<64x32xf32>
    %c0_18 = arith.constant 0 : index
    %c3 = arith.constant 3 : index
    %c0_19 = arith.constant 0 : index
    %c0_20 = arith.constant 0 : index
    %24 = vector.load %arg1[%c0_18, %c3, %c0_19, %c0_20] : memref<1x4x64x64xf32, #tpu.memory_space<vmem>>, vector<1x1x64x64xf32>
    %25 = vector.shape_cast %24 : vector<1x1x64x64xf32> to vector<64x64xf32>
    %cst_21 = arith.constant dense<0.000000e+00> : vector<64x32xf32>
    %26 = tpu.matmul %25, %0, %cst_21 {dimension_numbers = #tpu.dot_dimension_numbers<[1], [0], [0], [1], [0, 0, 1, 1], [], []>} : vector<64x64xf32>, vector<64x32xf32>, vector<64x32xf32> -> vector<64x32xf32>
    %27 = vector.broadcast %1 : vector<1x32xf32> to vector<64x32xf32>
    %28 = arith.addf %26, %27 : vector<64x32xf32>
    %cst_22 = arith.constant 0.000000e+00 : f32
    %29 = vector.broadcast %cst_22 : f32 to vector<64x32xf32>
    %30 = arith.maximumf %28, %29 : vector<64x32xf32>
    %31 = arith.maximumf %23, %30 : vector<64x32xf32>
    %32 = arith.maximumf %16, %31 : vector<64x32xf32>
    %c0_23 = arith.constant 0 : index
    %c0_24 = arith.constant 0 : index
    %33 = vector.load %arg4[%c0_23, %c0_24] : memref<1x32xf32, #tpu.memory_space<vmem>>, vector<1x32xf32>
    %34 = vector.broadcast %33 : vector<1x32xf32> to vector<64x32xf32>
    %35 = arith.mulf %32, %34 : vector<64x32xf32>
    %c0_25 = arith.constant 0 : index
    %c0_26 = arith.constant 0 : index
    %36 = vector.load %arg5[%c0_25, %c0_26] : memref<1x32xf32, #tpu.memory_space<vmem>>, vector<1x32xf32>
    %37 = vector.broadcast %36 : vector<1x32xf32> to vector<64x32xf32>
    %38 = arith.addf %35, %37 : vector<64x32xf32>
    %c0_27 = arith.constant 0 : index
    %c0_28 = arith.constant 0 : index
    %c0_29 = arith.constant 0 : index
    %39 = vector.load %arg6[%c0_27, %c0_28, %c0_29] : memref<1x64x32xf32, #tpu.memory_space<vmem>>, vector<1x64x32xf32>
    %40 = vector.shape_cast %39 : vector<1x64x32xf32> to vector<64x32xf32>
    %41 = vector.shape_cast %38 : vector<64x32xf32> to vector<1x64x32xf32>
    tpu.vector_store %arg6[%c0_27, %c0_28, %c0_29], %41 {strides = array<i32>} : memref<1x64x32xf32, #tpu.memory_space<vmem>>, vector<1x64x32xf32>,
    return
  }
  func.func @transform_0(%arg0: i32) -> (i32, i32, i32, i32) {
    %c0_i32 = arith.constant 0 : i32
    %c0_i32_0 = arith.constant 0 : i32
    %c0_i32_1 = arith.constant 0 : i32
    %c0_i32_2 = arith.constant 0 : i32
    return %arg0, %c0_i32, %c0_i32_0, %c0_i32_1 : i32, i32, i32, i32
  }
  func.func @transform_1(%arg0: i32) -> (i32, i32) {
    %c0_i32 = arith.constant 0 : i32
    %c0_i32_0 = arith.constant 0 : i32
    %c0_i32_1 = arith.constant 0 : i32
    return %c0_i32, %c0_i32_0 : i32, i32
  }
  func.func @transform_2(%arg0: i32) -> (i32, i32) {
    %c0_i32 = arith.constant 0 : i32
    %c0_i32_0 = arith.constant 0 : i32
    %c0_i32_1 = arith.constant 0 : i32
    return %c0_i32, %c0_i32_0 : i32, i32
  }
  func.func @transform_3(%arg0: i32) -> (i32, i32) {
    %c0_i32 = arith.constant 0 : i32
    %c0_i32_0 = arith.constant 0 : i32
    %c0_i32_1 = arith.constant 0 : i32
    return %c0_i32, %c0_i32_0 : i32, i32
  }
  func.func @transform_4(%arg0: i32) -> (i32, i32) {
    %c0_i32 = arith.constant 0 : i32
    %c0_i32_0 = arith.constant 0 : i32
    %c0_i32_1 = arith.constant 0 : i32
    return %c0_i32, %c0_i32_0 : i32, i32
  }
  func.func @transform_5(%arg0: i32) -> (i32, i32, i32) {
    %c0_i32 = arith.constant 0 : i32
    %c0_i32_0 = arith.constant 0 : i32
    %c0_i32_1 = arith.constant 0 : i32
    return %arg0, %c0_i32, %c0_i32_0 : i32, i32, i32
  }
}

module attributes {stable_mosaic.version = 11 : i64} {
  func.func @_mlp_kernel(%arg0: i32, %arg1: memref<8x2048xf32, #tpu.memory_space<vmem>>, %arg2: memref<2048x800xbf16, #tpu.memory_space<vmem>>, %arg3: memref<1x800xf32, #tpu.memory_space<vmem>>, %arg4: memref<800x400xbf16, #tpu.memory_space<vmem>>, %arg5: memref<1x400xf32, #tpu.memory_space<vmem>>, %arg6: memref<400x400xbf16, #tpu.memory_space<vmem>>, %arg7: memref<1x400xf32, #tpu.memory_space<vmem>>, %arg8: memref<400x200xbf16, #tpu.memory_space<vmem>>, %arg9: memref<1x200xf32, #tpu.memory_space<vmem>>, %arg10: memref<200x10xbf16, #tpu.memory_space<vmem>>, %arg11: memref<1x10xf32, #tpu.memory_space<vmem>>, %arg12: memref<8x10xf32, #tpu.memory_space<vmem>>) attributes {dimension_semantics = [#tpu.dimension_semantics<arbitrary>], iteration_bounds = array<i64: 1>, scalar_prefetch = 0 : i64, scratch_operands = 0 : i64, tpu.core_type = #tpu.core_type<tc>, window_params = [{pipeline_mode = #tpu.pipeline_mode<synchronous>, transform_indices = @transform_0, window_bounds = array<i64: 8, 2048>}, {pipeline_mode = #tpu.pipeline_mode<synchronous>, transform_indices = @transform_1, window_bounds = array<i64: 2048, 800>}, {pipeline_mode = #tpu.pipeline_mode<synchronous>, transform_indices = @transform_2, window_bounds = array<i64: 1, 800>}, {pipeline_mode = #tpu.pipeline_mode<synchronous>, transform_indices = @transform_3, window_bounds = array<i64: 800, 400>}, {pipeline_mode = #tpu.pipeline_mode<synchronous>, transform_indices = @transform_4, window_bounds = array<i64: 1, 400>}, {pipeline_mode = #tpu.pipeline_mode<synchronous>, transform_indices = @transform_5, window_bounds = array<i64: 400, 400>}, {pipeline_mode = #tpu.pipeline_mode<synchronous>, transform_indices = @transform_6, window_bounds = array<i64: 1, 400>}, {pipeline_mode = #tpu.pipeline_mode<synchronous>, transform_indices = @transform_7, window_bounds = array<i64: 400, 200>}, {pipeline_mode = #tpu.pipeline_mode<synchronous>, transform_indices = @transform_8, window_bounds = array<i64: 1, 200>}, {pipeline_mode = #tpu.pipeline_mode<synchronous>, transform_indices = @transform_9, window_bounds = array<i64: 200, 10>}, {pipeline_mode = #tpu.pipeline_mode<synchronous>, transform_indices = @transform_10, window_bounds = array<i64: 1, 10>}, {pipeline_mode = #tpu.pipeline_mode<synchronous>, transform_indices = @transform_11, window_bounds = array<i64: 8, 10>}]} {
    %c0 = arith.constant 0 : index
    %c0_0 = arith.constant 0 : index
    %0 = vector.load %arg1[%c0, %c0_0] : memref<8x2048xf32, #tpu.memory_space<vmem>>, vector<8x2048xf32>
    %1 = arith.truncf %0 : vector<8x2048xf32> to vector<8x2048xbf16>
    %c0_1 = arith.constant 0 : index
    %c0_2 = arith.constant 0 : index
    %2 = vector.load %arg2[%c0_1, %c0_2] : memref<2048x800xbf16, #tpu.memory_space<vmem>>, vector<2048x800xbf16>
    %cst = arith.constant dense<0.000000e+00> : vector<8x800xf32>
    %3 = tpu.matmul %1, %2, %cst {dimension_numbers = #tpu.dot_dimension_numbers<[1], [0], [0], [1], [0, 0, 1, 1], [], []>} : vector<8x2048xbf16>, vector<2048x800xbf16>, vector<8x800xf32> -> vector<8x800xf32>
    %c0_3 = arith.constant 0 : index
    %c0_4 = arith.constant 0 : index
    %4 = vector.load %arg3[%c0_3, %c0_4] : memref<1x800xf32, #tpu.memory_space<vmem>>, vector<1x800xf32>
    %5 = vector.broadcast %4 : vector<1x800xf32> to vector<8x800xf32>
    %6 = arith.addf %3, %5 : vector<8x800xf32>
    %cst_5 = arith.constant 0.000000e+00 : f32
    %7 = vector.broadcast %cst_5 : f32 to vector<8x800xf32>
    %8 = arith.maximumf %6, %7 : vector<8x800xf32>
    %9 = arith.truncf %8 : vector<8x800xf32> to vector<8x800xbf16>
    %c0_6 = arith.constant 0 : index
    %c0_7 = arith.constant 0 : index
    %10 = vector.load %arg4[%c0_6, %c0_7] : memref<800x400xbf16, #tpu.memory_space<vmem>>, vector<800x400xbf16>
    %cst_8 = arith.constant dense<0.000000e+00> : vector<8x400xf32>
    %11 = tpu.matmul %9, %10, %cst_8 {dimension_numbers = #tpu.dot_dimension_numbers<[1], [0], [0], [1], [0, 0, 1, 1], [], []>} : vector<8x800xbf16>, vector<800x400xbf16>, vector<8x400xf32> -> vector<8x400xf32>
    %c0_9 = arith.constant 0 : index
    %c0_10 = arith.constant 0 : index
    %12 = vector.load %arg5[%c0_9, %c0_10] : memref<1x400xf32, #tpu.memory_space<vmem>>, vector<1x400xf32>
    %13 = vector.broadcast %12 : vector<1x400xf32> to vector<8x400xf32>
    %14 = arith.addf %11, %13 : vector<8x400xf32>
    %cst_11 = arith.constant 0.000000e+00 : f32
    %15 = vector.broadcast %cst_11 : f32 to vector<8x400xf32>
    %16 = arith.maximumf %14, %15 : vector<8x400xf32>
    %17 = arith.truncf %16 : vector<8x400xf32> to vector<8x400xbf16>
    %c0_12 = arith.constant 0 : index
    %c0_13 = arith.constant 0 : index
    %18 = vector.load %arg6[%c0_12, %c0_13] : memref<400x400xbf16, #tpu.memory_space<vmem>>, vector<400x400xbf16>
    %cst_14 = arith.constant dense<0.000000e+00> : vector<8x400xf32>
    %19 = tpu.matmul %17, %18, %cst_14 {dimension_numbers = #tpu.dot_dimension_numbers<[1], [0], [0], [1], [0, 0, 1, 1], [], []>} : vector<8x400xbf16>, vector<400x400xbf16>, vector<8x400xf32> -> vector<8x400xf32>
    %c0_15 = arith.constant 0 : index
    %c0_16 = arith.constant 0 : index
    %20 = vector.load %arg7[%c0_15, %c0_16] : memref<1x400xf32, #tpu.memory_space<vmem>>, vector<1x400xf32>
    %21 = vector.broadcast %20 : vector<1x400xf32> to vector<8x400xf32>
    %22 = arith.addf %19, %21 : vector<8x400xf32>
    %cst_17 = arith.constant 0.000000e+00 : f32
    %23 = vector.broadcast %cst_17 : f32 to vector<8x400xf32>
    %24 = arith.maximumf %22, %23 : vector<8x400xf32>
    %25 = arith.truncf %24 : vector<8x400xf32> to vector<8x400xbf16>
    %c0_18 = arith.constant 0 : index
    %c0_19 = arith.constant 0 : index
    %26 = vector.load %arg8[%c0_18, %c0_19] : memref<400x200xbf16, #tpu.memory_space<vmem>>, vector<400x200xbf16>
    %cst_20 = arith.constant dense<0.000000e+00> : vector<8x200xf32>
    %27 = tpu.matmul %25, %26, %cst_20 {dimension_numbers = #tpu.dot_dimension_numbers<[1], [0], [0], [1], [0, 0, 1, 1], [], []>} : vector<8x400xbf16>, vector<400x200xbf16>, vector<8x200xf32> -> vector<8x200xf32>
    %c0_21 = arith.constant 0 : index
    %c0_22 = arith.constant 0 : index
    %28 = vector.load %arg9[%c0_21, %c0_22] : memref<1x200xf32, #tpu.memory_space<vmem>>, vector<1x200xf32>
    %29 = vector.broadcast %28 : vector<1x200xf32> to vector<8x200xf32>
    %30 = arith.addf %27, %29 : vector<8x200xf32>
    %cst_23 = arith.constant 0.000000e+00 : f32
    %31 = vector.broadcast %cst_23 : f32 to vector<8x200xf32>
    %32 = arith.maximumf %30, %31 : vector<8x200xf32>
    %33 = arith.truncf %32 : vector<8x200xf32> to vector<8x200xbf16>
    %c0_24 = arith.constant 0 : index
    %c0_25 = arith.constant 0 : index
    %34 = vector.load %arg10[%c0_24, %c0_25] : memref<200x10xbf16, #tpu.memory_space<vmem>>, vector<200x10xbf16>
    %cst_26 = arith.constant dense<0.000000e+00> : vector<8x10xf32>
    %35 = tpu.matmul %33, %34, %cst_26 {dimension_numbers = #tpu.dot_dimension_numbers<[1], [0], [0], [1], [0, 0, 1, 1], [], []>} : vector<8x200xbf16>, vector<200x10xbf16>, vector<8x10xf32> -> vector<8x10xf32>
    %c0_27 = arith.constant 0 : index
    %c0_28 = arith.constant 0 : index
    %36 = vector.load %arg11[%c0_27, %c0_28] : memref<1x10xf32, #tpu.memory_space<vmem>>, vector<1x10xf32>
    %37 = vector.broadcast %36 : vector<1x10xf32> to vector<8x10xf32>
    %38 = arith.addf %35, %37 : vector<8x10xf32>
    %c0_29 = arith.constant 0 : index
    %c0_30 = arith.constant 0 : index
    %39 = vector.load %arg12[%c0_29, %c0_30] : memref<8x10xf32, #tpu.memory_space<vmem>>, vector<8x10xf32>
    tpu.vector_store %arg12[%c0_29, %c0_30], %38 {strides = array<i32>} : memref<8x10xf32, #tpu.memory_space<vmem>>, vector<8x10xf32>,
    return
  }
  func.func @transform_0(%arg0: i32) -> (i32, i32) {
    %c0_i32 = arith.constant 0 : i32
    %c0_i32_0 = arith.constant 0 : i32
    %c0_i32_1 = arith.constant 0 : i32
    return %c0_i32, %c0_i32_0 : i32, i32
  }
  func.func @transform_1(%arg0: i32) -> (i32, i32) {
    %c0_i32 = arith.constant 0 : i32
    %c0_i32_0 = arith.constant 0 : i32
    %c0_i32_1 = arith.constant 0 : i32
    return %c0_i32, %c0_i32_0 : i32, i32
  }
  func.func @transform_2(%arg0: i32) -> (i32, i32) {
    %c0_i32 = arith.constant 0 : i32
    %c0_i32_0 = arith.constant 0 : i32
    %c0_i32_1 = arith.constant 0 : i32
    return %c0_i32, %c0_i32_0 : i32, i32
  }
  func.func @transform_3(%arg0: i32) -> (i32, i32) {
    %c0_i32 = arith.constant 0 : i32
    %c0_i32_0 = arith.constant 0 : i32
    %c0_i32_1 = arith.constant 0 : i32
    return %c0_i32, %c0_i32_0 : i32, i32
  }
  func.func @transform_4(%arg0: i32) -> (i32, i32) {
    %c0_i32 = arith.constant 0 : i32
    %c0_i32_0 = arith.constant 0 : i32
    %c0_i32_1 = arith.constant 0 : i32
    return %c0_i32, %c0_i32_0 : i32, i32
  }
  func.func @transform_5(%arg0: i32) -> (i32, i32) {
    %c0_i32 = arith.constant 0 : i32
    %c0_i32_0 = arith.constant 0 : i32
    %c0_i32_1 = arith.constant 0 : i32
    return %c0_i32, %c0_i32_0 : i32, i32
  }
  func.func @transform_6(%arg0: i32) -> (i32, i32) {
    %c0_i32 = arith.constant 0 : i32
    %c0_i32_0 = arith.constant 0 : i32
    %c0_i32_1 = arith.constant 0 : i32
    return %c0_i32, %c0_i32_0 : i32, i32
  }
  func.func @transform_7(%arg0: i32) -> (i32, i32) {
    %c0_i32 = arith.constant 0 : i32
    %c0_i32_0 = arith.constant 0 : i32
    %c0_i32_1 = arith.constant 0 : i32
    return %c0_i32, %c0_i32_0 : i32, i32
  }
  func.func @transform_8(%arg0: i32) -> (i32, i32) {
    %c0_i32 = arith.constant 0 : i32
    %c0_i32_0 = arith.constant 0 : i32
    %c0_i32_1 = arith.constant 0 : i32
    return %c0_i32, %c0_i32_0 : i32, i32
  }
  func.func @transform_9(%arg0: i32) -> (i32, i32) {
    %c0_i32 = arith.constant 0 : i32
    %c0_i32_0 = arith.constant 0 : i32
    %c0_i32_1 = arith.constant 0 : i32
    return %c0_i32, %c0_i32_0 : i32, i32
  }
  func.func @transform_10(%arg0: i32) -> (i32, i32) {
    %c0_i32 = arith.constant 0 : i32
    %c0_i32_0 = arith.constant 0 : i32
    %c0_i32_1 = arith.constant 0 : i32
    return %c0_i32, %c0_i32_0 : i32, i32
  }
  func.func @transform_11(%arg0: i32) -> (i32, i32) {
    %c0_i32 = arith.constant 0 : i32
    %c0_i32_0 = arith.constant 0 : i32
    %c0_i32_1 = arith.constant 0 : i32
    return %c0_i32, %c0_i32_0 : i32, i32
  }
}

</mosaic_0001>

<bundles_post_ra>
// kernel: forward.3
= control target key start
LH: loop header
LB: loop body
LE: loop exit
PB: predicated region body
PF: predicated region fallthrough
CT: control target
= control target key end

     0   :  { %s1564_s18 = smov 0   ;;  %s2016_s0 = inlined_call_operand.vmem [shape: f32[2,4,196,25], index: 0, kind: input, shape index: {}]   ;;  %s2017_s1 = inlined_call_operand.vmem [shape: f32[25,16], index: 1, kind: input, shape index: {}]   ;;  %s2018_s2 = inlined_call_operand.vmem [shape: f32[1,16], index: 2, kind: input, shape index: {}]   ;;  %s2019_s3 = inlined_call_operand.vmem [shape: f32[1,16], index: 3, kind: input, shape index: {}]   ;;  %s2020_s4 = inlined_call_operand.vmem [shape: f32[1,16], index: 4, kind: input, shape index: {}]   ;;  %s2021_s5 = inlined_call_operand.vmem [shape: f32[2,196,16], index: 5, kind: output, shape index: {}]  }
   0x1 LB: > { %s1324_s19 = sadd.s32 4294967295, %s1532_s18   ;;  %p1328_p0 = scmp.ge.s32.totalorder %s1532_s18, 1  ;;  %s1532_s18 = sphi %s1564_s18, %s15_s18  }
   0x2   : > { %p187_p1 = scmp.lt.s32.totalorder %s1532_s18, 3 }
   0x4   : > { %p188_p2 = pnand %p1328_p0, %p187_p1 }
   0x5   : > { %p215_p3 = scmp.lt.s32.totalorder (!%p188_p2), %s1324_s19, 1 }
   0x6   : > { %191 = sbr.rel (%p188_p2) target bundleno = 356 (0x164), region = 40 }
   0xb   : > { %v228_v0 = vld [vmem:[%s2017_s1 + $0x18] sm:$0x1]  ;;  %vm334_vm0 = vcmask 1040384   ;;  %v227_v1 = vld [vmem:[%s2017_s1 + $0x10] sm:$0xff]  ;;  %v226_v2 = vld [vmem:[%s2017_s1 + $0x8] sm:$0xff]  ;;  %s2023_s19 = smov (!%p215_p3, %s1324_s19), 1 }
   0xc   : > { %1433 = vmatpush.msk.msra.mxu2 %vm334_vm0, %v228_v0  ;;  %1484 = vmatpush.msk.msra.mxu3 %vm334_vm0, %v228_v0  ;;  %v225_v3 = vld [vmem:[%s2017_s1] sm:$0xff]  ;;  %s1512_s28 = smul.u32 800, %s2023_s19  ;;  %vm258_vm1 = vcmask 203776   ;;  %vm1242_vm2 = vcmask 130048   ;;  %vm1267_vm3 = vcmask 125952  }
   0xd   : > { %1331 = vmatpush.msk.msra.mxu0 %vm334_vm0, %v228_v0  ;;  %1382 = vmatpush.msk.msra.mxu1 %vm334_vm0, %v228_v0  ;;  %s1513_s11 = smul.u32 200, %s2023_s19 }
   0xe   : > { %812 = vmatpush.msra.mxu2 %v227_v1  ;;  %1030 = vmatpush.msra.mxu3 %v227_v1  ;;  %s1590_s6 = scalar_lea.vmem %s2016_s0, %s1512_s28 }
   0xf   : > { %351 = vmatpush.msra.mxu0 %v227_v1  ;;  %569 = vmatpush.msra.mxu1 %v227_v1  ;;  %v1408_v4 = vld [vmem:[%s1590_s6 + $0x190] sm:$0xff]  ;;  %v1459_v5 = vld [vmem:[%s1590_s6 + $0x258] sm:$0xff]  ;;  %v230_v6 = vld [vmem:[%s1590_s6] sm:$0xff]  ;;  %s1764_s16 = scalar_lea.vmem %s2021_s5, %s1513_s11 }
  0x10   : > { %813 = vmatpush.msra.mxu2 %v226_v2  ;;  %1031 = vmatpush.msra.mxu3 %v226_v2  ;;  %v1357_v7 = vld [vmem:[%s1590_s6 + $0xc8] sm:$0xff]  ;;  %v1409_v8 = vld [vmem:[%s1590_s6 + $0x198] sm:$0xff]  ;;  %v1460_v9 = vld [vmem:[%s1590_s6 + $0x260] sm:$0xff] }
  0x11   : > { %352 = vmatpush.msra.mxu0 %v226_v2  ;;  %570 = vmatpush.msra.mxu1 %v226_v2  ;;  %v231_v10 = vld [vmem:[%s1590_s6 + $0x8] sm:$0xff]  ;;  %v1358_v11 = vld [vmem:[%s1590_s6 + $0xd0] sm:$0xff]  ;;  %v1410_v12 = vld [vmem:[%s1590_s6 + $0x1a0] sm:$0xff] }
  0x12   : > { %814 = vmatpush.msra.mxu2 %v225_v3  ;;  %1032 = vmatpush.msra.mxu3 %v225_v3  ;;  %v1461_v13 = vld [vmem:[%s1590_s6 + $0x268] sm:$0xff]  ;;  %v232_v14 = vld [vmem:[%s1590_s6 + $0x10] sm:$0xff]  ;;  %v1359_v15 = vld [vmem:[%s1590_s6 + $0xd8] sm:$0xff] }
  0x13   : > { %1434 = vmatmul.msk.f32.vlgmr.msra.gmra.mxu2 %vm258_vm1, %v1408_v4  ;;  %1485 = vmatmul.msk.f32.vlgmr.msra.gmra.mxu3 %vm258_vm1, %v1459_v5  ;;  %v1411_v16 = vld [vmem:[%s1590_s6 + $0x1a8] sm:$0xff]  ;;  %v1462_v17 = vld [vmem:[%s1590_s6 + $0x270] sm:$0xff]  ;;  %v233_v18 = vld [vmem:[%s1590_s6 + $0x18] sm:$0xff] }
  0x14   : > { %353 = vmatpush.msra.mxu0 %v225_v3  ;;  %571 = vmatpush.msra.mxu1 %v225_v3  ;;  %v1360_v19 = vld [vmem:[%s1590_s6 + $0xe0] sm:$0xff]  ;;  %v1412_v20 = vld [vmem:[%s1590_s6 + $0x1b0] sm:$0xff]  ;;  %v1463_v21 = vld [vmem:[%s1590_s6 + $0x278] sm:$0xff] }
  0x15   : > { %1332 = vmatmul.msk.f32.vlgmr.msra.gmra.mxu0 %vm258_vm1, %v230_v6  ;;  %1383 = vmatmul.msk.f32.vlgmr.msra.gmra.mxu1 %vm258_vm1, %v1357_v7  ;;  %v234_v22 = vld [vmem:[%s1590_s6 + $0x20] sm:$0xff]  ;;  %v1361_v23 = vld [vmem:[%s1590_s6 + $0xe8] sm:$0xff]  ;;  %v1413_v24 = vld [vmem:[%s1590_s6 + $0x1b8] sm:$0xff] }
  0x16   : > { %v1464_v25 = vld [vmem:[%s1590_s6 + $0x280] sm:$0xff]  ;;  %v235_v26 = vld [vmem:[%s1590_s6 + $0x28] sm:$0xff]  ;;  %v1362_v27 = vld [vmem:[%s1590_s6 + $0xf0] sm:$0xff] }
  0x17   : > { %v1414_v28 = vld [vmem:[%s1590_s6 + $0x1c0] sm:$0xff]  ;;  %v1465_v29 = vld [vmem:[%s1590_s6 + $0x288] sm:$0xff]  ;;  %v236_v30 = vld [vmem:[%s1590_s6 + $0x30] sm:$0xff] }
  0x18   : > { %v1363_v31 = vld [vmem:[%s1590_s6 + $0xf8] sm:$0xff]  ;;  %v1415_v32 = vld [vmem:[%s1590_s6 + $0x1c8] sm:$0xff]  ;;  %v1466_v33 = vld [vmem:[%s1590_s6 + $0x290] sm:$0xff] }
  0x19   : > { %v237_v34 = vld [vmem:[%s1590_s6 + $0x38] sm:$0xff]  ;;  %v1364_v35 = vld [vmem:[%s1590_s6 + $0x100] sm:$0xff]  ;;  %v1416_v36 = vld [vmem:[%s1590_s6 + $0x1d0] sm:$0xff] }
  0x1a   : > { %v1467_v37 = vld [vmem:[%s1590_s6 + $0x298] sm:$0xff]  ;;  %v238_v38 = vld [vmem:[%s1590_s6 + $0x40] sm:$0xff]  ;;  %v1365_v39 = vld [vmem:[%s1590_s6 + $0x108] sm:$0xff] }
  0x1b   : > { %1435 = vmatmul.msk.f32.gmra.mxu2 %vm258_vm1, %v1409_v8  ;;  %1486 = vmatmul.msk.f32.gmra.mxu3 %vm258_vm1, %v1460_v9  ;;  %v1417_v40 = vld [vmem:[%s1590_s6 + $0x1d8] sm:$0xff]  ;;  %v1468_v41 = vld [vmem:[%s1590_s6 + $0x2a0] sm:$0xff]  ;;  %v239_v42 = vld [vmem:[%s1590_s6 + $0x48] sm:$0xff] }
  0x1c   : > { %v1366_v43 = vld [vmem:[%s1590_s6 + $0x110] sm:$0xff]  ;;  %v1418_v44 = vld [vmem:[%s1590_s6 + $0x1e0] sm:$0xff]  ;;  %v1469_v45 = vld [vmem:[%s1590_s6 + $0x2a8] sm:$0xff] }
  0x1d   : > { %1333 = vmatmul.msk.f32.gmra.mxu0 %vm258_vm1, %v231_v10  ;;  %1384 = vmatmul.msk.f32.gmra.mxu1 %vm258_vm1, %v1358_v11  ;;  %v240_v46 = vld [vmem:[%s1590_s6 + $0x50] sm:$0xff]  ;;  %v1367_v47 = vld [vmem:[%s1590_s6 + $0x118] sm:$0xff]  ;;  %v1419_v48 = vld [vmem:[%s1590_s6 + $0x1e8] sm:$0xff] }
  0x1e   : > { %v1470_v49 = vld [vmem:[%s1590_s6 + $0x2b0] sm:$0xff]  ;;  %v241_v50 = vld [vmem:[%s1590_s6 + $0x58] sm:$0xff]  ;;  %v1368_v51 = vld [vmem:[%s1590_s6 + $0x120] sm:$0xff] }
  0x1f   : > { %v1420_v52 = vld [vmem:[%s1590_s6 + $0x1f0] sm:$0xff]  ;;  %v1471_v53 = vld [vmem:[%s1590_s6 + $0x2b8] sm:$0xff]  ;;  %v242_v54 = vld [vmem:[%s1590_s6 + $0x60] sm:$0xff] }
  0x20   : > { %v1369_v55 = vld [vmem:[%s1590_s6 + $0x128] sm:$0xff]  ;;  %v1421_v56 = vld [vmem:[%s1590_s6 + $0x1f8] sm:$0xff]  ;;  %v1472_v57 = vld [vmem:[%s1590_s6 + $0x2c0] sm:$0xff] }
  0x21   : > { %v243_v58 = vld [vmem:[%s1590_s6 + $0x68] sm:$0xff]  ;;  %v1370_v59 = vld [vmem:[%s1590_s6 + $0x130] sm:$0xff]  ;;  %v1422_v60 = vld [vmem:[%s1590_s6 + $0x200] sm:$0xff] }
  0x22   : > { %v1473_v61 = vld [vmem:[%s1590_s6 + $0x2c8] sm:$0xff]  ;;  %v244_v62 = vld [vmem:[%s1590_s6 + $0x70] sm:$0xff]  ;;  %v1371_v63 = vld [vmem:[%s1590_s6 + $0x138] sm:$0xff] }
  0x23   : > { %1436 = vmatmul.msk.f32.gmra.mxu2 %vm258_vm1, %v1410_v12  ;;  %1487 = vmatmul.msk.f32.gmra.mxu3 %vm258_vm1, %v1461_v13  ;;  %v1423_v0 = vld [vmem:[%s1590_s6 + $0x208] sm:$0xff]  ;;  %v1474_v1 = vld [vmem:[%s1590_s6 + $0x2d0] sm:$0xff]  ;;  %v245_v2 = vld [vmem:[%s1590_s6 + $0x78] sm:$0xff] }
  0x24   : > { %v1372_v3 = vld [vmem:[%s1590_s6 + $0x140] sm:$0xff]  ;;  %v1424_v5 = vld [vmem:[%s1590_s6 + $0x210] sm:$0xff]  ;;  %v1475_v6 = vld [vmem:[%s1590_s6 + $0x2d8] sm:$0xff] }
  0x25   : > { %1334 = vmatmul.msk.f32.gmra.mxu0 %vm258_vm1, %v232_v14  ;;  %1385 = vmatmul.msk.f32.gmra.mxu1 %vm258_vm1, %v1359_v15  ;;  %v1723_v4 = vld [vmem:[%s2018_s2] ss:$0 sm:$0xff]  ;;  %v1373_v10 = vld [vmem:[%s1590_s6 + $0x148] sm:$0xff] }
  0x26   : > { %v246_v9 = vld [vmem:[%s1590_s6 + $0x80] sm:$0xff] }
  0x2b   : > { %1437 = vmatmul.msk.f32.gmra.mxu2 %vm258_vm1, %v1411_v16  ;;  %1488 = vmatmul.msk.f32.gmra.mxu3 %vm258_vm1, %v1462_v17 }
  0x2d   : > { %1335 = vmatmul.msk.f32.gmra.mxu0 %vm258_vm1, %v233_v18  ;;  %1386 = vmatmul.msk.f32.gmra.mxu1 %vm258_vm1, %v1360_v19  ;;  %v1425_v19 = vld [vmem:[%s1590_s6 + $0x218] sm:$0xff] }
  0x33   : > { %1438 = vmatmul.msk.f32.gmra.mxu2 %vm258_vm1, %v1412_v20  ;;  %1489 = vmatmul.msk.f32.gmra.mxu3 %vm258_vm1, %v1463_v21  ;;  %v1476_v20 = vld [vmem:[%s1590_s6 + $0x2e0] sm:$0xff] }
  0x35   : > { %1336 = vmatmul.msk.f32.gmra.mxu0 %vm258_vm1, %v234_v22  ;;  %1387 = vmatmul.msk.f32.gmra.mxu1 %vm258_vm1, %v1361_v23 }
  0x3b   : > { %1439 = vmatmul.msk.f32.gmra.mxu2 %vm258_vm1, %v1413_v24  ;;  %1490 = vmatmul.msk.f32.gmra.mxu3 %vm258_vm1, %v1464_v25 }
  0x3d   : > { %1337 = vmatmul.msk.f32.gmra.mxu0 %vm258_vm1, %v235_v26  ;;  %1388 = vmatmul.msk.f32.gmra.mxu1 %vm258_vm1, %v1362_v27  ;;  %v247_v26 = vld [vmem:[%s1590_s6 + $0x88] sm:$0xff]  ;;  %v1374_v27 = vld [vmem:[%s1590_s6 + $0x150] sm:$0xff] }
  0x43   : > { %1440 = vmatmul.msk.f32.gmra.mxu2 %vm258_vm1, %v1414_v28  ;;  %1491 = vmatmul.msk.f32.gmra.mxu3 %vm258_vm1, %v1465_v29  ;;  %v1744_v29 = vld [vmem:[%s2019_s3] ss:$0 sm:$0xff] }
  0x45   : > { %1338 = vmatmul.msk.f32.gmra.mxu0 %vm258_vm1, %v236_v30  ;;  %1389 = vmatmul.msk.f32.gmra.mxu1 %vm258_vm1, %v1363_v31 }
  0x4b   : > { %1441 = vmatmul.msk.f32.gmra.mxu2 %vm258_vm1, %v1415_v32  ;;  %1492 = vmatmul.msk.f32.gmra.mxu3 %vm258_vm1, %v1466_v33  ;;  %v1754_v33 = vld [vmem:[%s2020_s4] ss:$0 sm:$0xff] }
  0x4d   : > { %1339 = vmatmul.msk.f32.gmra.mxu0 %vm258_vm1, %v237_v34  ;;  %1390 = vmatmul.msk.f32.gmra.mxu1 %vm258_vm1, %v1364_v35 }
  0x53   : > { %1442 = vmatmul.msk.f32.gmra.mxu2 %vm258_vm1, %v1416_v36  ;;  %1493 = vmatmul.msk.f32.gmra.mxu3 %vm258_vm1, %v1467_v37 }
  0x55   : > { %1340 = vmatmul.msk.f32.gmra.mxu0 %vm258_vm1, %v238_v38  ;;  %1391 = vmatmul.msk.f32.gmra.mxu1 %vm258_vm1, %v1365_v39 }
  0x5b   : > { %1443 = vmatmul.msk.f32.gmra.mxu2 %vm258_vm1, %v1417_v40  ;;  %1494 = vmatmul.msk.f32.gmra.mxu3 %vm258_vm1, %v1468_v41  ;;  %v1426_v41 = vld [vmem:[%s1590_s6 + $0x220] sm:$0xff] }
  0x5d   : > { %1341 = vmatmul.msk.f32.gmra.mxu0 %vm258_vm1, %v239_v42  ;;  %1392 = vmatmul.msk.f32.gmra.mxu1 %vm258_vm1, %v1366_v43  ;;  %v1477_v42 = vld [vmem:[%s1590_s6 + $0x2e8] sm:$0xff] }
  0x63   : > { %1444 = vmatmul.msk.f32.gmra.mxu2 %vm258_vm1, %v1418_v44  ;;  %1495 = vmatmul.msk.f32.gmra.mxu3 %vm258_vm1, %v1469_v45 }
  0x65   : > { %1342 = vmatmul.msk.f32.gmra.mxu0 %vm258_vm1, %v240_v46  ;;  %1393 = vmatmul.msk.f32.gmra.mxu1 %vm258_vm1, %v1367_v47 }
  0x6b   : > { %1445 = vmatmul.msk.f32.gmra.mxu2 %vm258_vm1, %v1419_v48  ;;  %1496 = vmatmul.msk.f32.gmra.mxu3 %vm258_vm1, %v1470_v49  ;;  %v248_v49 = vld [vmem:[%s1590_s6 + $0x90] sm:$0xff] }
  0x6d   : > { %1343 = vmatmul.msk.f32.gmra.mxu0 %vm258_vm1, %v241_v50  ;;  %1394 = vmatmul.msk.f32.gmra.mxu1 %vm258_vm1, %v1368_v51  ;;  %v1375_v50 = vld [vmem:[%s1590_s6 + $0x158] sm:$0xff] }
  0x73   : > { %1446 = vmatmul.msk.f32.gmra.mxu2 %vm258_vm1, %v1420_v52  ;;  %1497 = vmatmul.msk.f32.gmra.mxu3 %vm258_vm1, %v1471_v53 }
  0x75   : > { %1344 = vmatmul.msk.f32.gmra.mxu0 %vm258_vm1, %v242_v54  ;;  %1395 = vmatmul.msk.f32.gmra.mxu1 %vm258_vm1, %v1369_v55 }
  0x7b   : > { %1447 = vmatmul.msk.f32.gmra.mxu2 %vm258_vm1, %v1421_v56  ;;  %1498 = vmatmul.msk.f32.gmra.mxu3 %vm258_vm1, %v1472_v57 }
  0x7d   : > { %1345 = vmatmul.msk.f32.gmra.mxu0 %vm258_vm1, %v243_v58  ;;  %1396 = vmatmul.msk.f32.gmra.mxu1 %vm258_vm1, %v1370_v59 }
  0x83   : > { %1448 = vmatmul.msk.f32.gmra.mxu2 %vm258_vm1, %v1422_v60  ;;  %1499 = vmatmul.msk.f32.gmra.mxu3 %vm258_vm1, %v1473_v61 }
  0x85   : > { %1346 = vmatmul.msk.f32.gmra.mxu0 %vm258_vm1, %v244_v62  ;;  %1397 = vmatmul.msk.f32.gmra.mxu1 %vm258_vm1, %v1371_v63  ;;  %v1427_v62 = vld [vmem:[%s1590_s6 + $0x228] sm:$0xff]  ;;  %v1478_v63 = vld [vmem:[%s1590_s6 + $0x2f0] sm:$0xff] }
  0x8b   : > { %1449 = vmatmul.msk.f32.gmra.mxu2 %vm258_vm1, %v1423_v0  ;;  %1500 = vmatmul.msk.f32.gmra.mxu3 %vm258_vm1, %v1474_v1 }
  0x8d   : > { %1347 = vmatmul.msk.f32.gmra.mxu0 %vm258_vm1, %v245_v2  ;;  %1398 = vmatmul.msk.f32.gmra.mxu1 %vm258_vm1, %v1372_v3 }
  0x92   : > { %v355_v7 = vpop.f32.mrf.mxu0  ;;  %v573_v8 = vpop.f32.mrf.mxu1 }
  0x93   : > { %1450 = vmatmul.msk.f32.gmra.mxu2 %vm258_vm1, %v1424_v5  ;;  %1501 = vmatmul.msk.f32.gmra.mxu3 %vm258_vm1, %v1475_v6  ;;  %v356_v11 = vadd.f32 %v1723_v4, %v355_v7  ;;  %v574_v12 = vadd.f32 %v1723_v4, %v573_v8  ;;  %v249_v7 = vld [vmem:[%s1590_s6 + $0x98] sm:$0xff]  ;;  %v1376_v8 = vld [vmem:[%s1590_s6 + $0x160] sm:$0xff] }
  0x95   : > { %v430_v13 = vmax.f32 %v356_v11, 0.0  ;;  %v648_v14 = vmax.f32 %v574_v12, 0.0  ;;  %1348 = vmatmul.msk.f32.gmra.mxu0 %vm258_vm1, %v246_v9  ;;  %1399 = vmatmul.msk.f32.gmra.mxu1 %vm258_vm1, %v1373_v10 }
  0x96   : > { %v816_v15 = vpop.f32.mrf.mxu2  ;;  %v1034_v16 = vpop.f32.mrf.mxu3 }
  0x97   : > { %v817_v17 = vadd.f32 %v1723_v4, %v816_v15  ;;  %v1035_v18 = vadd.f32 %v1723_v4, %v1034_v16  ;;  %v673_v21 = vmax.f32 %v430_v13, %v648_v14 }
  0x99   : > { %v891_v22 = vmax.f32 %v817_v17, 0.0  ;;  %v1109_v23 = vmax.f32 %v1035_v18, 0.0 }
  0x9a   : > { %v358_v24 = vpop.f32.mrf.mxu0  ;;  %v576_v25 = vpop.f32.mrf.mxu1 }
  0x9b   : > { %v1134_v28 = vmax.f32 %v891_v22, %v1109_v23  ;;  %1451 = vmatmul.msk.f32.gmra.mxu2 %vm258_vm1, %v1425_v19  ;;  %1502 = vmatmul.msk.f32.gmra.mxu3 %vm258_vm1, %v1476_v20  ;;  %v359_v30 = vadd.f32 %v1723_v4, %v358_v24  ;;  %v577_v31 = vadd.f32 %v1723_v4, %v576_v25  ;;  %v1428_v20 = vld [vmem:[%s1590_s6 + $0x230] sm:$0xff] }
  0x9d   : > { %v1159_v32 = vmax.f32 %v673_v21, %v1134_v28  ;;  %v431_v34 = vmax.f32 %v359_v30, 0.0  ;;  %v649_v35 = vmax.f32 %v577_v31, 0.0  ;;  %1349 = vmatmul.msk.f32.gmra.mxu0 %vm258_vm1, %v247_v26  ;;  %1400 = vmatmul.msk.f32.gmra.mxu1 %vm258_vm1, %v1374_v27  ;;  %v1479_v21 = vld [vmem:[%s1590_s6 + $0x2f8] sm:$0xff]  ;;  %v250_v28 = vld [vmem:[%s1590_s6 + $0xa0] sm:$0xff]  ;;  %v1377_v30 = vld [vmem:[%s1590_s6 + $0x168] sm:$0xff] }
  0x9e   : > { %v819_v36 = vpop.f32.mrf.mxu2  ;;  %v1037_v37 = vpop.f32.mrf.mxu3 }
  0x9f   : > { %v1188_v38 = vmul.f32 %v1744_v29, %v1159_v32  ;;  %v820_v39 = vadd.f32 %v1723_v4, %v819_v36  ;;  %v1038_v40 = vadd.f32 %v1723_v4, %v1037_v37  ;;  %v674_v44 = vmax.f32 %v431_v34, %v649_v35 }
  0xa1   : > { %v1217_v43 = vadd.f32 %v1754_v33, %v1188_v38  ;;  %v892_v45 = vmax.f32 %v820_v39, 0.0  ;;  %v1110_v46 = vmax.f32 %v1038_v40, 0.0 }
  0xa2   : > { %v361_v47 = vpop.f32.mrf.mxu0  ;;  %v579_v48 = vpop.f32.mrf.mxu1 }
  0xa3   : > { %1243 = vst.msk [vmem:[%s1764_s16] sm:$0xff] %vm1242_vm2, %v1217_v43  ;;  %v1135_v51 = vmax.f32 %v892_v45, %v1110_v46  ;;  %1452 = vmatmul.msk.f32.gmra.mxu2 %vm258_vm1, %v1426_v41  ;;  %1503 = vmatmul.msk.f32.gmra.mxu3 %vm258_vm1, %v1477_v42  ;;  %v362_v52 = vadd.f32 %v1723_v4, %v361_v47  ;;  %v1429_v43 = vld [vmem:[%s1590_s6 + $0x238] sm:$0xff] }
  0xa4   : > { %v580_v53 = vadd.f32 %v1723_v4, %v579_v48 }
  0xa5   : > { %v1160_v54 = vmax.f32 %v674_v44, %v1135_v51  ;;  %v432_v55 = vmax.f32 %v362_v52, 0.0  ;;  %1350 = vmatmul.msk.f32.gmra.mxu0 %vm258_vm1, %v248_v49  ;;  %1401 = vmatmul.msk.f32.gmra.mxu1 %vm258_vm1, %v1375_v50  ;;  %v1480_v44 = vld [vmem:[%s1590_s6 + $0x300] sm:$0xff]  ;;  %v251_v51 = vld [vmem:[%s1590_s6 + $0xa8] sm:$0xff]  ;;  %v1378_v52 = vld [vmem:[%s1590_s6 + $0x170] sm:$0xff] }
  0xa6   : > { %v650_v56 = vmax.f32 %v580_v53, 0.0  ;;  %v822_v57 = vpop.f32.mrf.mxu2  ;;  %v1040_v58 = vpop.f32.mrf.mxu3 }
  0xa7   : > { %v1189_v59 = vmul.f32 %v1744_v29, %v1160_v54  ;;  %v823_v60 = vadd.f32 %v1723_v4, %v822_v57  ;;  %v1041_v61 = vadd.f32 %v1723_v4, %v1040_v58 }
  0xa8   : > { %v675_v1 = vmax.f32 %v432_v55, %v650_v56 }
  0xa9   : > { %v1218_v0 = vadd.f32 %v1754_v33, %v1189_v59  ;;  %v893_v2 = vmax.f32 %v823_v60, 0.0  ;;  %v1111_v3 = vmax.f32 %v1041_v61, 0.0 }
  0xaa   : > { %v364_v5 = vpop.f32.mrf.mxu0  ;;  %v582_v6 = vpop.f32.mrf.mxu1 }
  0xab   : > { %1244 = vst.msk [vmem:[%s1764_s16 + $0x8] sm:$0xff] %vm1242_vm2, %v1218_v0  ;;  %v1136_v9 = vmax.f32 %v893_v2, %v1111_v3  ;;  %1453 = vmatmul.msk.f32.gmra.mxu2 %vm258_vm1, %v1427_v62  ;;  %1504 = vmatmul.msk.f32.gmra.mxu3 %vm258_vm1, %v1478_v63  ;;  %v365_v10 = vadd.f32 %v1723_v4, %v364_v5  ;;  %v1430_v0 = vld [vmem:[%s1590_s6 + $0x240] sm:$0xff] }
  0xac   : > { %v583_v11 = vadd.f32 %v1723_v4, %v582_v6 }
  0xad   : > { %v1161_v12 = vmax.f32 %v675_v1, %v1136_v9  ;;  %v433_v13 = vmax.f32 %v365_v10, 0.0  ;;  %1351 = vmatmul.msk.f32.gmra.mxu0 %vm258_vm1, %v249_v7  ;;  %1402 = vmatmul.msk.f32.gmra.mxu1 %vm258_vm1, %v1376_v8  ;;  %v1481_v1 = vld [vmem:[%s1590_s6 + $0x308] sm:$0xff]  ;;  %v252_v9 = vld [vmem:[%s1590_s6 + $0xb0] sm:$0xff]  ;;  %v1379_v10 = vld [vmem:[%s1590_s6 + $0x178] sm:$0xff] }
  0xae   : > { %v651_v14 = vmax.f32 %v583_v11, 0.0  ;;  %v825_v15 = vpop.f32.mrf.mxu2  ;;  %v1043_v16 = vpop.f32.mrf.mxu3 }
  0xaf   : > { %v1190_v17 = vmul.f32 %v1744_v29, %v1161_v12  ;;  %v826_v18 = vadd.f32 %v1723_v4, %v825_v15  ;;  %v1044_v19 = vadd.f32 %v1723_v4, %v1043_v16 }
  0xb0   : > { %v676_v23 = vmax.f32 %v433_v13, %v651_v14 }
  0xb1   : > { %v1219_v22 = vadd.f32 %v1754_v33, %v1190_v17  ;;  %v894_v24 = vmax.f32 %v826_v18, 0.0  ;;  %v1112_v25 = vmax.f32 %v1044_v19, 0.0 }
  0xb2   : > { %v367_v26 = vpop.f32.mrf.mxu0  ;;  %v585_v27 = vpop.f32.mrf.mxu1 }
  0xb3   : > { %1245 = vst.msk [vmem:[%s1764_s16 + $0x10] sm:$0xff] %vm1242_vm2, %v1219_v22  ;;  %v1137_v31 = vmax.f32 %v894_v24, %v1112_v25  ;;  %1454 = vmatmul.msk.f32.gmra.mxu2 %vm258_vm1, %v1428_v20  ;;  %1505 = vmatmul.msk.f32.gmra.mxu3 %vm258_vm1, %v1479_v21  ;;  %v368_v32 = vadd.f32 %v1723_v4, %v367_v26  ;;  %v1431_v22 = vld [vmem:[%s1590_s6 + $0x248] sm:$0xff] }
  0xb4   : > { %v586_v34 = vadd.f32 %v1723_v4, %v585_v27 }
  0xb5   : > { %v1162_v35 = vmax.f32 %v676_v23, %v1137_v31  ;;  %v434_v36 = vmax.f32 %v368_v32, 0.0  ;;  %1352 = vmatmul.msk.f32.gmra.mxu0 %vm258_vm1, %v250_v28  ;;  %1403 = vmatmul.msk.f32.gmra.mxu1 %vm258_vm1, %v1377_v30  ;;  %v1482_v23 = vld [vmem:[%s1590_s6 + $0x310] sm:$0xff]  ;;  %v253_v31 = vld [vmem:[%s1590_s6 + $0xb8] sm:$0xff]  ;;  %v1380_v32 = vld [vmem:[%s1590_s6 + $0x180] sm:$0xff] }
  0xb6   : > { %v652_v37 = vmax.f32 %v586_v34, 0.0  ;;  %v828_v38 = vpop.f32.mrf.mxu2  ;;  %v1046_v39 = vpop.f32.mrf.mxu3 }
  0xb7   : > { %v1191_v40 = vmul.f32 %v1744_v29, %v1162_v35  ;;  %v829_v41 = vadd.f32 %v1723_v4, %v828_v38  ;;  %v1047_v42 = vadd.f32 %v1723_v4, %v1046_v39 }
  0xb8   : > { %v677_v46 = vmax.f32 %v434_v36, %v652_v37 }
  0xb9   : > { %v1220_v45 = vadd.f32 %v1754_v33, %v1191_v40  ;;  %v895_v47 = vmax.f32 %v829_v41, 0.0  ;;  %v1113_v48 = vmax.f32 %v1047_v42, 0.0 }
  0xba   : > { %v370_v49 = vpop.f32.mrf.mxu0  ;;  %v588_v50 = vpop.f32.mrf.mxu1 }
  0xbb   : > { %1246 = vst.msk [vmem:[%s1764_s16 + $0x18] sm:$0xff] %vm1242_vm2, %v1220_v45  ;;  %v1138_v53 = vmax.f32 %v895_v47, %v1113_v48  ;;  %1455 = vmatmul.msk.f32.gmra.mxu2 %vm258_vm1, %v1429_v43  ;;  %1506 = vmatmul.msk.f32.gmra.mxu3 %vm258_vm1, %v1480_v44  ;;  %v371_v54 = vadd.f32 %v1723_v4, %v370_v49  ;;  %v1432_v45 = vld [vmem:[%s1590_s6 + $0x250] sm:$0xf] }
  0xbc   : > { %v589_v55 = vadd.f32 %v1723_v4, %v588_v50 }
  0xbd   : > { %v1163_v56 = vmax.f32 %v677_v46, %v1138_v53  ;;  %v435_v57 = vmax.f32 %v371_v54, 0.0  ;;  %1353 = vmatmul.msk.f32.gmra.mxu0 %vm258_vm1, %v251_v51  ;;  %1404 = vmatmul.msk.f32.gmra.mxu1 %vm258_vm1, %v1378_v52  ;;  %v1483_v46 = vld [vmem:[%s1590_s6 + $0x318] sm:$0xf]  ;;  %v254_v53 = vld [vmem:[%s1590_s6 + $0xc0] sm:$0xf] }
  0xbe   : > { %v653_v58 = vmax.f32 %v589_v55, 0.0  ;;  %v831_v59 = vpop.f32.mrf.mxu2  ;;  %v1049_v60 = vpop.f32.mrf.mxu3  ;;  %v1381_v54 = vld [vmem:[%s1590_s6 + $0x188] sm:$0xf] }
  0xbf   : > { %v1192_v61 = vmul.f32 %v1744_v29, %v1163_v56  ;;  %v832_v62 = vadd.f32 %v1723_v4, %v831_v59  ;;  %v1050_v63 = vadd.f32 %v1723_v4, %v1049_v60 }
  0xc0   : > { %v678_v3 = vmax.f32 %v435_v57, %v653_v58 }
  0xc1   : > { %v1221_v2 = vadd.f32 %v1754_v33, %v1192_v61  ;;  %v896_v5 = vmax.f32 %v832_v62, 0.0  ;;  %v1114_v6 = vmax.f32 %v1050_v63, 0.0 }
  0xc2   : > { %v373_v7 = vpop.f32.mrf.mxu0  ;;  %v591_v8 = vpop.f32.mrf.mxu1 }
  0xc3   : > { %1247 = vst.msk [vmem:[%s1764_s16 + $0x20] sm:$0xff] %vm1242_vm2, %v1221_v2  ;;  %v1139_v11 = vmax.f32 %v896_v5, %v1114_v6  ;;  %1456 = vmatmul.msk.f32.gmra.mxu2 %vm258_vm1, %v1430_v0  ;;  %1507 = vmatmul.msk.f32.gmra.mxu3 %vm258_vm1, %v1481_v1  ;;  %v374_v12 = vadd.f32 %v1723_v4, %v373_v7 }
  0xc4   : > { %v592_v13 = vadd.f32 %v1723_v4, %v591_v8 }
  0xc5   : > { %v1164_v14 = vmax.f32 %v678_v3, %v1139_v11  ;;  %v436_v15 = vmax.f32 %v374_v12, 0.0  ;;  %1354 = vmatmul.msk.f32.gmra.mxu0 %vm258_vm1, %v252_v9  ;;  %1405 = vmatmul.msk.f32.gmra.mxu1 %vm258_vm1, %v1379_v10 }
  0xc6   : > { %v654_v16 = vmax.f32 %v592_v13, 0.0  ;;  %v834_v17 = vpop.f32.mrf.mxu2  ;;  %v1052_v18 = vpop.f32.mrf.mxu3 }
  0xc7   : > { %v1193_v19 = vmul.f32 %v1744_v29, %v1164_v14  ;;  %v835_v20 = vadd.f32 %v1723_v4, %v834_v17  ;;  %v1053_v21 = vadd.f32 %v1723_v4, %v1052_v18 }
  0xc8   : > { %v679_v25 = vmax.f32 %v436_v15, %v654_v16 }
  0xc9   : > { %v1222_v24 = vadd.f32 %v1754_v33, %v1193_v19  ;;  %v897_v26 = vmax.f32 %v835_v20, 0.0  ;;  %v1115_v27 = vmax.f32 %v1053_v21, 0.0 }
  0xca   : > { %v376_v28 = vpop.f32.mrf.mxu0  ;;  %v594_v30 = vpop.f32.mrf.mxu1 }
  0xcb   : > { %1248 = vst.msk [vmem:[%s1764_s16 + $0x28] sm:$0xff] %vm1242_vm2, %v1222_v24  ;;  %v1140_v34 = vmax.f32 %v897_v26, %v1115_v27  ;;  %1457 = vmatmul.msk.f32.gmra.mxu2 %vm258_vm1, %v1431_v22  ;;  %1508 = vmatmul.msk.f32.gmra.mxu3 %vm258_vm1, %v1482_v23  ;;  %v377_v35 = vadd.f32 %v1723_v4, %v376_v28 }
  0xcc   : > { %v595_v36 = vadd.f32 %v1723_v4, %v594_v30 }
  0xcd   : > { %v1165_v37 = vmax.f32 %v679_v25, %v1140_v34  ;;  %v437_v38 = vmax.f32 %v377_v35, 0.0  ;;  %1355 = vmatmul.msk.f32.gmra.mxu0 %vm258_vm1, %v253_v31  ;;  %1406 = vmatmul.msk.f32.gmra.mxu1 %vm258_vm1, %v1380_v32 }
  0xce   : > { %v655_v39 = vmax.f32 %v595_v36, 0.0  ;;  %v837_v40 = vpop.f32.mrf.mxu2  ;;  %v1055_v41 = vpop.f32.mrf.mxu3 }
  0xcf   : > { %v1194_v42 = vmul.f32 %v1744_v29, %v1165_v37  ;;  %v838_v43 = vadd.f32 %v1723_v4, %v837_v40  ;;  %v1056_v44 = vadd.f32 %v1723_v4, %v1055_v41 }
  0xd0   : > { %v680_v48 = vmax.f32 %v437_v38, %v655_v39 }
  0xd1   : > { %v1223_v47 = vadd.f32 %v1754_v33, %v1194_v42  ;;  %v898_v49 = vmax.f32 %v838_v43, 0.0  ;;  %v1116_v50 = vmax.f32 %v1056_v44, 0.0 }
  0xd2   : > { %v379_v51 = vpop.f32.mrf.mxu0  ;;  %v597_v52 = vpop.f32.mrf.mxu1 }
  0xd3   : > { %1249 = vst.msk [vmem:[%s1764_s16 + $0x30] sm:$0xff] %vm1242_vm2, %v1223_v47  ;;  %v1141_v55 = vmax.f32 %v898_v49, %v1116_v50  ;;  %1458 = vmatmul.msk.f32.gmra.mxu2 %vm258_vm1, %v1432_v45  ;;  %1509 = vmatmul.msk.f32.gmra.mxu3 %vm258_vm1, %v1483_v46  ;;  %v380_v56 = vadd.f32 %v1723_v4, %v379_v51 }
  0xd4   : > { %v598_v57 = vadd.f32 %v1723_v4, %v597_v52 }
  0xd5   : > { %v1166_v58 = vmax.f32 %v680_v48, %v1141_v55  ;;  %v438_v59 = vmax.f32 %v380_v56, 0.0  ;;  %1356 = vmatmul.msk.f32.gmra.mxu0 %vm258_vm1, %v254_v53  ;;  %1407 = vmatmul.msk.f32.gmra.mxu1 %vm258_vm1, %v1381_v54 }
  0xd6   : > { %v656_v60 = vmax.f32 %v598_v57, 0.0  ;;  %v840_v61 = vpop.f32.mrf.mxu2  ;;  %v1058_v62 = vpop.f32.mrf.mxu3 }
  0xd7   : > { %v1195_v63 = vmul.f32 %v1744_v29, %v1166_v58  ;;  %v841_v0 = vadd.f32 %v1723_v4, %v840_v61  ;;  %v1059_v1 = vadd.f32 %v1723_v4, %v1058_v62 }
  0xd8   : > { %v681_v3 = vmax.f32 %v438_v59, %v656_v60 }
  0xd9   : > { %v1224_v2 = vadd.f32 %v1754_v33, %v1195_v63  ;;  %v899_v5 = vmax.f32 %v841_v0, 0.0  ;;  %v1117_v6 = vmax.f32 %v1059_v1, 0.0 }
  0xda   : > { %v382_v7 = vpop.f32.mrf.mxu0  ;;  %v600_v8 = vpop.f32.mrf.mxu1 }
  0xdb   : > { %1250 = vst.msk [vmem:[%s1764_s16 + $0x38] sm:$0xff] %vm1242_vm2, %v1224_v2  ;;  %v1142_v9 = vmax.f32 %v899_v5, %v1117_v6  ;;  %v383_v10 = vadd.f32 %v1723_v4, %v382_v7  ;;  %v601_v11 = vadd.f32 %v1723_v4, %v600_v8 }
  0xdd   : > { %v1167_v12 = vmax.f32 %v681_v3, %v1142_v9  ;;  %v439_v13 = vmax.f32 %v383_v10, 0.0  ;;  %v657_v14 = vmax.f32 %v601_v11, 0.0 }
  0xde   : > { %v843_v15 = vpop.f32.mrf.mxu2  ;;  %v1061_v16 = vpop.f32.mrf.mxu3 }
  0xdf   : > { %v1196_v17 = vmul.f32 %v1744_v29, %v1167_v12  ;;  %v844_v18 = vadd.f32 %v1723_v4, %v843_v15  ;;  %v1062_v19 = vadd.f32 %v1723_v4, %v1061_v16  ;;  %v682_v21 = vmax.f32 %v439_v13, %v657_v14 }
  0xe1   : > { %v1225_v20 = vadd.f32 %v1754_v33, %v1196_v17  ;;  %v900_v22 = vmax.f32 %v844_v18, 0.0  ;;  %v1118_v23 = vmax.f32 %v1062_v19, 0.0 }
  0xe2   : > { %v385_v24 = vpop.f32.mrf.mxu0  ;;  %v603_v25 = vpop.f32.mrf.mxu1 }
  0xe3   : > { %1251 = vst.msk [vmem:[%s1764_s16 + $0x40] sm:$0xff] %vm1242_vm2, %v1225_v20  ;;  %v1143_v26 = vmax.f32 %v900_v22, %v1118_v23  ;;  %v386_v27 = vadd.f32 %v1723_v4, %v385_v24  ;;  %v604_v28 = vadd.f32 %v1723_v4, %v603_v25 }
  0xe5   : > { %v1168_v30 = vmax.f32 %v682_v21, %v1143_v26  ;;  %v440_v31 = vmax.f32 %v386_v27, 0.0  ;;  %v658_v32 = vmax.f32 %v604_v28, 0.0 }
  0xe6   : > { %v846_v34 = vpop.f32.mrf.mxu2  ;;  %v1064_v35 = vpop.f32.mrf.mxu3 }
  0xe7   : > { %v1197_v36 = vmul.f32 %v1744_v29, %v1168_v30  ;;  %v847_v37 = vadd.f32 %v1723_v4, %v846_v34  ;;  %v1065_v38 = vadd.f32 %v1723_v4, %v1064_v35  ;;  %v683_v40 = vmax.f32 %v440_v31, %v658_v32 }
  0xe9   : > { %v1226_v39 = vadd.f32 %v1754_v33, %v1197_v36  ;;  %v901_v41 = vmax.f32 %v847_v37, 0.0  ;;  %v1119_v42 = vmax.f32 %v1065_v38, 0.0 }
  0xea   : > { %v388_v43 = vpop.f32.mrf.mxu0  ;;  %v606_v44 = vpop.f32.mrf.mxu1 }
  0xeb   : > { %1252 = vst.msk [vmem:[%s1764_s16 + $0x48] sm:$0xff] %vm1242_vm2, %v1226_v39  ;;  %v1144_v45 = vmax.f32 %v901_v41, %v1119_v42  ;;  %v389_v46 = vadd.f32 %v1723_v4, %v388_v43  ;;  %v607_v47 = vadd.f32 %v1723_v4, %v606_v44 }
  0xed   : > { %v1169_v48 = vmax.f32 %v683_v40, %v1144_v45  ;;  %v441_v49 = vmax.f32 %v389_v46, 0.0  ;;  %v659_v50 = vmax.f32 %v607_v47, 0.0 }
  0xee   : > { %v849_v51 = vpop.f32.mrf.mxu2  ;;  %v1067_v52 = vpop.f32.mrf.mxu3 }
  0xef   : > { %v1198_v53 = vmul.f32 %v1744_v29, %v1169_v48  ;;  %v850_v54 = vadd.f32 %v1723_v4, %v849_v51  ;;  %v1068_v55 = vadd.f32 %v1723_v4, %v1067_v52  ;;  %v684_v57 = vmax.f32 %v441_v49, %v659_v50 }
  0xf1   : > { %v1227_v56 = vadd.f32 %v1754_v33, %v1198_v53  ;;  %v902_v58 = vmax.f32 %v850_v54, 0.0  ;;  %v1120_v59 = vmax.f32 %v1068_v55, 0.0 }
  0xf2   : > { %v391_v60 = vpop.f32.mrf.mxu0  ;;  %v609_v61 = vpop.f32.mrf.mxu1 }
  0xf3   : > { %1253 = vst.msk [vmem:[%s1764_s16 + $0x50] sm:$0xff] %vm1242_vm2, %v1227_v56  ;;  %v1145_v62 = vmax.f32 %v902_v58, %v1120_v59  ;;  %v392_v63 = vadd.f32 %v1723_v4, %v391_v60  ;;  %v610_v0 = vadd.f32 %v1723_v4, %v609_v61 }
  0xf5   : > { %v1170_v1 = vmax.f32 %v684_v57, %v1145_v62  ;;  %v442_v2 = vmax.f32 %v392_v63, 0.0  ;;  %v660_v3 = vmax.f32 %v610_v0, 0.0 }
  0xf6   : > { %v852_v5 = vpop.f32.mrf.mxu2  ;;  %v1070_v6 = vpop.f32.mrf.mxu3 }
  0xf7   : > { %v1199_v7 = vmul.f32 %v1744_v29, %v1170_v1  ;;  %v853_v8 = vadd.f32 %v1723_v4, %v852_v5  ;;  %v1071_v9 = vadd.f32 %v1723_v4, %v1070_v6  ;;  %v685_v11 = vmax.f32 %v442_v2, %v660_v3 }
  0xf9   : > { %v1228_v10 = vadd.f32 %v1754_v33, %v1199_v7  ;;  %v903_v12 = vmax.f32 %v853_v8, 0.0  ;;  %v1121_v13 = vmax.f32 %v1071_v9, 0.0 }
  0xfa   : > { %v394_v14 = vpop.f32.mrf.mxu0  ;;  %v612_v15 = vpop.f32.mrf.mxu1 }
  0xfb   : > { %1254 = vst.msk [vmem:[%s1764_s16 + $0x58] sm:$0xff] %vm1242_vm2, %v1228_v10  ;;  %v1146_v16 = vmax.f32 %v903_v12, %v1121_v13  ;;  %v395_v17 = vadd.f32 %v1723_v4, %v394_v14  ;;  %v613_v18 = vadd.f32 %v1723_v4, %v612_v15 }
  0xfd   : > { %v1171_v19 = vmax.f32 %v685_v11, %v1146_v16  ;;  %v443_v20 = vmax.f32 %v395_v17, 0.0  ;;  %v661_v21 = vmax.f32 %v613_v18, 0.0 }
  0xfe   : > { %v855_v22 = vpop.f32.mrf.mxu2  ;;  %v1073_v23 = vpop.f32.mrf.mxu3 }
  0xff   : > { %v1200_v24 = vmul.f32 %v1744_v29, %v1171_v19  ;;  %v856_v25 = vadd.f32 %v1723_v4, %v855_v22  ;;  %v1074_v26 = vadd.f32 %v1723_v4, %v1073_v23  ;;  %v686_v28 = vmax.f32 %v443_v20, %v661_v21 }
 0x101   : > { %v1229_v27 = vadd.f32 %v1754_v33, %v1200_v24  ;;  %v904_v30 = vmax.f32 %v856_v25, 0.0  ;;  %v1122_v31 = vmax.f32 %v1074_v26, 0.0 }
 0x102   : > { %v397_v32 = vpop.f32.mrf.mxu0  ;;  %v615_v34 = vpop.f32.mrf.mxu1 }
 0x103   : > { %1255 = vst.msk [vmem:[%s1764_s16 + $0x60] sm:$0xff] %vm1242_vm2, %v1229_v27  ;;  %v1147_v35 = vmax.f32 %v904_v30, %v1122_v31  ;;  %v398_v36 = vadd.f32 %v1723_v4, %v397_v32  ;;  %v616_v37 = vadd.f32 %v1723_v4, %v615_v34 }
 0x105   : > { %v1172_v38 = vmax.f32 %v686_v28, %v1147_v35  ;;  %v444_v39 = vmax.f32 %v398_v36, 0.0  ;;  %v662_v40 = vmax.f32 %v616_v37, 0.0 }
 0x106   : > { %v858_v41 = vpop.f32.mrf.mxu2  ;;  %v1076_v42 = vpop.f32.mrf.mxu3 }
 0x107   : > { %v1201_v43 = vmul.f32 %v1744_v29, %v1172_v38  ;;  %v859_v44 = vadd.f32 %v1723_v4, %v858_v41  ;;  %v1077_v45 = vadd.f32 %v1723_v4, %v1076_v42  ;;  %v687_v47 = vmax.f32 %v444_v39, %v662_v40 }
 0x109   : > { %v1230_v46 = vadd.f32 %v1754_v33, %v1201_v43  ;;  %v905_v48 = vmax.f32 %v859_v44, 0.0  ;;  %v1123_v49 = vmax.f32 %v1077_v45, 0.0 }
 0x10a   : > { %v400_v50 = vpop.f32.mrf.mxu0  ;;  %v618_v51 = vpop.f32.mrf.mxu1 }
 0x10b   : > { %1256 = vst.msk [vmem:[%s1764_s16 + $0x68] sm:$0xff] %vm1242_vm2, %v1230_v46  ;;  %v1148_v52 = vmax.f32 %v905_v48, %v1123_v49  ;;  %v401_v53 = vadd.f32 %v1723_v4, %v400_v50  ;;  %v619_v54 = vadd.f32 %v1723_v4, %v618_v51 }
 0x10d   : > { %v1173_v55 = vmax.f32 %v687_v47, %v1148_v52  ;;  %v445_v56 = vmax.f32 %v401_v53, 0.0  ;;  %v663_v57 = vmax.f32 %v619_v54, 0.0 }
 0x10e   : > { %v861_v58 = vpop.f32.mrf.mxu2  ;;  %v1079_v59 = vpop.f32.mrf.mxu3 }
 0x10f   : > { %v1202_v60 = vmul.f32 %v1744_v29, %v1173_v55  ;;  %v862_v61 = vadd.f32 %v1723_v4, %v861_v58  ;;  %v1080_v62 = vadd.f32 %v1723_v4, %v1079_v59  ;;  %v688_v0 = vmax.f32 %v445_v56, %v663_v57 }
 0x111   : > { %v1231_v63 = vadd.f32 %v1754_v33, %v1202_v60  ;;  %v906_v1 = vmax.f32 %v862_v61, 0.0  ;;  %v1124_v2 = vmax.f32 %v1080_v62, 0.0 }
 0x112   : > { %v403_v3 = vpop.f32.mrf.mxu0  ;;  %v621_v5 = vpop.f32.mrf.mxu1 }
 0x113   : > { %1257 = vst.msk [vmem:[%s1764_s16 + $0x70] sm:$0xff] %vm1242_vm2, %v1231_v63  ;;  %v1149_v6 = vmax.f32 %v906_v1, %v1124_v2  ;;  %v404_v7 = vadd.f32 %v1723_v4, %v403_v3  ;;  %v622_v8 = vadd.f32 %v1723_v4, %v621_v5 }
 0x115   : > { %v1174_v9 = vmax.f32 %v688_v0, %v1149_v6  ;;  %v446_v10 = vmax.f32 %v404_v7, 0.0  ;;  %v664_v11 = vmax.f32 %v622_v8, 0.0 }
 0x116   : > { %v864_v12 = vpop.f32.mrf.mxu2  ;;  %v1082_v13 = vpop.f32.mrf.mxu3 }
 0x117   : > { %v1203_v14 = vmul.f32 %v1744_v29, %v1174_v9  ;;  %v865_v15 = vadd.f32 %v1723_v4, %v864_v12  ;;  %v1083_v16 = vadd.f32 %v1723_v4, %v1082_v13  ;;  %v689_v18 = vmax.f32 %v446_v10, %v664_v11 }
 0x119   : > { %v1232_v17 = vadd.f32 %v1754_v33, %v1203_v14  ;;  %v907_v19 = vmax.f32 %v865_v15, 0.0  ;;  %v1125_v20 = vmax.f32 %v1083_v16, 0.0 }
 0x11a   : > { %v406_v21 = vpop.f32.mrf.mxu0  ;;  %v624_v22 = vpop.f32.mrf.mxu1 }
 0x11b   : > { %1258 = vst.msk [vmem:[%s1764_s16 + $0x78] sm:$0xff] %vm1242_vm2, %v1232_v17  ;;  %v1150_v23 = vmax.f32 %v907_v19, %v1125_v20  ;;  %v407_v24 = vadd.f32 %v1723_v4, %v406_v21  ;;  %v625_v25 = vadd.f32 %v1723_v4, %v624_v22 }
 0x11d   : > { %v1175_v26 = vmax.f32 %v689_v18, %v1150_v23  ;;  %v447_v27 = vmax.f32 %v407_v24, 0.0  ;;  %v665_v28 = vmax.f32 %v625_v25, 0.0 }
 0x11e   : > { %v867_v30 = vpop.f32.mrf.mxu2  ;;  %v1085_v31 = vpop.f32.mrf.mxu3 }
 0x11f   : > { %v1204_v32 = vmul.f32 %v1744_v29, %v1175_v26  ;;  %v868_v34 = vadd.f32 %v1723_v4, %v867_v30  ;;  %v1086_v35 = vadd.f32 %v1723_v4, %v1085_v31  ;;  %v690_v37 = vmax.f32 %v447_v27, %v665_v28 }
 0x121   : > { %v1233_v36 = vadd.f32 %v1754_v33, %v1204_v32  ;;  %v908_v38 = vmax.f32 %v868_v34, 0.0  ;;  %v1126_v39 = vmax.f32 %v1086_v35, 0.0 }
 0x122   : > { %v409_v40 = vpop.f32.mrf.mxu0  ;;  %v627_v41 = vpop.f32.mrf.mxu1 }
 0x123   : > { %1259 = vst.msk [vmem:[%s1764_s16 + $0x80] sm:$0xff] %vm1242_vm2, %v1233_v36  ;;  %v1151_v42 = vmax.f32 %v908_v38, %v1126_v39  ;;  %v410_v43 = vadd.f32 %v1723_v4, %v409_v40  ;;  %v628_v44 = vadd.f32 %v1723_v4, %v627_v41 }
 0x125   : > { %v1176_v45 = vmax.f32 %v690_v37, %v1151_v42  ;;  %v448_v46 = vmax.f32 %v410_v43, 0.0  ;;  %v666_v47 = vmax.f32 %v628_v44, 0.0 }
 0x126   : > { %v870_v48 = vpop.f32.mrf.mxu2  ;;  %v1088_v49 = vpop.f32.mrf.mxu3 }
 0x127   : > { %v1205_v50 = vmul.f32 %v1744_v29, %v1176_v45  ;;  %v871_v51 = vadd.f32 %v1723_v4, %v870_v48  ;;  %v1089_v52 = vadd.f32 %v1723_v4, %v1088_v49  ;;  %v691_v54 = vmax.f32 %v448_v46, %v666_v47 }
 0x129   : > { %v1234_v53 = vadd.f32 %v1754_v33, %v1205_v50  ;;  %v909_v55 = vmax.f32 %v871_v51, 0.0  ;;  %v1127_v56 = vmax.f32 %v1089_v52, 0.0 }
 0x12a   : > { %v412_v57 = vpop.f32.mrf.mxu0  ;;  %v630_v58 = vpop.f32.mrf.mxu1 }
 0x12b   : > { %1260 = vst.msk [vmem:[%s1764_s16 + $0x88] sm:$0xff] %vm1242_vm2, %v1234_v53  ;;  %v1152_v59 = vmax.f32 %v909_v55, %v1127_v56  ;;  %v413_v60 = vadd.f32 %v1723_v4, %v412_v57  ;;  %v631_v61 = vadd.f32 %v1723_v4, %v630_v58 }
 0x12d   : > { %v1177_v62 = vmax.f32 %v691_v54, %v1152_v59  ;;  %v449_v63 = vmax.f32 %v413_v60, 0.0  ;;  %v667_v0 = vmax.f32 %v631_v61, 0.0 }
 0x12e   : > { %v873_v1 = vpop.f32.mrf.mxu2  ;;  %v1091_v2 = vpop.f32.mrf.mxu3 }
 0x12f   : > { %v1206_v3 = vmul.f32 %v1744_v29, %v1177_v62  ;;  %v874_v5 = vadd.f32 %v1723_v4, %v873_v1  ;;  %v1092_v6 = vadd.f32 %v1723_v4, %v1091_v2  ;;  %v692_v8 = vmax.f32 %v449_v63, %v667_v0 }
 0x131   : > { %v1235_v7 = vadd.f32 %v1754_v33, %v1206_v3  ;;  %v910_v9 = vmax.f32 %v874_v5, 0.0  ;;  %v1128_v10 = vmax.f32 %v1092_v6, 0.0 }
 0x132   : > { %v415_v11 = vpop.f32.mrf.mxu0  ;;  %v633_v12 = vpop.f32.mrf.mxu1 }
 0x133   : > { %1261 = vst.msk [vmem:[%s1764_s16 + $0x90] sm:$0xff] %vm1242_vm2, %v1235_v7  ;;  %v1153_v13 = vmax.f32 %v910_v9, %v1128_v10  ;;  %v416_v14 = vadd.f32 %v1723_v4, %v415_v11  ;;  %v634_v15 = vadd.f32 %v1723_v4, %v633_v12 }
 0x135   : > { %v1178_v16 = vmax.f32 %v692_v8, %v1153_v13  ;;  %v450_v17 = vmax.f32 %v416_v14, 0.0  ;;  %v668_v18 = vmax.f32 %v634_v15, 0.0 }
 0x136   : > { %v876_v19 = vpop.f32.mrf.mxu2  ;;  %v1094_v20 = vpop.f32.mrf.mxu3 }
 0x137   : > { %v1207_v21 = vmul.f32 %v1744_v29, %v1178_v16  ;;  %v877_v22 = vadd.f32 %v1723_v4, %v876_v19  ;;  %v1095_v23 = vadd.f32 %v1723_v4, %v1094_v20  ;;  %v693_v25 = vmax.f32 %v450_v17, %v668_v18 }
 0x139   : > { %v1236_v24 = vadd.f32 %v1754_v33, %v1207_v21  ;;  %v911_v26 = vmax.f32 %v877_v22, 0.0  ;;  %v1129_v27 = vmax.f32 %v1095_v23, 0.0 }
 0x13a   : > { %v418_v28 = vpop.f32.mrf.mxu0  ;;  %v636_v30 = vpop.f32.mrf.mxu1 }
 0x13b   : > { %1262 = vst.msk [vmem:[%s1764_s16 + $0x98] sm:$0xff] %vm1242_vm2, %v1236_v24  ;;  %v1154_v31 = vmax.f32 %v911_v26, %v1129_v27  ;;  %v419_v32 = vadd.f32 %v1723_v4, %v418_v28  ;;  %v637_v34 = vadd.f32 %v1723_v4, %v636_v30  ;;  %v1525_v30 = vld [vmem:[%s2018_s2] ss:$0 sm:$0xff] }
 0x13d   : > { %v1179_v35 = vmax.f32 %v693_v25, %v1154_v31  ;;  %v451_v36 = vmax.f32 %v419_v32, 0.0  ;;  %v669_v37 = vmax.f32 %v637_v34, 0.0 }
 0x13e   : > { %v879_v38 = vpop.f32.mrf.mxu2  ;;  %v1097_v39 = vpop.f32.mrf.mxu3 }
 0x13f   : > { %v1208_v40 = vmul.f32 %v1744_v29, %v1179_v35  ;;  %v880_v41 = vadd.f32 %v1723_v4, %v879_v38  ;;  %v1098_v42 = vadd.f32 %v1723_v4, %v1097_v39  ;;  %v694_v44 = vmax.f32 %v451_v36, %v669_v37 }
 0x141   : > { %v1237_v43 = vadd.f32 %v1754_v33, %v1208_v40  ;;  %v912_v45 = vmax.f32 %v880_v41, 0.0  ;;  %v1130_v46 = vmax.f32 %v1098_v42, 0.0 }
 0x142   : > { %v421_v47 = vpop.f32.mrf.mxu0  ;;  %v639_v48 = vpop.f32.mrf.mxu1 }
 0x143   : > { %1263 = vst.msk [vmem:[%s1764_s16 + $0xa0] sm:$0xff] %vm1242_vm2, %v1237_v43  ;;  %v1155_v49 = vmax.f32 %v912_v45, %v1130_v46  ;;  %v422_v50 = vadd.f32 %v1723_v4, %v421_v47  ;;  %v640_v51 = vadd.f32 %v1723_v4, %v639_v48 }
 0x145   : > { %v1180_v52 = vmax.f32 %v694_v44, %v1155_v49  ;;  %v452_v53 = vmax.f32 %v422_v50, 0.0  ;;  %v670_v54 = vmax.f32 %v640_v51, 0.0 }
 0x146   : > { %v882_v55 = vpop.f32.mrf.mxu2  ;;  %v1100_v56 = vpop.f32.mrf.mxu3 }
 0x147   : > { %v1209_v57 = vmul.f32 %v1744_v29, %v1180_v52  ;;  %v883_v58 = vadd.f32 %v1723_v4, %v882_v55  ;;  %v1101_v59 = vadd.f32 %v1723_v4, %v1100_v56  ;;  %v695_v61 = vmax.f32 %v452_v53, %v670_v54 }
 0x149   : > { %v1238_v60 = vadd.f32 %v1754_v33, %v1209_v57  ;;  %v913_v62 = vmax.f32 %v883_v58, 0.0  ;;  %v1131_v63 = vmax.f32 %v1101_v59, 0.0 }
 0x14a   : > { %v424_v0 = vpop.f32.mrf.mxu0  ;;  %v642_v1 = vpop.f32.mrf.mxu1 }
 0x14b   : > { %1264 = vst.msk [vmem:[%s1764_s16 + $0xa8] sm:$0xff] %vm1242_vm2, %v1238_v60  ;;  %v1156_v2 = vmax.f32 %v913_v62, %v1131_v63  ;;  %v425_v3 = vadd.f32 %v1723_v4, %v424_v0  ;;  %v643_v5 = vadd.f32 %v1723_v4, %v642_v1 }
 0x14d   : > { %v1181_v6 = vmax.f32 %v695_v61, %v1156_v2  ;;  %v453_v7 = vmax.f32 %v425_v3, 0.0  ;;  %v671_v8 = vmax.f32 %v643_v5, 0.0 }
 0x14e   : > { %v885_v9 = vpop.f32.mrf.mxu2  ;;  %v1103_v10 = vpop.f32.mrf.mxu3 }
 0x14f   : > { %v1210_v11 = vmul.f32 %v1744_v29, %v1181_v6  ;;  %v886_v12 = vadd.f32 %v1723_v4, %v885_v9  ;;  %v1104_v13 = vadd.f32 %v1723_v4, %v1103_v10  ;;  %v696_v15 = vmax.f32 %v453_v7, %v671_v8 }
 0x151   : > { %v1239_v14 = vadd.f32 %v1754_v33, %v1210_v11  ;;  %v914_v16 = vmax.f32 %v886_v12, 0.0  ;;  %v1132_v17 = vmax.f32 %v1104_v13, 0.0 }
 0x152   : > { %v427_v18 = vpop.f32.mrf.mxu0  ;;  %v645_v19 = vpop.f32.mrf.mxu1 }
 0x153   : > { %1265 = vst.msk [vmem:[%s1764_s16 + $0xb0] sm:$0xff] %vm1242_vm2, %v1239_v14  ;;  %v1157_v20 = vmax.f32 %v914_v16, %v1132_v17  ;;  %v428_v21 = vadd.f32 %v1723_v4, %v427_v18  ;;  %v646_v22 = vadd.f32 %v1723_v4, %v645_v19 }
 0x155   : > { %v1182_v23 = vmax.f32 %v696_v15, %v1157_v20  ;;  %v454_v24 = vmax.f32 %v428_v21, 0.0  ;;  %v672_v25 = vmax.f32 %v646_v22, 0.0 }
 0x156   : > { %v888_v26 = vpop.f32.mrf.mxu2  ;;  %v1106_v27 = vpop.f32.mrf.mxu3 }
 0x157   : > { %v1211_v28 = vmul.f32 %v1744_v29, %v1182_v23  ;;  %v889_v31 = vadd.f32 %v1525_v30, %v888_v26  ;;  %v1107_v32 = vadd.f32 %v1525_v30, %v1106_v27  ;;  %v697_v35 = vmax.f32 %v454_v24, %v672_v25 }
 0x159   : > { %v1240_v34 = vadd.f32 %v1754_v33, %v1211_v28  ;;  %v915_v36 = vmax.f32 %v889_v31, 0.0  ;;  %v1133_v37 = vmax.f32 %v1107_v32, 0.0 }
 0x15b   : > { %1266 = vst.msk [vmem:[%s1764_s16 + $0xb8] sm:$0xff] %vm1242_vm2, %v1240_v34  ;;  %v1158_v4 = vmax.f32 %v915_v36, %v1133_v37 }
 0x15d   : > { %v1183_v38 = vmax.f32 %v697_v35, %v1158_v4 }
 0x15f   : > { %v1212_v39 = vmul.f32 %v1744_v29, %v1183_v38 }
 0x161   : > { %v1241_v40 = vadd.f32 %v1754_v33, %v1212_v39 }
 0x163   : > { %1268 = vst.msk [vmem:[%s1764_s16 + $0xc0] sm:$0xf] %vm1267_vm3, %v1241_v40 }
 0x164 PF: > { %s15_s18 = sadd.s32 1, %s1532_s18  }
 0x165   : > { %p12_p4 = scmp.ge.s32.totalorder %s15_s18, 4  }
 0x167   :  { %14 = sbr.rel (!%p12_p4) target bundleno = 1 (0x1), region = 73 }

// kernel: forward.4
= control target key start
LH: loop header
LB: loop body
LE: loop exit
PB: predicated region body
PF: predicated region fallthrough
CT: control target
= control target key end

     0   :  { %s795_s18 = smov 0   ;;  %s987_s0 = inlined_call_operand.vmem [shape: f32[2,4,64,64], index: 0, kind: input, shape index: {}]   ;;  %s988_s1 = inlined_call_operand.vmem [shape: f32[64,32], index: 1, kind: input, shape index: {}]   ;;  %s989_s2 = inlined_call_operand.vmem [shape: f32[1,32], index: 2, kind: input, shape index: {}]   ;;  %s990_s3 = inlined_call_operand.vmem [shape: f32[1,32], index: 3, kind: input, shape index: {}]   ;;  %s991_s4 = inlined_call_operand.vmem [shape: f32[1,32], index: 4, kind: input, shape index: {}]   ;;  %s992_s5 = inlined_call_operand.vmem [shape: f32[2,64,32], index: 5, kind: output, shape index: {}]  }
   0x1 LB: > { %s677_s19 = sadd.s32 4294967295, %s763_s18   ;;  %p681_p0 = scmp.ge.s32.totalorder %s763_s18, 1  ;;  %s763_s18 = sphi %s795_s18, %s15_s18  }
   0x2   : > { %p187_p1 = scmp.lt.s32.totalorder %s763_s18, 3 }
   0x4   : > { %p188_p2 = pnand %p681_p0, %p187_p1 }
   0x5   : > { %p215_p3 = scmp.lt.s32.totalorder (!%p188_p2), %s677_s19, 1 }
   0x6   : > { %191 = sbr.rel (%p188_p2) target bundleno = 228 (0xe4), region = 40 }
   0xb   : > { %v232_v0 = vld [vmem:[%s988_s1 + $0x38] sm:$0xff]  ;;  %v231_v1 = vld [vmem:[%s988_s1 + $0x30] sm:$0xff]  ;;  %v230_v2 = vld [vmem:[%s988_s1 + $0x28] sm:$0xff]  ;;  %s994_s19 = smov (!%p215_p3, %s677_s19), 1  ;;  %vm245_vm0 = vcmask 523264   ;;  %vm613_vm1 = vcmask 261120  }
   0xc   : > { %450 = vmatpush.msra.mxu2 %v232_v0  ;;  %532 = vmatpush.msra.mxu3 %v232_v0  ;;  %v229_v3 = vld [vmem:[%s988_s1 + $0x20] sm:$0xff]  ;;  %v228_v4 = vld [vmem:[%s988_s1 + $0x18] sm:$0xff]  ;;  %s744_s30 = sshll.u32 %s994_s19, 8  ;;  %v227_v5 = vld [vmem:[%s988_s1 + $0x10] sm:$0xff]  ;;  %s745_s21 = sshll.u32 %s994_s19, 6 }
   0xd   : > { %278 = vmatpush.msra.mxu0 %v232_v0  ;;  %360 = vmatpush.msra.mxu1 %v232_v0  ;;  %v226_v6 = vld [vmem:[%s988_s1 + $0x8] sm:$0xff]  ;;  %s830_s12 = scalar_lea.vmem %s987_s0, %s744_s30  ;;  %v225_v7 = vld [vmem:[%s988_s1] sm:$0xff]  ;;  %s927_s19 = scalar_lea.vmem %s992_s5, %s745_s21 }
   0xe   : > { %451 = vmatpush.msra.mxu2 %v231_v1  ;;  %533 = vmatpush.msra.mxu3 %v231_v1  ;;  %v710_v8 = vld [vmem:[%s830_s12 + $0x80] sm:$0xff]  ;;  %v711_v12 = vld [vmem:[%s830_s12 + $0x88] sm:$0xff]  ;;  %v712_v16 = vld [vmem:[%s830_s12 + $0x90] sm:$0xff] }
   0xf   : > { %279 = vmatpush.msra.mxu0 %v231_v1  ;;  %361 = vmatpush.msra.mxu1 %v231_v1  ;;  %v726_v9 = vld [vmem:[%s830_s12 + $0xc0] sm:$0xff]  ;;  %v727_v13 = vld [vmem:[%s830_s12 + $0xc8] sm:$0xff]  ;;  %v728_v17 = vld [vmem:[%s830_s12 + $0xd0] sm:$0xff] }
  0x10   : > { %452 = vmatpush.msra.mxu2 %v230_v2  ;;  %534 = vmatpush.msra.mxu3 %v230_v2  ;;  %v234_v10 = vld [vmem:[%s830_s12] sm:$0xff]  ;;  %v235_v14 = vld [vmem:[%s830_s12 + $0x8] sm:$0xff]  ;;  %v236_v18 = vld [vmem:[%s830_s12 + $0x10] sm:$0xff] }
  0x11   : > { %280 = vmatpush.msra.mxu0 %v230_v2  ;;  %362 = vmatpush.msra.mxu1 %v230_v2  ;;  %v694_v11 = vld [vmem:[%s830_s12 + $0x40] sm:$0xff]  ;;  %v695_v15 = vld [vmem:[%s830_s12 + $0x48] sm:$0xff]  ;;  %v696_v19 = vld [vmem:[%s830_s12 + $0x50] sm:$0xff] }
  0x12   : > { %453 = vmatpush.msra.mxu2 %v229_v3  ;;  %535 = vmatpush.msra.mxu3 %v229_v3  ;;  %v713_v20 = vld [vmem:[%s830_s12 + $0x98] sm:$0xff]  ;;  %v714_v24 = vld [vmem:[%s830_s12 + $0xa0] sm:$0xff]  ;;  %v715_v28 = vld [vmem:[%s830_s12 + $0xa8] sm:$0xff] }
  0x13   : > { %281 = vmatpush.msra.mxu0 %v229_v3  ;;  %363 = vmatpush.msra.mxu1 %v229_v3  ;;  %v729_v21 = vld [vmem:[%s830_s12 + $0xd8] sm:$0xff]  ;;  %v730_v25 = vld [vmem:[%s830_s12 + $0xe0] sm:$0xff]  ;;  %v731_v29 = vld [vmem:[%s830_s12 + $0xe8] sm:$0xff] }
  0x14   : > { %454 = vmatpush.msra.mxu2 %v228_v4  ;;  %536 = vmatpush.msra.mxu3 %v228_v4  ;;  %v237_v22 = vld [vmem:[%s830_s12 + $0x18] sm:$0xff]  ;;  %v238_v26 = vld [vmem:[%s830_s12 + $0x20] sm:$0xff]  ;;  %v239_v30 = vld [vmem:[%s830_s12 + $0x28] sm:$0xff] }
  0x15   : > { %282 = vmatpush.msra.mxu0 %v228_v4  ;;  %364 = vmatpush.msra.mxu1 %v228_v4  ;;  %v697_v23 = vld [vmem:[%s830_s12 + $0x58] sm:$0xff]  ;;  %v698_v27 = vld [vmem:[%s830_s12 + $0x60] sm:$0xff]  ;;  %v699_v31 = vld [vmem:[%s830_s12 + $0x68] sm:$0xff] }
  0x16   : > { %455 = vmatpush.msra.mxu2 %v227_v5  ;;  %537 = vmatpush.msra.mxu3 %v227_v5  ;;  %v716_v32 = vld [vmem:[%s830_s12 + $0xb0] sm:$0xff]  ;;  %v717_v36 = vld [vmem:[%s830_s12 + $0xb8] sm:$0xff]  ;;  %v902_v40 = vld [vmem:[%s989_s2] ss:$0 sm:$0xff] }
  0x17   : > { %283 = vmatpush.msra.mxu0 %v227_v5  ;;  %365 = vmatpush.msra.mxu1 %v227_v5  ;;  %v732_v33 = vld [vmem:[%s830_s12 + $0xf0] sm:$0xff]  ;;  %v733_v37 = vld [vmem:[%s830_s12 + $0xf8] sm:$0xff]  ;;  %v911_v57 = vld [vmem:[%s990_s3] ss:$0 sm:$0xff] }
  0x18   : > { %456 = vmatpush.msra.mxu2 %v226_v6  ;;  %538 = vmatpush.msra.mxu3 %v226_v6  ;;  %v240_v34 = vld [vmem:[%s830_s12 + $0x30] sm:$0xff]  ;;  %v241_v38 = vld [vmem:[%s830_s12 + $0x38] sm:$0xff]  ;;  %v919_v61 = vld [vmem:[%s991_s4] ss:$0 sm:$0xff] }
  0x19   : > { %284 = vmatpush.msra.mxu0 %v226_v6  ;;  %366 = vmatpush.msra.mxu1 %v226_v6  ;;  %v700_v35 = vld [vmem:[%s830_s12 + $0x70] sm:$0xff]  ;;  %v701_v39 = vld [vmem:[%s830_s12 + $0x78] sm:$0xff] }
  0x1a   : > { %457 = vmatpush.msra.mxu2 %v225_v7  ;;  %539 = vmatpush.msra.mxu3 %v225_v7 }
  0x1b   : > { %718 = vmatmul.msk.f32.vlgmr.msra.gmra.mxu2 %vm245_vm0, %v710_v8  ;;  %734 = vmatmul.msk.f32.vlgmr.msra.gmra.mxu3 %vm245_vm0, %v726_v9 }
  0x1c   : > { %285 = vmatpush.msra.mxu0 %v225_v7  ;;  %367 = vmatpush.msra.mxu1 %v225_v7 }
  0x1d   : > { %686 = vmatmul.msk.f32.vlgmr.msra.gmra.mxu0 %vm245_vm0, %v234_v10  ;;  %702 = vmatmul.msk.f32.vlgmr.msra.gmra.mxu1 %vm245_vm0, %v694_v11 }
  0x23   : > { %719 = vmatmul.msk.f32.gmra.mxu2 %vm245_vm0, %v711_v12  ;;  %735 = vmatmul.msk.f32.gmra.mxu3 %vm245_vm0, %v727_v13 }
  0x25   : > { %687 = vmatmul.msk.f32.gmra.mxu0 %vm245_vm0, %v235_v14  ;;  %703 = vmatmul.msk.f32.gmra.mxu1 %vm245_vm0, %v695_v15 }
  0x2b   : > { %720 = vmatmul.msk.f32.gmra.mxu2 %vm245_vm0, %v712_v16  ;;  %736 = vmatmul.msk.f32.gmra.mxu3 %vm245_vm0, %v728_v17 }
  0x2d   : > { %688 = vmatmul.msk.f32.gmra.mxu0 %vm245_vm0, %v236_v18  ;;  %704 = vmatmul.msk.f32.gmra.mxu1 %vm245_vm0, %v696_v19 }
  0x33   : > { %721 = vmatmul.msk.f32.gmra.mxu2 %vm245_vm0, %v713_v20  ;;  %737 = vmatmul.msk.f32.gmra.mxu3 %vm245_vm0, %v729_v21 }
  0x35   : > { %689 = vmatmul.msk.f32.gmra.mxu0 %vm245_vm0, %v237_v22  ;;  %705 = vmatmul.msk.f32.gmra.mxu1 %vm245_vm0, %v697_v23 }
  0x3b   : > { %722 = vmatmul.msk.f32.gmra.mxu2 %vm245_vm0, %v714_v24  ;;  %738 = vmatmul.msk.f32.gmra.mxu3 %vm245_vm0, %v730_v25 }
  0x3d   : > { %690 = vmatmul.msk.f32.gmra.mxu0 %vm245_vm0, %v238_v26  ;;  %706 = vmatmul.msk.f32.gmra.mxu1 %vm245_vm0, %v698_v27 }
  0x43   : > { %723 = vmatmul.msk.f32.gmra.mxu2 %vm245_vm0, %v715_v28  ;;  %739 = vmatmul.msk.f32.gmra.mxu3 %vm245_vm0, %v731_v29 }
  0x45   : > { %691 = vmatmul.msk.f32.gmra.mxu0 %vm245_vm0, %v239_v30  ;;  %707 = vmatmul.msk.f32.gmra.mxu1 %vm245_vm0, %v699_v31 }
  0x4b   : > { %724 = vmatmul.msk.f32.gmra.mxu2 %vm245_vm0, %v716_v32  ;;  %740 = vmatmul.msk.f32.gmra.mxu3 %vm245_vm0, %v732_v33 }
  0x4d   : > { %692 = vmatmul.msk.f32.gmra.mxu0 %vm245_vm0, %v240_v34  ;;  %708 = vmatmul.msk.f32.gmra.mxu1 %vm245_vm0, %v700_v35 }
  0x53   : > { %725 = vmatmul.msk.f32.gmra.mxu2 %vm245_vm0, %v717_v36  ;;  %741 = vmatmul.msk.f32.gmra.mxu3 %vm245_vm0, %v733_v37 }
  0x55   : > { %693 = vmatmul.msk.f32.gmra.mxu0 %vm245_vm0, %v241_v38  ;;  %709 = vmatmul.msk.f32.gmra.mxu1 %vm245_vm0, %v701_v39 }
  0x9a   : > { %v287_v41 = vpop.f32.mrf.mxu0  ;;  %v369_v42 = vpop.f32.mrf.mxu1 }
  0x9b   : > { %v288_v43 = vadd.f32 %v902_v40, %v287_v41  ;;  %v370_v44 = vadd.f32 %v902_v40, %v369_v42 }
  0x9d   : > { %v311_v45 = vmax.f32 %v288_v43, 0.0  ;;  %v393_v46 = vmax.f32 %v370_v44, 0.0 }
  0x9e   : > { %v459_v47 = vpop.f32.mrf.mxu2  ;;  %v541_v48 = vpop.f32.mrf.mxu3 }
  0x9f   : > { %v460_v49 = vadd.f32 %v902_v40, %v459_v47  ;;  %v542_v50 = vadd.f32 %v902_v40, %v541_v48  ;;  %v401_v51 = vmax.f32 %v311_v45, %v393_v46 }
  0xa1   : > { %v483_v52 = vmax.f32 %v460_v49, 0.0  ;;  %v565_v53 = vmax.f32 %v542_v50, 0.0 }
  0xa2   : > { %v290_v54 = vpop.f32.mrf.mxu0  ;;  %v372_v55 = vpop.f32.mrf.mxu1 }
  0xa3   : > { %v573_v56 = vmax.f32 %v483_v52, %v565_v53  ;;  %v291_v58 = vadd.f32 %v902_v40, %v290_v54  ;;  %v373_v59 = vadd.f32 %v902_v40, %v372_v55 }
  0xa5   : > { %v581_v60 = vmax.f32 %v401_v51, %v573_v56  ;;  %v312_v62 = vmax.f32 %v291_v58, 0.0  ;;  %v394_v63 = vmax.f32 %v373_v59, 0.0 }
  0xa6   : > { %v462_v0 = vpop.f32.mrf.mxu2  ;;  %v544_v1 = vpop.f32.mrf.mxu3 }
  0xa7   : > { %v593_v2 = vmul.f32 %v911_v57, %v581_v60  ;;  %v463_v3 = vadd.f32 %v902_v40, %v462_v0  ;;  %v545_v4 = vadd.f32 %v902_v40, %v544_v1  ;;  %v402_v6 = vmax.f32 %v312_v62, %v394_v63 }
  0xa9   : > { %v605_v5 = vadd.f32 %v919_v61, %v593_v2  ;;  %v484_v7 = vmax.f32 %v463_v3, 0.0  ;;  %v566_v8 = vmax.f32 %v545_v4, 0.0 }
  0xaa   : > { %v293_v9 = vpop.f32.mrf.mxu0  ;;  %v375_v10 = vpop.f32.mrf.mxu1 }
  0xab   : > { %614 = vst.msk [vmem:[%s927_s19] sm:$0xff] %vm613_vm1, %v605_v5  ;;  %v574_v11 = vmax.f32 %v484_v7, %v566_v8  ;;  %v294_v12 = vadd.f32 %v902_v40, %v293_v9  ;;  %v376_v13 = vadd.f32 %v902_v40, %v375_v10 }
  0xad   : > { %v582_v14 = vmax.f32 %v402_v6, %v574_v11  ;;  %v313_v15 = vmax.f32 %v294_v12, 0.0  ;;  %v395_v16 = vmax.f32 %v376_v13, 0.0 }
  0xae   : > { %v465_v17 = vpop.f32.mrf.mxu2  ;;  %v547_v18 = vpop.f32.mrf.mxu3 }
  0xaf   : > { %v594_v19 = vmul.f32 %v911_v57, %v582_v14  ;;  %v466_v20 = vadd.f32 %v902_v40, %v465_v17  ;;  %v548_v21 = vadd.f32 %v902_v40, %v547_v18  ;;  %v403_v23 = vmax.f32 %v313_v15, %v395_v16 }
  0xb1   : > { %v606_v22 = vadd.f32 %v919_v61, %v594_v19  ;;  %v485_v24 = vmax.f32 %v466_v20, 0.0  ;;  %v567_v25 = vmax.f32 %v548_v21, 0.0 }
  0xb2   : > { %v296_v26 = vpop.f32.mrf.mxu0  ;;  %v378_v27 = vpop.f32.mrf.mxu1 }
  0xb3   : > { %615 = vst.msk [vmem:[%s927_s19 + $0x8] sm:$0xff] %vm613_vm1, %v606_v22  ;;  %v575_v28 = vmax.f32 %v485_v24, %v567_v25  ;;  %v297_v29 = vadd.f32 %v902_v40, %v296_v26  ;;  %v379_v30 = vadd.f32 %v902_v40, %v378_v27 }
  0xb5   : > { %v583_v31 = vmax.f32 %v403_v23, %v575_v28  ;;  %v314_v32 = vmax.f32 %v297_v29, 0.0  ;;  %v396_v33 = vmax.f32 %v379_v30, 0.0 }
  0xb6   : > { %v468_v34 = vpop.f32.mrf.mxu2  ;;  %v550_v35 = vpop.f32.mrf.mxu3 }
  0xb7   : > { %v595_v36 = vmul.f32 %v911_v57, %v583_v31  ;;  %v469_v37 = vadd.f32 %v902_v40, %v468_v34  ;;  %v551_v38 = vadd.f32 %v902_v40, %v550_v35  ;;  %v404_v41 = vmax.f32 %v314_v32, %v396_v33 }
  0xb9   : > { %v607_v39 = vadd.f32 %v919_v61, %v595_v36  ;;  %v486_v42 = vmax.f32 %v469_v37, 0.0  ;;  %v568_v43 = vmax.f32 %v551_v38, 0.0 }
  0xba   : > { %v299_v44 = vpop.f32.mrf.mxu0  ;;  %v381_v45 = vpop.f32.mrf.mxu1 }
  0xbb   : > { %616 = vst.msk [vmem:[%s927_s19 + $0x10] sm:$0xff] %vm613_vm1, %v607_v39  ;;  %v576_v46 = vmax.f32 %v486_v42, %v568_v43  ;;  %v300_v47 = vadd.f32 %v902_v40, %v299_v44  ;;  %v382_v48 = vadd.f32 %v902_v40, %v381_v45 }
  0xbd   : > { %v584_v49 = vmax.f32 %v404_v41, %v576_v46  ;;  %v315_v50 = vmax.f32 %v300_v47, 0.0  ;;  %v397_v51 = vmax.f32 %v382_v48, 0.0 }
  0xbe   : > { %v471_v52 = vpop.f32.mrf.mxu2  ;;  %v553_v53 = vpop.f32.mrf.mxu3 }
  0xbf   : > { %v596_v54 = vmul.f32 %v911_v57, %v584_v49  ;;  %v472_v55 = vadd.f32 %v902_v40, %v471_v52  ;;  %v554_v56 = vadd.f32 %v902_v40, %v553_v53  ;;  %v405_v59 = vmax.f32 %v315_v50, %v397_v51 }
  0xc1   : > { %v608_v58 = vadd.f32 %v919_v61, %v596_v54  ;;  %v487_v60 = vmax.f32 %v472_v55, 0.0  ;;  %v569_v62 = vmax.f32 %v554_v56, 0.0 }
  0xc2   : > { %v302_v63 = vpop.f32.mrf.mxu0  ;;  %v384_v0 = vpop.f32.mrf.mxu1 }
  0xc3   : > { %617 = vst.msk [vmem:[%s927_s19 + $0x18] sm:$0xff] %vm613_vm1, %v608_v58  ;;  %v577_v1 = vmax.f32 %v487_v60, %v569_v62  ;;  %v303_v2 = vadd.f32 %v902_v40, %v302_v63  ;;  %v385_v3 = vadd.f32 %v902_v40, %v384_v0 }
  0xc5   : > { %v585_v4 = vmax.f32 %v405_v59, %v577_v1  ;;  %v316_v5 = vmax.f32 %v303_v2, 0.0  ;;  %v398_v6 = vmax.f32 %v385_v3, 0.0 }
  0xc6   : > { %v474_v7 = vpop.f32.mrf.mxu2  ;;  %v556_v8 = vpop.f32.mrf.mxu3 }
  0xc7   : > { %v597_v9 = vmul.f32 %v911_v57, %v585_v4  ;;  %v475_v10 = vadd.f32 %v902_v40, %v474_v7  ;;  %v557_v11 = vadd.f32 %v902_v40, %v556_v8  ;;  %v406_v13 = vmax.f32 %v316_v5, %v398_v6 }
  0xc9   : > { %v609_v12 = vadd.f32 %v919_v61, %v597_v9  ;;  %v488_v14 = vmax.f32 %v475_v10, 0.0  ;;  %v570_v15 = vmax.f32 %v557_v11, 0.0 }
  0xca   : > { %v305_v16 = vpop.f32.mrf.mxu0  ;;  %v387_v17 = vpop.f32.mrf.mxu1 }
  0xcb   : > { %618 = vst.msk [vmem:[%s927_s19 + $0x20] sm:$0xff] %vm613_vm1, %v609_v12  ;;  %v578_v18 = vmax.f32 %v488_v14, %v570_v15  ;;  %v306_v19 = vadd.f32 %v902_v40, %v305_v16  ;;  %v388_v20 = vadd.f32 %v902_v40, %v387_v17 }
  0xcd   : > { %v586_v21 = vmax.f32 %v406_v13, %v578_v18  ;;  %v317_v22 = vmax.f32 %v306_v19, 0.0  ;;  %v399_v23 = vmax.f32 %v388_v20, 0.0 }
  0xce   : > { %v477_v24 = vpop.f32.mrf.mxu2  ;;  %v559_v25 = vpop.f32.mrf.mxu3 }
  0xcf   : > { %v598_v26 = vmul.f32 %v911_v57, %v586_v21  ;;  %v478_v27 = vadd.f32 %v902_v40, %v477_v24  ;;  %v560_v28 = vadd.f32 %v902_v40, %v559_v25  ;;  %v407_v30 = vmax.f32 %v317_v22, %v399_v23 }
  0xd1   : > { %v610_v29 = vadd.f32 %v919_v61, %v598_v26  ;;  %v489_v31 = vmax.f32 %v478_v27, 0.0  ;;  %v571_v32 = vmax.f32 %v560_v28, 0.0 }
  0xd2   : > { %v308_v33 = vpop.f32.mrf.mxu0  ;;  %v390_v34 = vpop.f32.mrf.mxu1 }
  0xd3   : > { %619 = vst.msk [vmem:[%s927_s19 + $0x28] sm:$0xff] %vm613_vm1, %v610_v29  ;;  %v579_v35 = vmax.f32 %v489_v31, %v571_v32  ;;  %v309_v36 = vadd.f32 %v902_v40, %v308_v33  ;;  %v391_v37 = vadd.f32 %v902_v40, %v390_v34 }
  0xd5   : > { %v587_v38 = vmax.f32 %v407_v30, %v579_v35  ;;  %v318_v39 = vmax.f32 %v309_v36, 0.0  ;;  %v400_v41 = vmax.f32 %v391_v37, 0.0 }
  0xd6   : > { %v480_v42 = vpop.f32.mrf.mxu2  ;;  %v562_v43 = vpop.f32.mrf.mxu3 }
  0xd7   : > { %v599_v44 = vmul.f32 %v911_v57, %v587_v38  ;;  %v481_v45 = vadd.f32 %v902_v40, %v480_v42  ;;  %v563_v46 = vadd.f32 %v902_v40, %v562_v43  ;;  %v408_v48 = vmax.f32 %v318_v39, %v400_v41 }
  0xd9   : > { %v611_v47 = vadd.f32 %v919_v61, %v599_v44  ;;  %v490_v49 = vmax.f32 %v481_v45, 0.0  ;;  %v572_v50 = vmax.f32 %v563_v46, 0.0 }
  0xdb   : > { %620 = vst.msk [vmem:[%s927_s19 + $0x30] sm:$0xff] %vm613_vm1, %v611_v47  ;;  %v580_v51 = vmax.f32 %v490_v49, %v572_v50 }
  0xdd   : > { %v588_v52 = vmax.f32 %v408_v48, %v580_v51 }
  0xdf   : > { %v600_v53 = vmul.f32 %v911_v57, %v588_v52 }
  0xe1   : > { %v612_v54 = vadd.f32 %v919_v61, %v600_v53 }
  0xe3   : > { %621 = vst.msk [vmem:[%s927_s19 + $0x38] sm:$0xff] %vm613_vm1, %v612_v54 }
  0xe4 PF: > { %s15_s18 = sadd.s32 1, %s763_s18  }
  0xe5   : > { %p12_p4 = scmp.ge.s32.totalorder %s15_s18, 4  }
  0xe7   :  { %14 = sbr.rel (!%p12_p4) target bundleno = 1 (0x1), region = 73 }

// kernel: forward.5
= control target key start
LH: loop header
LB: loop body
LE: loop exit
PB: predicated region body
PF: predicated region fallthrough
CT: control target
= control target key end

     0   :  { %vm8399_vm0 = vcmask 261120   ;;  %vm9385_vm1 = vcmask 130048   ;;  %vm10130_vm2 = vcmask 1043456   ;;  %vm10126_vm3 = vcmask 588800   ;;  %s24558_s1 = inlined_call_operand.vmem [shape: bf16[2048,800], index: 1, kind: input, shape index: {}]   ;;  %s24559_s0 = inlined_call_operand.vmem [shape: f32[8,2048], index: 0, kind: input, shape index: {}]   ;;  %s24560_s2 = inlined_call_operand.vmem [shape: f32[1,800], index: 2, kind: input, shape index: {}]   ;;  %s24561_s3 = inlined_call_operand.vmem [shape: bf16[800,400], index: 3, kind: input, shape index: {}]   ;;  %s24562_s4 = inlined_call_operand.vmem [shape: f32[1,400], index: 4, kind: input, shape index: {}]   ;;  %s24563_s5 = inlined_call_operand.vmem [shape: bf16[400,400], index: 5, kind: input, shape index: {}]   ;;  %s24564_s6 = inlined_call_operand.vmem [shape: f32[1,400], index: 6, kind: input, shape index: {}]   ;;  %s24565_s7 = inlined_call_operand.vmem [shape: bf16[400,200], index: 7, kind: input, shape index: {}]   ;;  %s24566_s10 = inlined_call_operand.vmem [shape: f32[1,10], index: 10, kind: input, shape index: {}]   ;;  %s24567_s9 = inlined_call_operand.vmem [shape: bf16[200,10], index: 9, kind: input, shape index: {}]   ;;  %s24568_s8 = inlined_call_operand.vmem [shape: f32[1,200], index: 8, kind: input, shape index: {}]   ;;  %s24569_s11 = inlined_call_operand.vmem [shape: f32[8,10], index: 11, kind: output, shape index: {}]  }
   0x1   :  { %v10364_v0 = vld [vmem:[%s24558_s1 + $0x188] sm:$0xf]  ;;  %v15261_v1 = vld [vmem:[%s24558_s1 + $0x1a0] sm:$0xf0]  ;;  %v10336_v11 = vld [vmem:[%s24558_s1 + $0x150] sm:$0xf] }
   0x2   :  { %v10588_v2 = vld [vmem:[%s24558_s1 + $0x348] sm:$0xf]  ;;  %v10365_v3 = vor.u32 %v15261_v1, %v10364_v0  ;;  %v15317_v4 = vld [vmem:[%s24558_s1 + $0x360] sm:$0xf0]  ;;  %v15254_v13 = vld [vmem:[%s24558_s1 + $0x168] sm:$0xf0] }
   0x3   :  { %v10812_v5 = vld [vmem:[%s24558_s1 + $0x508] sm:$0xf]  ;;  %v15373_v6 = vld [vmem:[%s24558_s1 + $0x520] sm:$0xf0]  ;;  %v10589_v7 = vor.u32 %v15317_v4, %v10588_v2  ;;  %v10560_v14 = vld [vmem:[%s24558_s1 + $0x310] sm:$0xf]  ;;  %v10337_v16 = vor.u32 %v15254_v13, %v10336_v11 }
   0x4   :  { %v10813_v8 = vor.u32 %v15373_v6, %v10812_v5  ;;  %v11036_v9 = vld [vmem:[%s24558_s1 + $0x6c8] sm:$0xf]  ;;  %v15429_v10 = vld [vmem:[%s24558_s1 + $0x6e0] sm:$0xf0]  ;;  %5719 = vmatpush.bf16.msra.mxu0 %v10365_v3  ;;  %v15310_v15 = vld [vmem:[%s24558_s1 + $0x328] sm:$0xf0] }
   0x5   :  { %v11037_v12 = vor.u32 %v15429_v10, %v11036_v9  ;;  %5732 = vmatpush.bf16.msra.mxu1 %v10589_v7  ;;  %v10561_v17 = vor.u32 %v15310_v15, %v10560_v14  ;;  %v10784_v18 = vld [vmem:[%s24558_s1 + $0x4d0] sm:$0xf]  ;;  %v15366_v19 = vld [vmem:[%s24558_s1 + $0x4e8] sm:$0xf0]  ;;  %v10308_v23 = vld [vmem:[%s24558_s1 + $0x118] sm:$0xf] }
   0x6   :  { %5745 = vmatpush.bf16.msra.mxu2 %v10813_v8  ;;  %v11008_v20 = vld [vmem:[%s24558_s1 + $0x690] sm:$0xf]  ;;  %v10785_v21 = vor.u32 %v15366_v19, %v10784_v18  ;;  %v15422_v22 = vld [vmem:[%s24558_s1 + $0x6a8] sm:$0xf0]  ;;  %v15247_v24 = vld [vmem:[%s24558_s1 + $0x130] sm:$0xf0] }
   0x7   :  { %5758 = vmatpush.bf16.msra.mxu3 %v11037_v12  ;;  %v11009_v25 = vor.u32 %v15422_v22, %v11008_v20  ;;  %v10532_v26 = vld [vmem:[%s24558_s1 + $0x2d8] sm:$0xf]  ;;  %v15303_v27 = vld [vmem:[%s24558_s1 + $0x2f0] sm:$0xf0]  ;;  %v10309_v29 = vor.u32 %v15247_v24, %v10308_v23  ;;  %v10280_v35 = vld [vmem:[%s24558_s1 + $0xe0] sm:$0xf] }
   0x8   :  { %v10756_v28 = vld [vmem:[%s24558_s1 + $0x498] sm:$0xf]  ;;  %5720 = vmatpush.bf16.msra.mxu0 %v10337_v16  ;;  %v15359_v30 = vld [vmem:[%s24558_s1 + $0x4b0] sm:$0xf0]  ;;  %v10533_v33 = vor.u32 %v15303_v27, %v10532_v26  ;;  %v15240_v36 = vld [vmem:[%s24558_s1 + $0xf8] sm:$0xf0] }
   0x9   :  { %v10980_v31 = vld [vmem:[%s24558_s1 + $0x658] sm:$0xf]  ;;  %v15415_v32 = vld [vmem:[%s24558_s1 + $0x670] sm:$0xf0]  ;;  %5733 = vmatpush.bf16.msra.mxu1 %v10561_v17  ;;  %v10757_v34 = vor.u32 %v15359_v30, %v10756_v28  ;;  %v10504_v37 = vld [vmem:[%s24558_s1 + $0x2a0] sm:$0xf]  ;;  %v10281_v44 = vor.u32 %v15240_v36, %v10280_v35 }
   0xa   :  { %5746 = vmatpush.bf16.msra.mxu2 %v10785_v21  ;;  %v10981_v38 = vor.u32 %v15415_v32, %v10980_v31  ;;  %v15296_v39 = vld [vmem:[%s24558_s1 + $0x2b8] sm:$0xf0]  ;;  %v10728_v40 = vld [vmem:[%s24558_s1 + $0x460] sm:$0xf]  ;;  %v10252_v47 = vld [vmem:[%s24558_s1 + $0xa8] sm:$0xf] }
   0xb   :  { %5759 = vmatpush.bf16.msra.mxu3 %v11009_v25  ;;  %v15352_v41 = vld [vmem:[%s24558_s1 + $0x478] sm:$0xf0]  ;;  %v10952_v42 = vld [vmem:[%s24558_s1 + $0x620] sm:$0xf]  ;;  %v10505_v45 = vor.u32 %v15296_v39, %v10504_v37  ;;  %v15233_v48 = vld [vmem:[%s24558_s1 + $0xc0] sm:$0xf0] }
   0xc   :  { %v15408_v43 = vld [vmem:[%s24558_s1 + $0x638] sm:$0xf0]  ;;  %5721 = vmatpush.bf16.msra.mxu0 %v10309_v29  ;;  %v10729_v46 = vor.u32 %v15352_v41, %v10728_v40  ;;  %v10476_v49 = vld [vmem:[%s24558_s1 + $0x268] sm:$0xf]  ;;  %v15289_v51 = vld [vmem:[%s24558_s1 + $0x280] sm:$0xf0]  ;;  %v10253_v56 = vor.u32 %v15233_v48, %v10252_v47 }
   0xd   :  { %5734 = vmatpush.bf16.msra.mxu1 %v10533_v33  ;;  %v10953_v50 = vor.u32 %v15408_v43, %v10952_v42  ;;  %v10700_v52 = vld [vmem:[%s24558_s1 + $0x428] sm:$0xf]  ;;  %v15345_v53 = vld [vmem:[%s24558_s1 + $0x440] sm:$0xf0]  ;;  %v10477_v57 = vor.u32 %v15289_v51, %v10476_v49  ;;  %v10224_v59 = vld [vmem:[%s24558_s1 + $0x70] sm:$0xf] }
   0xe   :  { %5747 = vmatpush.bf16.msra.mxu2 %v10757_v34  ;;  %v10924_v54 = vld [vmem:[%s24558_s1 + $0x5e8] sm:$0xf]  ;;  %v15401_v55 = vld [vmem:[%s24558_s1 + $0x600] sm:$0xf0]  ;;  %v10701_v58 = vor.u32 %v15345_v53, %v10700_v52  ;;  %v15226_v60 = vld [vmem:[%s24558_s1 + $0x88] sm:$0xf0] }
   0xf   :  { %5760 = vmatpush.bf16.msra.mxu3 %v10981_v38  ;;  %v10448_v61 = vld [vmem:[%s24558_s1 + $0x230] sm:$0xf]  ;;  %v10925_v62 = vor.u32 %v15401_v55, %v10924_v54  ;;  %v15282_v63 = vld [vmem:[%s24558_s1 + $0x248] sm:$0xf0]  ;;  %v10225_v4 = vor.u32 %v15226_v60, %v10224_v59  ;;  %v10196_v7 = vld [vmem:[%s24558_s1 + $0x38] sm:$0xf] }
  0x10   :  { %5722 = vmatpush.bf16.msra.mxu0 %v10281_v44  ;;  %v10672_v0 = vld [vmem:[%s24558_s1 + $0x3f0] sm:$0xf]  ;;  %v15338_v1 = vld [vmem:[%s24558_s1 + $0x408] sm:$0xf0]  ;;  %v10449_v5 = vor.u32 %v15282_v63, %v10448_v61  ;;  %v15219_v8 = vld [vmem:[%s24558_s1 + $0x50] sm:$0xf0] }
  0x11   :  { %5735 = vmatpush.bf16.msra.mxu1 %v10505_v45  ;;  %v10896_v2 = vld [vmem:[%s24558_s1 + $0x5b0] sm:$0xf]  ;;  %v15394_v3 = vld [vmem:[%s24558_s1 + $0x5c8] sm:$0xf0]  ;;  %v10673_v6 = vor.u32 %v15338_v1, %v10672_v0  ;;  %v10420_v9 = vld [vmem:[%s24558_s1 + $0x1f8] sm:$0xf]  ;;  %v10197_v16 = vor.u32 %v15219_v8, %v10196_v7 }
  0x12   :  { %5748 = vmatpush.bf16.msra.mxu2 %v10729_v46  ;;  %v10897_v10 = vor.u32 %v15394_v3, %v10896_v2  ;;  %v15275_v11 = vld [vmem:[%s24558_s1 + $0x210] sm:$0xf0]  ;;  %v10644_v12 = vld [vmem:[%s24558_s1 + $0x3b8] sm:$0xf]  ;;  %v10168_v17 = vld [vmem:[%s24558_s1] sm:$0xf] }
  0x13   :  { %5761 = vmatpush.bf16.msra.mxu3 %v10953_v50  ;;  %v15331_v13 = vld [vmem:[%s24558_s1 + $0x3d0] sm:$0xf0]  ;;  %v10868_v14 = vld [vmem:[%s24558_s1 + $0x578] sm:$0xf]  ;;  %v15212_v18 = vld [vmem:[%s24558_s1 + $0x18] sm:$0xf0]  ;;  %v10421_v19 = vor.u32 %v15275_v11, %v10420_v9 }
  0x14   :  { %5723 = vmatpush.bf16.msra.mxu0 %v10253_v56  ;;  %v15387_v15 = vld [vmem:[%s24558_s1 + $0x590] sm:$0xf0]  ;;  %v10645_v20 = vor.u32 %v15331_v13, %v10644_v12  ;;  %v10392_v21 = vld [vmem:[%s24558_s1 + $0x1c0] sm:$0xf]  ;;  %v15268_v22 = vld [vmem:[%s24558_s1 + $0x1d8] sm:$0xf0]  ;;  %v10169_v31 = vor.u32 %v15212_v18, %v10168_v17 }
  0x15   :  { %5736 = vmatpush.bf16.msra.mxu1 %v10477_v57  ;;  %v10616_v23 = vld [vmem:[%s24558_s1 + $0x380] sm:$0xf]  ;;  %v10869_v24 = vor.u32 %v15387_v15, %v10868_v14  ;;  %v15324_v25 = vld [vmem:[%s24558_s1 + $0x398] sm:$0xf0]  ;;  %v11260_v28 = vld [vmem:[%s24558_s1 + $0x888] sm:$0xf]  ;;  %v10393_v35 = vor.u32 %v15268_v22, %v10392_v21 }
  0x16   :  { %5749 = vmatpush.bf16.msra.mxu2 %v10701_v58  ;;  %v10840_v26 = vld [vmem:[%s24558_s1 + $0x540] sm:$0xf]  ;;  %v15380_v27 = vld [vmem:[%s24558_s1 + $0x558] sm:$0xf0]  ;;  %v15485_v29 = vld [vmem:[%s24558_s1 + $0x8a0] sm:$0xf0]  ;;  %v10617_v36 = vor.u32 %v15324_v25, %v10616_v23 }
  0x17   :  { %5762 = vmatpush.bf16.msra.mxu3 %v10925_v62  ;;  %v11484_v30 = vld [vmem:[%s24558_s1 + $0xa48] sm:$0xf]  ;;  %v15541_v32 = vld [vmem:[%s24558_s1 + $0xa60] sm:$0xf0]  ;;  %v10841_v39 = vor.u32 %v15380_v27, %v10840_v26  ;;  %v11261_v40 = vor.u32 %v15485_v29, %v11260_v28  ;;  %v11232_v43 = vld [vmem:[%s24558_s1 + $0x850] sm:$0xf] }
  0x18   :  { %5724 = vmatpush.bf16.msra.mxu0 %v10225_v4  ;;  %v11708_v33 = vld [vmem:[%s24558_s1 + $0xc08] sm:$0xf]  ;;  %v15597_v34 = vld [vmem:[%s24558_s1 + $0xc20] sm:$0xf0]  ;;  %v11485_v41 = vor.u32 %v15541_v32, %v11484_v30  ;;  %v15478_v44 = vld [vmem:[%s24558_s1 + $0x868] sm:$0xf0] }
  0x19   :  { %5737 = vmatpush.bf16.msra.mxu1 %v10449_v5  ;;  %v11932_v37 = vld [vmem:[%s24558_s1 + $0xdc8] sm:$0xf]  ;;  %v15653_v38 = vld [vmem:[%s24558_s1 + $0xde0] sm:$0xf0]  ;;  %v11709_v42 = vor.u32 %v15597_v34, %v11708_v33  ;;  %v11456_v45 = vld [vmem:[%s24558_s1 + $0xa10] sm:$0xf]  ;;  %v11233_v52 = vor.u32 %v15478_v44, %v11232_v43 }
  0x1a   :  { %5750 = vmatpush.bf16.msra.mxu2 %v10673_v6  ;;  %v11933_v46 = vor.u32 %v15653_v38, %v11932_v37  ;;  %v15534_v47 = vld [vmem:[%s24558_s1 + $0xa28] sm:$0xf0]  ;;  %v11680_v48 = vld [vmem:[%s24558_s1 + $0xbd0] sm:$0xf]  ;;  %v11204_v53 = vld [vmem:[%s24558_s1 + $0x818] sm:$0xf] }
  0x1b   :  { %5763 = vmatpush.bf16.msra.mxu3 %v10897_v10  ;;  %v15590_v49 = vld [vmem:[%s24558_s1 + $0xbe8] sm:$0xf0]  ;;  %v11904_v50 = vld [vmem:[%s24558_s1 + $0xd90] sm:$0xf]  ;;  %v11457_v54 = vor.u32 %v15534_v47, %v11456_v45  ;;  %v15471_v56 = vld [vmem:[%s24558_s1 + $0x830] sm:$0xf0] }
  0x1c   :  { %5725 = vmatpush.bf16.msra.mxu0 %v10197_v16  ;;  %v15646_v51 = vld [vmem:[%s24558_s1 + $0xda8] sm:$0xf0]  ;;  %v11681_v55 = vor.u32 %v15590_v49, %v11680_v48  ;;  %v11428_v57 = vld [vmem:[%s24558_s1 + $0x9d8] sm:$0xf]  ;;  %v15527_v58 = vld [vmem:[%s24558_s1 + $0x9f0] sm:$0xf0]  ;;  %v11205_v0 = vor.u32 %v15471_v56, %v11204_v53 }
  0x1d   :  { %5738 = vmatpush.bf16.msra.mxu1 %v10421_v19  ;;  %v11905_v59 = vor.u32 %v15646_v51, %v11904_v50  ;;  %v11652_v60 = vld [vmem:[%s24558_s1 + $0xb98] sm:$0xf]  ;;  %v15583_v61 = vld [vmem:[%s24558_s1 + $0xbb0] sm:$0xf0]  ;;  %v11429_v1 = vor.u32 %v15527_v58, %v11428_v57  ;;  %v11176_v2 = vld [vmem:[%s24558_s1 + $0x7e0] sm:$0xf] }
  0x1e   :  { %5751 = vmatpush.bf16.msra.mxu2 %v10645_v20  ;;  %v11876_v62 = vld [vmem:[%s24558_s1 + $0xd58] sm:$0xf]  ;;  %v15639_v63 = vld [vmem:[%s24558_s1 + $0xd70] sm:$0xf0]  ;;  %v39_v4 = vld [vmem:[%s24559_s0] sm:$0xff]  ;;  %v11653_v5 = vor.u32 %v15583_v61, %v11652_v60  ;;  %vm10160_vm4 = vcmask 80896  }
  0x1f   :  { %5764 = vmatpush.bf16.msra.mxu3 %v10869_v24  ;;  %v41_v3 = vld [vmem:[%s24559_s0 + $0x10] sm:$0xff]  ;;  %v15464_v6 = vld [vmem:[%s24558_s1 + $0x7f8] sm:$0xf0]  ;;  %v11400_v7 = vld [vmem:[%s24558_s1 + $0x9a0] sm:$0xf]  ;;  %v16816_v9 = vpack.c.bf16 %v39_v4, %v39_v4  ;;  %v11877_v11 = vor.u32 %v15639_v63, %v11876_v62 }
  0x20   :  { %5726 = vmatpush.bf16.msra.mxu0 %v10169_v31  ;;  %v16814_v8 = vpack.c.bf16 %v41_v3, %v41_v3  ;;  %v42_v10 = vld [vmem:[%s24559_s0 + $0x18] sm:$0xff]  ;;  %v11624_v13 = vld [vmem:[%s24558_s1 + $0xb60] sm:$0xf]  ;;  %v11177_v18 = vor.u32 %v15464_v6, %v11176_v2  ;;  %v40_v19 = vld [vmem:[%s24559_s0 + $0x8] sm:$0xff] }
  0x21   :  { %5739 = vmatpush.bf16.msra.mxu1 %v10393_v35  ;;  %v15520_v12 = vld [vmem:[%s24558_s1 + $0x9b8] sm:$0xf0]  ;;  %v16830_v15 = vpack.c.bf16 %v42_v10, %v42_v10  ;;  %v11848_v16 = vld [vmem:[%s24558_s1 + $0xd20] sm:$0xf]  ;;  %v11148_v22 = vld [vmem:[%s24558_s1 + $0x7a8] sm:$0xf]  ;;  %v16853_v25 = vpack.c.bf16 %v40_v19, %v40_v19 }
  0x22   :  { %5752 = vmatpush.bf16.msra.mxu2 %v10617_v36  ;;  %v15576_v14 = vld [vmem:[%s24558_s1 + $0xb78] sm:$0xf0]  ;;  %v11401_v20 = vor.u32 %v15520_v12, %v11400_v7  ;;  %v15457_v23 = vld [vmem:[%s24558_s1 + $0x7c0] sm:$0xf0]  ;;  %v11372_v24 = vld [vmem:[%s24558_s1 + $0x968] sm:$0xf] }
  0x23   :  { %5765 = vmatpush.bf16.msra.mxu3 %v10841_v39  ;;  %v15632_v17 = vld [vmem:[%s24558_s1 + $0xd38] sm:$0xf0]  ;;  %5727 = vmatmul.bf16.vlgmr.msra.gmra.mxu0 %v16816_v9  ;;  %v11625_v21 = vor.u32 %v15576_v14, %v11624_v13  ;;  %v15513_v27 = vld [vmem:[%s24558_s1 + $0x980] sm:$0xf0]  ;;  %v11596_v28 = vld [vmem:[%s24558_s1 + $0xb28] sm:$0xf]  ;;  %v11149_v32 = vor.u32 %v15457_v23, %v11148_v22 }
  0x24   :  { %5771 = vmatpush.bf16.msrb.mxu0 %v11261_v40  ;;  %v11849_v26 = vor.u32 %v15632_v17, %v11848_v16  ;;  %v15569_v29 = vld [vmem:[%s24558_s1 + $0xb40] sm:$0xf0]  ;;  %v11820_v30 = vld [vmem:[%s24558_s1 + $0xce8] sm:$0xf]  ;;  %5740 = vmatmul.bf16.vlgmr.msra.gmra.mxu1 %v16853_v25  ;;  %v11373_v33 = vor.u32 %v15513_v27, %v11372_v24  ;;  %v11120_v35 = vld [vmem:[%s24558_s1 + $0x770] sm:$0xf] }
  0x25   :  { %5784 = vmatpush.bf16.msrb.mxu1 %v11485_v41  ;;  %5753 = vmatmul.bf16.vlgmr.msra.gmra.mxu2 %v16814_v8  ;;  %v15625_v31 = vld [vmem:[%s24558_s1 + $0xd00] sm:$0xf0]  ;;  %v11597_v34 = vor.u32 %v15569_v29, %v11596_v28  ;;  %v15450_v36 = vld [vmem:[%s24558_s1 + $0x788] sm:$0xf0]  ;;  %v11344_v37 = vld [vmem:[%s24558_s1 + $0x930] sm:$0xf] }
  0x26   :  { %5797 = vmatpush.bf16.msrb.mxu2 %v11709_v42  ;;  %5766 = vmatmul.bf16.vlgmr.msra.gmra.mxu3 %v16830_v15  ;;  %v11821_v38 = vor.u32 %v15625_v31, %v11820_v30  ;;  %v15506_v39 = vld [vmem:[%s24558_s1 + $0x948] sm:$0xf0]  ;;  %v11568_v40 = vld [vmem:[%s24558_s1 + $0xaf0] sm:$0xf]  ;;  %v11121_v44 = vor.u32 %v15450_v36, %v11120_v35  ;;  %v11092_v47 = vld [vmem:[%s24558_s1 + $0x738] sm:$0xf] }
  0x27   :  { %5810 = vmatpush.bf16.msrb.mxu3 %v11933_v46  ;;  %v15562_v41 = vld [vmem:[%s24558_s1 + $0xb08] sm:$0xf0]  ;;  %v11792_v42 = vld [vmem:[%s24558_s1 + $0xcb0] sm:$0xf]  ;;  %v11345_v45 = vor.u32 %v15506_v39, %v11344_v37  ;;  %v15443_v48 = vld [vmem:[%s24558_s1 + $0x750] sm:$0xf0] }
  0x28   :  { %5772 = vmatpush.bf16.msrb.mxu0 %v11233_v52  ;;  %v15618_v43 = vld [vmem:[%s24558_s1 + $0xcc8] sm:$0xf0]  ;;  %v11569_v46 = vor.u32 %v15562_v41, %v11568_v40  ;;  %v11316_v49 = vld [vmem:[%s24558_s1 + $0x8f8] sm:$0xf]  ;;  %v15499_v51 = vld [vmem:[%s24558_s1 + $0x910] sm:$0xf0]  ;;  %v11093_v56 = vor.u32 %v15443_v48, %v11092_v47 }
  0x29   :  { %5785 = vmatpush.bf16.msrb.mxu1 %v11457_v54  ;;  %v11793_v50 = vor.u32 %v15618_v43, %v11792_v42  ;;  %v11540_v52 = vld [vmem:[%s24558_s1 + $0xab8] sm:$0xf]  ;;  %v15555_v53 = vld [vmem:[%s24558_s1 + $0xad0] sm:$0xf0]  ;;  %v11064_v57 = vld [vmem:[%s24558_s1 + $0x700] sm:$0xf] }
  0x2a   :  { %5798 = vmatpush.bf16.msrb.mxu2 %v11681_v55  ;;  %v11764_v54 = vld [vmem:[%s24558_s1 + $0xc78] sm:$0xf]  ;;  %v15611_v55 = vld [vmem:[%s24558_s1 + $0xc90] sm:$0xf0]  ;;  %v15436_v58 = vld [vmem:[%s24558_s1 + $0x718] sm:$0xf0]  ;;  %v11541_v60 = vor.u32 %v15555_v53, %v11540_v52 }
  0x2b   :  { %5811 = vmatpush.bf16.msrb.mxu3 %v11905_v59  ;;  %v11317_v59 = vor.u32 %v15499_v51, %v11316_v49  ;;  %v11288_v61 = vld [vmem:[%s24558_s1 + $0x8c0] sm:$0xf]  ;;  %v15492_v62 = vld [vmem:[%s24558_s1 + $0x8d8] sm:$0xf0]  ;;  %v12156_v4 = vld [vmem:[%s24558_s1 + $0xf88] sm:$0xf]  ;;  %v11065_v7 = vor.u32 %v15436_v58, %v11064_v57 }
  0x2c   :  { %5773 = vmatpush.bf16.msrb.mxu0 %v11205_v0  ;;  %v11512_v63 = vld [vmem:[%s24558_s1 + $0xa80] sm:$0xf]  ;;  %v11765_v0 = vor.u32 %v15611_v55, %v11764_v54  ;;  %v15604_v3 = vld [vmem:[%s24558_s1 + $0xc58] sm:$0xf0]  ;;  %v12380_v6 = vld [vmem:[%s24558_s1 + $0x1148] sm:$0xf]  ;;  %v11289_v13 = vor.u32 %v15492_v62, %v11288_v61 }
  0x2d   :  { %5786 = vmatpush.bf16.msrb.mxu1 %v11429_v1  ;;  %v15548_v1 = vld [vmem:[%s24558_s1 + $0xa98] sm:$0xf0]  ;;  %v11736_v2 = vld [vmem:[%s24558_s1 + $0xc40] sm:$0xf]  ;;  %v15765_v10 = vld [vmem:[%s24558_s1 + $0x1160] sm:$0xf0] }
  0x2e   :  { %5799 = vmatpush.bf16.msrb.mxu2 %v11653_v5  ;;  %v15709_v5 = vld [vmem:[%s24558_s1 + $0xfa0] sm:$0xf0]  ;;  %v11513_v14 = vor.u32 %v15548_v1, %v11512_v63  ;;  %v12828_v16 = vld [vmem:[%s24558_s1 + $0x14c8] sm:$0xf]  ;;  %v11737_v19 = vor.u32 %v15604_v3, %v11736_v2  ;;  %v46_v23 = vld [vmem:[%s24559_s0 + $0x38] sm:$0xff]  ;;  %v12381_v24 = vor.u32 %v15765_v10, %v12380_v6 }
  0x2f   :  { %5812 = vmatpush.bf16.msrb.mxu3 %v11877_v11  ;;  %v12604_v11 = vld [vmem:[%s24558_s1 + $0x1308] sm:$0xf]  ;;  %v15821_v12 = vld [vmem:[%s24558_s1 + $0x1320] sm:$0xf0]  ;;  %v15702_v27 = vld [vmem:[%s24558_s1 + $0xf68] sm:$0xf0] }
  0x30   :  { %5774 = vmatpush.bf16.msrb.mxu0 %v11177_v18  ;;  %v15877_v17 = vld [vmem:[%s24558_s1 + $0x14e0] sm:$0xf0]  ;;  %v45_v18 = vld [vmem:[%s24559_s0 + $0x30] sm:$0xff]  ;;  %v44_v29 = vld [vmem:[%s24559_s0 + $0x28] sm:$0xff] }
  0x31   :  { %5787 = vmatpush.bf16.msrb.mxu1 %v11401_v20  ;;  %v12157_v20 = vor.u32 %v15709_v5, %v12156_v4  ;;  %v43_v22 = vld [vmem:[%s24559_s0 + $0x20] sm:$0xff]  ;;  %v12352_v28 = vld [vmem:[%s24558_s1 + $0x1110] sm:$0xf]  ;;  %v12829_v30 = vor.u32 %v15877_v17, %v12828_v16  ;;  %v15758_v31 = vld [vmem:[%s24558_s1 + $0x1128] sm:$0xf0]  ;;  %v17009_v40 = vpack.c.bf16 %v44_v29, %v44_v29 }
  0x32   :  { %5800 = vmatpush.bf16.msrb.mxu2 %v11625_v21  ;;  %v12128_v21 = vld [vmem:[%s24558_s1 + $0xf50] sm:$0xf]  ;;  %v15870_v36 = vld [vmem:[%s24558_s1 + $0x14a8] sm:$0xf0]  ;;  %v17005_v37 = vpack.c.bf16 %v43_v22, %v43_v22  ;;  %v12353_v41 = vor.u32 %v15758_v31, %v12352_v28  ;;  %v12100_v43 = vld [vmem:[%s24558_s1 + $0xf18] sm:$0xf] }
  0x33   :  { %5813 = vmatpush.bf16.msrb.mxu3 %v11849_v26  ;;  %v12605_v26 = vor.u32 %v15821_v12, %v12604_v11  ;;  %v12800_v35 = vld [vmem:[%s24558_s1 + $0x1490] sm:$0xf]  ;;  %v12129_v39 = vor.u32 %v15702_v27, %v12128_v21  ;;  %v15751_v47 = vld [vmem:[%s24558_s1 + $0x10f0] sm:$0xf0]  ;;  %v12548_v48 = vld [vmem:[%s24558_s1 + $0x1298] sm:$0xf] }
  0x34   :  { %5775 = vmatpush.bf16.msrb.mxu0 %v11149_v32  ;;  %v12576_v32 = vld [vmem:[%s24558_s1 + $0x12d0] sm:$0xf]  ;;  %v15807_v49 = vld [vmem:[%s24558_s1 + $0x12b0] sm:$0xf0]  ;;  %v12072_v55 = vld [vmem:[%s24558_s1 + $0xee0] sm:$0xf] }
  0x35   :  { %5788 = vmatpush.bf16.msrb.mxu1 %v11373_v33  ;;  %v15814_v33 = vld [vmem:[%s24558_s1 + $0x12e8] sm:$0xf0]  ;;  %v15863_v51 = vld [vmem:[%s24558_s1 + $0x1470] sm:$0xf0]  ;;  %v12549_v54 = vor.u32 %v15807_v49, %v12548_v48  ;;  %v12296_v57 = vld [vmem:[%s24558_s1 + $0x10a0] sm:$0xf] }
  0x36   :  { %5801 = vmatpush.bf16.msrb.mxu2 %v11597_v34  ;;  %v16997_v34 = vpack.c.bf16 %v45_v18, %v45_v18  ;;  %v12577_v42 = vor.u32 %v15814_v33, %v12576_v32  ;;  %v15800_v61 = vld [vmem:[%s24558_s1 + $0x1278] sm:$0xf0]  ;;  %v12744_v62 = vld [vmem:[%s24558_s1 + $0x1420] sm:$0xf]  ;;  %v12044_v3 = vld [vmem:[%s24558_s1 + $0xea8] sm:$0xf] }
  0x37   :  { %5814 = vmatpush.bf16.msrb.mxu3 %v11821_v38  ;;  %v17007_v38 = vpack.c.bf16 %v46_v23, %v46_v23  ;;  %v15856_v63 = vld [vmem:[%s24558_s1 + $0x1438] sm:$0xf0]  ;;  %v15681_v4 = vld [vmem:[%s24558_s1 + $0xec0] sm:$0xf0]  ;;  %v12268_v5 = vld [vmem:[%s24558_s1 + $0x1068] sm:$0xf] }
  0x38   :  { %5776 = vmatpush.bf16.msrb.mxu0 %v11121_v44  ;;  %v15695_v44 = vld [vmem:[%s24558_s1 + $0xf30] sm:$0xf0]  ;;  %v12745_v6 = vor.u32 %v15856_v63, %v12744_v62  ;;  %v12492_v10 = vld [vmem:[%s24558_s1 + $0x1228] sm:$0xf]  ;;  %v15793_v11 = vld [vmem:[%s24558_s1 + $0x1240] sm:$0xf0] }
  0x39   :  { %5789 = vmatpush.bf16.msrb.mxu1 %v11345_v45  ;;  %v12324_v45 = vld [vmem:[%s24558_s1 + $0x10d8] sm:$0xf]  ;;  %v12101_v52 = vor.u32 %v15695_v44, %v12100_v43  ;;  %v12716_v12 = vld [vmem:[%s24558_s1 + $0x13e8] sm:$0xf]  ;;  %v12493_v17 = vor.u32 %v15793_v11, %v12492_v10  ;;  %v12016_v18 = vld [vmem:[%s24558_s1 + $0xe70] sm:$0xf] }
  0x3a   :  { %5802 = vmatpush.bf16.msrb.mxu2 %v11569_v46  ;;  %v12801_v46 = vor.u32 %v15870_v36, %v12800_v35  ;;  %v12325_v53 = vor.u32 %v15751_v47, %v12324_v45  ;;  %v15730_v22 = vld [vmem:[%s24558_s1 + $0x1048] sm:$0xf0]  ;;  %v12464_v23 = vld [vmem:[%s24558_s1 + $0x11f0] sm:$0xf]  ;;  %v11988_v31 = vld [vmem:[%s24558_s1 + $0xe38] sm:$0xf] }
  0x3b   :  { %5815 = vmatpush.bf16.msrb.mxu3 %v11793_v50  ;;  %v12772_v50 = vld [vmem:[%s24558_s1 + $0x1458] sm:$0xf]  ;;  %v15842_v27 = vld [vmem:[%s24558_s1 + $0x13c8] sm:$0xf0]  ;;  %v15667_v32 = vld [vmem:[%s24558_s1 + $0xe50] sm:$0xf0] }
  0x3c   :  { %5777 = vmatpush.bf16.msrb.mxu0 %v11093_v56  ;;  %v15688_v56 = vld [vmem:[%s24558_s1 + $0xef8] sm:$0xf0]  ;;  %v12773_v58 = vor.u32 %v15863_v51, %v12772_v50  ;;  %v12212_v33 = vld [vmem:[%s24558_s1 + $0xff8] sm:$0xf]  ;;  %v15723_v36 = vld [vmem:[%s24558_s1 + $0x1010] sm:$0xf0]  ;;  %v11989_v44 = vor.u32 %v15667_v32, %v11988_v31 }
  0x3d   :  { %5790 = vmatpush.bf16.msrb.mxu1 %v11317_v59  ;;  %v15744_v59 = vld [vmem:[%s24558_s1 + $0x10b8] sm:$0xf0]  ;;  %v15835_v43 = vld [vmem:[%s24558_s1 + $0x1390] sm:$0xf0]  ;;  %v11960_v45 = vld [vmem:[%s24558_s1 + $0xe00] sm:$0xf]  ;;  %v12213_v47 = vor.u32 %v15723_v36, %v12212_v33 }
  0x3e   :  { %5803 = vmatpush.bf16.msrb.mxu2 %v11541_v60  ;;  %v12520_v60 = vld [vmem:[%s24558_s1 + $0x1260] sm:$0xf]  ;;  %v12297_v1 = vor.u32 %v15744_v59, %v12296_v57  ;;  %v15716_v50 = vld [vmem:[%s24558_s1 + $0xfd8] sm:$0xf0]  ;;  %v15933_v57 = vld [vmem:[%s24558_s1 + $0x16a0] sm:$0xf0] }
  0x3f   :  { %5816 = vmatpush.bf16.msrb.mxu3 %v11765_v0  ;;  %v12073_v0 = vor.u32 %v15688_v56, %v12072_v55  ;;  %v12521_v2 = vor.u32 %v15800_v61, %v12520_v60  ;;  %v12184_v49 = vld [vmem:[%s24558_s1 + $0xfc0] sm:$0xf]  ;;  %v15828_v55 = vld [vmem:[%s24558_s1 + $0x1358] sm:$0xf0]  ;;  %v13052_v56 = vld [vmem:[%s24558_s1 + $0x1688] sm:$0xf] }
  0x40   :  { %5778 = vmatpush.bf16.msrb.mxu0 %v11065_v7  ;;  %v15737_v7 = vld [vmem:[%s24558_s1 + $0x1080] sm:$0xf0]  ;;  %v12408_v51 = vld [vmem:[%s24558_s1 + $0x1180] sm:$0xf]  ;;  %v13500_v61 = vld [vmem:[%s24558_s1 + $0x1a08] sm:$0xf]  ;;  %v12185_v63 = vor.u32 %v15716_v50, %v12184_v49 }
  0x41   :  { %5791 = vmatpush.bf16.msrb.mxu1 %v11289_v13  ;;  %v15849_v13 = vld [vmem:[%s24558_s1 + $0x1400] sm:$0xf0]  ;;  %v12269_v16 = vor.u32 %v15737_v7, %v12268_v5  ;;  %v13053_v5 = vor.u32 %v15933_v57, %v13052_v56  ;;  %v48_v7 = vld [vmem:[%s24559_s0 + $0x48] sm:$0xff]  ;;  %v50_v10 = vld [vmem:[%s24559_s0 + $0x58] sm:$0xff] }
  0x42   :  { %5804 = vmatpush.bf16.msrb.mxu2 %v11513_v14  ;;  %v12045_v14 = vor.u32 %v15681_v4, %v12044_v3  ;;  %v12717_v21 = vor.u32 %v15849_v13, %v12716_v12  ;;  %v15989_v60 = vld [vmem:[%s24558_s1 + $0x1860] sm:$0xf0]  ;;  %v13024_v13 = vld [vmem:[%s24558_s1 + $0x1650] sm:$0xf]  ;;  %v12996_v31 = vld [vmem:[%s24558_s1 + $0x1618] sm:$0xf] }
  0x43   :  { %5817 = vmatpush.bf16.msrb.mxu3 %v11737_v19  ;;  %5779 = vmatmul.bf16.vlgmr.msrb.gmra.mxu0 %v17005_v37  ;;  %v15674_v19 = vld [vmem:[%s24558_s1 + $0xe88] sm:$0xf0]  ;;  %v16045_v62 = vld [vmem:[%s24558_s1 + $0x1a20] sm:$0xf0]  ;;  %v15919_v32 = vld [vmem:[%s24558_s1 + $0x1630] sm:$0xf0] }
  0x44   :  { %5823 = vmatpush.bf16.msra.mxu0 %v12157_v20  ;;  %5792 = vmatmul.bf16.vlgmr.msrb.gmra.mxu1 %v17009_v40  ;;  %v12240_v20 = vld [vmem:[%s24558_s1 + $0x1030] sm:$0xf]  ;;  %v12017_v28 = vor.u32 %v15674_v19, %v12016_v18  ;;  %v47_v3 = vld [vmem:[%s24559_s0 + $0x40] sm:$0xff]  ;;  %v13501_v12 = vor.u32 %v16045_v62, %v13500_v61  ;;  %v15982_v19 = vld [vmem:[%s24558_s1 + $0x1828] sm:$0xf0] }
  0x45   :  { %5836 = vmatpush.bf16.msra.mxu1 %v12381_v24  ;;  %5805 = vmatmul.bf16.vlgmr.msrb.gmra.mxu2 %v16997_v34  ;;  %v15786_v24 = vld [vmem:[%s24558_s1 + $0x1208] sm:$0xf0]  ;;  %v12241_v29 = vor.u32 %v15730_v22, %v12240_v20  ;;  %v17204_v18 = vpack.c.bf16 %v47_v3, %v47_v3  ;;  %v13472_v20 = vld [vmem:[%s24558_s1 + $0x19d0] sm:$0xf]  ;;  %v13220_v33 = vld [vmem:[%s24558_s1 + $0x17d8] sm:$0xf] }
  0x46   :  { %5849 = vmatpush.bf16.msra.mxu2 %v12605_v26  ;;  %5818 = vmatmul.bf16.vlgmr.msrb.gmra.mxu3 %v17007_v38  ;;  %v12688_v26 = vld [vmem:[%s24558_s1 + $0x13b0] sm:$0xf]  ;;  %v15975_v36 = vld [vmem:[%s24558_s1 + $0x17f0] sm:$0xf0]  ;;  %v13192_v49 = vld [vmem:[%s24558_s1 + $0x17a0] sm:$0xf] }
  0x47   :  { %5862 = vmatpush.bf16.msra.mxu3 %v12829_v30  ;;  %v12465_v30 = vor.u32 %v15786_v24, %v12464_v23  ;;  %v12689_v35 = vor.u32 %v15842_v27, %v12688_v26  ;;  %v17217_v23 = vpack.c.bf16 %v48_v7, %v48_v7  ;;  %v13696_v24 = vld [vmem:[%s24558_s1 + $0x1b90] sm:$0xf]  ;;  %v16094_v26 = vld [vmem:[%s24558_s1 + $0x1ba8] sm:$0xf0]  ;;  %v17225_v27 = vpack.c.bf16 %v50_v10, %v50_v10  ;;  %v13164_v61 = vld [vmem:[%s24558_s1 + $0x1768] sm:$0xf] }
  0x48   :  { %5824 = vmatpush.bf16.msra.mxu0 %v12129_v39  ;;  %v12436_v39 = vld [vmem:[%s24558_s1 + $0x11b8] sm:$0xf]  ;;  %v16073_v3 = vld [vmem:[%s24558_s1 + $0x1b00] sm:$0xf0]  ;;  %v12912_v7 = vld [vmem:[%s24558_s1 + $0x1570] sm:$0xf] }
  0x49   :  { %5837 = vmatpush.bf16.msra.mxu1 %v12353_v41  ;;  %v15779_v41 = vld [vmem:[%s24558_s1 + $0x11d0] sm:$0xf0]  ;;  %v15898_v10 = vld [vmem:[%s24558_s1 + $0x1588] sm:$0xf0] }
  0x4a   :  { %5850 = vmatpush.bf16.msra.mxu2 %v12577_v42  ;;  %v12660_v42 = vld [vmem:[%s24558_s1 + $0x1378] sm:$0xf]  ;;  %v12437_v48 = vor.u32 %v15779_v41, %v12436_v39  ;;  %v16031_v41 = vld [vmem:[%s24558_s1 + $0x19b0] sm:$0xf0] }
  0x4b   :  { %5863 = vmatpush.bf16.msra.mxu3 %v12801_v46  ;;  %v15660_v46 = vld [vmem:[%s24558_s1 + $0xe18] sm:$0xf0]  ;;  %v13444_v39 = vld [vmem:[%s24558_s1 + $0x1998] sm:$0xf] }
  0x4c   :  { %5825 = vmatpush.bf16.msra.mxu0 %v12101_v52  ;;  %v12661_v52 = vor.u32 %v15835_v43, %v12660_v42  ;;  %v11961_v59 = vor.u32 %v15660_v46, %v11960_v45  ;;  %v13668_v42 = vld [vmem:[%s24558_s1 + $0x1b58] sm:$0xf]  ;;  %v16087_v43 = vld [vmem:[%s24558_s1 + $0x1b70] sm:$0xf0]  ;;  %v13221_v45 = vor.u32 %v15975_v36, %v13220_v33  ;;  %v13445_v46 = vor.u32 %v16031_v41, %v13444_v39  ;;  %v12856_v41 = vld [vmem:[%s24558_s1 + $0x1500] sm:$0xf] }
  0x4d   :  { %5838 = vmatpush.bf16.msra.mxu1 %v12325_v53  ;;  %v15772_v53 = vld [vmem:[%s24558_s1 + $0x1198] sm:$0xf0]  ;;  %v13669_v50 = vor.u32 %v16087_v43, %v13668_v42  ;;  %v16003_v33 = vld [vmem:[%s24558_s1 + $0x18d0] sm:$0xf0] }
  0x4e   :  { %5851 = vmatpush.bf16.msra.mxu2 %v12549_v54  ;;  %v12632_v54 = vld [vmem:[%s24558_s1 + $0x1340] sm:$0xf]  ;;  %v16059_v36 = vld [vmem:[%s24558_s1 + $0x1a90] sm:$0xf0]  ;;  %v15884_v42 = vld [vmem:[%s24558_s1 + $0x1518] sm:$0xf0] }
  0x4f   :  { %5864 = vmatpush.bf16.msra.mxu3 %v12773_v58  ;;  %v13276_v58 = vld [vmem:[%s24558_s1 + $0x1848] sm:$0xf]  ;;  %v12633_v4 = vor.u32 %v15828_v55, %v12632_v54  ;;  %v13640_v54 = vld [vmem:[%s24558_s1 + $0x1b20] sm:$0xf]  ;;  %v16080_v55 = vld [vmem:[%s24558_s1 + $0x1b38] sm:$0xf0] }
  0x50   :  { %5826 = vmatpush.bf16.msra.mxu0 %v12073_v0  ;;  %v12409_v0 = vor.u32 %v15772_v53, %v12408_v51  ;;  %v13277_v11 = vor.u32 %v15989_v60, %v13276_v58  ;;  %v15968_v51 = vld [vmem:[%s24558_s1 + $0x17b8] sm:$0xf0]  ;;  %v15905_v60 = vld [vmem:[%s24558_s1 + $0x15c0] sm:$0xf0]  ;;  %v13641_v62 = vor.u32 %v16080_v55, %v13640_v54  ;;  %v15314_v54 = vld [vmem:[%s24558_s1 + $0x34c] sm:$0xf]  ;;  %v12857_v55 = vor.u32 %v15884_v42, %v12856_v41 }
  0x51   :  { %5839 = vmatpush.bf16.msra.mxu1 %v12297_v1  ;;  %v13724_v1 = vld [vmem:[%s24558_s1 + $0x1bc8] sm:$0xf]  ;;  %v16024_v53 = vld [vmem:[%s24558_s1 + $0x1978] sm:$0xf0]  ;;  %v13193_v57 = vor.u32 %v15968_v51, %v13192_v49  ;;  %v10758_v41 = vld [vmem:[%s24558_s1 + $0x4b4] sm:$0xf0] }
  0x52   :  { %5852 = vmatpush.bf16.msra.mxu2 %v12521_v2  ;;  %v16101_v2 = vld [vmem:[%s24558_s1 + $0x1be0] sm:$0xf0]  ;;  %v15996_v49 = vld [vmem:[%s24558_s1 + $0x1898] sm:$0xf0] }
  0x53   :  { %5865 = vmatpush.bf16.msra.mxu3 %v12745_v6  ;;  %v49_v6 = vld [vmem:[%s24559_s0 + $0x50] sm:$0xff]  ;;  %v16052_v51 = vld [vmem:[%s24558_s1 + $0x1a58] sm:$0xf0] }
  0x54   :  { %5827 = vmatpush.bf16.msra.mxu0 %v12045_v14  ;;  %v15926_v14 = vld [vmem:[%s24558_s1 + $0x1668] sm:$0xf0]  ;;  %v17215_v22 = vpack.c.bf16 %v49_v6, %v49_v6  ;;  %v15412_v42 = vld [vmem:[%s24558_s1 + $0x65c] sm:$0xf] }
  0x55   :  { %5840 = vmatpush.bf16.msra.mxu1 %v12269_v16  ;;  %v13248_v16 = vld [vmem:[%s24558_s1 + $0x1810] sm:$0xf] }
  0x56   :  { %5853 = vmatpush.bf16.msra.mxu2 %v12493_v17  ;;  %v13725_v17 = vor.u32 %v16101_v2, %v13724_v1  ;;  %v16017_v1 = vld [vmem:[%s24558_s1 + $0x1940] sm:$0xf0]  ;;  %v13612_v2 = vld [vmem:[%s24558_s1 + $0x1ae8] sm:$0xf] }
  0x57   :  { %5866 = vmatpush.bf16.msra.mxu3 %v12717_v21  ;;  %v16038_v21 = vld [vmem:[%s24558_s1 + $0x19e8] sm:$0xf0] }
  0x58   :  { %5828 = vmatpush.bf16.msra.mxu0 %v12017_v28  ;;  %v13025_v28 = vor.u32 %v15926_v14, %v13024_v13  ;;  %v15954_v13 = vld [vmem:[%s24558_s1 + $0x1748] sm:$0xf0]  ;;  %v13360_v14 = vld [vmem:[%s24558_s1 + $0x18f0] sm:$0xf] }
  0x59   :  { %5841 = vmatpush.bf16.msra.mxu1 %v12241_v29  ;;  %v13249_v29 = vor.u32 %v15982_v19, %v13248_v16  ;;  %v16010_v16 = vld [vmem:[%s24558_s1 + $0x1908] sm:$0xf0] }
  0x5a   :  { %5854 = vmatpush.bf16.msra.mxu2 %v12465_v30  ;;  %v13473_v30 = vor.u32 %v16038_v21, %v13472_v20  ;;  %v16066_v19 = vld [vmem:[%s24558_s1 + $0x1ac8] sm:$0xf0]  ;;  %v12913_v20 = vor.u32 %v15898_v10, %v12912_v7  ;;  %v15251_v7 = vld [vmem:[%s24558_s1 + $0x154] sm:$0xf]  ;;  %v10338_v10 = vld [vmem:[%s24558_s1 + $0x16c] sm:$0xf0] }
  0x5b   :  { %5867 = vmatpush.bf16.msra.mxu3 %v12689_v35  ;;  %v13697_v35 = vor.u32 %v16094_v26, %v13696_v24  ;;  %v13361_v24 = vor.u32 %v16010_v16, %v13360_v14  ;;  %v12884_v26 = vld [vmem:[%s24558_s1 + $0x1538] sm:$0xf]  ;;  %v10562_v14 = vld [vmem:[%s24558_s1 + $0x32c] sm:$0xf0]  ;;  %v15363_v16 = vld [vmem:[%s24558_s1 + $0x4d4] sm:$0xf] }
  0x5c   :  { %5829 = vmatpush.bf16.msra.mxu0 %v11989_v44  ;;  %v12997_v44 = vor.u32 %v15919_v32, %v12996_v31  ;;  %v15947_v31 = vld [vmem:[%s24558_s1 + $0x1710] sm:$0xf0]  ;;  %v13332_v32 = vld [vmem:[%s24558_s1 + $0x18b8] sm:$0xf] }
  0x5d   :  { %5842 = vmatpush.bf16.msra.mxu1 %v12213_v47  ;;  %v12968_v47 = vld [vmem:[%s24558_s1 + $0x15e0] sm:$0xf] }
  0x5e   :  { %5855 = vmatpush.bf16.msra.mxu2 %v12437_v48  ;;  %v15912_v48 = vld [vmem:[%s24558_s1 + $0x15f8] sm:$0xf0] }
  0x5f   :  { %5868 = vmatpush.bf16.msra.mxu3 %v12661_v52  ;;  %v13416_v52 = vld [vmem:[%s24558_s1 + $0x1960] sm:$0xf]  ;;  %v12969_v56 = vor.u32 %v15912_v48, %v12968_v47 }
  0x60   :  { %5830 = vmatpush.bf16.msra.mxu0 %v11961_v59  ;;  %v13417_v58 = vor.u32 %v16024_v53, %v13416_v52  ;;  %v12940_v59 = vld [vmem:[%s24558_s1 + $0x15a8] sm:$0xf]  ;;  %v13304_v47 = vld [vmem:[%s24558_s1 + $0x1880] sm:$0xf]  ;;  %v15258_v52 = vld [vmem:[%s24558_s1 + $0x18c] sm:$0xf] }
  0x61   :  { %5843 = vmatpush.bf16.msra.mxu1 %v12185_v63  ;;  %v15961_v63 = vld [vmem:[%s24558_s1 + $0x1780] sm:$0xf0]  ;;  %v10366_v53 = vld [vmem:[%s24558_s1 + $0x1a4] sm:$0xf0] }
  0x62   :  { %5856 = vmatpush.bf16.msra.mxu2 %v12409_v0  ;;  %v13388_v0 = vld [vmem:[%s24558_s1 + $0x1928] sm:$0xf] }
  0x63   :  { %5869 = vmatpush.bf16.msra.mxu3 %v12633_v4  ;;  %5831 = vmatmul.bf16.vlgmr.msra.gmra.mxu0 %v17204_v18  ;;  %v12941_v4 = vor.u32 %v15905_v60, %v12940_v59  ;;  %v13389_v6 = vor.u32 %v16017_v1, %v13388_v0  ;;  %v13305_v60 = vor.u32 %v15996_v49, %v13304_v47  ;;  %v15237_v47 = vld [vmem:[%s24558_s1 + $0xe4] sm:$0xf] }
  0x64   :  { %5875 = vmatpush.bf16.msrb.mxu0 %v13053_v5  ;;  %5844 = vmatmul.bf16.vlgmr.msra.gmra.mxu1 %v17217_v23  ;;  %v13165_v5 = vor.u32 %v15961_v63, %v13164_v61  ;;  %v15426_v61 = vld [vmem:[%s24558_s1 + $0x6cc] sm:$0xf]  ;;  %v51_v63 = vld [vmem:[%s24559_s0 + $0x60] sm:$0xff]  ;;  %v10369_v1 = vor.u32 %v15258_v52, %v10366_v53 }
  0x65   :  { %5888 = vmatpush.bf16.msrb.mxu1 %v13277_v11  ;;  %5857 = vmatmul.bf16.vlgmr.msra.gmra.mxu2 %v17215_v22  ;;  %v13136_v11 = vld [vmem:[%s24558_s1 + $0x1730] sm:$0xf]  ;;  %v15293_v49 = vld [vmem:[%s24558_s1 + $0x2a4] sm:$0xf]  ;;  %v10730_v53 = vld [vmem:[%s24558_s1 + $0x47c] sm:$0xf0] }
  0x66   :  { %5901 = vmatpush.bf16.msrb.mxu2 %v13501_v12  ;;  %5870 = vmatmul.bf16.vlgmr.msra.gmra.mxu3 %v17225_v27  ;;  %v13613_v12 = vor.u32 %v16073_v3, %v13612_v2  ;;  %v13137_v21 = vor.u32 %v15954_v13, %v13136_v11  ;;  %v53_v2 = vld [vmem:[%s24559_s0 + $0x70] sm:$0xff]  ;;  %v52_v3 = vld [vmem:[%s24559_s0 + $0x68] sm:$0xff]  ;;  %v17420_v13 = vpack.c.bf16 %v51_v63, %v51_v63  ;;  %v15349_v52 = vld [vmem:[%s24558_s1 + $0x464] sm:$0xf] }
  0x67   :  { %5914 = vmatpush.bf16.msrb.mxu3 %v13725_v17  ;;  %v13584_v17 = vld [vmem:[%s24558_s1 + $0x1ab0] sm:$0xf]  ;;  %v15307_v11 = vld [vmem:[%s24558_s1 + $0x314] sm:$0xf]  ;;  %v10478_v63 = vld [vmem:[%s24558_s1 + $0x284] sm:$0xf0] }
  0x68   :  { %5876 = vmatpush.bf16.msrb.mxu0 %v13025_v28  ;;  %v15891_v28 = vld [vmem:[%s24558_s1 + $0x1550] sm:$0xf0] }
  0x69   :  { %5889 = vmatpush.bf16.msrb.mxu1 %v13249_v29  ;;  %v13108_v29 = vld [vmem:[%s24558_s1 + $0x16f8] sm:$0xf]  ;;  %v12885_v39 = vor.u32 %v15891_v28, %v12884_v26  ;;  %v10341_v28 = vor.u32 %v15251_v7, %v10338_v10  ;;  %v15223_v7 = vld [vmem:[%s24558_s1 + $0x74] sm:$0xf]  ;;  %v10226_v10 = vld [vmem:[%s24558_s1 + $0x8c] sm:$0xf0] }
  0x6a   :  { %5902 = vmatpush.bf16.msrb.mxu2 %v13473_v30  ;;  %v13585_v30 = vor.u32 %v16066_v19, %v13584_v17  ;;  %v13109_v43 = vor.u32 %v15947_v31, %v13108_v29  ;;  %v10786_v17 = vld [vmem:[%s24558_s1 + $0x4ec] sm:$0xf0]  ;;  %v17431_v19 = vpack.c.bf16 %v53_v2, %v53_v2  ;;  %v10565_v29 = vor.u32 %v15307_v11, %v10562_v14  ;;  %v15244_v31 = vld [vmem:[%s24558_s1 + $0x11c] sm:$0xf]  ;;  %v15398_v2 = vld [vmem:[%s24558_s1 + $0x5ec] sm:$0xf] }
  0x6b   :  { %5915 = vmatpush.bf16.msrb.mxu3 %v13697_v35  ;;  %v13556_v35 = vld [vmem:[%s24558_s1 + $0x1a78] sm:$0xf]  ;;  %v15279_v11 = vld [vmem:[%s24558_s1 + $0x234] sm:$0xf]  ;;  %v10450_v14 = vld [vmem:[%s24558_s1 + $0x24c] sm:$0xf0] }
  0x6c   :  { %5877 = vmatpush.bf16.msrb.mxu0 %v12997_v44  ;;  %v13333_v44 = vor.u32 %v16003_v33, %v13332_v32  ;;  %v13557_v48 = vor.u32 %v16059_v36, %v13556_v35  ;;  %v10310_v32 = vld [vmem:[%s24558_s1 + $0x134] sm:$0xf0]  ;;  %v15300_v33 = vld [vmem:[%s24558_s1 + $0x2dc] sm:$0xf] }
  0x6d   :  { %5890 = vmatpush.bf16.msrb.mxu1 %v13221_v45  ;;  %v13080_v45 = vld [vmem:[%s24558_s1 + $0x16c0] sm:$0xf]  ;;  %v10534_v36 = vld [vmem:[%s24558_s1 + $0x2f4] sm:$0xf0] }
  0x6e   :  { %5903 = vmatpush.bf16.msrb.mxu2 %v13445_v46  ;;  %v15940_v46 = vld [vmem:[%s24558_s1 + $0x16d8] sm:$0xf0] }
  0x6f   :  { %5916 = vmatpush.bf16.msrb.mxu3 %v13669_v50  ;;  %v13528_v50 = vld [vmem:[%s24558_s1 + $0x1a40] sm:$0xf]  ;;  %v13081_v59 = vor.u32 %v15940_v46, %v13080_v45  ;;  %v10537_v45 = vor.u32 %v15300_v33, %v10534_v36  ;;  %v15272_v33 = vld [vmem:[%s24558_s1 + $0x1fc] sm:$0xf]  ;;  %v10422_v36 = vld [vmem:[%s24558_s1 + $0x214] sm:$0xf0] }
  0x70   :  { %5878 = vmatpush.bf16.msrb.mxu0 %v12969_v56  ;;  %v10590_v56 = vld [vmem:[%s24558_s1 + $0x364] sm:$0xf0]  ;;  %v13529_v0 = vor.u32 %v16052_v51, %v13528_v50  ;;  %v10506_v51 = vld [vmem:[%s24558_s1 + $0x2bc] sm:$0xf0] }
  0x71   :  { %5891 = vmatpush.bf16.msrb.mxu1 %v13193_v57  ;;  %v15370_v57 = vld [vmem:[%s24558_s1 + $0x50c] sm:$0xf] }
  0x72   :  { %5904 = vmatpush.bf16.msrb.mxu2 %v13417_v58  ;;  %v10814_v58 = vld [vmem:[%s24558_s1 + $0x524] sm:$0xf0] }
  0x73   :  { %5917 = vmatpush.bf16.msrb.mxu3 %v13641_v62  ;;  %v11038_v62 = vld [vmem:[%s24558_s1 + $0x6e4] sm:$0xf0] }
  0x74   :  { %5879 = vmatpush.bf16.msrb.mxu0 %v12941_v4  ;;  %v54_v4 = vld [vmem:[%s24559_s0 + $0x78] sm:$0xff] }
  0x75   :  { %5892 = vmatpush.bf16.msrb.mxu1 %v13165_v5  ;;  %v10593_v5 = vor.u32 %v15314_v54, %v10590_v56  ;;  %v17441_v26 = vpack.c.bf16 %v54_v4, %v54_v4  ;;  %v15405_v54 = vld [vmem:[%s24558_s1 + $0x624] sm:$0xf] }
  0x76   :  { %5905 = vmatpush.bf16.msrb.mxu2 %v13389_v6  ;;  %v10817_v6 = vor.u32 %v15370_v57, %v10814_v58  ;;  %v10509_v57 = vor.u32 %v15293_v49, %v10506_v51  ;;  %v10733_v58 = vor.u32 %v15349_v52, %v10730_v53  ;;  %v15265_v49 = vld [vmem:[%s24558_s1 + $0x1c4] sm:$0xf]  ;;  %v10618_v53 = vld [vmem:[%s24558_s1 + $0x39c] sm:$0xf0] }
  0x77   :  { %5918 = vmatpush.bf16.msrb.mxu3 %v13613_v12  ;;  %v11041_v12 = vor.u32 %v15426_v61, %v11038_v62  ;;  %v15286_v61 = vld [vmem:[%s24558_s1 + $0x26c] sm:$0xf]  ;;  %v15321_v51 = vld [vmem:[%s24558_s1 + $0x384] sm:$0xf] }
  0x78   :  { %5880 = vmatpush.bf16.msrb.mxu0 %v12913_v20  ;;  %v17433_v20 = vpack.c.bf16 %v52_v3, %v52_v3  ;;  %v10926_v3 = vld [vmem:[%s24558_s1 + $0x604] sm:$0xf0] }
  0x79   :  { %5893 = vmatpush.bf16.msrb.mxu1 %v13137_v21  ;;  %v15419_v21 = vld [vmem:[%s24558_s1 + $0x694] sm:$0xf] }
  0x7a   :  { %5906 = vmatpush.bf16.msrb.mxu2 %v13361_v24  ;;  %v11010_v24 = vld [vmem:[%s24558_s1 + $0x6ac] sm:$0xf0] }
  0x7b   :  { %5919 = vmatpush.bf16.msrb.mxu3 %v13585_v30  ;;  %v10789_v30 = vor.u32 %v15363_v16, %v10786_v17  ;;  %v11013_v35 = vor.u32 %v15419_v21, %v11010_v24  ;;  %v15335_v16 = vld [vmem:[%s24558_s1 + $0x3f4] sm:$0xf]  ;;  %v10674_v17 = vld [vmem:[%s24558_s1 + $0x40c] sm:$0xf0] }
  0x7c   :  { %5881 = vmatpush.bf16.msrb.mxu0 %v12885_v39  ;;  %v15356_v39 = vld [vmem:[%s24558_s1 + $0x49c] sm:$0xf]  ;;  %v15391_v21 = vld [vmem:[%s24558_s1 + $0x5b4] sm:$0xf]  ;;  %v10898_v24 = vld [vmem:[%s24558_s1 + $0x5cc] sm:$0xf0] }
  0x7d   :  { %5894 = vmatpush.bf16.msrb.mxu1 %v13109_v43  ;;  %v10982_v43 = vld [vmem:[%s24558_s1 + $0x674] sm:$0xf0]  ;;  %v10761_v46 = vor.u32 %v15356_v39, %v10758_v41  ;;  %v15328_v39 = vld [vmem:[%s24558_s1 + $0x3bc] sm:$0xf] }
  0x7e   :  { %5907 = vmatpush.bf16.msrb.mxu2 %v13333_v44  ;;  %v10313_v44 = vor.u32 %v15244_v31, %v10310_v32  ;;  %v10985_v50 = vor.u32 %v15412_v42, %v10982_v43  ;;  %v15216_v31 = vld [vmem:[%s24558_s1 + $0x3c] sm:$0xf]  ;;  %v10198_v32 = vld [vmem:[%s24558_s1 + $0x54] sm:$0xf0] }
  0x7f   :  { %5920 = vmatpush.bf16.msrb.mxu3 %v13557_v48  ;;  %v10282_v48 = vld [vmem:[%s24558_s1 + $0xfc] sm:$0xf0]  ;;  %v10646_v41 = vld [vmem:[%s24558_s1 + $0x3d4] sm:$0xf0]  ;;  %v15384_v42 = vld [vmem:[%s24558_s1 + $0x57c] sm:$0xf] }
  0x80   :  { %5882 = vmatpush.bf16.msrb.mxu0 %v12857_v55  ;;  %v10954_v55 = vld [vmem:[%s24558_s1 + $0x63c] sm:$0xf0]  ;;  %v10285_v56 = vor.u32 %v15237_v47, %v10282_v48  ;;  %v10870_v43 = vld [vmem:[%s24558_s1 + $0x594] sm:$0xf0]  ;;  %v10425_v47 = vor.u32 %v15272_v33, %v10422_v36  ;;  %v10649_v48 = vor.u32 %v15328_v39, %v10646_v41  ;;  %v15524_v33 = vld [vmem:[%s24558_s1 + $0x9dc] sm:$0xf] }
  0x81   :  { %5895 = vmatpush.bf16.msrb.mxu1 %v13081_v59  ;;  %v15230_v59 = vld [vmem:[%s24558_s1 + $0xac] sm:$0xf]  ;;  %v10957_v62 = vor.u32 %v15405_v54, %v10954_v55  ;;  %v10873_v52 = vor.u32 %v15384_v42, %v10870_v43  ;;  %v15377_v54 = vld [vmem:[%s24558_s1 + $0x544] sm:$0xf]  ;;  %v10842_v55 = vld [vmem:[%s24558_s1 + $0x55c] sm:$0xf0] }
  0x82   :  { %5908 = vmatpush.bf16.msrb.mxu2 %v13305_v60  ;;  %v10254_v60 = vld [vmem:[%s24558_s1 + $0xc4] sm:$0xf0]  ;;  %v11430_v36 = vld [vmem:[%s24558_s1 + $0x9f4] sm:$0xf0]  ;;  %v15580_v39 = vld [vmem:[%s24558_s1 + $0xb9c] sm:$0xf] }
  0x83   :  { %5921 = vmatpush.bf16.msrb.mxu3 %v13529_v0  ;;  %5883 = vmatmul.bf16.vlgmr.msrb.gmra.mxu0 %v17420_v13  ;;  %v15342_v0 = vld [vmem:[%s24558_s1 + $0x42c] sm:$0xf]  ;;  %v10257_v4 = vor.u32 %v15230_v59, %v10254_v60  ;;  %v11486_v60 = vld [vmem:[%s24558_s1 + $0xa64] sm:$0xf0]  ;;  %v11654_v41 = vld [vmem:[%s24558_s1 + $0xbb4] sm:$0xf0] }
  0x84   :  { %5927 = vmatpush.bf16.msra.mxu0 %v10369_v1  ;;  %5896 = vmatmul.bf16.vlgmr.msrb.gmra.mxu1 %v17433_v20  ;;  %v10702_v1 = vld [vmem:[%s24558_s1 + $0x444] sm:$0xf0]  ;;  %v15636_v42 = vld [vmem:[%s24558_s1 + $0xd5c] sm:$0xf]  ;;  %v11878_v43 = vld [vmem:[%s24558_s1 + $0xd74] sm:$0xf0] }
  0x85   :  { %5940 = vmatpush.bf16.msra.mxu1 %v10593_v5  ;;  %5909 = vmatmul.bf16.vlgmr.msrb.gmra.mxu2 %v17431_v19  ;;  %v10481_v5 = vor.u32 %v15286_v61, %v10478_v63  ;;  %v15594_v61 = vld [vmem:[%s24558_s1 + $0xc0c] sm:$0xf] }
  0x86   :  { %5953 = vmatpush.bf16.msra.mxu2 %v10817_v6  ;;  %5922 = vmatmul.bf16.vlgmr.msrb.gmra.mxu3 %v17441_v26  ;;  %v10705_v6 = vor.u32 %v15342_v0, %v10702_v1  ;;  %v10621_v0 = vor.u32 %v15321_v51, %v10618_v53  ;;  %v15650_v1 = vld [vmem:[%s24558_s1 + $0xdcc] sm:$0xf]  ;;  %v11881_v51 = vor.u32 %v15636_v42, %v11878_v43  ;;  %v11626_v53 = vld [vmem:[%s24558_s1 + $0xb7c] sm:$0xf0]  ;;  %v15496_v42 = vld [vmem:[%s24558_s1 + $0x8fc] sm:$0xf] }
  0x87   :  { %5966 = vmatpush.bf16.msra.mxu3 %v11041_v12  ;;  %v10929_v12 = vor.u32 %v15398_v2, %v10926_v3  ;;  %v11934_v2 = vld [vmem:[%s24558_s1 + $0xde4] sm:$0xf0]  ;;  %v10845_v3 = vor.u32 %v15377_v54, %v10842_v55  ;;  %v1095_v54 = vld [vmem:[%s24560_s2] sm:$0x7f] }
  0x88   :  { %5928 = vmatpush.bf16.msra.mxu0 %v10341_v28  ;;  %v10229_v28 = vor.u32 %v15223_v7, %v10226_v10  ;;  %v15475_v7 = vld [vmem:[%s24558_s1 + $0x854] sm:$0xf]  ;;  %v11234_v10 = vld [vmem:[%s24558_s1 + $0x86c] sm:$0xf0]  ;;  %v15629_v55 = vld [vmem:[%s24558_s1 + $0xd24] sm:$0xf] }
  0x89   :  { %5941 = vmatpush.bf16.msra.mxu1 %v10565_v29  ;;  %v10453_v29 = vor.u32 %v15279_v11, %v10450_v14  ;;  %v15531_v11 = vld [vmem:[%s24558_s1 + $0xa14] sm:$0xf]  ;;  %v11458_v14 = vld [vmem:[%s24558_s1 + $0xa2c] sm:$0xf0] }
  0x8a   :  { %5954 = vmatpush.bf16.msra.mxu2 %v10789_v30  ;;  %v10677_v30 = vor.u32 %v15335_v16, %v10674_v17  ;;  %v15587_v16 = vld [vmem:[%s24558_s1 + $0xbd4] sm:$0xf]  ;;  %v11682_v17 = vld [vmem:[%s24558_s1 + $0xbec] sm:$0xf0] }
  0x8b   :  { %5967 = vmatpush.bf16.msra.mxu3 %v11013_v35  ;;  %v10901_v35 = vor.u32 %v15391_v21, %v10898_v24  ;;  %v15643_v21 = vld [vmem:[%s24558_s1 + $0xd94] sm:$0xf]  ;;  %v11906_v24 = vld [vmem:[%s24558_s1 + $0xdac] sm:$0xf0] }
  0x8c   :  { %5929 = vmatpush.bf16.msra.mxu0 %v10313_v44  ;;  %v10201_v44 = vor.u32 %v15216_v31, %v10198_v32  ;;  %v15468_v31 = vld [vmem:[%s24558_s1 + $0x81c] sm:$0xf]  ;;  %v11206_v32 = vld [vmem:[%s24558_s1 + $0x834] sm:$0xf0] }
  0x8d   :  { %5942 = vmatpush.bf16.msra.mxu1 %v10537_v45  ;;  %v15209_v45 = vld [vmem:[%s24558_s1 + $0x4] sm:$0xf] }
  0x8e   :  { %5955 = vmatpush.bf16.msra.mxu2 %v10761_v46  ;;  %v10170_v46 = vld [vmem:[%s24558_s1 + $0x1c] sm:$0xf0] }
  0x8f   :  { %5968 = vmatpush.bf16.msra.mxu3 %v10985_v50  ;;  %v10394_v50 = vld [vmem:[%s24558_s1 + $0x1dc] sm:$0xf0]  ;;  %v10173_v59 = vor.u32 %v15209_v45, %v10170_v46  ;;  %v15461_v45 = vld [vmem:[%s24558_s1 + $0x7e4] sm:$0xf]  ;;  %v11433_v46 = vor.u32 %v15524_v33, %v11430_v36 }
  0x90   :  { %5930 = vmatpush.bf16.msra.mxu0 %v10285_v56  ;;  %v15482_v56 = vld [vmem:[%s24558_s1 + $0x88c] sm:$0xf]  ;;  %v10397_v63 = vor.u32 %v15265_v49, %v10394_v50  ;;  %v15517_v49 = vld [vmem:[%s24558_s1 + $0x9a4] sm:$0xf]  ;;  %v11402_v50 = vld [vmem:[%s24558_s1 + $0x9bc] sm:$0xf0] }
  0x91   :  { %5943 = vmatpush.bf16.msra.mxu1 %v10509_v57  ;;  %v11262_v57 = vld [vmem:[%s24558_s1 + $0x8a4] sm:$0xf0] }
  0x92   :  { %5956 = vmatpush.bf16.msra.mxu2 %v10733_v58  ;;  %v15538_v58 = vld [vmem:[%s24558_s1 + $0xa4c] sm:$0xf] }
  0x93   :  { %5969 = vmatpush.bf16.msra.mxu3 %v10957_v62  ;;  %v11710_v62 = vld [vmem:[%s24558_s1 + $0xc24] sm:$0xf0] }
  0x94   :  { %5931 = vmatpush.bf16.msra.mxu0 %v10257_v4  ;;  %v11265_v4 = vor.u32 %v15482_v56, %v11262_v57  ;;  %v11850_v56 = vld [vmem:[%s24558_s1 + $0xd3c] sm:$0xf0] }
  0x95   :  { %5944 = vmatpush.bf16.msra.mxu1 %v10481_v5  ;;  %v11489_v5 = vor.u32 %v15538_v58, %v11486_v60  ;;  %v15454_v58 = vld [vmem:[%s24558_s1 + $0x7ac] sm:$0xf] }
  0x96   :  { %5957 = vmatpush.bf16.msra.mxu2 %v10705_v6  ;;  %v11713_v6 = vor.u32 %v15594_v61, %v11710_v62  ;;  %v11150_v61 = vld [vmem:[%s24558_s1 + $0x7c4] sm:$0xf0]  ;;  %v15510_v62 = vld [vmem:[%s24558_s1 + $0x96c] sm:$0xf] }
  0x97   :  { %5970 = vmatpush.bf16.msra.mxu3 %v10929_v12  ;;  %v11937_v12 = vor.u32 %v15650_v1, %v11934_v2  ;;  %v11374_v1 = vld [vmem:[%s24558_s1 + $0x984] sm:$0xf0]  ;;  %v15566_v2 = vld [vmem:[%s24558_s1 + $0xb2c] sm:$0xf] }
  0x98   :  { %5932 = vmatpush.bf16.msra.mxu0 %v10229_v28  ;;  %v11237_v28 = vor.u32 %v15475_v7, %v11234_v10  ;;  %v11377_v10 = vor.u32 %v15510_v62, %v11374_v1  ;;  %v15601_v1 = vld [vmem:[%s24558_s1 + $0xc44] sm:$0xf] }
  0x99   :  { %5945 = vmatpush.bf16.msra.mxu1 %v10453_v29  ;;  %v11461_v29 = vor.u32 %v15531_v11, %v11458_v14  ;;  %v11122_v14 = vld [vmem:[%s24558_s1 + $0x78c] sm:$0xf0] }
  0x9a   :  { %5958 = vmatpush.bf16.msra.mxu2 %v10677_v30  ;;  %v11685_v30 = vor.u32 %v15587_v16, %v11682_v17  ;;  %v15503_v16 = vld [vmem:[%s24558_s1 + $0x934] sm:$0xf] }
  0x9b   :  { %5971 = vmatpush.bf16.msra.mxu3 %v10901_v35  ;;  %v11909_v35 = vor.u32 %v15643_v21, %v11906_v24  ;;  %v11346_v24 = vld [vmem:[%s24558_s1 + $0x94c] sm:$0xf0] }
  0x9c   :  { %5933 = vmatpush.bf16.msra.mxu0 %v10201_v44  ;;  %v11209_v44 = vor.u32 %v15468_v31, %v11206_v32  ;;  %v11794_v31 = vld [vmem:[%s24558_s1 + $0xccc] sm:$0xf0] }
  0x9d   :  { %5946 = vmatpush.bf16.msra.mxu1 %v10425_v47  ;;  %v11657_v47 = vor.u32 %v15580_v39, %v11654_v41  ;;  %v15440_v39 = vld [vmem:[%s24558_s1 + $0x73c] sm:$0xf]  ;;  %v11094_v41 = vld [vmem:[%s24558_s1 + $0x754] sm:$0xf0] }
  0x9e   :  { %5959 = vmatpush.bf16.msra.mxu2 %v10649_v48  ;;  %v11178_v48 = vld [vmem:[%s24558_s1 + $0x7fc] sm:$0xf0] }
  0x9f   :  { %5972 = vmatpush.bf16.msra.mxu3 %v10873_v52  ;;  %v15573_v52 = vld [vmem:[%s24558_s1 + $0xb64] sm:$0xf]  ;;  %v11181_v57 = vor.u32 %v15461_v45, %v11178_v48  ;;  %v11318_v45 = vld [vmem:[%s24558_s1 + $0x914] sm:$0xf0] }
  0xa0   :  { %5934 = vmatpush.bf16.msra.mxu0 %v10173_v59  ;;  %v11405_v59 = vor.u32 %v15517_v49, %v11402_v50  ;;  %v11629_v60 = vor.u32 %v15573_v52, %v11626_v53  ;;  %v5728_v7 = vpop.f32.mrf.mxu0  ;;  %v15608_v49 = vld [vmem:[%s24558_s1 + $0xc7c] sm:$0xf]  ;;  %v11766_v50 = vld [vmem:[%s24558_s1 + $0xc94] sm:$0xf0]  ;;  %v11097_v53 = vor.u32 %v15440_v39, %v11094_v41  ;;  %v12354_v41 = vld [vmem:[%s24558_s1 + $0x112c] sm:$0xf0] }
  0xa1   :  { %5947 = vmatpush.bf16.msra.mxu1 %v10397_v63  ;;  %v1097_v63 = vperm.slane %v1095_v54, 0  ;;  %v5741_v33 = vpop.f32.mrf.mxu1  ;;  %v15433_v54 = vld [vmem:[%s24558_s1 + $0x704] sm:$0xf] }
  0xa2   :  { %5960 = vmatpush.bf16.msra.mxu2 %v10621_v0  ;;  %v11853_v0 = vor.u32 %v15629_v55, %v11850_v56  ;;  %v11066_v55 = vld [vmem:[%s24558_s1 + $0x71c] sm:$0xf0] }
  0xa3   :  { %5973 = vmatpush.bf16.msra.mxu3 %v10845_v3  ;;  %5935 = vmatmul.bf16.vlgmr.msra.gmra.mxu0 %v16816_v9  ;;  %v11598_v3 = vld [vmem:[%s24558_s1 + $0xb44] sm:$0xf0]  ;;  %v5729_v17 = vadd.f32 %v5728_v7, %v1097_v63  ;;  %v11769_v63 = vor.u32 %v15608_v49, %v11766_v50  ;;  %v15692_v49 = vld [vmem:[%s24558_s1 + $0xf1c] sm:$0xf]  ;;  %v12102_v50 = vld [vmem:[%s24558_s1 + $0xf34] sm:$0xf0] }
  0xa4   :  { %5979 = vmatpush.bf16.msrb.mxu0 %v11265_v4  ;;  %5948 = vmatmul.bf16.vlgmr.msra.gmra.mxu1 %v16853_v25  ;;  %v15622_v4 = vld [vmem:[%s24558_s1 + $0xcec] sm:$0xf]  ;;  %v11601_v11 = vor.u32 %v15566_v2, %v11598_v3  ;;  %v11738_v2 = vld [vmem:[%s24558_s1 + $0xc5c] sm:$0xf0]  ;;  %v12382_v7 = vld [vmem:[%s24558_s1 + $0x1164] sm:$0xf0] }
  0xa5   :  { %5992 = vmatpush.bf16.msrb.mxu1 %v11489_v5  ;;  %5961 = vmatmul.bf16.vlgmr.msra.gmra.mxu2 %v16814_v8  ;;  %v11822_v5 = vld [vmem:[%s24558_s1 + $0xd04] sm:$0xf0]  ;;  %v5742_v43 = vadd.f32 %v5741_v33, %v5729_v17  ;;  %v15706_v3 = vld [vmem:[%s24558_s1 + $0xf8c] sm:$0xf]  ;;  %v12130_v33 = vld [vmem:[%s24558_s1 + $0xf6c] sm:$0xf0] }
  0xa6   :  { %6005 = vmatpush.bf16.msrb.mxu2 %v11713_v6  ;;  %5974 = vmatmul.bf16.vlgmr.msra.gmra.mxu3 %v16830_v15  ;;  %v11153_v6 = vor.u32 %v15454_v58, %v11150_v61  ;;  %v11825_v21 = vor.u32 %v15622_v4, %v11822_v5  ;;  %v15545_v61 = vld [vmem:[%s24558_s1 + $0xa84] sm:$0xf]  ;;  %v12158_v4 = vld [vmem:[%s24558_s1 + $0xfa4] sm:$0xf0]  ;;  %v15762_v5 = vld [vmem:[%s24558_s1 + $0x114c] sm:$0xf] }
  0xa7   :  { %6018 = vmatpush.bf16.msrb.mxu3 %v11937_v12  ;;  %v15447_v12 = vld [vmem:[%s24558_s1 + $0x774] sm:$0xf]  ;;  %v15874_v17 = vld [vmem:[%s24558_s1 + $0x14cc] sm:$0xf] }
  0xa8   :  { %5980 = vmatpush.bf16.msrb.mxu0 %v11237_v28  ;;  %v15559_v28 = vld [vmem:[%s24558_s1 + $0xaf4] sm:$0xf]  ;;  %v11125_v32 = vor.u32 %v15447_v12, %v11122_v14  ;;  %v5754_v48 = vpop.f32.mrf.mxu2  ;;  %v5730_v56 = vpop.f32.mrf.mxu0 }
  0xa9   :  { %5993 = vmatpush.bf16.msrb.mxu1 %v11461_v29  ;;  %v11570_v29 = vld [vmem:[%s24558_s1 + $0xb0c] sm:$0xf0]  ;;  %v5767_v52 = vpop.f32.mrf.mxu3  ;;  %v5743_v12 = vpop.f32.mrf.mxu1  ;;  %v15860_v56 = vld [vmem:[%s24558_s1 + $0x145c] sm:$0xf] }
  0xaa   :  { %6006 = vmatpush.bf16.msrb.mxu2 %v11685_v30  ;;  %v15615_v30 = vld [vmem:[%s24558_s1 + $0xcb4] sm:$0xf]  ;;  %v11573_v36 = vor.u32 %v15559_v28, %v11570_v29  ;;  %v12161_v28 = vor.u32 %v15706_v3, %v12158_v4  ;;  %v15797_v3 = vld [vmem:[%s24558_s1 + $0x1264] sm:$0xf]  ;;  %v12522_v4 = vld [vmem:[%s24558_s1 + $0x127c] sm:$0xf0] }
  0xab   :  { %6019 = vmatpush.bf16.msrb.mxu3 %v11909_v35  ;;  %v11349_v35 = vor.u32 %v15503_v16, %v11346_v24  ;;  %v11741_v24 = vor.u32 %v15601_v1, %v11738_v2  ;;  %v12298_v2 = vld [vmem:[%s24558_s1 + $0x10bc] sm:$0xf0]  ;;  %v12525_v12 = vor.u32 %v15797_v3, %v12522_v4  ;;  %v15832_v3 = vld [vmem:[%s24558_s1 + $0x137c] sm:$0xf]  ;;  %v12662_v4 = vld [vmem:[%s24558_s1 + $0x1394] sm:$0xf0] }
  0xac   :  { %5981 = vmatpush.bf16.msrb.mxu0 %v11209_v44  ;;  %v11797_v44 = vor.u32 %v15615_v30, %v11794_v31  ;;  %v12385_v30 = vor.u32 %v15762_v5, %v12382_v7  ;;  %v15853_v5 = vld [vmem:[%s24558_s1 + $0x1424] sm:$0xf] }
  0xad   :  { %5994 = vmatpush.bf16.msrb.mxu1 %v11433_v46  ;;  %v15552_v46 = vld [vmem:[%s24558_s1 + $0xabc] sm:$0xf] }
  0xae   :  { %6007 = vmatpush.bf16.msrb.mxu2 %v11657_v47  ;;  %v11542_v47 = vld [vmem:[%s24558_s1 + $0xad4] sm:$0xf0] }
  0xaf   :  { %6020 = vmatpush.bf16.msrb.mxu3 %v11881_v51  ;;  %v5755_v51 = vadd.f32 %v5754_v48, %v5742_v43  ;;  %v11545_v58 = vor.u32 %v15552_v46, %v11542_v47  ;;  %v12578_v43 = vld [vmem:[%s24558_s1 + $0x12ec] sm:$0xf0] }
  0xb0   :  { %5982 = vmatpush.bf16.msrb.mxu0 %v11181_v57  ;;  %v11321_v57 = vor.u32 %v15496_v42, %v11318_v45  ;;  %v5756_v29 = vpop.f32.mrf.mxu2  ;;  %v15811_v42 = vld [vmem:[%s24558_s1 + $0x12d4] sm:$0xf]  ;;  %v12802_v45 = vld [vmem:[%s24558_s1 + $0x14ac] sm:$0xf0] }
  0xb1   :  { %5995 = vmatpush.bf16.msrb.mxu1 %v11405_v59  ;;  %v15489_v59 = vld [vmem:[%s24558_s1 + $0x8c4] sm:$0xf]  ;;  %v17781_v62 = vadd.f32 %v5767_v52, %v5755_v51  ;;  %v12581_v48 = vor.u32 %v15811_v42, %v12578_v43  ;;  %v15748_v51 = vld [vmem:[%s24558_s1 + $0x10dc] sm:$0xf]  ;;  %v12270_v29 = vld [vmem:[%s24558_s1 + $0x1084] sm:$0xf0] }
  0xb2   :  { %6008 = vmatpush.bf16.msrb.mxu2 %v11629_v60  ;;  %v11290_v60 = vld [vmem:[%s24558_s1 + $0x8dc] sm:$0xf0]  ;;  %v12018_v42 = vld [vmem:[%s24558_s1 + $0xe8c] sm:$0xf0]  ;;  %v15727_v43 = vld [vmem:[%s24558_s1 + $0x1034] sm:$0xf] }
  0xb3   :  { %6021 = vmatpush.bf16.msrb.mxu3 %v11853_v0  ;;  %v11514_v0 = vld [vmem:[%s24558_s1 + $0xa9c] sm:$0xf0]  ;;  %v11293_v14 = vor.u32 %v15489_v59, %v11290_v60 }
  0xb4   :  { %5983 = vmatpush.bf16.msrb.mxu0 %v11153_v6  ;;  %v11069_v6 = vor.u32 %v15433_v54, %v11066_v55  ;;  %v11517_v16 = vor.u32 %v15545_v61, %v11514_v0  ;;  %v15804_v54 = vld [vmem:[%s24558_s1 + $0x129c] sm:$0xf]  ;;  %v12550_v55 = vld [vmem:[%s24558_s1 + $0x12b4] sm:$0xf0]  ;;  %v15685_v61 = vld [vmem:[%s24558_s1 + $0xee4] sm:$0xf] }
  0xb5   :  { %5996 = vmatpush.bf16.msrb.mxu1 %v11377_v10  ;;  %v15818_v10 = vld [vmem:[%s24558_s1 + $0x130c] sm:$0xf]  ;;  %v12553_v60 = vor.u32 %v15804_v54, %v12550_v55  ;;  %v15741_v0 = vld [vmem:[%s24558_s1 + $0x10a4] sm:$0xf] }
  0xb6   :  { %6009 = vmatpush.bf16.msrb.mxu2 %v11601_v11  ;;  %v12606_v11 = vld [vmem:[%s24558_s1 + $0x1324] sm:$0xf0] }
  0xb7   :  { %6022 = vmatpush.bf16.msrb.mxu3 %v11825_v21  ;;  %v12830_v21 = vld [vmem:[%s24558_s1 + $0x14e4] sm:$0xf0]  ;;  %v12609_v31 = vor.u32 %v15818_v10, %v12606_v11  ;;  %v12301_v11 = vor.u32 %v15741_v0, %v12298_v2  ;;  %v12214_v0 = vld [vmem:[%s24558_s1 + $0x1014] sm:$0xf0] }
  0xb8   :  { %5984 = vmatpush.bf16.msrb.mxu0 %v11125_v32  ;;  %v15699_v32 = vld [vmem:[%s24558_s1 + $0xf54] sm:$0xf]  ;;  %v12833_v39 = vor.u32 %v15874_v17, %v12830_v21  ;;  %v15734_v17 = vld [vmem:[%s24558_s1 + $0x106c] sm:$0xf]  ;;  %v12438_v2 = vld [vmem:[%s24558_s1 + $0x11d4] sm:$0xf0] }
  0xb9   :  { %5997 = vmatpush.bf16.msrb.mxu1 %v11349_v35  ;;  %v15755_v35 = vld [vmem:[%s24558_s1 + $0x1114] sm:$0xf]  ;;  %v12133_v46 = vor.u32 %v15699_v32, %v12130_v33  ;;  %v15846_v32 = vld [vmem:[%s24558_s1 + $0x13ec] sm:$0xf] }
  0xba   :  { %6010 = vmatpush.bf16.msrb.mxu2 %v11573_v36  ;;  %v5769_v36 = vpop.f32.mrf.mxu3  ;;  %v12357_v47 = vor.u32 %v15755_v35, %v12354_v41  ;;  %v15671_v41 = vld [vmem:[%s24558_s1 + $0xe74] sm:$0xf] }
  0xbb   :  { %6023 = vmatpush.bf16.msrb.mxu3 %v11797_v44  ;;  %v15867_v44 = vld [vmem:[%s24558_s1 + $0x1494] sm:$0xf]  ;;  %v12273_v36 = vor.u32 %v15734_v17, %v12270_v29  ;;  %v12634_v29 = vld [vmem:[%s24558_s1 + $0x135c] sm:$0xf0] }
  0xbc   :  { %5985 = vmatpush.bf16.msrb.mxu0 %v11097_v53  ;;  %v12805_v52 = vor.u32 %v15867_v44, %v12802_v45  ;;  %v12326_v53 = vld [vmem:[%s24558_s1 + $0x10f4] sm:$0xf0] }
  0xbd   :  { %5998 = vmatpush.bf16.msrb.mxu1 %v11321_v57  ;;  %v12774_v57 = vld [vmem:[%s24558_s1 + $0x1474] sm:$0xf0]  ;;  %v12329_v59 = vor.u32 %v15748_v51, %v12326_v53  ;;  %v15839_v51 = vld [vmem:[%s24558_s1 + $0x13b4] sm:$0xf]  ;;  %v12021_v53 = vor.u32 %v15671_v41, %v12018_v42 }
  0xbe   :  { %6011 = vmatpush.bf16.msrb.mxu2 %v11545_v58  ;;  %v12105_v58 = vor.u32 %v15692_v49, %v12102_v50  ;;  %v12777_v1 = vor.u32 %v15860_v56, %v12774_v57 }
  0xbf   :  { %6024 = vmatpush.bf16.msrb.mxu3 %v11769_v63  ;;  %v12074_v63 = vld [vmem:[%s24558_s1 + $0xefc] sm:$0xf0] }
  0xc0   :  { %5986 = vmatpush.bf16.msrb.mxu0 %v11069_v6  ;;  %v12746_v6 = vld [vmem:[%s24558_s1 + $0x143c] sm:$0xf0]  ;;  %v12077_v7 = vor.u32 %v15685_v61, %v12074_v63  ;;  %v5780_v10 = vpop.f32.mrf.mxu0 }
  0xc1   :  { %5999 = vmatpush.bf16.msrb.mxu1 %v11293_v14  ;;  %v15678_v14 = vld [vmem:[%s24558_s1 + $0xeac] sm:$0xf]  ;;  %v5781_v21 = vadd.f32 %v5780_v10, %v17781_v62  ;;  %v12718_v62 = vld [vmem:[%s24558_s1 + $0x1404] sm:$0xf0] }
  0xc2   :  { %6012 = vmatpush.bf16.msrb.mxu2 %v11517_v16  ;;  %v12046_v16 = vld [vmem:[%s24558_s1 + $0xec4] sm:$0xf0]  ;;  %v12721_v45 = vor.u32 %v15846_v32, %v12718_v62  ;;  %v15986_v62 = vld [vmem:[%s24558_s1 + $0x184c] sm:$0xf] }
  0xc3   :  { %6025 = vmatpush.bf16.msrb.mxu3 %v11741_v24  ;;  %5987 = vmatmul.bf16.vlgmr.msrb.gmra.mxu0 %v17005_v37  ;;  %v5793_v24 = vpop.f32.mrf.mxu1  ;;  %v12049_v35 = vor.u32 %v15678_v14, %v12046_v16  ;;  %v12186_v14 = vld [vmem:[%s24558_s1 + $0xfdc] sm:$0xf0]  ;;  %v15769_v16 = vld [vmem:[%s24558_s1 + $0x1184] sm:$0xf]  ;;  %v13054_v32 = vld [vmem:[%s24558_s1 + $0x16a4] sm:$0xf0] }
  0xc4   :  { %6031 = vmatpush.bf16.msra.mxu0 %v12161_v28  ;;  %6000 = vmatmul.bf16.vlgmr.msrb.gmra.mxu1 %v17009_v40  ;;  %v12749_v28 = vor.u32 %v15853_v5, %v12746_v6  ;;  %v5794_v33 = vadd.f32 %v5793_v24, %v5781_v21  ;;  %v15657_v6 = vld [vmem:[%s24558_s1 + $0xe04] sm:$0xf]  ;;  %v12665_v21 = vor.u32 %v15832_v3, %v12662_v4  ;;  %v12410_v24 = vld [vmem:[%s24558_s1 + $0x119c] sm:$0xf0]  ;;  %v13222_v3 = vld [vmem:[%s24558_s1 + $0x17f4] sm:$0xf0] }
  0xc5   :  { %6044 = vmatpush.bf16.msra.mxu1 %v12385_v30  ;;  %6013 = vmatmul.bf16.vlgmr.msrb.gmra.mxu2 %v16997_v34  ;;  %v15790_v30 = vld [vmem:[%s24558_s1 + $0x122c] sm:$0xf]  ;;  %v12413_v42 = vor.u32 %v15769_v16, %v12410_v24  ;;  %v16028_v4 = vld [vmem:[%s24558_s1 + $0x199c] sm:$0xf]  ;;  %v12970_v16 = vld [vmem:[%s24558_s1 + $0x15fc] sm:$0xf0] }
  0xc6   :  { %6057 = vmatpush.bf16.msra.mxu2 %v12609_v31  ;;  %6026 = vmatmul.bf16.vlgmr.msrb.gmra.mxu3 %v17007_v38  ;;  %v12494_v31 = vld [vmem:[%s24558_s1 + $0x1244] sm:$0xf0]  ;;  %v13194_v24 = vld [vmem:[%s24558_s1 + $0x17bc] sm:$0xf0] }
  0xc7   :  { %6070 = vmatpush.bf16.msra.mxu3 %v12833_v39  ;;  %v12497_v39 = vor.u32 %v15790_v30, %v12494_v31  ;;  %v15930_v31 = vld [vmem:[%s24558_s1 + $0x168c] sm:$0xf] }
  0xc8   :  { %6032 = vmatpush.bf16.msra.mxu0 %v12133_v46  ;;  %v5806_v44 = vpop.f32.mrf.mxu2  ;;  %v12242_v46 = vld [vmem:[%s24558_s1 + $0x104c] sm:$0xf0]  ;;  %v5782_v55 = vpop.f32.mrf.mxu0 }
  0xc9   :  { %6045 = vmatpush.bf16.msra.mxu1 %v12357_v47  ;;  %v15783_v47 = vld [vmem:[%s24558_s1 + $0x11f4] sm:$0xf]  ;;  %v5807_v49 = vadd.f32 %v5806_v44, %v5794_v33  ;;  %v5819_v50 = vpop.f32.mrf.mxu3  ;;  %v12245_v56 = vor.u32 %v15727_v43, %v12242_v46  ;;  %v16098_v43 = vld [vmem:[%s24558_s1 + $0x1bcc] sm:$0xf]  ;;  %v13726_v44 = vld [vmem:[%s24558_s1 + $0x1be4] sm:$0xf0]  ;;  %v13057_v46 = vor.u32 %v15930_v31, %v13054_v32 }
  0xca   :  { %6058 = vmatpush.bf16.msra.mxu2 %v12581_v48  ;;  %v12466_v48 = vld [vmem:[%s24558_s1 + $0x120c] sm:$0xf0]  ;;  %v16035_v55 = vld [vmem:[%s24558_s1 + $0x19d4] sm:$0xf]  ;;  %v16077_v31 = vld [vmem:[%s24558_s1 + $0x1b24] sm:$0xf] }
  0xcb   :  { %6071 = vmatpush.bf16.msra.mxu3 %v12805_v52  ;;  %v12690_v52 = vld [vmem:[%s24558_s1 + $0x13cc] sm:$0xf0]  ;;  %v17941_v54 = vadd.f32 %v5819_v50, %v5807_v49  ;;  %v12469_v57 = vor.u32 %v15783_v47, %v12466_v48  ;;  %v5795_v61 = vpop.f32.mrf.mxu1  ;;  %v15923_v49 = vld [vmem:[%s24558_s1 + $0x1654] sm:$0xf]  ;;  %v13642_v32 = vld [vmem:[%s24558_s1 + $0x1b3c] sm:$0xf0] }
  0xcc   :  { %6033 = vmatpush.bf16.msra.mxu0 %v12105_v58  ;;  %v15664_v58 = vld [vmem:[%s24558_s1 + $0xe3c] sm:$0xf]  ;;  %v12693_v63 = vor.u32 %v15839_v51, %v12690_v52  ;;  %v13026_v50 = vld [vmem:[%s24558_s1 + $0x166c] sm:$0xf0]  ;;  %v15979_v51 = vld [vmem:[%s24558_s1 + $0x1814] sm:$0xf]  ;;  %v13729_v52 = vor.u32 %v16098_v43, %v13726_v44 }
  0xcd   :  { %6046 = vmatpush.bf16.msra.mxu1 %v12329_v59  ;;  %v11990_v59 = vld [vmem:[%s24558_s1 + $0xe54] sm:$0xf0]  ;;  %v15958_v43 = vld [vmem:[%s24558_s1 + $0x176c] sm:$0xf] }
  0xce   :  { %6059 = vmatpush.bf16.msra.mxu2 %v12553_v60  ;;  %v15720_v60 = vld [vmem:[%s24558_s1 + $0xffc] sm:$0xf]  ;;  %v11993_v5 = vor.u32 %v15664_v58, %v11990_v59  ;;  %v13698_v58 = vld [vmem:[%s24558_s1 + $0x1bac] sm:$0xf0]  ;;  %v13029_v59 = vor.u32 %v15923_v49, %v13026_v50  ;;  %v13614_v49 = vld [vmem:[%s24558_s1 + $0x1b04] sm:$0xf0] }
  0xcf   :  { %6072 = vmatpush.bf16.msra.mxu3 %v12777_v1  ;;  %v15776_v1 = vld [vmem:[%s24558_s1 + $0x11bc] sm:$0xf]  ;;  %v12217_v10 = vor.u32 %v15720_v60, %v12214_v0  ;;  %v12998_v0 = vld [vmem:[%s24558_s1 + $0x1634] sm:$0xf0] }
  0xd0   :  { %6034 = vmatpush.bf16.msra.mxu0 %v12077_v7  ;;  %v11962_v7 = vld [vmem:[%s24558_s1 + $0xe1c] sm:$0xf0]  ;;  %v5808_v17 = vpop.f32.mrf.mxu2 }
  0xd1   :  { %6047 = vmatpush.bf16.msra.mxu1 %v12301_v11  ;;  %v12441_v11 = vor.u32 %v15776_v1, %v12438_v2  ;;  %v5821_v30 = vpop.f32.mrf.mxu3  ;;  %v11965_v33 = vor.u32 %v15657_v6, %v11962_v7  ;;  %v15972_v1 = vld [vmem:[%s24558_s1 + $0x17dc] sm:$0xf]  ;;  %v13670_v7 = vld [vmem:[%s24558_s1 + $0x1b74] sm:$0xf0]  ;;  %v15965_v17 = vld [vmem:[%s24558_s1 + $0x17a4] sm:$0xf] }
  0xd2   :  { %6060 = vmatpush.bf16.msra.mxu2 %v12525_v12  ;;  %v15713_v12 = vld [vmem:[%s24558_s1 + $0xfc4] sm:$0xf]  ;;  %v16084_v6 = vld [vmem:[%s24558_s1 + $0x1b5c] sm:$0xf] }
  0xd3   :  { %6073 = vmatpush.bf16.msra.mxu3 %v12749_v28  ;;  %v15825_v28 = vld [vmem:[%s24558_s1 + $0x1344] sm:$0xf]  ;;  %v12189_v41 = vor.u32 %v15713_v12, %v12186_v14 }
  0xd4   :  { %6035 = vmatpush.bf16.msra.mxu0 %v12049_v35  ;;  %v13278_v35 = vld [vmem:[%s24558_s1 + $0x1864] sm:$0xf0]  ;;  %v15909_v14 = vld [vmem:[%s24558_s1 + $0x15e4] sm:$0xf] }
  0xd5   :  { %6048 = vmatpush.bf16.msra.mxu1 %v12273_v36  ;;  %v16042_v36 = vld [vmem:[%s24558_s1 + $0x1a0c] sm:$0xf]  ;;  %v13281_v47 = vor.u32 %v15986_v62, %v13278_v35 }
  0xd6   :  { %6061 = vmatpush.bf16.msra.mxu2 %v12497_v39  ;;  %v13502_v39 = vld [vmem:[%s24558_s1 + $0x1a24] sm:$0xf0] }
  0xd7   :  { %6074 = vmatpush.bf16.msra.mxu3 %v12721_v45  ;;  %v12637_v45 = vor.u32 %v15825_v28, %v12634_v29  ;;  %v13505_v48 = vor.u32 %v16042_v36, %v13502_v39  ;;  %v16021_v28 = vld [vmem:[%s24558_s1 + $0x1964] sm:$0xf]  ;;  %v13418_v29 = vld [vmem:[%s24558_s1 + $0x197c] sm:$0xf0]  ;;  %v13197_v36 = vor.u32 %v15965_v17, %v13194_v24  ;;  %v13110_v17 = vld [vmem:[%s24558_s1 + $0x1714] sm:$0xf0] }
  0xd8   :  { %6036 = vmatpush.bf16.msra.mxu0 %v12021_v53  ;;  %v13250_v53 = vld [vmem:[%s24558_s1 + $0x182c] sm:$0xf0]  ;;  %v13421_v39 = vor.u32 %v16021_v28, %v13418_v29  ;;  %v13334_v24 = vld [vmem:[%s24558_s1 + $0x18d4] sm:$0xf0]  ;;  %v16056_v28 = vld [vmem:[%s24558_s1 + $0x1a7c] sm:$0xf] }
  0xd9   :  { %6049 = vmatpush.bf16.msra.mxu1 %v12245_v56  ;;  %v13474_v56 = vld [vmem:[%s24558_s1 + $0x19ec] sm:$0xf0]  ;;  %v13253_v60 = vor.u32 %v15979_v51, %v13250_v53  ;;  %v15895_v53 = vld [vmem:[%s24558_s1 + $0x1574] sm:$0xf]  ;;  %v13558_v29 = vld [vmem:[%s24558_s1 + $0x1a94] sm:$0xf0] }
  0xda   :  { %6062 = vmatpush.bf16.msra.mxu2 %v12469_v57  ;;  %v16091_v57 = vld [vmem:[%s24558_s1 + $0x1b94] sm:$0xf]  ;;  %v13477_v61 = vor.u32 %v16035_v55, %v13474_v56  ;;  %v12914_v55 = vld [vmem:[%s24558_s1 + $0x158c] sm:$0xf0] }
  0xdb   :  { %6075 = vmatpush.bf16.msra.mxu3 %v12693_v63  ;;  %v15916_v63 = vld [vmem:[%s24558_s1 + $0x161c] sm:$0xf]  ;;  %v13701_v2 = vor.u32 %v16091_v57, %v13698_v58  ;;  %v15951_v56 = vld [vmem:[%s24558_s1 + $0x1734] sm:$0xf] }
  0xdc   :  { %6037 = vmatpush.bf16.msra.mxu0 %v11993_v5  ;;  %v13446_v5 = vld [vmem:[%s24558_s1 + $0x19b4] sm:$0xf0] }
  0xdd   :  { %6050 = vmatpush.bf16.msra.mxu1 %v12217_v10  ;;  %v13001_v10 = vor.u32 %v15916_v63, %v12998_v0  ;;  %v13449_v12 = vor.u32 %v16028_v4, %v13446_v5  ;;  %v12917_v4 = vor.u32 %v15895_v53, %v12914_v55 }
  0xde   :  { %6063 = vmatpush.bf16.msra.mxu2 %v12441_v11  ;;  %v13225_v11 = vor.u32 %v15972_v1, %v13222_v3  ;;  %v16063_v1 = vld [vmem:[%s24558_s1 + $0x1ab4] sm:$0xf] }
  0xdf   :  { %6076 = vmatpush.bf16.msra.mxu3 %v12665_v21  ;;  %v13673_v21 = vor.u32 %v16084_v6, %v13670_v7 }
  0xe0   :  { %6038 = vmatpush.bf16.msra.mxu0 %v11965_v33  ;;  %v5832_v30 = vpop.f32.mrf.mxu0  ;;  %v12973_v33 = vor.u32 %v15909_v14, %v12970_v16  ;;  %v15944_v14 = vld [vmem:[%s24558_s1 + $0x16fc] sm:$0xf] }
  0xe1   :  { %6051 = vmatpush.bf16.msra.mxu1 %v12189_v41  ;;  %v5833_v62 = vadd.f32 %v5832_v30, %v17941_v54  ;;  %v5845_v35 = vpop.f32.mrf.mxu1  ;;  %v15902_v41 = vld [vmem:[%s24558_s1 + $0x15ac] sm:$0xf]  ;;  %v13645_v54 = vor.u32 %v16077_v31, %v13642_v32  ;;  %v15881_v31 = vld [vmem:[%s24558_s1 + $0x1504] sm:$0xf]  ;;  %v12858_v32 = vld [vmem:[%s24558_s1 + $0x151c] sm:$0xf0] }
  0xe2   :  { %6064 = vmatpush.bf16.msra.mxu2 %v12413_v42  ;;  %v12942_v42 = vld [vmem:[%s24558_s1 + $0x15c4] sm:$0xf0] }
  0xe3   :  { %6077 = vmatpush.bf16.msra.mxu3 %v12637_v45  ;;  %6039 = vmatmul.bf16.vlgmr.msra.gmra.mxu0 %v17204_v18  ;;  %v5846_v44 = vadd.f32 %v5845_v35, %v5833_v62  ;;  %v13166_v45 = vld [vmem:[%s24558_s1 + $0x1784] sm:$0xf0]  ;;  %v12945_v50 = vor.u32 %v15902_v41, %v12942_v42  ;;  %v13113_v62 = vor.u32 %v15944_v14, %v13110_v17  ;;  %v15937_v35 = vld [vmem:[%s24558_s1 + $0x16c4] sm:$0xf]  ;;  %v13306_v42 = vld [vmem:[%s24558_s1 + $0x189c] sm:$0xf0] }
  0xe4   :  { %6083 = vmatpush.bf16.msrb.mxu0 %v13057_v46  ;;  %6052 = vmatmul.bf16.vlgmr.msra.gmra.mxu1 %v17217_v23  ;;  %v16014_v46 = vld [vmem:[%s24558_s1 + $0x192c] sm:$0xf]  ;;  %v13169_v51 = vor.u32 %v15958_v43, %v13166_v45  ;;  %v13561_v41 = vor.u32 %v16056_v28, %v13558_v29  ;;  %v16049_v43 = vld [vmem:[%s24558_s1 + $0x1a44] sm:$0xf]  ;;  %v10372_v45 = vld [vmem:[%s24558_s1 + $0x190] sm:$0xf] }
  0xe5   :  { %6096 = vmatpush.bf16.msrb.mxu1 %v13281_v47  ;;  %6065 = vmatmul.bf16.vlgmr.msra.gmra.mxu2 %v17215_v22  ;;  %v13390_v47 = vld [vmem:[%s24558_s1 + $0x1944] sm:$0xf0]  ;;  %v15248_v17 = vld [vmem:[%s24558_s1 + $0x138] sm:$0xf0]  ;;  %v10764_v29 = vld [vmem:[%s24558_s1 + $0x4a0] sm:$0xf] }
  0xe6   :  { %6109 = vmatpush.bf16.msrb.mxu2 %v13505_v48  ;;  %6078 = vmatmul.bf16.vlgmr.msra.gmra.mxu3 %v17225_v27  ;;  %v16070_v48 = vld [vmem:[%s24558_s1 + $0x1aec] sm:$0xf]  ;;  %v15304_v28 = vld [vmem:[%s24558_s1 + $0x2f8] sm:$0xf0] }
  0xe7   :  { %6122 = vmatpush.bf16.msrb.mxu3 %v13729_v52  ;;  %v13393_v52 = vor.u32 %v16014_v46, %v13390_v47  ;;  %v13617_v57 = vor.u32 %v16070_v48, %v13614_v49  ;;  %v15262_v46 = vld [vmem:[%s24558_s1 + $0x1a8] sm:$0xf0]  ;;  %v10596_v47 = vld [vmem:[%s24558_s1 + $0x350] sm:$0xf]  ;;  %v12861_v49 = vor.u32 %v15881_v31, %v12858_v32  ;;  %v10988_v31 = vld [vmem:[%s24558_s1 + $0x660] sm:$0xf] }
  0xe8   :  { %6084 = vmatpush.bf16.msrb.mxu0 %v13029_v59  ;;  %v5858_v58 = vpop.f32.mrf.mxu2  ;;  %v13138_v59 = vld [vmem:[%s24558_s1 + $0x174c] sm:$0xf0]  ;;  %v5834_v3 = vpop.f32.mrf.mxu0  ;;  %v15416_v32 = vld [vmem:[%s24558_s1 + $0x678] sm:$0xf0] }
  0xe9   :  { %6097 = vmatpush.bf16.msrb.mxu1 %v13253_v60  ;;  %v16007_v60 = vld [vmem:[%s24558_s1 + $0x18f4] sm:$0xf]  ;;  %v5859_v63 = vadd.f32 %v5858_v58, %v5846_v44  ;;  %v5871_v0 = vpop.f32.mrf.mxu3  ;;  %v5847_v5 = vpop.f32.mrf.mxu1  ;;  %v13141_v7 = vor.u32 %v15951_v56, %v13138_v59  ;;  %v11044_v56 = vld [vmem:[%s24558_s1 + $0x6d0] sm:$0xf]  ;;  %v10373_v59 = vor.u32 %v15262_v46, %v10372_v45  ;;  %v10960_v46 = vld [vmem:[%s24558_s1 + $0x628] sm:$0xf] }
  0xea   :  { %6110 = vmatpush.bf16.msrb.mxu2 %v13477_v61  ;;  %v13362_v61 = vld [vmem:[%s24558_s1 + $0x190c] sm:$0xf0]  ;;  %v15311_v3 = vld [vmem:[%s24558_s1 + $0x330] sm:$0xf0] }
  0xeb   :  { %6123 = vmatpush.bf16.msrb.mxu3 %v13701_v2  ;;  %v13586_v2 = vld [vmem:[%s24558_s1 + $0x1acc] sm:$0xf0]  ;;  %v18140_v6 = vadd.f32 %v5871_v0, %v5859_v63  ;;  %v10344_v63 = vld [vmem:[%s24558_s1 + $0x158] sm:$0xf]  ;;  %v15255_v0 = vld [vmem:[%s24558_s1 + $0x170] sm:$0xf0] }
  0xec   :  { %6085 = vmatpush.bf16.msrb.mxu0 %v13001_v10  ;;  %v13365_v10 = vor.u32 %v16007_v60, %v13362_v61  ;;  %v13589_v16 = vor.u32 %v16063_v1, %v13586_v2  ;;  %v10568_v1 = vld [vmem:[%s24558_s1 + $0x318] sm:$0xf]  ;;  %v15367_v5 = vld [vmem:[%s24558_s1 + $0x4f0] sm:$0xf0] }
  0xed   :  { %6098 = vmatpush.bf16.msrb.mxu1 %v13225_v11  ;;  %v15888_v11 = vld [vmem:[%s24558_s1 + $0x153c] sm:$0xf] }
  0xee   :  { %6111 = vmatpush.bf16.msrb.mxu2 %v13449_v12  ;;  %v12886_v12 = vld [vmem:[%s24558_s1 + $0x1554] sm:$0xf0] }
  0xef   :  { %6124 = vmatpush.bf16.msrb.mxu3 %v13673_v21  ;;  %v16000_v21 = vld [vmem:[%s24558_s1 + $0x18bc] sm:$0xf]  ;;  %v12889_v30 = vor.u32 %v15888_v11, %v12886_v12  ;;  %v10345_v11 = vor.u32 %v15255_v0, %v10344_v63  ;;  %v10569_v12 = vor.u32 %v15311_v3, %v10568_v1  ;;  %v15402_v63 = vld [vmem:[%s24558_s1 + $0x608] sm:$0xf0]  ;;  %v10232_v3 = vld [vmem:[%s24558_s1 + $0x78] sm:$0xf] }
  0xf0   :  { %6086 = vmatpush.bf16.msrb.mxu0 %v12973_v33  ;;  %v13337_v33 = vor.u32 %v16000_v21, %v13334_v24  ;;  %v5860_v44 = vpop.f32.mrf.mxu2  ;;  %v10540_v21 = vld [vmem:[%s24558_s1 + $0x2e0] sm:$0xf] }
  0xf1   :  { %6099 = vmatpush.bf16.msrb.mxu1 %v13197_v36  ;;  %v13082_v36 = vld [vmem:[%s24558_s1 + $0x16dc] sm:$0xf0]  ;;  %v5873_v48 = vpop.f32.mrf.mxu3  ;;  %v15353_v44 = vld [vmem:[%s24558_s1 + $0x480] sm:$0xf0] }
  0xf2   :  { %6112 = vmatpush.bf16.msrb.mxu2 %v13421_v39  ;;  %v15993_v39 = vld [vmem:[%s24558_s1 + $0x1884] sm:$0xf]  ;;  %v13085_v53 = vor.u32 %v15937_v35, %v13082_v36  ;;  %v10288_v36 = vld [vmem:[%s24558_s1 + $0xe8] sm:$0xf] }
  0xf3   :  { %6125 = vmatpush.bf16.msrb.mxu3 %v13645_v54  ;;  %v13530_v54 = vld [vmem:[%s24558_s1 + $0x1a5c] sm:$0xf0]  ;;  %v13309_v55 = vor.u32 %v15993_v39, %v13306_v42  ;;  %v15241_v39 = vld [vmem:[%s24558_s1 + $0x100] sm:$0xf0]  ;;  %v10989_v42 = vor.u32 %v15416_v32, %v10988_v31 }
  0xf4   :  { %6087 = vmatpush.bf16.msrb.mxu0 %v12945_v50  ;;  %v15318_v50 = vld [vmem:[%s24558_s1 + $0x368] sm:$0xf0]  ;;  %v13533_v58 = vor.u32 %v16049_v43, %v13530_v54  ;;  %v15297_v43 = vld [vmem:[%s24558_s1 + $0x2c0] sm:$0xf0]  ;;  %v10736_v54 = vld [vmem:[%s24558_s1 + $0x468] sm:$0xf] }
  0xf5   :  { %6100 = vmatpush.bf16.msrb.mxu1 %v13169_v51  ;;  %v10820_v51 = vld [vmem:[%s24558_s1 + $0x510] sm:$0xf]  ;;  %v10597_v60 = vor.u32 %v15318_v50, %v10596_v47  ;;  %v15409_v47 = vld [vmem:[%s24558_s1 + $0x640] sm:$0xf0] }
  0xf6   :  { %6113 = vmatpush.bf16.msrb.mxu2 %v13393_v52  ;;  %v15374_v52 = vld [vmem:[%s24558_s1 + $0x528] sm:$0xf0] }
  0xf7   :  { %6126 = vmatpush.bf16.msrb.mxu3 %v13617_v57  ;;  %v15430_v57 = vld [vmem:[%s24558_s1 + $0x6e8] sm:$0xf0]  ;;  %v10821_v61 = vor.u32 %v15374_v52, %v10820_v51  ;;  %v10737_v52 = vor.u32 %v15353_v44, %v10736_v54  ;;  %v10876_v54 = vld [vmem:[%s24558_s1 + $0x580] sm:$0xf]  ;;  %v15388_v44 = vld [vmem:[%s24558_s1 + $0x598] sm:$0xf0] }
  0xf8   :  { %6088 = vmatpush.bf16.msrb.mxu0 %v12917_v4  ;;  %v11045_v2 = vor.u32 %v15430_v57, %v11044_v56  ;;  %v10792_v4 = vld [vmem:[%s24558_s1 + $0x4d8] sm:$0xf]  ;;  %v10484_v56 = vld [vmem:[%s24558_s1 + $0x270] sm:$0xf] }
  0xf9   :  { %6101 = vmatpush.bf16.msrb.mxu1 %v13141_v7  ;;  %v11016_v7 = vld [vmem:[%s24558_s1 + $0x698] sm:$0xf]  ;;  %v10793_v14 = vor.u32 %v15367_v5, %v10792_v4  ;;  %v15227_v4 = vld [vmem:[%s24558_s1 + $0x90] sm:$0xf0] }
  0xfa   :  { %6114 = vmatpush.bf16.msrb.mxu2 %v13365_v10  ;;  %v15423_v10 = vld [vmem:[%s24558_s1 + $0x6b0] sm:$0xf0]  ;;  %v10456_v5 = vld [vmem:[%s24558_s1 + $0x238] sm:$0xf] }
  0xfb   :  { %6127 = vmatpush.bf16.msrb.mxu3 %v13589_v16  ;;  %v10316_v16 = vld [vmem:[%s24558_s1 + $0x120] sm:$0xf]  ;;  %v11017_v24 = vor.u32 %v15423_v10, %v11016_v7 }
  0xfc   :  { %6089 = vmatpush.bf16.msrb.mxu0 %v12889_v30  ;;  %v15360_v30 = vld [vmem:[%s24558_s1 + $0x4b8] sm:$0xf0] }
  0xfd   :  { %6102 = vmatpush.bf16.msrb.mxu1 %v13113_v62  ;;  %v10317_v62 = vor.u32 %v15248_v17, %v10316_v16  ;;  %v10765_v35 = vor.u32 %v15360_v30, %v10764_v29  ;;  %v10233_v29 = vor.u32 %v15227_v4, %v10232_v3 }
  0xfe   :  { %6115 = vmatpush.bf16.msrb.mxu2 %v13337_v33  ;;  %v10541_v33 = vor.u32 %v15304_v28, %v10540_v21  ;;  %v10904_v21 = vld [vmem:[%s24558_s1 + $0x5b8] sm:$0xf] }
  0xff   :  { %6128 = vmatpush.bf16.msrb.mxu3 %v13561_v41  ;;  %v10512_v41 = vld [vmem:[%s24558_s1 + $0x2a8] sm:$0xf] }
 0x100   :  { %6090 = vmatpush.bf16.msrb.mxu0 %v12861_v49  ;;  %v5884_v45 = vpop.f32.mrf.mxu0  ;;  %v10289_v49 = vor.u32 %v15241_v39, %v10288_v36  ;;  %v10513_v51 = vor.u32 %v15297_v43, %v10512_v41  ;;  %v10428_v36 = vld [vmem:[%s24558_s1 + $0x200] sm:$0xf]  ;;  %v15276_v41 = vld [vmem:[%s24558_s1 + $0x218] sm:$0xf0] }
 0x101   :  { %6103 = vmatpush.bf16.msrb.mxu1 %v13085_v53  ;;  %v5885_v48 = vadd.f32 %v5884_v45, %v18140_v6  ;;  %v5897_v50 = vpop.f32.mrf.mxu1  ;;  %v10260_v53 = vld [vmem:[%s24558_s1 + $0xb0] sm:$0xf]  ;;  %v10961_v6 = vor.u32 %v15409_v47, %v10960_v46  ;;  %v15332_v43 = vld [vmem:[%s24558_s1 + $0x3d8] sm:$0xf0]  ;;  %v10176_v46 = vld [vmem:[%s24558_s1 + $0x8] sm:$0xf] }
 0x102   :  { %6116 = vmatpush.bf16.msrb.mxu2 %v13309_v55  ;;  %v15234_v55 = vld [vmem:[%s24558_s1 + $0xc8] sm:$0xf0]  ;;  %v15213_v47 = vld [vmem:[%s24558_s1 + $0x20] sm:$0xf0] }
 0x103   :  { %6129 = vmatpush.bf16.msrb.mxu3 %v13533_v58  ;;  %6091 = vmatmul.bf16.vlgmr.msrb.gmra.mxu0 %v17420_v13  ;;  %v5898_v57 = vadd.f32 %v5897_v50, %v5885_v48  ;;  %v15290_v58 = vld [vmem:[%s24558_s1 + $0x288] sm:$0xf0]  ;;  %v10261_v0 = vor.u32 %v15234_v55, %v10260_v53  ;;  %v10429_v48 = vor.u32 %v15276_v41, %v10428_v36  ;;  %v10400_v50 = vld [vmem:[%s24558_s1 + $0x1c8] sm:$0xf]  ;;  %v15325_v55 = vld [vmem:[%s24558_s1 + $0x3a0] sm:$0xf0] }
 0x104   :  { %6135 = vmatpush.bf16.msra.mxu0 %v10373_v59  ;;  %6104 = vmatmul.bf16.vlgmr.msrb.gmra.mxu1 %v17433_v20  ;;  %v10708_v59 = vld [vmem:[%s24558_s1 + $0x430] sm:$0xf]  ;;  %v10485_v1 = vor.u32 %v15290_v58, %v10484_v56  ;;  %v10877_v53 = vor.u32 %v15388_v44, %v10876_v54  ;;  %v10848_v56 = vld [vmem:[%s24558_s1 + $0x548] sm:$0xf]  ;;  %v15472_v41 = vld [vmem:[%s24558_s1 + $0x838] sm:$0xf0] }
 0x105   :  { %6148 = vmatpush.bf16.msra.mxu1 %v10597_v60  ;;  %6117 = vmatmul.bf16.vlgmr.msrb.gmra.mxu2 %v17431_v19  ;;  %v15346_v60 = vld [vmem:[%s24558_s1 + $0x448] sm:$0xf0]  ;;  %v11268_v58 = vld [vmem:[%s24558_s1 + $0x890] sm:$0xf]  ;;  %v15528_v54 = vld [vmem:[%s24558_s1 + $0x9f8] sm:$0xf0] }
 0x106   :  { %6161 = vmatpush.bf16.msra.mxu2 %v10821_v61  ;;  %6130 = vmatmul.bf16.vlgmr.msrb.gmra.mxu3 %v17441_v26  ;;  %v10932_v61 = vld [vmem:[%s24558_s1 + $0x5f0] sm:$0xf]  ;;  %v11660_v44 = vld [vmem:[%s24558_s1 + $0xba0] sm:$0xf] }
 0x107   :  { %6174 = vmatpush.bf16.msra.mxu3 %v11045_v2  ;;  %v10709_v2 = vor.u32 %v15346_v60, %v10708_v59  ;;  %v10933_v7 = vor.u32 %v15402_v63, %v10932_v61  ;;  %v15486_v59 = vld [vmem:[%s24558_s1 + $0x8a8] sm:$0xf0]  ;;  %v11492_v60 = vld [vmem:[%s24558_s1 + $0xa50] sm:$0xf]  ;;  %v10177_v63 = vor.u32 %v15213_v47, %v10176_v46  ;;  %v11884_v46 = vld [vmem:[%s24558_s1 + $0xd60] sm:$0xf] }
 0x108   :  { %6136 = vmatpush.bf16.msra.mxu0 %v10345_v11  ;;  %v5910_v10 = vpop.f32.mrf.mxu2  ;;  %v15283_v11 = vld [vmem:[%s24558_s1 + $0x250] sm:$0xf0]  ;;  %v5886_v28 = vpop.f32.mrf.mxu0  ;;  %v15640_v47 = vld [vmem:[%s24558_s1 + $0xd78] sm:$0xf0] }
 0x109   :  { %6149 = vmatpush.bf16.msra.mxu1 %v10569_v12  ;;  %v10680_v12 = vld [vmem:[%s24558_s1 + $0x3f8] sm:$0xf]  ;;  %v5911_v16 = vadd.f32 %v5910_v10, %v5898_v57  ;;  %v5923_v17 = vpop.f32.mrf.mxu3  ;;  %v5899_v30 = vpop.f32.mrf.mxu1  ;;  %v10457_v32 = vor.u32 %v15283_v11, %v10456_v5  ;;  %v11940_v5 = vld [vmem:[%s24558_s1 + $0xdd0] sm:$0xf]  ;;  %v11269_v11 = vor.u32 %v15486_v59, %v11268_v58  ;;  %v15535_v28 = vld [vmem:[%s24558_s1 + $0xa30] sm:$0xf0] }
 0x10a   :  { %6162 = vmatpush.bf16.msra.mxu2 %v10793_v14  ;;  %v15339_v14 = vld [vmem:[%s24558_s1 + $0x410] sm:$0xf0]  ;;  %v11632_v58 = vld [vmem:[%s24558_s1 + $0xb68] sm:$0xf]  ;;  %v15577_v59 = vld [vmem:[%s24558_s1 + $0xb80] sm:$0xf0] }
 0x10b   :  { %6175 = vmatpush.bf16.msra.mxu3 %v11017_v24  ;;  %v15395_v24 = vld [vmem:[%s24558_s1 + $0x5d0] sm:$0xf0]  ;;  %v18339_v31 = vadd.f32 %v5923_v17, %v5911_v16  ;;  %v11240_v16 = vld [vmem:[%s24558_s1 + $0x858] sm:$0xf] }
 0x10c   :  { %6137 = vmatpush.bf16.msra.mxu0 %v10317_v62  ;;  %v10681_v62 = vor.u32 %v15339_v14, %v10680_v12  ;;  %v10905_v39 = vor.u32 %v15395_v24, %v10904_v21  ;;  %v15479_v17 = vld [vmem:[%s24558_s1 + $0x870] sm:$0xf0]  ;;  %v11464_v21 = vld [vmem:[%s24558_s1 + $0xa18] sm:$0xf] }
 0x10d   :  { %6150 = vmatpush.bf16.msra.mxu1 %v10541_v33  ;;  %v10204_v33 = vld [vmem:[%s24558_s1 + $0x40] sm:$0xf]  ;;  %v15591_v30 = vld [vmem:[%s24558_s1 + $0xbf0] sm:$0xf0] }
 0x10e   :  { %6163 = vmatpush.bf16.msra.mxu2 %v10765_v35  ;;  %v15220_v35 = vld [vmem:[%s24558_s1 + $0x58] sm:$0xf0] }
 0x10f   :  { %6176 = vmatpush.bf16.msra.mxu3 %v10989_v42  ;;  %v10652_v42 = vld [vmem:[%s24558_s1 + $0x3c0] sm:$0xf]  ;;  %v10205_v45 = vor.u32 %v15220_v35, %v10204_v33  ;;  %v11241_v33 = vor.u32 %v15479_v17, %v11240_v16  ;;  %v11465_v35 = vor.u32 %v15535_v28, %v11464_v21  ;;  %v15570_v16 = vld [vmem:[%s24558_s1 + $0xb48] sm:$0xf0]  ;;  %v11828_v17 = vld [vmem:[%s24558_s1 + $0xcf0] sm:$0xf] }
 0x110   :  { %6138 = vmatpush.bf16.msra.mxu0 %v10289_v49  ;;  %v10653_v49 = vor.u32 %v15332_v43, %v10652_v42  ;;  %v5912_v57 = vpop.f32.mrf.mxu2  ;;  %v11436_v42 = vld [vmem:[%s24558_s1 + $0x9e0] sm:$0xf]  ;;  %v15626_v21 = vld [vmem:[%s24558_s1 + $0xd08] sm:$0xf0] }
 0x111   :  { %6151 = vmatpush.bf16.msra.mxu1 %v10513_v51  ;;  %v15269_v51 = vld [vmem:[%s24558_s1 + $0x1e0] sm:$0xf0]  ;;  %v5925_v61 = vpop.f32.mrf.mxu3 }
 0x112   :  { %6164 = vmatpush.bf16.msra.mxu2 %v10737_v52  ;;  %v10624_v52 = vld [vmem:[%s24558_s1 + $0x388] sm:$0xf]  ;;  %v10401_v3 = vor.u32 %v15269_v51, %v10400_v50  ;;  %v11437_v50 = vor.u32 %v15528_v54, %v11436_v42  ;;  %v15521_v57 = vld [vmem:[%s24558_s1 + $0x9c0] sm:$0xf0]  ;;  %v15563_v42 = vld [vmem:[%s24558_s1 + $0xb10] sm:$0xf0] }
 0x113   :  { %6177 = vmatpush.bf16.msra.mxu3 %v10961_v6  ;;  %v15381_v6 = vld [vmem:[%s24558_s1 + $0x560] sm:$0xf0]  ;;  %v10625_v4 = vor.u32 %v15325_v55, %v10624_v52 }
 0x114   :  { %6139 = vmatpush.bf16.msra.mxu0 %v10261_v0  ;;  %v15542_v0 = vld [vmem:[%s24558_s1 + $0xa68] sm:$0xf0]  ;;  %v10849_v10 = vor.u32 %v15381_v6, %v10848_v56  ;;  %v15465_v52 = vld [vmem:[%s24558_s1 + $0x800] sm:$0xf0]  ;;  %v11885_v6 = vor.u32 %v15640_v47, %v11884_v46 }
 0x115   :  { %6152 = vmatpush.bf16.msra.mxu1 %v10485_v1  ;;  %v11716_v1 = vld [vmem:[%s24558_s1 + $0xc10] sm:$0xf]  ;;  %v11493_v12 = vor.u32 %v15542_v0, %v11492_v60  ;;  %v16468_v55 = vld [vmem:[%s24560_s2] sm:$0x7f]  ;;  %v11856_v60 = vld [vmem:[%s24558_s1 + $0xd28] sm:$0xf] }
 0x116   :  { %6165 = vmatpush.bf16.msra.mxu2 %v10709_v2  ;;  %v15598_v2 = vld [vmem:[%s24558_s1 + $0xc28] sm:$0xf0]  ;;  %v1098_v56 = vperm.slane %v16468_v55, 1  ;;  %v15633_v61 = vld [vmem:[%s24558_s1 + $0xd40] sm:$0xf0] }
 0x117   :  { %6178 = vmatpush.bf16.msra.mxu3 %v10933_v7  ;;  %v15654_v7 = vld [vmem:[%s24558_s1 + $0xde8] sm:$0xf0]  ;;  %v11717_v14 = vor.u32 %v15598_v2, %v11716_v1  ;;  %v11633_v2 = vor.u32 %v15577_v59, %v11632_v58  ;;  %v15556_v58 = vld [vmem:[%s24558_s1 + $0xad8] sm:$0xf0]  ;;  %v11772_v59 = vld [vmem:[%s24558_s1 + $0xc80] sm:$0xf] }
 0x118   :  { %6140 = vmatpush.bf16.msra.mxu0 %v10233_v29  ;;  %v11941_v24 = vor.u32 %v15654_v7, %v11940_v5  ;;  %v11688_v29 = vld [vmem:[%s24558_s1 + $0xbd8] sm:$0xf]  ;;  %v11380_v5 = vld [vmem:[%s24558_s1 + $0x970] sm:$0xf] }
 0x119   :  { %6153 = vmatpush.bf16.msra.mxu1 %v10457_v32  ;;  %v11912_v32 = vld [vmem:[%s24558_s1 + $0xd98] sm:$0xf]  ;;  %v11689_v36 = vor.u32 %v15591_v30, %v11688_v29 }
 0x11a   :  { %6166 = vmatpush.bf16.msra.mxu2 %v10681_v62  ;;  %v15647_v62 = vld [vmem:[%s24558_s1 + $0xdb0] sm:$0xf0] }
 0x11b   :  { %6179 = vmatpush.bf16.msra.mxu3 %v10905_v39  ;;  %v11212_v39 = vld [vmem:[%s24558_s1 + $0x820] sm:$0xf]  ;;  %v11913_v43 = vor.u32 %v15647_v62, %v11912_v32  ;;  %v11128_v32 = vld [vmem:[%s24558_s1 + $0x778] sm:$0xf]  ;;  %v15451_v62 = vld [vmem:[%s24558_s1 + $0x790] sm:$0xf0] }
 0x11c   :  { %6141 = vmatpush.bf16.msra.mxu0 %v10205_v45  ;;  %v15584_v45 = vld [vmem:[%s24558_s1 + $0xbb8] sm:$0xf0]  ;;  %v11129_v46 = vor.u32 %v15451_v62, %v11128_v32  ;;  %v15822_v32 = vld [vmem:[%s24558_s1 + $0x1328] sm:$0xf0] }
 0x11d   :  { %6154 = vmatpush.bf16.msra.mxu1 %v10429_v48  ;;  %v11213_v48 = vor.u32 %v15472_v41, %v11212_v39  ;;  %v11661_v51 = vor.u32 %v15584_v45, %v11660_v44  ;;  %v15507_v39 = vld [vmem:[%s24558_s1 + $0x950] sm:$0xf0]  ;;  %v11576_v41 = vld [vmem:[%s24558_s1 + $0xaf8] sm:$0xf] }
 0x11e   :  { %6167 = vmatpush.bf16.msra.mxu2 %v10653_v49  ;;  %v11184_v49 = vld [vmem:[%s24558_s1 + $0x7e8] sm:$0xf]  ;;  %v11800_v44 = vld [vmem:[%s24558_s1 + $0xcb8] sm:$0xf]  ;;  %v15619_v45 = vld [vmem:[%s24558_s1 + $0xcd0] sm:$0xf0] }
 0x11f   :  { %6180 = vmatpush.bf16.msra.mxu3 %v10877_v53  ;;  %v11408_v53 = vld [vmem:[%s24558_s1 + $0x9a8] sm:$0xf] }
 0x120   :  { %6142 = vmatpush.bf16.msra.mxu0 %v10177_v63  ;;  %v11185_v63 = vor.u32 %v15465_v52, %v11184_v49  ;;  %v5936_v0 = vpop.f32.mrf.mxu0  ;;  %v11409_v1 = vor.u32 %v15521_v57, %v11408_v53  ;;  %v15444_v52 = vld [vmem:[%s24558_s1 + $0x758] sm:$0xf0]  ;;  %v11324_v53 = vld [vmem:[%s24558_s1 + $0x900] sm:$0xf] }
 0x121   :  { %6155 = vmatpush.bf16.msra.mxu1 %v10401_v3  ;;  %v11156_v3 = vld [vmem:[%s24558_s1 + $0x7b0] sm:$0xf]  ;;  %v5937_v7 = vadd.f32 %v5936_v0, %v1098_v56  ;;  %v11801_v56 = vor.u32 %v15619_v45, %v11800_v44  ;;  %v11548_v57 = vld [vmem:[%s24558_s1 + $0xac0] sm:$0xf]  ;;  %v15437_v0 = vld [vmem:[%s24558_s1 + $0x720] sm:$0xf0] }
 0x122   :  { %6168 = vmatpush.bf16.msra.mxu2 %v10625_v4  ;;  %v15458_v4 = vld [vmem:[%s24558_s1 + $0x7c8] sm:$0xf0]  ;;  %v15703_v44 = vld [vmem:[%s24558_s1 + $0xf70] sm:$0xf0]  ;;  %v12360_v45 = vld [vmem:[%s24558_s1 + $0x1118] sm:$0xf] }
 0x123   :  { %6181 = vmatpush.bf16.msra.mxu3 %v10849_v10  ;;  %6143 = vmatmul.bf16.vlgmr.msra.gmra.mxu0 %v16816_v9  ;;  %v5949_v10 = vpop.f32.mrf.mxu1  ;;  %v11157_v28 = vor.u32 %v15458_v4, %v11156_v3  ;;  %v11296_v3 = vld [vmem:[%s24558_s1 + $0x8c8] sm:$0xf]  ;;  %v15493_v4 = vld [vmem:[%s24558_s1 + $0x8e0] sm:$0xf0] }
 0x124   :  { %6187 = vmatpush.bf16.msrb.mxu0 %v11269_v11  ;;  %6156 = vmatmul.bf16.vlgmr.msra.gmra.mxu1 %v16853_v25  ;;  %v11857_v11 = vor.u32 %v15633_v61, %v11856_v60  ;;  %v15612_v60 = vld [vmem:[%s24558_s1 + $0xc98] sm:$0xf0]  ;;  %v11297_v62 = vor.u32 %v15493_v4, %v11296_v3 }
 0x125   :  { %6200 = vmatpush.bf16.msrb.mxu1 %v11493_v12  ;;  %6169 = vmatmul.bf16.vlgmr.msra.gmra.mxu2 %v16814_v8  ;;  %v15514_v12 = vld [vmem:[%s24558_s1 + $0x988] sm:$0xf0] }
 0x126   :  { %6213 = vmatpush.bf16.msrb.mxu2 %v11717_v14  ;;  %6182 = vmatmul.bf16.vlgmr.msra.gmra.mxu3 %v16830_v15  ;;  %v11604_v14 = vld [vmem:[%s24558_s1 + $0xb30] sm:$0xf]  ;;  %v11381_v29 = vor.u32 %v15514_v12, %v11380_v5  ;;  %v11520_v5 = vld [vmem:[%s24558_s1 + $0xa88] sm:$0xf] }
 0x127   :  { %6226 = vmatpush.bf16.msrb.mxu3 %v11941_v24  ;;  %v5950_v24 = vadd.f32 %v5949_v10, %v5937_v7  ;;  %v11605_v30 = vor.u32 %v15570_v16, %v11604_v14  ;;  %v11773_v10 = vor.u32 %v15612_v60, %v11772_v59  ;;  %v11744_v12 = vld [vmem:[%s24558_s1 + $0xc48] sm:$0xf]  ;;  %v15605_v14 = vld [vmem:[%s24558_s1 + $0xc60] sm:$0xf0]  ;;  %v15752_v60 = vld [vmem:[%s24558_s1 + $0x10f8] sm:$0xf0] }
 0x128   :  { %6188 = vmatpush.bf16.msrb.mxu0 %v11241_v33  ;;  %v11352_v33 = vld [vmem:[%s24558_s1 + $0x938] sm:$0xf] }
 0x129   :  { %6201 = vmatpush.bf16.msrb.mxu1 %v11465_v35  ;;  %v5962_v35 = vpop.f32.mrf.mxu2  ;;  %v5975_v54 = vpop.f32.mrf.mxu3  ;;  %v11353_v49 = vor.u32 %v15507_v39, %v11352_v33  ;;  %v11745_v39 = vor.u32 %v15605_v14, %v11744_v12  ;;  %v15745_v12 = vld [vmem:[%s24558_s1 + $0x10c0] sm:$0xf0]  ;;  %v12528_v14 = vld [vmem:[%s24558_s1 + $0x1268] sm:$0xf] }
 0x12a   :  { %6214 = vmatpush.bf16.msrb.mxu2 %v11689_v36  ;;  %v11829_v36 = vor.u32 %v15626_v21, %v11828_v17  ;;  %v12164_v17 = vld [vmem:[%s24558_s1 + $0xf90] sm:$0xf]  ;;  %v15710_v21 = vld [vmem:[%s24558_s1 + $0xfa8] sm:$0xf0] }
 0x12b   :  { %6227 = vmatpush.bf16.msrb.mxu3 %v11913_v43  ;;  %v5963_v43 = vadd.f32 %v5962_v35, %v5950_v24  ;;  %v5951_v55 = vpop.f32.mrf.mxu1  ;;  %v12388_v24 = vld [vmem:[%s24558_s1 + $0x1150] sm:$0xf] }
 0x12c   :  { %6189 = vmatpush.bf16.msrb.mxu0 %v11213_v48  ;;  %v5938_v48 = vpop.f32.mrf.mxu0  ;;  %v12836_v35 = vld [vmem:[%s24558_s1 + $0x14d0] sm:$0xf] }
 0x12d   :  { %6202 = vmatpush.bf16.msrb.mxu1 %v11437_v50  ;;  %v18540_v47 = vadd.f32 %v5975_v54, %v5963_v43  ;;  %v11577_v50 = vor.u32 %v15563_v42, %v11576_v41  ;;  %v12165_v41 = vor.u32 %v15710_v21, %v12164_v17  ;;  %v12136_v54 = vld [vmem:[%s24558_s1 + $0xf58] sm:$0xf]  ;;  %v15759_v48 = vld [vmem:[%s24558_s1 + $0x1130] sm:$0xf0]  ;;  %v12752_v17 = vld [vmem:[%s24558_s1 + $0x1428] sm:$0xf] }
 0x12e   :  { %6215 = vmatpush.bf16.msrb.mxu2 %v11661_v51  ;;  %v11100_v51 = vld [vmem:[%s24558_s1 + $0x740] sm:$0xf]  ;;  %v12361_v55 = vor.u32 %v15759_v48, %v12360_v45  ;;  %v15857_v21 = vld [vmem:[%s24558_s1 + $0x1440] sm:$0xf0] }
 0x12f   :  { %6228 = vmatpush.bf16.msrb.mxu3 %v11885_v6  ;;  %v15500_v6 = vld [vmem:[%s24558_s1 + $0x918] sm:$0xf0]  ;;  %v11101_v61 = vor.u32 %v15444_v52, %v11100_v51  ;;  %v12808_v51 = vld [vmem:[%s24558_s1 + $0x1498] sm:$0xf]  ;;  %v15871_v52 = vld [vmem:[%s24558_s1 + $0x14b0] sm:$0xf0] }
 0x130   :  { %6190 = vmatpush.bf16.msrb.mxu0 %v11185_v63  ;;  %v11072_v63 = vld [vmem:[%s24558_s1 + $0x708] sm:$0xf]  ;;  %v12809_v59 = vor.u32 %v15871_v52, %v12808_v51  ;;  %v12248_v51 = vld [vmem:[%s24558_s1 + $0x1038] sm:$0xf] }
 0x131   :  { %6203 = vmatpush.bf16.msrb.mxu1 %v11409_v1  ;;  %v11325_v1 = vor.u32 %v15500_v6, %v11324_v53  ;;  %v5964_v7 = vpop.f32.mrf.mxu2  ;;  %v5977_v16 = vpop.f32.mrf.mxu3  ;;  %v12137_v53 = vor.u32 %v15703_v44, %v12136_v54  ;;  %v12108_v6 = vld [vmem:[%s24558_s1 + $0xf20] sm:$0xf]  ;;  %v12724_v54 = vld [vmem:[%s24558_s1 + $0x13f0] sm:$0xf] }
 0x132   :  { %6216 = vmatpush.bf16.msrb.mxu2 %v11633_v2  ;;  %v11549_v2 = vor.u32 %v15556_v58, %v11548_v57  ;;  %v15696_v57 = vld [vmem:[%s24558_s1 + $0xf38] sm:$0xf0]  ;;  %v12332_v58 = vld [vmem:[%s24558_s1 + $0x10e0] sm:$0xf]  ;;  %v15689_v7 = vld [vmem:[%s24558_s1 + $0xf00] sm:$0xf0] }
 0x133   :  { %6229 = vmatpush.bf16.msrb.mxu3 %v11857_v11  ;;  %v15549_v11 = vld [vmem:[%s24558_s1 + $0xaa0] sm:$0xf0]  ;;  %v12333_v3 = vor.u32 %v15752_v60, %v12332_v58  ;;  %v15843_v60 = vld [vmem:[%s24558_s1 + $0x13d0] sm:$0xf0] }
 0x134   :  { %6191 = vmatpush.bf16.msrb.mxu0 %v11157_v28  ;;  %v11073_v28 = vor.u32 %v15437_v0, %v11072_v63  ;;  %v11521_v33 = vor.u32 %v15549_v11, %v11520_v5  ;;  %v15808_v63 = vld [vmem:[%s24558_s1 + $0x12b8] sm:$0xf0]  ;;  %v12780_v0 = vld [vmem:[%s24558_s1 + $0x1460] sm:$0xf]  ;;  %v12080_v5 = vld [vmem:[%s24558_s1 + $0xee8] sm:$0xf] }
 0x135   :  { %6204 = vmatpush.bf16.msrb.mxu1 %v11381_v29  ;;  %v15766_v29 = vld [vmem:[%s24558_s1 + $0x1168] sm:$0xf0]  ;;  %v15801_v16 = vld [vmem:[%s24558_s1 + $0x1280] sm:$0xf0] }
 0x136   :  { %6217 = vmatpush.bf16.msrb.mxu2 %v11605_v30  ;;  %v12612_v30 = vld [vmem:[%s24558_s1 + $0x1310] sm:$0xf]  ;;  %v12389_v42 = vor.u32 %v15766_v29, %v12388_v24  ;;  %v12081_v24 = vor.u32 %v15689_v7, %v12080_v5  ;;  %v12220_v5 = vld [vmem:[%s24558_s1 + $0x1000] sm:$0xf] }
 0x137   :  { %6230 = vmatpush.bf16.msrb.mxu3 %v11829_v36  ;;  %v15878_v36 = vld [vmem:[%s24558_s1 + $0x14e8] sm:$0xf0]  ;;  %v12613_v43 = vor.u32 %v15822_v32, %v12612_v30  ;;  %v12529_v30 = vor.u32 %v15801_v16, %v12528_v14  ;;  %v12052_v32 = vld [vmem:[%s24558_s1 + $0xeb0] sm:$0xf]  ;;  %v15780_v14 = vld [vmem:[%s24558_s1 + $0x11d8] sm:$0xf0] }
 0x138   :  { %6192 = vmatpush.bf16.msrb.mxu0 %v11129_v46  ;;  %v12837_v46 = vor.u32 %v15878_v36, %v12836_v35  ;;  %v12668_v16 = vld [vmem:[%s24558_s1 + $0x1380] sm:$0xf] }
 0x139   :  { %6205 = vmatpush.bf16.msrb.mxu1 %v11353_v49  ;;  %v12584_v49 = vld [vmem:[%s24558_s1 + $0x12d8] sm:$0xf] }
 0x13a   :  { %6218 = vmatpush.bf16.msrb.mxu2 %v11577_v50  ;;  %v15815_v50 = vld [vmem:[%s24558_s1 + $0x12f0] sm:$0xf0] }
 0x13b   :  { %6231 = vmatpush.bf16.msrb.mxu3 %v11801_v56  ;;  %v12585_v56 = vor.u32 %v15815_v50, %v12584_v49  ;;  %v12024_v49 = vld [vmem:[%s24558_s1 + $0xe78] sm:$0xf]  ;;  %v15675_v50 = vld [vmem:[%s24558_s1 + $0xe90] sm:$0xf0] }
 0x13c   :  { %6193 = vmatpush.bf16.msrb.mxu0 %v11101_v61  ;;  %v12556_v61 = vld [vmem:[%s24558_s1 + $0x12a0] sm:$0xf] }
 0x13d   :  { %6206 = vmatpush.bf16.msrb.mxu1 %v11325_v1  ;;  %v15864_v1 = vld [vmem:[%s24558_s1 + $0x1478] sm:$0xf0]  ;;  %v12557_v4 = vor.u32 %v15808_v63, %v12556_v61  ;;  %v12025_v61 = vor.u32 %v15675_v50, %v12024_v49  ;;  %v16046_v49 = vld [vmem:[%s24558_s1 + $0x1a28] sm:$0xf0] }
 0x13e   :  { %6219 = vmatpush.bf16.msrb.mxu2 %v11549_v2  ;;  %v12109_v2 = vor.u32 %v15696_v57, %v12108_v6  ;;  %v12781_v11 = vor.u32 %v15864_v1, %v12780_v0  ;;  %v15787_v6 = vld [vmem:[%s24558_s1 + $0x1210] sm:$0xf0] }
 0x13f   :  { %6232 = vmatpush.bf16.msrb.mxu3 %v11773_v10  ;;  %v12304_v10 = vld [vmem:[%s24558_s1 + $0x10a8] sm:$0xf] }
 0x140   :  { %6194 = vmatpush.bf16.msrb.mxu0 %v11073_v28  ;;  %v5988_v28 = vpop.f32.mrf.mxu0  ;;  %v12305_v29 = vor.u32 %v15745_v12, %v12304_v10  ;;  %v12444_v12 = vld [vmem:[%s24558_s1 + $0x11c0] sm:$0xf] }
 0x141   :  { %6207 = vmatpush.bf16.msrb.mxu1 %v11297_v62  ;;  %v15682_v62 = vld [vmem:[%s24558_s1 + $0xec8] sm:$0xf0]  ;;  %v5989_v35 = vadd.f32 %v5988_v28, %v18540_v47  ;;  %v6001_v36 = vpop.f32.mrf.mxu1  ;;  %v15661_v28 = vld [vmem:[%s24558_s1 + $0xe20] sm:$0xf0] }
 0x142   :  { %6220 = vmatpush.bf16.msrb.mxu2 %v11521_v33  ;;  %v12276_v33 = vld [vmem:[%s24558_s1 + $0x1070] sm:$0xf]  ;;  %v15850_v47 = vld [vmem:[%s24558_s1 + $0x1408] sm:$0xf0]  ;;  %v12053_v45 = vor.u32 %v15682_v62, %v12052_v32  ;;  %v12192_v32 = vld [vmem:[%s24558_s1 + $0xfc8] sm:$0xf] }
 0x143   :  { %6233 = vmatpush.bf16.msrb.mxu3 %v11745_v39  ;;  %6195 = vmatmul.bf16.vlgmr.msrb.gmra.mxu0 %v17005_v37  ;;  %v12753_v39 = vor.u32 %v15857_v21, %v12752_v17  ;;  %v6002_v44 = vadd.f32 %v6001_v36, %v5989_v35  ;;  %v15836_v17 = vld [vmem:[%s24558_s1 + $0x1398] sm:$0xf0]  ;;  %v15717_v62 = vld [vmem:[%s24558_s1 + $0xfe0] sm:$0xf0] }
 0x144   :  { %6239 = vmatpush.bf16.msra.mxu0 %v12165_v41  ;;  %6208 = vmatmul.bf16.vlgmr.msrb.gmra.mxu1 %v17009_v40  ;;  %v15738_v41 = vld [vmem:[%s24558_s1 + $0x1088] sm:$0xf0]  ;;  %v12669_v36 = vor.u32 %v15836_v17, %v12668_v16  ;;  %v12193_v50 = vor.u32 %v15717_v62, %v12192_v32  ;;  %v15976_v17 = vld [vmem:[%s24558_s1 + $0x17f8] sm:$0xf0] }
 0x145   :  { %6252 = vmatpush.bf16.msra.mxu1 %v12389_v42  ;;  %6221 = vmatmul.bf16.vlgmr.msrb.gmra.mxu2 %v16997_v34  ;;  %v12500_v42 = vld [vmem:[%s24558_s1 + $0x1230] sm:$0xf] }
 0x146   :  { %6265 = vmatpush.bf16.msra.mxu2 %v12613_v43  ;;  %6234 = vmatmul.bf16.vlgmr.msrb.gmra.mxu3 %v17007_v38  ;;  %v15794_v43 = vld [vmem:[%s24558_s1 + $0x1248] sm:$0xf0] }
 0x147   :  { %6278 = vmatpush.bf16.msra.mxu3 %v12837_v46  ;;  %v12277_v46 = vor.u32 %v15738_v41, %v12276_v33  ;;  %v12501_v48 = vor.u32 %v15794_v43, %v12500_v42  ;;  %v12416_v33 = vld [vmem:[%s24558_s1 + $0x1188] sm:$0xf]  ;;  %v15829_v42 = vld [vmem:[%s24558_s1 + $0x1360] sm:$0xf0] }
 0x148   :  { %6240 = vmatpush.bf16.msra.mxu0 %v12137_v53  ;;  %v6014_v52 = vpop.f32.mrf.mxu2  ;;  %v12725_v53 = vor.u32 %v15850_v47, %v12724_v54  ;;  %v5990_v0 = vpop.f32.mrf.mxu0  ;;  %v12640_v41 = vld [vmem:[%s24558_s1 + $0x1348] sm:$0xf]  ;;  %v13060_v54 = vld [vmem:[%s24558_s1 + $0x1690] sm:$0xf]  ;;  %v15934_v47 = vld [vmem:[%s24558_s1 + $0x16a8] sm:$0xf0] }
 0x149   :  { %6253 = vmatpush.bf16.msra.mxu1 %v12361_v55  ;;  %v15731_v55 = vld [vmem:[%s24558_s1 + $0x1050] sm:$0xf0]  ;;  %v6015_v57 = vadd.f32 %v6014_v52, %v6002_v44  ;;  %v6027_v58 = vpop.f32.mrf.mxu3  ;;  %v6003_v7 = vpop.f32.mrf.mxu1  ;;  %v13284_v44 = vld [vmem:[%s24558_s1 + $0x1850] sm:$0xf] }
 0x14a   :  { %6266 = vmatpush.bf16.msra.mxu2 %v12585_v56  ;;  %v12472_v56 = vld [vmem:[%s24558_s1 + $0x11f8] sm:$0xf]  ;;  %v12249_v1 = vor.u32 %v15731_v55, %v12248_v51  ;;  %v13732_v52 = vld [vmem:[%s24558_s1 + $0x1bd0] sm:$0xf]  ;;  %v12641_v55 = vor.u32 %v15829_v42, %v12640_v41  ;;  %v15983_v0 = vld [vmem:[%s24558_s1 + $0x1830] sm:$0xf0] }
 0x14b   :  { %6279 = vmatpush.bf16.msra.mxu3 %v12809_v59  ;;  %v12696_v59 = vld [vmem:[%s24558_s1 + $0x13b8] sm:$0xf]  ;;  %v18739_v63 = vadd.f32 %v6027_v58, %v6015_v57  ;;  %v15969_v41 = vld [vmem:[%s24558_s1 + $0x17c0] sm:$0xf0]  ;;  %v13424_v42 = vld [vmem:[%s24558_s1 + $0x1968] sm:$0xf] }
 0x14c   :  { %6241 = vmatpush.bf16.msra.mxu0 %v12109_v2  ;;  %v12473_v2 = vor.u32 %v15787_v6, %v12472_v56  ;;  %v12697_v10 = vor.u32 %v15843_v60, %v12696_v59  ;;  %v13061_v56 = vor.u32 %v15934_v47, %v13060_v54  ;;  %v13032_v58 = vld [vmem:[%s24558_s1 + $0x1658] sm:$0xf]  ;;  %v15927_v59 = vld [vmem:[%s24558_s1 + $0x1670] sm:$0xf0]  ;;  %v13648_v47 = vld [vmem:[%s24558_s1 + $0x1b28] sm:$0xf] }
 0x14d   :  { %6254 = vmatpush.bf16.msra.mxu1 %v12333_v3  ;;  %v11996_v3 = vld [vmem:[%s24558_s1 + $0xe40] sm:$0xf]  ;;  %v13256_v60 = vld [vmem:[%s24558_s1 + $0x1818] sm:$0xf] }
 0x14e   :  { %6267 = vmatpush.bf16.msra.mxu2 %v12557_v4  ;;  %v15668_v4 = vld [vmem:[%s24558_s1 + $0xe58] sm:$0xf0]  ;;  %v13257_v7 = vor.u32 %v15983_v0, %v13256_v60 }
 0x14f   :  { %6280 = vmatpush.bf16.msra.mxu3 %v12781_v11  ;;  %v15724_v11 = vld [vmem:[%s24558_s1 + $0x1018] sm:$0xf0]  ;;  %v11997_v21 = vor.u32 %v15668_v4, %v11996_v3  ;;  %v13704_v3 = vld [vmem:[%s24558_s1 + $0x1b98] sm:$0xf]  ;;  %v16095_v4 = vld [vmem:[%s24558_s1 + $0x1bb0] sm:$0xf0] }
 0x150   :  { %6242 = vmatpush.bf16.msra.mxu0 %v12081_v24  ;;  %v11968_v24 = vld [vmem:[%s24558_s1 + $0xe08] sm:$0xf]  ;;  %v6016_v35 = vpop.f32.mrf.mxu2  ;;  %v13705_v16 = vor.u32 %v16095_v4, %v13704_v3  ;;  %v13144_v3 = vld [vmem:[%s24558_s1 + $0x1738] sm:$0xf] }
 0x151   :  { %6255 = vmatpush.bf16.msra.mxu1 %v12305_v29  ;;  %v12221_v29 = vor.u32 %v15724_v11, %v12220_v5  ;;  %v6029_v43 = vpop.f32.mrf.mxu3  ;;  %v13033_v5 = vor.u32 %v15927_v59, %v13032_v58  ;;  %v13004_v11 = vld [vmem:[%s24558_s1 + $0x1620] sm:$0xf]  ;;  %v15913_v35 = vld [vmem:[%s24558_s1 + $0x1600] sm:$0xf0]  ;;  %v13620_v58 = vld [vmem:[%s24558_s1 + $0x1af0] sm:$0xf] }
 0x152   :  { %6268 = vmatpush.bf16.msra.mxu2 %v12529_v30  ;;  %v12445_v30 = vor.u32 %v15780_v14, %v12444_v12  ;;  %v15920_v12 = vld [vmem:[%s24558_s1 + $0x1638] sm:$0xf0]  ;;  %v13228_v14 = vld [vmem:[%s24558_s1 + $0x17e0] sm:$0xf]  ;;  %v16025_v43 = vld [vmem:[%s24558_s1 + $0x1980] sm:$0xf0] }
 0x153   :  { %6281 = vmatpush.bf16.msra.mxu3 %v12753_v39  ;;  %v15773_v39 = vld [vmem:[%s24558_s1 + $0x11a0] sm:$0xf0]  ;;  %v13229_v32 = vor.u32 %v15976_v17, %v13228_v14  ;;  %v16074_v59 = vld [vmem:[%s24558_s1 + $0x1b08] sm:$0xf0]  ;;  %v16067_v17 = vld [vmem:[%s24558_s1 + $0x1ad0] sm:$0xf0] }
 0x154   :  { %6243 = vmatpush.bf16.msra.mxu0 %v12053_v45  ;;  %v11969_v45 = vor.u32 %v15661_v28, %v11968_v24  ;;  %v12417_v51 = vor.u32 %v15773_v39, %v12416_v33  ;;  %v16032_v24 = vld [vmem:[%s24558_s1 + $0x19b8] sm:$0xf0]  ;;  %v13676_v28 = vld [vmem:[%s24558_s1 + $0x1b60] sm:$0xf]  ;;  %v12976_v33 = vld [vmem:[%s24558_s1 + $0x15e8] sm:$0xf]  ;;  %v13621_v4 = vor.u32 %v16074_v59, %v13620_v58 }
 0x155   :  { %6256 = vmatpush.bf16.msra.mxu1 %v12277_v46  ;;  %v15990_v46 = vld [vmem:[%s24558_s1 + $0x1868] sm:$0xf0]  ;;  %v15315_v58 = vld [vmem:[%s24558_s1 + $0x354] sm:$0xf] }
 0x156   :  { %6269 = vmatpush.bf16.msra.mxu2 %v12501_v48  ;;  %v13508_v48 = vld [vmem:[%s24558_s1 + $0x1a10] sm:$0xf]  ;;  %v13285_v6 = vor.u32 %v15990_v46, %v13284_v44  ;;  %v16081_v44 = vld [vmem:[%s24558_s1 + $0x1b40] sm:$0xf0]  ;;  %v12977_v46 = vor.u32 %v15913_v35, %v12976_v33  ;;  %v15892_v33 = vld [vmem:[%s24558_s1 + $0x1558] sm:$0xf0] }
 0x157   :  { %6282 = vmatpush.bf16.msra.mxu3 %v12725_v53  ;;  %v16102_v53 = vld [vmem:[%s24558_s1 + $0x1be8] sm:$0xf0]  ;;  %v13509_v57 = vor.u32 %v16046_v49, %v13508_v48  ;;  %v13116_v35 = vld [vmem:[%s24558_s1 + $0x1700] sm:$0xf] }
 0x158   :  { %6244 = vmatpush.bf16.msra.mxu0 %v12025_v61  ;;  %v13733_v61 = vor.u32 %v16102_v53, %v13732_v52  ;;  %v15906_v52 = vld [vmem:[%s24558_s1 + $0x15c8] sm:$0xf0]  ;;  %v13172_v53 = vld [vmem:[%s24558_s1 + $0x1770] sm:$0xf] }
 0x159   :  { %6257 = vmatpush.bf16.msra.mxu1 %v12249_v1  ;;  %v13480_v1 = vld [vmem:[%s24558_s1 + $0x19d8] sm:$0xf] }
 0x15a   :  { %6270 = vmatpush.bf16.msra.mxu2 %v12473_v2  ;;  %v16039_v2 = vld [vmem:[%s24558_s1 + $0x19f0] sm:$0xf0] }
 0x15b   :  { %6283 = vmatpush.bf16.msra.mxu3 %v12697_v10  ;;  %v13481_v10 = vor.u32 %v16039_v2, %v13480_v1  ;;  %v12920_v1 = vld [vmem:[%s24558_s1 + $0x1578] sm:$0xf]  ;;  %v15899_v2 = vld [vmem:[%s24558_s1 + $0x1590] sm:$0xf0] }
 0x15c   :  { %6245 = vmatpush.bf16.msra.mxu0 %v11997_v21  ;;  %v13452_v21 = vld [vmem:[%s24558_s1 + $0x19a0] sm:$0xf] }
 0x15d   :  { %6258 = vmatpush.bf16.msra.mxu1 %v12221_v29  ;;  %v16088_v29 = vld [vmem:[%s24558_s1 + $0x1b78] sm:$0xf0]  ;;  %v13453_v62 = vor.u32 %v16032_v24, %v13452_v21  ;;  %v12921_v24 = vor.u32 %v15899_v2, %v12920_v1  ;;  %v10822_v1 = vld [vmem:[%s24558_s1 + $0x52c] sm:$0xf0] }
 0x15e   :  { %6271 = vmatpush.bf16.msra.mxu2 %v12445_v30  ;;  %v13005_v30 = vor.u32 %v15920_v12, %v13004_v11  ;;  %v13677_v39 = vor.u32 %v16088_v29, %v13676_v28  ;;  %v16011_v11 = vld [vmem:[%s24558_s1 + $0x1910] sm:$0xf0] }
 0x15f   :  { %6284 = vmatpush.bf16.msra.mxu3 %v12669_v36  ;;  %v13200_v36 = vld [vmem:[%s24558_s1 + $0x17a8] sm:$0xf] }
 0x160   :  { %6246 = vmatpush.bf16.msra.mxu0 %v11969_v45  ;;  %v6040_v54 = vpop.f32.mrf.mxu0  ;;  %v13201_v49 = vor.u32 %v15969_v41, %v13200_v36  ;;  %v13340_v41 = vld [vmem:[%s24558_s1 + $0x18c0] sm:$0xf] }
 0x161   :  { %6259 = vmatpush.bf16.msra.mxu1 %v12193_v50  ;;  %v6041_v45 = vadd.f32 %v6040_v54, %v18739_v63  ;;  %v6053_v48 = vpop.f32.mrf.mxu1  ;;  %v13425_v50 = vor.u32 %v16025_v43, %v13424_v42  ;;  %v13649_v63 = vor.u32 %v16081_v44, %v13648_v47  ;;  %v16004_v42 = vld [vmem:[%s24558_s1 + $0x18d8] sm:$0xf0]  ;;  %v13564_v43 = vld [vmem:[%s24558_s1 + $0x1a80] sm:$0xf]  ;;  %v12864_v44 = vld [vmem:[%s24558_s1 + $0x1508] sm:$0xf] }
 0x162   :  { %6272 = vmatpush.bf16.msra.mxu2 %v12417_v51  ;;  %v12948_v51 = vld [vmem:[%s24558_s1 + $0x15b0] sm:$0xf]  ;;  %v16060_v54 = vld [vmem:[%s24558_s1 + $0x1a98] sm:$0xf0] }
 0x163   :  { %6285 = vmatpush.bf16.msra.mxu3 %v12641_v55  ;;  %6247 = vmatmul.bf16.vlgmr.msra.gmra.mxu0 %v17204_v18  ;;  %v6054_v55 = vadd.f32 %v6053_v48, %v6041_v45  ;;  %v12949_v60 = vor.u32 %v15906_v52, %v12948_v51  ;;  %v15885_v45 = vld [vmem:[%s24558_s1 + $0x1520] sm:$0xf0]  ;;  %v13341_v48 = vor.u32 %v16004_v42, %v13340_v41  ;;  %v13312_v51 = vld [vmem:[%s24558_s1 + $0x1888] sm:$0xf]  ;;  %v10318_v41 = vld [vmem:[%s24558_s1 + $0x13c] sm:$0xf0] }
 0x164   :  { %6291 = vmatpush.bf16.msrb.mxu0 %v13061_v56  ;;  %6260 = vmatmul.bf16.vlgmr.msra.gmra.mxu1 %v17217_v23  ;;  %v15962_v56 = vld [vmem:[%s24558_s1 + $0x1788] sm:$0xf0]  ;;  %v13565_v52 = vor.u32 %v16060_v54, %v13564_v43  ;;  %v15301_v42 = vld [vmem:[%s24558_s1 + $0x2e4] sm:$0xf]  ;;  %v10542_v54 = vld [vmem:[%s24558_s1 + $0x2fc] sm:$0xf0] }
 0x165   :  { %6304 = vmatpush.bf16.msrb.mxu1 %v13285_v6  ;;  %6273 = vmatmul.bf16.vlgmr.msra.gmra.mxu2 %v17215_v22  ;;  %v13396_v6 = vld [vmem:[%s24558_s1 + $0x1930] sm:$0xf] }
 0x166   :  { %6317 = vmatpush.bf16.msrb.mxu2 %v13509_v57  ;;  %6286 = vmatmul.bf16.vlgmr.msra.gmra.mxu3 %v17225_v27  ;;  %v16018_v57 = vld [vmem:[%s24558_s1 + $0x1948] sm:$0xf0] }
 0x167   :  { %6330 = vmatpush.bf16.msrb.mxu3 %v13733_v61  ;;  %v13173_v61 = vor.u32 %v15962_v56, %v13172_v53  ;;  %v13397_v0 = vor.u32 %v16018_v57, %v13396_v6  ;;  %v15997_v53 = vld [vmem:[%s24558_s1 + $0x18a0] sm:$0xf0]  ;;  %v15259_v6 = vld [vmem:[%s24558_s1 + $0x194] sm:$0xf]  ;;  %v10374_v57 = vld [vmem:[%s24558_s1 + $0x1ac] sm:$0xf0] }
 0x168   :  { %6292 = vmatpush.bf16.msrb.mxu0 %v13033_v5  ;;  %v6066_v5 = vpop.f32.mrf.mxu2  ;;  %v6042_v21 = vpop.f32.mrf.mxu0 }
 0x169   :  { %6305 = vmatpush.bf16.msrb.mxu1 %v13257_v7  ;;  %v15955_v7 = vld [vmem:[%s24558_s1 + $0x1750] sm:$0xf0]  ;;  %v6067_v12 = vadd.f32 %v6066_v5, %v6054_v55  ;;  %v6079_v14 = vpop.f32.mrf.mxu3  ;;  %v6055_v28 = vpop.f32.mrf.mxu1  ;;  %v16053_v55 = vld [vmem:[%s24558_s1 + $0x1a60] sm:$0xf0]  ;;  %v11046_v5 = vld [vmem:[%s24558_s1 + $0x6ec] sm:$0xf0] }
 0x16a   :  { %6318 = vmatpush.bf16.msrb.mxu2 %v13481_v10  ;;  %v13368_v10 = vld [vmem:[%s24558_s1 + $0x18f8] sm:$0xf]  ;;  %v15364_v28 = vld [vmem:[%s24558_s1 + $0x4dc] sm:$0xf] }
 0x16b   :  { %6331 = vmatpush.bf16.msrb.mxu3 %v13705_v16  ;;  %v13592_v16 = vld [vmem:[%s24558_s1 + $0x1ab8] sm:$0xf]  ;;  %v18938_v29 = vadd.f32 %v6079_v14, %v6067_v12  ;;  %v15252_v14 = vld [vmem:[%s24558_s1 + $0x15c] sm:$0xf] }
 0x16c   :  { %6293 = vmatpush.bf16.msrb.mxu0 %v13005_v30  ;;  %v13145_v30 = vor.u32 %v15955_v7, %v13144_v3  ;;  %v13593_v36 = vor.u32 %v16067_v17, %v13592_v16  ;;  %v13313_v3 = vor.u32 %v15997_v53, %v13312_v51  ;;  %v10346_v16 = vld [vmem:[%s24558_s1 + $0x174] sm:$0xf0]  ;;  %v15308_v17 = vld [vmem:[%s24558_s1 + $0x31c] sm:$0xf]  ;;  %v15238_v51 = vld [vmem:[%s24558_s1 + $0xec] sm:$0xf] }
 0x16d   :  { %6306 = vmatpush.bf16.msrb.mxu1 %v13229_v32  ;;  %v13369_v32 = vor.u32 %v16011_v11, %v13368_v10  ;;  %v10377_v10 = vor.u32 %v15259_v6, %v10374_v57  ;;  %v15294_v53 = vld [vmem:[%s24558_s1 + $0x2ac] sm:$0xf]  ;;  %v10738_v6 = vld [vmem:[%s24558_s1 + $0x484] sm:$0xf0] }
 0x16e   :  { %6319 = vmatpush.bf16.msrb.mxu2 %v13453_v62  ;;  %v12892_v62 = vld [vmem:[%s24558_s1 + $0x1540] sm:$0xf] }
 0x16f   :  { %6332 = vmatpush.bf16.msrb.mxu3 %v13677_v39  ;;  %v15948_v39 = vld [vmem:[%s24558_s1 + $0x1718] sm:$0xf0]  ;;  %v12893_v47 = vor.u32 %v15892_v33, %v12892_v62  ;;  %v11018_v62 = vld [vmem:[%s24558_s1 + $0x6b4] sm:$0xf0]  ;;  %v10349_v33 = vor.u32 %v15252_v14, %v10346_v16  ;;  %v15399_v14 = vld [vmem:[%s24558_s1 + $0x5f4] sm:$0xf] }
 0x170   :  { %6294 = vmatpush.bf16.msrb.mxu0 %v12977_v46  ;;  %v13117_v46 = vor.u32 %v15948_v39, %v13116_v35  ;;  %v6068_v56 = vpop.f32.mrf.mxu2  ;;  %v15245_v39 = vld [vmem:[%s24558_s1 + $0x124] sm:$0xf]  ;;  %v10934_v16 = vld [vmem:[%s24558_s1 + $0x60c] sm:$0xf0] }
 0x171   :  { %6307 = vmatpush.bf16.msrb.mxu1 %v13201_v49  ;;  %v13088_v49 = vld [vmem:[%s24558_s1 + $0x16c8] sm:$0xf]  ;;  %v6081_v59 = vpop.f32.mrf.mxu3  ;;  %v15350_v56 = vld [vmem:[%s24558_s1 + $0x46c] sm:$0xf] }
 0x172   :  { %6320 = vmatpush.bf16.msrb.mxu2 %v13425_v50  ;;  %v15941_v50 = vld [vmem:[%s24558_s1 + $0x16e0] sm:$0xf0]  ;;  %v10962_v59 = vld [vmem:[%s24558_s1 + $0x644] sm:$0xf0] }
 0x173   :  { %6333 = vmatpush.bf16.msrb.mxu3 %v13649_v63  ;;  %v13536_v63 = vld [vmem:[%s24558_s1 + $0x1a48] sm:$0xf]  ;;  %v13089_v2 = vor.u32 %v15941_v50, %v13088_v49  ;;  %v10545_v49 = vor.u32 %v15301_v42, %v10542_v54  ;;  %v10906_v54 = vld [vmem:[%s24558_s1 + $0x5d4] sm:$0xf0] }
 0x174   :  { %6295 = vmatpush.bf16.msrb.mxu0 %v12949_v60  ;;  %v12865_v60 = vor.u32 %v15885_v45, %v12864_v44  ;;  %v13537_v7 = vor.u32 %v16053_v55, %v13536_v63  ;;  %v10766_v44 = vld [vmem:[%s24558_s1 + $0x4bc] sm:$0xf0]  ;;  %v15413_v45 = vld [vmem:[%s24558_s1 + $0x664] sm:$0xf]  ;;  %v10514_v55 = vld [vmem:[%s24558_s1 + $0x2c4] sm:$0xf0] }
 0x175   :  { %6308 = vmatpush.bf16.msrb.mxu1 %v13173_v61  ;;  %v10598_v61 = vld [vmem:[%s24558_s1 + $0x36c] sm:$0xf0] }
 0x176   :  { %6321 = vmatpush.bf16.msrb.mxu2 %v13397_v0  ;;  %v15371_v0 = vld [vmem:[%s24558_s1 + $0x514] sm:$0xf]  ;;  %v10601_v11 = vor.u32 %v15315_v58, %v10598_v61  ;;  %v15406_v58 = vld [vmem:[%s24558_s1 + $0x62c] sm:$0xf] }
 0x177   :  { %6334 = vmatpush.bf16.msrb.mxu3 %v13621_v4  ;;  %v15427_v4 = vld [vmem:[%s24558_s1 + $0x6d4] sm:$0xf]  ;;  %v10825_v12 = vor.u32 %v15371_v0, %v10822_v1  ;;  %v10517_v1 = vor.u32 %v15294_v53, %v10514_v55  ;;  %v15329_v55 = vld [vmem:[%s24558_s1 + $0x3c4] sm:$0xf] }
 0x178   :  { %6296 = vmatpush.bf16.msrb.mxu0 %v12921_v24  ;;  %v11049_v21 = vor.u32 %v15427_v4, %v11046_v5  ;;  %v10570_v24 = vld [vmem:[%s24558_s1 + $0x334] sm:$0xf0]  ;;  %v10262_v4 = vld [vmem:[%s24558_s1 + $0xcc] sm:$0xf0]  ;;  %v15287_v5 = vld [vmem:[%s24558_s1 + $0x274] sm:$0xf] }
 0x179   :  { %6309 = vmatpush.bf16.msrb.mxu1 %v13145_v30  ;;  %v10794_v30 = vld [vmem:[%s24558_s1 + $0x4f4] sm:$0xf0]  ;;  %v10573_v35 = vor.u32 %v15308_v17, %v10570_v24 }
 0x17a   :  { %6322 = vmatpush.bf16.msrb.mxu2 %v13369_v32  ;;  %v15420_v32 = vld [vmem:[%s24558_s1 + $0x69c] sm:$0xf] }
 0x17b   :  { %6335 = vmatpush.bf16.msrb.mxu3 %v13593_v36  ;;  %v10797_v36 = vor.u32 %v15364_v28, %v10794_v30  ;;  %v11021_v43 = vor.u32 %v15420_v32, %v11018_v62  ;;  %v15224_v28 = vld [vmem:[%s24558_s1 + $0x7c] sm:$0xf]  ;;  %v10234_v30 = vld [vmem:[%s24558_s1 + $0x94] sm:$0xf0]  ;;  %v10937_v62 = vor.u32 %v15399_v14, %v10934_v16  ;;  %v15539_v14 = vld [vmem:[%s24558_s1 + $0xa54] sm:$0xf] }
 0x17c   :  { %6297 = vmatpush.bf16.msrb.mxu0 %v12893_v47  ;;  %v15357_v47 = vld [vmem:[%s24558_s1 + $0x4a4] sm:$0xf]  ;;  %v15280_v32 = vld [vmem:[%s24558_s1 + $0x23c] sm:$0xf] }
 0x17d   :  { %6310 = vmatpush.bf16.msrb.mxu1 %v13117_v46  ;;  %v10990_v46 = vld [vmem:[%s24558_s1 + $0x67c] sm:$0xf0]  ;;  %v10769_v50 = vor.u32 %v15357_v47, %v10766_v44  ;;  %v10237_v44 = vor.u32 %v15224_v28, %v10234_v30  ;;  %v11718_v28 = vld [vmem:[%s24558_s1 + $0xc2c] sm:$0xf0] }
 0x17e   :  { %6323 = vmatpush.bf16.msrb.mxu2 %v13341_v48  ;;  %v10321_v48 = vor.u32 %v15245_v39, %v10318_v41  ;;  %v10993_v63 = vor.u32 %v15413_v45, %v10990_v46  ;;  %v10682_v39 = vld [vmem:[%s24558_s1 + $0x414] sm:$0xf0] }
 0x17f   :  { %6336 = vmatpush.bf16.msrb.mxu3 %v13565_v52  ;;  %v10290_v52 = vld [vmem:[%s24558_s1 + $0x104] sm:$0xf0] }
 0x180   :  { %6298 = vmatpush.bf16.msrb.mxu0 %v12865_v60  ;;  %v6092_v57 = vpop.f32.mrf.mxu0  ;;  %v10293_v61 = vor.u32 %v15238_v51, %v10290_v52  ;;  %v10206_v51 = vld [vmem:[%s24558_s1 + $0x5c] sm:$0xf0]  ;;  %v15273_v52 = vld [vmem:[%s24558_s1 + $0x204] sm:$0xf] }
 0x181   :  { %6311 = vmatpush.bf16.msrb.mxu1 %v13089_v2  ;;  %v6093_v60 = vadd.f32 %v6092_v57, %v18938_v29  ;;  %v6105_v0 = vpop.f32.mrf.mxu1  ;;  %v10741_v2 = vor.u32 %v15350_v56, %v10738_v6  ;;  %v10965_v29 = vor.u32 %v15406_v58, %v10962_v59  ;;  %v10654_v56 = vld [vmem:[%s24558_s1 + $0x3dc] sm:$0xf0]  ;;  %v15385_v6 = vld [vmem:[%s24558_s1 + $0x584] sm:$0xf]  ;;  %v15210_v59 = vld [vmem:[%s24558_s1 + $0xc] sm:$0xf] }
 0x182   :  { %6324 = vmatpush.bf16.msrb.mxu2 %v13313_v3  ;;  %v15231_v3 = vld [vmem:[%s24558_s1 + $0xb4] sm:$0xf]  ;;  %v10878_v57 = vld [vmem:[%s24558_s1 + $0x59c] sm:$0xf0] }
 0x183   :  { %6337 = vmatpush.bf16.msrb.mxu3 %v13537_v7  ;;  %6299 = vmatmul.bf16.vlgmr.msrb.gmra.mxu0 %v17420_v13  ;;  %v6106_v7 = vadd.f32 %v6105_v0, %v6093_v60  ;;  %v10265_v17 = vor.u32 %v15231_v3, %v10262_v4  ;;  %v10178_v60 = vld [vmem:[%s24558_s1 + $0x24] sm:$0xf0]  ;;  %v10657_v0 = vor.u32 %v15329_v55, %v10654_v56  ;;  %v15322_v3 = vld [vmem:[%s24558_s1 + $0x38c] sm:$0xf]  ;;  %v11214_v55 = vld [vmem:[%s24558_s1 + $0x83c] sm:$0xf0] }
 0x184   :  { %6343 = vmatpush.bf16.msra.mxu0 %v10377_v10  ;;  %6312 = vmatmul.bf16.vlgmr.msrb.gmra.mxu1 %v17433_v20  ;;  %v10486_v10 = vld [vmem:[%s24558_s1 + $0x28c] sm:$0xf0]  ;;  %v10881_v4 = vor.u32 %v15385_v6, %v10878_v57  ;;  %v15525_v56 = vld [vmem:[%s24558_s1 + $0x9e4] sm:$0xf]  ;;  %v11438_v57 = vld [vmem:[%s24558_s1 + $0x9fc] sm:$0xf0] }
 0x185   :  { %6356 = vmatpush.bf16.msra.mxu1 %v10601_v11  ;;  %6325 = vmatmul.bf16.vlgmr.msrb.gmra.mxu2 %v17431_v19  ;;  %v15343_v11 = vld [vmem:[%s24558_s1 + $0x434] sm:$0xf] }
 0x186   :  { %6369 = vmatpush.bf16.msra.mxu2 %v10825_v12  ;;  %6338 = vmatmul.bf16.vlgmr.msrb.gmra.mxu3 %v17441_v26  ;;  %v10710_v12 = vld [vmem:[%s24558_s1 + $0x44c] sm:$0xf0] }
 0x187   :  { %6382 = vmatpush.bf16.msra.mxu3 %v11049_v21  ;;  %v10489_v21 = vor.u32 %v15287_v5, %v10486_v10  ;;  %v10713_v24 = vor.u32 %v15343_v11, %v10710_v12  ;;  %v10626_v5 = vld [vmem:[%s24558_s1 + $0x3a4] sm:$0xf0]  ;;  %v15483_v11 = vld [vmem:[%s24558_s1 + $0x894] sm:$0xf]  ;;  %v11270_v12 = vld [vmem:[%s24558_s1 + $0x8ac] sm:$0xf0] }
 0x188   :  { %6344 = vmatpush.bf16.msra.mxu0 %v10349_v33  ;;  %v6118_v33 = vpop.f32.mrf.mxu2  ;;  %v6094_v47 = vpop.f32.mrf.mxu0 }
 0x189   :  { %6357 = vmatpush.bf16.msra.mxu1 %v10573_v35  ;;  %v10458_v35 = vld [vmem:[%s24558_s1 + $0x254] sm:$0xf0]  ;;  %v6119_v41 = vadd.f32 %v6118_v33, %v6106_v7  ;;  %v6131_v42 = vpop.f32.mrf.mxu3  ;;  %v6107_v45 = vpop.f32.mrf.mxu1  ;;  %v10850_v7 = vld [vmem:[%s24558_s1 + $0x564] sm:$0xf0]  ;;  %v11942_v33 = vld [vmem:[%s24558_s1 + $0xdec] sm:$0xf0] }
 0x18a   :  { %6370 = vmatpush.bf16.msra.mxu2 %v10797_v36  ;;  %v15336_v36 = vld [vmem:[%s24558_s1 + $0x3fc] sm:$0xf] }
 0x18b   :  { %6383 = vmatpush.bf16.msra.mxu3 %v11021_v43  ;;  %v15392_v43 = vld [vmem:[%s24558_s1 + $0x5bc] sm:$0xf]  ;;  %v19137_v46 = vadd.f32 %v6131_v42, %v6119_v41 }
 0x18c   :  { %6345 = vmatpush.bf16.msra.mxu0 %v10321_v48  ;;  %v10461_v48 = vor.u32 %v15280_v32, %v10458_v35  ;;  %v10909_v53 = vor.u32 %v15392_v43, %v10906_v54  ;;  %v10629_v32 = vor.u32 %v15322_v3, %v10626_v5  ;;  %v15476_v42 = vld [vmem:[%s24558_s1 + $0x85c] sm:$0xf]  ;;  %v11242_v43 = vld [vmem:[%s24558_s1 + $0x874] sm:$0xf0]  ;;  %v15518_v5 = vld [vmem:[%s24558_s1 + $0x9ac] sm:$0xf] }
 0x18d   :  { %6358 = vmatpush.bf16.msra.mxu1 %v10545_v49  ;;  %v10685_v49 = vor.u32 %v15336_v36, %v10682_v39  ;;  %v11273_v36 = vor.u32 %v15483_v11, %v11270_v12  ;;  %v15532_v54 = vld [vmem:[%s24558_s1 + $0xa1c] sm:$0xf]  ;;  %v11410_v11 = vld [vmem:[%s24558_s1 + $0x9c4] sm:$0xf0]  ;;  %v15574_v12 = vld [vmem:[%s24558_s1 + $0xb6c] sm:$0xf] }
 0x18e   :  { %6371 = vmatpush.bf16.msra.mxu2 %v10769_v50  ;;  %v15217_v50 = vld [vmem:[%s24558_s1 + $0x44] sm:$0xf]  ;;  %v15588_v45 = vld [vmem:[%s24558_s1 + $0xbdc] sm:$0xf] }
 0x18f   :  { %6384 = vmatpush.bf16.msra.mxu3 %v10993_v63  ;;  %v10430_v63 = vld [vmem:[%s24558_s1 + $0x21c] sm:$0xf0]  ;;  %v10209_v58 = vor.u32 %v15217_v50, %v10206_v51  ;;  %v11914_v50 = vld [vmem:[%s24558_s1 + $0xdb4] sm:$0xf0]  ;;  %v11245_v51 = vor.u32 %v15476_v42, %v11242_v43  ;;  %v15567_v42 = vld [vmem:[%s24558_s1 + $0xb34] sm:$0xf] }
 0x190   :  { %6346 = vmatpush.bf16.msra.mxu0 %v10293_v61  ;;  %v10433_v61 = vor.u32 %v15273_v52, %v10430_v63  ;;  %v6120_v10 = vpop.f32.mrf.mxu2  ;;  %v15469_v63 = vld [vmem:[%s24558_s1 + $0x824] sm:$0xf]  ;;  %v11606_v43 = vld [vmem:[%s24558_s1 + $0xb4c] sm:$0xf0] }
 0x191   :  { %6359 = vmatpush.bf16.msra.mxu1 %v10517_v1  ;;  %v15266_v1 = vld [vmem:[%s24558_s1 + $0x1cc] sm:$0xf]  ;;  %v6133_v16 = vpop.f32.mrf.mxu3 }
 0x192   :  { %6372 = vmatpush.bf16.msra.mxu2 %v10741_v2  ;;  %v10402_v2 = vld [vmem:[%s24558_s1 + $0x1e4] sm:$0xf0]  ;;  %v15630_v16 = vld [vmem:[%s24558_s1 + $0xd2c] sm:$0xf] }
 0x193   :  { %6385 = vmatpush.bf16.msra.mxu3 %v10965_v29  ;;  %v15378_v29 = vld [vmem:[%s24558_s1 + $0x54c] sm:$0xf]  ;;  %v10405_v30 = vor.u32 %v15266_v1, %v10402_v2  ;;  %v11441_v2 = vor.u32 %v15525_v56, %v11438_v57  ;;  %v15560_v56 = vld [vmem:[%s24558_s1 + $0xafc] sm:$0xf] }
 0x194   :  { %6347 = vmatpush.bf16.msra.mxu0 %v10265_v17  ;;  %v10181_v17 = vor.u32 %v15210_v59, %v10178_v60  ;;  %v10853_v35 = vor.u32 %v15378_v29, %v10850_v7  ;;  %v11662_v59 = vld [vmem:[%s24558_s1 + $0xbbc] sm:$0xf0]  ;;  %v15637_v60 = vld [vmem:[%s24558_s1 + $0xd64] sm:$0xf]  ;;  %v15462_v1 = vld [vmem:[%s24558_s1 + $0x7ec] sm:$0xf] }
 0x195   :  { %6360 = vmatpush.bf16.msra.mxu1 %v10489_v21  ;;  %v11494_v21 = vld [vmem:[%s24558_s1 + $0xa6c] sm:$0xf0]  ;;  %v16469_v29 = vld [vmem:[%s24560_s2] sm:$0x7f] }
 0x196   :  { %6373 = vmatpush.bf16.msra.mxu2 %v10713_v24  ;;  %v15595_v24 = vld [vmem:[%s24558_s1 + $0xc14] sm:$0xf]  ;;  %v11497_v39 = vor.u32 %v15539_v14, %v11494_v21  ;;  %v1099_v7 = vperm.slane %v16469_v29, 2  ;;  %v11634_v14 = vld [vmem:[%s24558_s1 + $0xb84] sm:$0xf0] }
 0x197   :  { %6386 = vmatpush.bf16.msra.mxu3 %v10937_v62  ;;  %v15651_v62 = vld [vmem:[%s24558_s1 + $0xdd4] sm:$0xf]  ;;  %v11721_v41 = vor.u32 %v15595_v24, %v11718_v28  ;;  %v11413_v28 = vor.u32 %v15518_v5, %v11410_v11  ;;  %v11102_v5 = vld [vmem:[%s24558_s1 + $0x75c] sm:$0xf0]  ;;  %v15497_v29 = vld [vmem:[%s24558_s1 + $0x904] sm:$0xf] }
 0x198   :  { %6348 = vmatpush.bf16.msra.mxu0 %v10237_v44  ;;  %v11945_v47 = vor.u32 %v15651_v62, %v11942_v33  ;;  %v11466_v44 = vld [vmem:[%s24558_s1 + $0xa34] sm:$0xf0]  ;;  %v11158_v62 = vld [vmem:[%s24558_s1 + $0x7cc] sm:$0xf0]  ;;  %v15511_v33 = vld [vmem:[%s24558_s1 + $0x974] sm:$0xf] }
 0x199   :  { %6361 = vmatpush.bf16.msra.mxu1 %v10461_v48  ;;  %v11690_v48 = vld [vmem:[%s24558_s1 + $0xbf4] sm:$0xf0]  ;;  %v11469_v52 = vor.u32 %v15532_v54, %v11466_v44  ;;  %v15623_v54 = vld [vmem:[%s24558_s1 + $0xcf4] sm:$0xf]  ;;  %v11326_v11 = vld [vmem:[%s24558_s1 + $0x91c] sm:$0xf0] }
 0x19a   :  { %6374 = vmatpush.bf16.msra.mxu2 %v10685_v49  ;;  %v15644_v49 = vld [vmem:[%s24558_s1 + $0xd9c] sm:$0xf] }
 0x19b   :  { %6387 = vmatpush.bf16.msra.mxu3 %v10909_v53  ;;  %v11693_v53 = vor.u32 %v15588_v45, %v11690_v48  ;;  %v11917_v6 = vor.u32 %v15644_v49, %v11914_v50  ;;  %v11609_v49 = vor.u32 %v15567_v42, %v11606_v43  ;;  %v15448_v50 = vld [vmem:[%s24558_s1 + $0x77c] sm:$0xf]  ;;  %v15602_v42 = vld [vmem:[%s24558_s1 + $0xc4c] sm:$0xf]  ;;  %v11746_v43 = vld [vmem:[%s24558_s1 + $0xc64] sm:$0xf0] }
 0x19c   :  { %6349 = vmatpush.bf16.msra.mxu0 %v10209_v58  ;;  %v15581_v58 = vld [vmem:[%s24558_s1 + $0xba4] sm:$0xf] }
 0x19d   :  { %6362 = vmatpush.bf16.msra.mxu1 %v10433_v61  ;;  %v11886_v61 = vld [vmem:[%s24558_s1 + $0xd7c] sm:$0xf0]  ;;  %v11665_v3 = vor.u32 %v15581_v58, %v11662_v59  ;;  %v15616_v59 = vld [vmem:[%s24558_s1 + $0xcbc] sm:$0xf] }
 0x19e   :  { %6375 = vmatpush.bf16.msra.mxu2 %v10657_v0  ;;  %v11217_v0 = vor.u32 %v15469_v63, %v11214_v55  ;;  %v11889_v10 = vor.u32 %v15637_v60, %v11886_v61  ;;  %v11354_v55 = vld [vmem:[%s24558_s1 + $0x954] sm:$0xf0] }
 0x19f   :  { %6388 = vmatpush.bf16.msra.mxu3 %v10881_v4  ;;  %v11186_v4 = vld [vmem:[%s24558_s1 + $0x804] sm:$0xf0]  ;;  %v11802_v60 = vld [vmem:[%s24558_s1 + $0xcd4] sm:$0xf0] }
 0x1a0   :  { %6350 = vmatpush.bf16.msra.mxu0 %v10181_v17  ;;  %v11858_v17 = vld [vmem:[%s24558_s1 + $0xd44] sm:$0xf0]  ;;  %v11189_v21 = vor.u32 %v15462_v1, %v11186_v4  ;;  %v6144_v24 = vpop.f32.mrf.mxu0  ;;  %v15441_v4 = vld [vmem:[%s24558_s1 + $0x744] sm:$0xf] }
 0x1a1   :  { %6363 = vmatpush.bf16.msra.mxu1 %v10405_v30  ;;  %v11637_v30 = vor.u32 %v15574_v12, %v11634_v14  ;;  %v15553_v12 = vld [vmem:[%s24558_s1 + $0xac4] sm:$0xf]  ;;  %v11550_v14 = vld [vmem:[%s24558_s1 + $0xadc] sm:$0xf0] }
 0x1a2   :  { %6376 = vmatpush.bf16.msra.mxu2 %v10629_v32  ;;  %v15455_v32 = vld [vmem:[%s24558_s1 + $0x7b4] sm:$0xf] }
 0x1a3   :  { %6389 = vmatpush.bf16.msra.mxu3 %v10853_v35  ;;  %6351 = vmatmul.bf16.vlgmr.msra.gmra.mxu0 %v16816_v9  ;;  %v6145_v35 = vadd.f32 %v6144_v24, %v1099_v7  ;;  %v11161_v45 = vor.u32 %v15455_v32, %v11158_v62  ;;  %v15434_v24 = vld [vmem:[%s24558_s1 + $0x70c] sm:$0xf]  ;;  %v11553_v32 = vor.u32 %v15553_v12, %v11550_v14  ;;  %v15693_v12 = vld [vmem:[%s24558_s1 + $0xf24] sm:$0xf]  ;;  %v12110_v14 = vld [vmem:[%s24558_s1 + $0xf3c] sm:$0xf0] }
 0x1a4   :  { %6395 = vmatpush.bf16.msrb.mxu0 %v11273_v36  ;;  %6364 = vmatmul.bf16.vlgmr.msra.gmra.mxu1 %v16853_v25  ;;  %v6157_v36 = vpop.f32.mrf.mxu1  ;;  %v15490_v62 = vld [vmem:[%s24558_s1 + $0x8cc] sm:$0xf] }
 0x1a5   :  { %6408 = vmatpush.bf16.msrb.mxu1 %v11497_v39  ;;  %6377 = vmatmul.bf16.vlgmr.msra.gmra.mxu2 %v16814_v8  ;;  %v11861_v39 = vor.u32 %v15630_v16, %v11858_v17  ;;  %v6158_v44 = vadd.f32 %v6157_v36, %v6145_v35  ;;  %v15609_v16 = vld [vmem:[%s24558_s1 + $0xc84] sm:$0xf]  ;;  %v11774_v17 = vld [vmem:[%s24558_s1 + $0xc9c] sm:$0xf0]  ;;  %v15546_v35 = vld [vmem:[%s24558_s1 + $0xa8c] sm:$0xf] }
 0x1a6   :  { %6421 = vmatpush.bf16.msrb.mxu2 %v11721_v41  ;;  %6390 = vmatmul.bf16.vlgmr.msra.gmra.mxu3 %v16830_v15  ;;  %v11382_v41 = vld [vmem:[%s24558_s1 + $0x98c] sm:$0xf0] }
 0x1a7   :  { %6434 = vmatpush.bf16.msrb.mxu3 %v11945_v47  ;;  %v11830_v47 = vld [vmem:[%s24558_s1 + $0xd0c] sm:$0xf0]  ;;  %v11385_v48 = vor.u32 %v15511_v33, %v11382_v41  ;;  %v11298_v33 = vld [vmem:[%s24558_s1 + $0x8e4] sm:$0xf0] }
 0x1a8   :  { %6396 = vmatpush.bf16.msrb.mxu0 %v11245_v51  ;;  %v11130_v51 = vld [vmem:[%s24558_s1 + $0x794] sm:$0xf0]  ;;  %v11833_v63 = vor.u32 %v15623_v54, %v11830_v47  ;;  %v6146_v1 = vpop.f32.mrf.mxu0  ;;  %v11522_v41 = vld [vmem:[%s24558_s1 + $0xaa4] sm:$0xf0]  ;;  %v15707_v47 = vld [vmem:[%s24558_s1 + $0xf94] sm:$0xf] }
 0x1a9   :  { %6409 = vmatpush.bf16.msrb.mxu1 %v11469_v52  ;;  %v15504_v52 = vld [vmem:[%s24558_s1 + $0x93c] sm:$0xf]  ;;  %v6183_v58 = vpop.f32.mrf.mxu3  ;;  %v11133_v61 = vor.u32 %v15448_v50, %v11130_v51  ;;  %v15819_v50 = vld [vmem:[%s24558_s1 + $0x1314] sm:$0xf]  ;;  %v12614_v51 = vld [vmem:[%s24558_s1 + $0x132c] sm:$0xf0] }
 0x1aa   :  { %6422 = vmatpush.bf16.msrb.mxu2 %v11693_v53  ;;  %v6170_v53 = vpop.f32.mrf.mxu2 }
 0x1ab   :  { %6435 = vmatpush.bf16.msrb.mxu3 %v11917_v6  ;;  %v11578_v6 = vld [vmem:[%s24558_s1 + $0xb14] sm:$0xf0]  ;;  %v6171_v57 = vadd.f32 %v6170_v53, %v6158_v44  ;;  %v12166_v44 = vld [vmem:[%s24558_s1 + $0xfac] sm:$0xf0]  ;;  %v11525_v53 = vor.u32 %v15546_v35, %v11522_v41  ;;  %v15742_v41 = vld [vmem:[%s24558_s1 + $0x10ac] sm:$0xf] }
 0x1ac   :  { %6397 = vmatpush.bf16.msrb.mxu0 %v11217_v0  ;;  %v6159_v7 = vpop.f32.mrf.mxu1 }
 0x1ad   :  { %6410 = vmatpush.bf16.msrb.mxu1 %v11441_v2  ;;  %v19338_v0 = vadd.f32 %v6183_v58, %v6171_v57  ;;  %v11357_v2 = vor.u32 %v15504_v52, %v11354_v55  ;;  %v11301_v52 = vor.u32 %v15490_v62, %v11298_v33  ;;  %v12838_v55 = vld [vmem:[%s24558_s1 + $0x14ec] sm:$0xf0]  ;;  %v12617_v58 = vor.u32 %v15819_v50, %v12614_v51 }
 0x1ae   :  { %6423 = vmatpush.bf16.msrb.mxu2 %v11665_v3  ;;  %v11581_v3 = vor.u32 %v15560_v56, %v11578_v6  ;;  %v11749_v56 = vor.u32 %v15602_v42, %v11746_v43  ;;  %v12169_v6 = vor.u32 %v15707_v47, %v12166_v44  ;;  %v12113_v62 = vor.u32 %v15693_v12, %v12110_v14  ;;  %v12306_v43 = vld [vmem:[%s24558_s1 + $0x10c4] sm:$0xf0]  ;;  %v15854_v44 = vld [vmem:[%s24558_s1 + $0x142c] sm:$0xf]  ;;  %v15784_v12 = vld [vmem:[%s24558_s1 + $0x11fc] sm:$0xf] }
 0x1af   :  { %6436 = vmatpush.bf16.msrb.mxu3 %v11889_v10  ;;  %v11805_v10 = vor.u32 %v15616_v59, %v11802_v60  ;;  %v15700_v59 = vld [vmem:[%s24558_s1 + $0xf5c] sm:$0xf]  ;;  %v12138_v60 = vld [vmem:[%s24558_s1 + $0xf74] sm:$0xf0]  ;;  %v12530_v47 = vld [vmem:[%s24558_s1 + $0x1284] sm:$0xf0]  ;;  %v12309_v50 = vor.u32 %v15742_v41, %v12306_v43 }
 0x1b0   :  { %6398 = vmatpush.bf16.msrb.mxu0 %v11189_v21  ;;  %v11105_v21 = vor.u32 %v15441_v4, %v11102_v5  ;;  %v12586_v4 = vld [vmem:[%s24558_s1 + $0x12f4] sm:$0xf0]  ;;  %v15868_v5 = vld [vmem:[%s24558_s1 + $0x149c] sm:$0xf]  ;;  %v12141_v7 = vor.u32 %v15700_v59, %v12138_v60  ;;  %v12502_v59 = vld [vmem:[%s24558_s1 + $0x124c] sm:$0xf0] }
 0x1b1   :  { %6411 = vmatpush.bf16.msrb.mxu1 %v11413_v28  ;;  %v11074_v28 = vld [vmem:[%s24558_s1 + $0x724] sm:$0xf0]  ;;  %v6185_v54 = vpop.f32.mrf.mxu3  ;;  %v15847_v60 = vld [vmem:[%s24558_s1 + $0x13f4] sm:$0xf]  ;;  %v12474_v14 = vld [vmem:[%s24558_s1 + $0x1214] sm:$0xf0] }
 0x1b2   :  { %6424 = vmatpush.bf16.msrb.mxu2 %v11637_v30  ;;  %v11329_v30 = vor.u32 %v15497_v29, %v11326_v11  ;;  %v6172_v36 = vpop.f32.mrf.mxu2  ;;  %v12810_v29 = vld [vmem:[%s24558_s1 + $0x14b4] sm:$0xf0]  ;;  %v15798_v54 = vld [vmem:[%s24558_s1 + $0x126c] sm:$0xf]  ;;  %v12222_v43 = vld [vmem:[%s24558_s1 + $0x101c] sm:$0xf0] }
 0x1b3   :  { %6437 = vmatpush.bf16.msrb.mxu3 %v11861_v39  ;;  %v11777_v39 = vor.u32 %v15609_v16, %v11774_v17  ;;  %v15749_v16 = vld [vmem:[%s24558_s1 + $0x10e4] sm:$0xf]  ;;  %v12813_v17 = vor.u32 %v15868_v5, %v12810_v29  ;;  %v15686_v36 = vld [vmem:[%s24558_s1 + $0xeec] sm:$0xf]  ;;  %v12533_v51 = vor.u32 %v15798_v54, %v12530_v47  ;;  %v12026_v5 = vld [vmem:[%s24558_s1 + $0xe94] sm:$0xf0] }
 0x1b4   :  { %6399 = vmatpush.bf16.msrb.mxu0 %v11161_v45  ;;  %v15763_v45 = vld [vmem:[%s24558_s1 + $0x1154] sm:$0xf]  ;;  %v15728_v29 = vld [vmem:[%s24558_s1 + $0x103c] sm:$0xf]  ;;  %v15777_v54 = vld [vmem:[%s24558_s1 + $0x11c4] sm:$0xf] }
 0x1b5   :  { %6412 = vmatpush.bf16.msrb.mxu1 %v11385_v48  ;;  %v11077_v48 = vor.u32 %v15434_v24, %v11074_v28  ;;  %v15805_v24 = vld [vmem:[%s24558_s1 + $0x12a4] sm:$0xf]  ;;  %v12558_v28 = vld [vmem:[%s24558_s1 + $0x12bc] sm:$0xf0] }
 0x1b6   :  { %6425 = vmatpush.bf16.msrb.mxu2 %v11609_v49  ;;  %v12390_v49 = vld [vmem:[%s24558_s1 + $0x116c] sm:$0xf0]  ;;  %v12561_v35 = vor.u32 %v15805_v24, %v12558_v28  ;;  %v12698_v24 = vld [vmem:[%s24558_s1 + $0x13d4] sm:$0xf0]  ;;  %v12446_v47 = vld [vmem:[%s24558_s1 + $0x11dc] sm:$0xf0] }
 0x1b7   :  { %6438 = vmatpush.bf16.msrb.mxu3 %v11833_v63  ;;  %v15875_v63 = vld [vmem:[%s24558_s1 + $0x14d4] sm:$0xf]  ;;  %v12393_v57 = vor.u32 %v15763_v45, %v12390_v49  ;;  %v12754_v45 = vld [vmem:[%s24558_s1 + $0x1444] sm:$0xf0] }
 0x1b8   :  { %6400 = vmatpush.bf16.msrb.mxu0 %v11133_v61  ;;  %v15756_v61 = vld [vmem:[%s24558_s1 + $0x111c] sm:$0xf]  ;;  %v12841_v1 = vor.u32 %v15875_v63, %v12838_v55  ;;  %v15735_v63 = vld [vmem:[%s24558_s1 + $0x1074] sm:$0xf] }
 0x1b9   :  { %6413 = vmatpush.bf16.msrb.mxu1 %v11357_v2  ;;  %v12362_v2 = vld [vmem:[%s24558_s1 + $0x1134] sm:$0xf0] }
 0x1ba   :  { %6426 = vmatpush.bf16.msrb.mxu2 %v11581_v3  ;;  %v15812_v3 = vld [vmem:[%s24558_s1 + $0x12dc] sm:$0xf] }
 0x1bb   :  { %6439 = vmatpush.bf16.msrb.mxu3 %v11805_v10  ;;  %v12365_v10 = vor.u32 %v15756_v61, %v12362_v2  ;;  %v12589_v11 = vor.u32 %v15812_v3, %v12586_v4  ;;  %v15672_v4 = vld [vmem:[%s24558_s1 + $0xe7c] sm:$0xf] }
 0x1bc   :  { %6401 = vmatpush.bf16.msrb.mxu0 %v11105_v21  ;;  %v12334_v21 = vld [vmem:[%s24558_s1 + $0x10fc] sm:$0xf0]  ;;  %v12029_v28 = vor.u32 %v15672_v4, %v12026_v5  ;;  %v16043_v4 = vld [vmem:[%s24558_s1 + $0x1a14] sm:$0xf]  ;;  %v13510_v5 = vld [vmem:[%s24558_s1 + $0x1a2c] sm:$0xf0] }
 0x1bd   :  { %6414 = vmatpush.bf16.msrb.mxu1 %v11329_v30  ;;  %v15861_v30 = vld [vmem:[%s24558_s1 + $0x1464] sm:$0xf]  ;;  %v12337_v33 = vor.u32 %v15749_v16, %v12334_v21  ;;  %v15840_v21 = vld [vmem:[%s24558_s1 + $0x13bc] sm:$0xf] }
 0x1be   :  { %6427 = vmatpush.bf16.msrb.mxu2 %v11553_v32  ;;  %v12782_v32 = vld [vmem:[%s24558_s1 + $0x147c] sm:$0xf0] }
 0x1bf   :  { %6440 = vmatpush.bf16.msrb.mxu3 %v11777_v39  ;;  %v12082_v39 = vld [vmem:[%s24558_s1 + $0xf04] sm:$0xf0]  ;;  %v12785_v42 = vor.u32 %v15861_v30, %v12782_v32 }
 0x1c0   :  { %6402 = vmatpush.bf16.msrb.mxu0 %v11077_v48  ;;  %v12085_v48 = vor.u32 %v15686_v36, %v12082_v39  ;;  %v6196_v49 = vpop.f32.mrf.mxu0  ;;  %v11998_v36 = vld [vmem:[%s24558_s1 + $0xe5c] sm:$0xf0]  ;;  %v15721_v39 = vld [vmem:[%s24558_s1 + $0x1004] sm:$0xf] }
 0x1c1   :  { %6415 = vmatpush.bf16.msrb.mxu1 %v11301_v52  ;;  %v15679_v52 = vld [vmem:[%s24558_s1 + $0xeb4] sm:$0xf]  ;;  %v6197_v55 = vadd.f32 %v6196_v49, %v19338_v0  ;;  %v12726_v0 = vld [vmem:[%s24558_s1 + $0x140c] sm:$0xf0]  ;;  %v15658_v49 = vld [vmem:[%s24558_s1 + $0xe0c] sm:$0xf] }
 0x1c2   :  { %6428 = vmatpush.bf16.msrb.mxu2 %v11525_v53  ;;  %v12054_v53 = vld [vmem:[%s24558_s1 + $0xecc] sm:$0xf0] }
 0x1c3   :  { %6441 = vmatpush.bf16.msrb.mxu3 %v11749_v56  ;;  %6403 = vmatmul.bf16.vlgmr.msrb.gmra.mxu0 %v17005_v37  ;;  %v6209_v56 = vpop.f32.mrf.mxu1 }
 0x1c4   :  { %6447 = vmatpush.bf16.msra.mxu0 %v12169_v6  ;;  %6416 = vmatmul.bf16.vlgmr.msrb.gmra.mxu1 %v17009_v40  ;;  %v12757_v6 = vor.u32 %v15854_v44, %v12754_v45  ;;  %v6210_v61 = vadd.f32 %v6209_v56, %v6197_v55  ;;  %v15833_v44 = vld [vmem:[%s24558_s1 + $0x1384] sm:$0xf]  ;;  %v12670_v45 = vld [vmem:[%s24558_s1 + $0x139c] sm:$0xf0]  ;;  %v15770_v55 = vld [vmem:[%s24558_s1 + $0x118c] sm:$0xf] }
 0x1c5   :  { %6460 = vmatpush.bf16.msra.mxu1 %v12393_v57  ;;  %6429 = vmatmul.bf16.vlgmr.msrb.gmra.mxu2 %v16997_v34  ;;  %v12278_v57 = vld [vmem:[%s24558_s1 + $0x108c] sm:$0xf0] }
 0x1c6   :  { %6473 = vmatpush.bf16.msra.mxu2 %v12617_v58  ;;  %6442 = vmatmul.bf16.vlgmr.msrb.gmra.mxu3 %v17007_v38  ;;  %v15791_v58 = vld [vmem:[%s24558_s1 + $0x1234] sm:$0xf]  ;;  %v12281_v2 = vor.u32 %v15735_v63, %v12278_v57  ;;  %v12194_v63 = vld [vmem:[%s24558_s1 + $0xfe4] sm:$0xf0] }
 0x1c7   :  { %6486 = vmatpush.bf16.msra.mxu3 %v12841_v1  ;;  %v12057_v1 = vor.u32 %v15679_v52, %v12054_v53  ;;  %v12505_v3 = vor.u32 %v15791_v58, %v12502_v59  ;;  %v12449_v52 = vor.u32 %v15777_v54, %v12446_v47  ;;  %v15714_v53 = vld [vmem:[%s24558_s1 + $0xfcc] sm:$0xf]  ;;  %v12418_v57 = vld [vmem:[%s24558_s1 + $0x11a4] sm:$0xf0]  ;;  %v15917_v54 = vld [vmem:[%s24558_s1 + $0x1624] sm:$0xf] }
 0x1c8   :  { %6448 = vmatpush.bf16.msra.mxu0 %v12141_v7  ;;  %v6222_v7 = vpop.f32.mrf.mxu2  ;;  %v6198_v32 = vpop.f32.mrf.mxu0  ;;  %v15826_v58 = vld [vmem:[%s24558_s1 + $0x134c] sm:$0xf]  ;;  %v12642_v59 = vld [vmem:[%s24558_s1 + $0x1364] sm:$0xf0]  ;;  %v13006_v47 = vld [vmem:[%s24558_s1 + $0x163c] sm:$0xf0] }
 0x1c9   :  { %6461 = vmatpush.bf16.msra.mxu1 %v12365_v10  ;;  %v12729_v10 = vor.u32 %v15847_v60, %v12726_v0  ;;  %v6223_v16 = vadd.f32 %v6222_v7, %v6210_v61  ;;  %v15931_v0 = vld [vmem:[%s24558_s1 + $0x1694] sm:$0xf]  ;;  %v13062_v61 = vld [vmem:[%s24558_s1 + $0x16ac] sm:$0xf0]  ;;  %v12421_v7 = vor.u32 %v15770_v55, %v12418_v57  ;;  %v15966_v57 = vld [vmem:[%s24558_s1 + $0x17ac] sm:$0xf] }
 0x1ca   :  { %6474 = vmatpush.bf16.msra.mxu2 %v12589_v11  ;;  %v12250_v11 = vld [vmem:[%s24558_s1 + $0x1054] sm:$0xf0] }
 0x1cb   :  { %6487 = vmatpush.bf16.msra.mxu3 %v12813_v17  ;;  %v6235_v17 = vpop.f32.mrf.mxu3  ;;  %v6211_v41 = vpop.f32.mrf.mxu1 }
 0x1cc   :  { %6449 = vmatpush.bf16.msra.mxu0 %v12113_v62  ;;  %v19537_v30 = vadd.f32 %v6235_v17, %v6223_v16  ;;  %v12253_v62 = vor.u32 %v15728_v29, %v12250_v11  ;;  %v12197_v29 = vor.u32 %v15714_v53, %v12194_v63  ;;  %v13734_v11 = vld [vmem:[%s24558_s1 + $0x1bec] sm:$0xf0]  ;;  %v13513_v17 = vor.u32 %v16043_v4, %v13510_v5 }
 0x1cd   :  { %6462 = vmatpush.bf16.msra.mxu1 %v12337_v33  ;;  %v12477_v33 = vor.u32 %v15784_v12, %v12474_v14  ;;  %v12645_v12 = vor.u32 %v15826_v58, %v12642_v59  ;;  %v13065_v14 = vor.u32 %v15931_v0, %v13062_v61  ;;  %v13009_v53 = vor.u32 %v15917_v54, %v13006_v47  ;;  %v13202_v59 = vld [vmem:[%s24558_s1 + $0x17c4] sm:$0xf0]  ;;  %v16008_v54 = vld [vmem:[%s24558_s1 + $0x18fc] sm:$0xf]  ;;  %v13370_v47 = vld [vmem:[%s24558_s1 + $0x1914] sm:$0xf0] }
 0x1ce   :  { %6475 = vmatpush.bf16.msra.mxu2 %v12561_v35  ;;  %v15665_v35 = vld [vmem:[%s24558_s1 + $0xe44] sm:$0xf]  ;;  %v13426_v0 = vld [vmem:[%s24558_s1 + $0x1984] sm:$0xf0] }
 0x1cf   :  { %6488 = vmatpush.bf16.msra.mxu3 %v12785_v42  ;;  %v12701_v42 = vor.u32 %v15840_v21, %v12698_v24  ;;  %v15924_v21 = vld [vmem:[%s24558_s1 + $0x165c] sm:$0xf]  ;;  %v13034_v24 = vld [vmem:[%s24558_s1 + $0x1674] sm:$0xf0] }
 0x1d0   :  { %6450 = vmatpush.bf16.msra.mxu0 %v12085_v48  ;;  %v12001_v48 = vor.u32 %v15665_v35, %v11998_v36  ;;  %v6224_v56 = vpop.f32.mrf.mxu2  ;;  %v13482_v35 = vld [vmem:[%s24558_s1 + $0x19f4] sm:$0xf0]  ;;  %v16092_v36 = vld [vmem:[%s24558_s1 + $0x1b9c] sm:$0xf]  ;;  %v13037_v41 = vor.u32 %v15924_v21, %v13034_v24  ;;  %v13398_v21 = vld [vmem:[%s24558_s1 + $0x194c] sm:$0xf0] }
 0x1d1   :  { %6463 = vmatpush.bf16.msra.mxu1 %v12309_v50  ;;  %v11970_v50 = vld [vmem:[%s24558_s1 + $0xe24] sm:$0xf0]  ;;  %v15910_v56 = vld [vmem:[%s24558_s1 + $0x15ec] sm:$0xf]  ;;  %v16071_v24 = vld [vmem:[%s24558_s1 + $0x1af4] sm:$0xf] }
 0x1d2   :  { %6476 = vmatpush.bf16.msra.mxu2 %v12533_v51  ;;  %v12225_v51 = vor.u32 %v15721_v39, %v12222_v43  ;;  %v13706_v39 = vld [vmem:[%s24558_s1 + $0x1bb4] sm:$0xf0] }
 0x1d3   :  { %6489 = vmatpush.bf16.msra.mxu3 %v12757_v6  ;;  %v12673_v6 = vor.u32 %v15833_v44, %v12670_v45  ;;  %v6237_v60 = vpop.f32.mrf.mxu3  ;;  %v15973_v44 = vld [vmem:[%s24558_s1 + $0x17e4] sm:$0xf]  ;;  %v13709_v45 = vor.u32 %v16092_v36, %v13706_v39  ;;  %v12922_v36 = vld [vmem:[%s24558_s1 + $0x1594] sm:$0xf0]  ;;  %v15952_v39 = vld [vmem:[%s24558_s1 + $0x173c] sm:$0xf] }
 0x1d4   :  { %6451 = vmatpush.bf16.msra.mxu0 %v12057_v1  ;;  %v15987_v1 = vld [vmem:[%s24558_s1 + $0x1854] sm:$0xf]  ;;  %v16022_v60 = vld [vmem:[%s24558_s1 + $0x196c] sm:$0xf] }
 0x1d5   :  { %6464 = vmatpush.bf16.msra.mxu1 %v12281_v2  ;;  %v11973_v2 = vor.u32 %v15658_v49, %v11970_v50  ;;  %v16029_v49 = vld [vmem:[%s24558_s1 + $0x19a4] sm:$0xf]  ;;  %v13454_v50 = vld [vmem:[%s24558_s1 + $0x19bc] sm:$0xf0] }
 0x1d6   :  { %6477 = vmatpush.bf16.msra.mxu2 %v12505_v3  ;;  %v13286_v3 = vld [vmem:[%s24558_s1 + $0x186c] sm:$0xf0]  ;;  %v13457_v55 = vor.u32 %v16029_v49, %v13454_v50  ;;  %v13594_v49 = vld [vmem:[%s24558_s1 + $0x1ad4] sm:$0xf0] }
 0x1d7   :  { %6490 = vmatpush.bf16.msra.mxu3 %v12729_v10  ;;  %v16099_v10 = vld [vmem:[%s24558_s1 + $0x1bd4] sm:$0xf]  ;;  %v13289_v16 = vor.u32 %v15987_v1, %v13286_v3  ;;  %v16078_v1 = vld [vmem:[%s24558_s1 + $0x1b2c] sm:$0xf] }
 0x1d8   :  { %6452 = vmatpush.bf16.msra.mxu0 %v12029_v28  ;;  %v15980_v28 = vld [vmem:[%s24558_s1 + $0x181c] sm:$0xf]  ;;  %v13737_v32 = vor.u32 %v16099_v10, %v13734_v11  ;;  %v15903_v10 = vld [vmem:[%s24558_s1 + $0x15b4] sm:$0xf]  ;;  %v12950_v11 = vld [vmem:[%s24558_s1 + $0x15cc] sm:$0xf0] }
 0x1d9   :  { %6465 = vmatpush.bf16.msra.mxu1 %v12253_v62  ;;  %v13258_v62 = vld [vmem:[%s24558_s1 + $0x1834] sm:$0xf0] }
 0x1da   :  { %6478 = vmatpush.bf16.msra.mxu2 %v12477_v33  ;;  %v16036_v33 = vld [vmem:[%s24558_s1 + $0x19dc] sm:$0xf] }
 0x1db   :  { %6491 = vmatpush.bf16.msra.mxu3 %v12701_v42  ;;  %v13261_v42 = vor.u32 %v15980_v28, %v13258_v62  ;;  %v13485_v43 = vor.u32 %v16036_v33, %v13482_v35  ;;  %v13622_v28 = vld [vmem:[%s24558_s1 + $0x1b0c] sm:$0xf0]  ;;  %v15896_v35 = vld [vmem:[%s24558_s1 + $0x157c] sm:$0xf] }
 0x1dc   :  { %6453 = vmatpush.bf16.msra.mxu0 %v12001_v48  ;;  %v13230_v48 = vld [vmem:[%s24558_s1 + $0x17fc] sm:$0xf0] }
 0x1dd   :  { %6466 = vmatpush.bf16.msra.mxu1 %v12225_v51  ;;  %v16085_v51 = vld [vmem:[%s24558_s1 + $0x1b64] sm:$0xf]  ;;  %v13233_v63 = vor.u32 %v15973_v44, %v13230_v48  ;;  %v16064_v48 = vld [vmem:[%s24558_s1 + $0x1abc] sm:$0xf] }
 0x1de   :  { %6479 = vmatpush.bf16.msra.mxu2 %v12449_v52  ;;  %v13678_v52 = vld [vmem:[%s24558_s1 + $0x1b7c] sm:$0xf0] }
 0x1df   :  { %6492 = vmatpush.bf16.msra.mxu3 %v12673_v6  ;;  %v12978_v6 = vld [vmem:[%s24558_s1 + $0x1604] sm:$0xf0]  ;;  %v13681_v58 = vor.u32 %v16085_v51, %v13678_v52  ;;  %v12925_v51 = vor.u32 %v15896_v35, %v12922_v36  ;;  %v10828_v35 = vld [vmem:[%s24558_s1 + $0x518] sm:$0xf]  ;;  %v15375_v36 = vld [vmem:[%s24558_s1 + $0x530] sm:$0xf0] }
 0x1e0   :  { %6454 = vmatpush.bf16.msra.mxu0 %v11973_v2  ;;  %v6248_v61 = vpop.f32.mrf.mxu0  ;;  %v13650_v2 = vld [vmem:[%s24558_s1 + $0x1b44] sm:$0xf0]  ;;  %v12981_v4 = vor.u32 %v15910_v56, %v12978_v6  ;;  %v15889_v56 = vld [vmem:[%s24558_s1 + $0x1544] sm:$0xf]  ;;  %v12894_v6 = vld [vmem:[%s24558_s1 + $0x155c] sm:$0xf0] }
 0x1e1   :  { %6467 = vmatpush.bf16.msra.mxu1 %v12197_v29  ;;  %v6249_v3 = vadd.f32 %v6248_v61, %v19537_v30  ;;  %v6261_v5 = vpop.f32.mrf.mxu1  ;;  %v13205_v29 = vor.u32 %v15966_v57, %v13202_v59  ;;  %v13653_v30 = vor.u32 %v16078_v1, %v13650_v2  ;;  %v15945_v57 = vld [vmem:[%s24558_s1 + $0x1704] sm:$0xf]  ;;  %v13118_v59 = vld [vmem:[%s24558_s1 + $0x171c] sm:$0xf0]  ;;  %v12897_v2 = vor.u32 %v15889_v56, %v12894_v6  ;;  %v15424_v6 = vld [vmem:[%s24558_s1 + $0x6b8] sm:$0xf0] }
 0x1e2   :  { %6480 = vmatpush.bf16.msra.mxu2 %v12421_v7  ;;  %v13429_v7 = vor.u32 %v16022_v60, %v13426_v0  ;;  %v16001_v60 = vld [vmem:[%s24558_s1 + $0x18c4] sm:$0xf]  ;;  %v13342_v0 = vld [vmem:[%s24558_s1 + $0x18dc] sm:$0xf0] }
 0x1e3   :  { %6493 = vmatpush.bf16.msra.mxu3 %v12645_v12  ;;  %6455 = vmatmul.bf16.vlgmr.msra.gmra.mxu0 %v17204_v18  ;;  %v15959_v12 = vld [vmem:[%s24558_s1 + $0x1774] sm:$0xf]  ;;  %v16057_v61 = vld [vmem:[%s24558_s1 + $0x1a84] sm:$0xf]  ;;  %v13566_v1 = vld [vmem:[%s24558_s1 + $0x1a9c] sm:$0xf0] }
 0x1e4   :  { %6499 = vmatpush.bf16.msrb.mxu0 %v13065_v14  ;;  %6468 = vmatmul.bf16.vlgmr.msra.gmra.mxu1 %v17217_v23  ;;  %v6262_v14 = vadd.f32 %v6261_v5, %v6249_v3  ;;  %v15882_v3 = vld [vmem:[%s24558_s1 + $0x150c] sm:$0xf]  ;;  %v13121_v5 = vor.u32 %v15945_v57, %v13118_v59  ;;  %v11024_v56 = vld [vmem:[%s24558_s1 + $0x6a0] sm:$0xf] }
 0x1e5   :  { %6512 = vmatpush.bf16.msrb.mxu1 %v13289_v16  ;;  %6481 = vmatmul.bf16.vlgmr.msra.gmra.mxu2 %v17215_v22  ;;  %v13174_v16 = vld [vmem:[%s24558_s1 + $0x178c] sm:$0xf0] }
 0x1e6   :  { %6525 = vmatpush.bf16.msrb.mxu2 %v13513_v17  ;;  %6494 = vmatmul.bf16.vlgmr.msra.gmra.mxu3 %v17225_v27  ;;  %v16015_v17 = vld [vmem:[%s24558_s1 + $0x1934] sm:$0xf]  ;;  %v13177_v62 = vor.u32 %v15959_v12, %v13174_v16  ;;  %v13569_v12 = vor.u32 %v16057_v61, %v13566_v1  ;;  %v13538_v16 = vld [vmem:[%s24558_s1 + $0x1a64] sm:$0xf0]  ;;  %v11025_v1 = vor.u32 %v15424_v6, %v11024_v56  ;;  %v15228_v56 = vld [vmem:[%s24558_s1 + $0x98] sm:$0xf0] }
 0x1e7   :  { %6538 = vmatpush.bf16.msrb.mxu3 %v13737_v32  ;;  %v12953_v32 = vor.u32 %v15903_v10, %v12950_v11  ;;  %v13401_v33 = vor.u32 %v16015_v17, %v13398_v21  ;;  %v13090_v10 = vld [vmem:[%s24558_s1 + $0x16e4] sm:$0xf0]  ;;  %v15994_v11 = vld [vmem:[%s24558_s1 + $0x188c] sm:$0xf]  ;;  %v10380_v21 = vld [vmem:[%s24558_s1 + $0x198] sm:$0xf] }
 0x1e8   :  { %6500 = vmatpush.bf16.msrb.mxu0 %v13037_v41  ;;  %v13625_v41 = vor.u32 %v16071_v24, %v13622_v28  ;;  %v6250_v50 = vpop.f32.mrf.mxu0  ;;  %v15263_v24 = vld [vmem:[%s24558_s1 + $0x1b0] sm:$0xf0]  ;;  %v10604_v28 = vld [vmem:[%s24558_s1 + $0x358] sm:$0xf]  ;;  %v10548_v61 = vld [vmem:[%s24558_s1 + $0x2e8] sm:$0xf] }
 0x1e9   :  { %6513 = vmatpush.bf16.msrb.mxu1 %v13261_v42  ;;  %v6274_v42 = vpop.f32.mrf.mxu2  ;;  %v6263_v52 = vpop.f32.mrf.mxu1  ;;  %v10576_v50 = vld [vmem:[%s24558_s1 + $0x320] sm:$0xf] }
 0x1ea   :  { %6526 = vmatpush.bf16.msrb.mxu2 %v13485_v43  ;;  %v13146_v43 = vld [vmem:[%s24558_s1 + $0x1754] sm:$0xf0]  ;;  %v6275_v44 = vadd.f32 %v6274_v42, %v6262_v14  ;;  %v16050_v14 = vld [vmem:[%s24558_s1 + $0x1a4c] sm:$0xf]  ;;  %v15312_v52 = vld [vmem:[%s24558_s1 + $0x338] sm:$0xf0] }
 0x1eb   :  { %6539 = vmatpush.bf16.msrb.mxu3 %v13709_v45  ;;  %v6287_v45 = vpop.f32.mrf.mxu3  ;;  %v11052_v42 = vld [vmem:[%s24558_s1 + $0x6d8] sm:$0xf]  ;;  %v10464_v6 = vld [vmem:[%s24558_s1 + $0x240] sm:$0xf] }
 0x1ec   :  { %6501 = vmatpush.bf16.msrb.mxu0 %v13009_v53  ;;  %v19736_v53 = vadd.f32 %v6287_v45, %v6275_v44  ;;  %v10829_v45 = vor.u32 %v15375_v36, %v10828_v35 }
 0x1ed   :  { %6514 = vmatpush.bf16.msrb.mxu1 %v13233_v63  ;;  %v13149_v63 = vor.u32 %v15952_v39, %v13146_v43  ;;  %v15431_v43 = vld [vmem:[%s24558_s1 + $0x6f0] sm:$0xf0] }
 0x1ee   :  { %6527 = vmatpush.bf16.msrb.mxu2 %v13457_v55  ;;  %v13373_v55 = vor.u32 %v16008_v54, %v13370_v47  ;;  %v13541_v54 = vor.u32 %v16050_v14, %v13538_v16  ;;  %v10381_v47 = vor.u32 %v15263_v24, %v10380_v21  ;;  %v10520_v14 = vld [vmem:[%s24558_s1 + $0x2b0] sm:$0xf]  ;;  %v15354_v24 = vld [vmem:[%s24558_s1 + $0x488] sm:$0xf0] }
 0x1ef   :  { %6540 = vmatpush.bf16.msrb.mxu3 %v13681_v58  ;;  %v13597_v58 = vor.u32 %v16064_v48, %v13594_v49  ;;  %v10352_v48 = vld [vmem:[%s24558_s1 + $0x160] sm:$0xf]  ;;  %v15256_v49 = vld [vmem:[%s24558_s1 + $0x178] sm:$0xf0]  ;;  %v10744_v21 = vld [vmem:[%s24558_s1 + $0x470] sm:$0xf] }
 0x1f0   :  { %6502 = vmatpush.bf16.msrb.mxu0 %v12981_v4  ;;  %v12866_v4 = vld [vmem:[%s24558_s1 + $0x1524] sm:$0xf0]  ;;  %v10353_v57 = vor.u32 %v15256_v49, %v10352_v48  ;;  %v15347_v48 = vld [vmem:[%s24558_s1 + $0x450] sm:$0xf0]  ;;  %v10940_v49 = vld [vmem:[%s24558_s1 + $0x5f8] sm:$0xf] }
 0x1f1   :  { %6515 = vmatpush.bf16.msrb.mxu1 %v13205_v29  ;;  %v13345_v29 = vor.u32 %v16001_v60, %v13342_v0  ;;  %v6276_v17 = vpop.f32.mrf.mxu2  ;;  %v10324_v60 = vld [vmem:[%s24558_s1 + $0x128] sm:$0xf]  ;;  %v15249_v0 = vld [vmem:[%s24558_s1 + $0x140] sm:$0xf0] }
 0x1f2   :  { %6528 = vmatpush.bf16.msrb.mxu2 %v13429_v7  ;;  %v15938_v7 = vld [vmem:[%s24558_s1 + $0x16cc] sm:$0xf] }
 0x1f3   :  { %6541 = vmatpush.bf16.msrb.mxu3 %v13653_v30  ;;  %v13314_v30 = vld [vmem:[%s24558_s1 + $0x18a4] sm:$0xf0]  ;;  %v13093_v39 = vor.u32 %v15938_v7, %v13090_v10  ;;  %v10325_v7 = vor.u32 %v15249_v0, %v10324_v60  ;;  %v15298_v17 = vld [vmem:[%s24558_s1 + $0x2c8] sm:$0xf0]  ;;  %v10688_v60 = vld [vmem:[%s24558_s1 + $0x400] sm:$0xf] }
 0x1f4   :  { %6503 = vmatpush.bf16.msrb.mxu0 %v12953_v32  ;;  %v6289_v32 = vpop.f32.mrf.mxu3  ;;  %v15340_v0 = vld [vmem:[%s24558_s1 + $0x418] sm:$0xf0] }
 0x1f5   :  { %6516 = vmatpush.bf16.msrb.mxu1 %v13177_v62  ;;  %v12869_v62 = vor.u32 %v15882_v3, %v12866_v4  ;;  %v10772_v3 = vld [vmem:[%s24558_s1 + $0x4a8] sm:$0xf]  ;;  %v15361_v4 = vld [vmem:[%s24558_s1 + $0x4c0] sm:$0xf0]  ;;  %v10968_v32 = vld [vmem:[%s24558_s1 + $0x630] sm:$0xf] }
 0x1f6   :  { %6529 = vmatpush.bf16.msrb.mxu2 %v13401_v33  ;;  %v15319_v33 = vld [vmem:[%s24558_s1 + $0x370] sm:$0xf0] }
 0x1f7   :  { %6542 = vmatpush.bf16.msrb.mxu3 %v13625_v41  ;;  %v13317_v41 = vor.u32 %v15994_v11, %v13314_v30  ;;  %v10605_v44 = vor.u32 %v15319_v33, %v10604_v28  ;;  %v10773_v11 = vor.u32 %v15361_v4, %v10772_v3  ;;  %v15242_v30 = vld [vmem:[%s24558_s1 + $0x108] sm:$0xf0]  ;;  %v15396_v3 = vld [vmem:[%s24558_s1 + $0x5d8] sm:$0xf0] }
 0x1f8   :  { %6504 = vmatpush.bf16.msrb.mxu0 %v12925_v51  ;;  %v11053_v51 = vor.u32 %v15431_v43, %v11052_v42  ;;  %v10268_v42 = vld [vmem:[%s24558_s1 + $0xb8] sm:$0xf]  ;;  %v15235_v43 = vld [vmem:[%s24558_s1 + $0xd0] sm:$0xf0] }
 0x1f9   :  { %6517 = vmatpush.bf16.msrb.mxu1 %v13149_v63  ;;  %v10800_v63 = vld [vmem:[%s24558_s1 + $0x4e0] sm:$0xf] }
 0x1fa   :  { %6530 = vmatpush.bf16.msrb.mxu2 %v13373_v55  ;;  %v15368_v55 = vld [vmem:[%s24558_s1 + $0x4f8] sm:$0xf0] }
 0x1fb   :  { %6543 = vmatpush.bf16.msrb.mxu3 %v13597_v58  ;;  %v10577_v58 = vor.u32 %v15312_v52, %v10576_v50  ;;  %v10801_v59 = vor.u32 %v15368_v55, %v10800_v63  ;;  %v15403_v50 = vld [vmem:[%s24558_s1 + $0x610] sm:$0xf0]  ;;  %v10240_v55 = vld [vmem:[%s24558_s1 + $0x80] sm:$0xf] }
 0x1fc   :  { %6505 = vmatpush.bf16.msrb.mxu0 %v12897_v2  ;;  %v15305_v2 = vld [vmem:[%s24558_s1 + $0x300] sm:$0xf0] }
 0x1fd   :  { %6518 = vmatpush.bf16.msrb.mxu1 %v13121_v5  ;;  %v10996_v5 = vld [vmem:[%s24558_s1 + $0x668] sm:$0xf]  ;;  %v10549_v10 = vor.u32 %v15305_v2, %v10548_v61  ;;  %v10912_v2 = vld [vmem:[%s24558_s1 + $0x5c0] sm:$0xf] }
 0x1fe   :  { %6531 = vmatpush.bf16.msrb.mxu2 %v13345_v29  ;;  %v15417_v29 = vld [vmem:[%s24558_s1 + $0x680] sm:$0xf0] }
 0x1ff   :  { %6544 = vmatpush.bf16.msrb.mxu3 %v13569_v12  ;;  %v10296_v12 = vld [vmem:[%s24558_s1 + $0xf0] sm:$0xf]  ;;  %v10997_v16 = vor.u32 %v15417_v29, %v10996_v5  ;;  %v10241_v5 = vor.u32 %v15228_v56, %v10240_v55  ;;  %v11724_v55 = vld [vmem:[%s24558_s1 + $0xc18] sm:$0xf]  ;;  %v15599_v56 = vld [vmem:[%s24558_s1 + $0xc30] sm:$0xf0] }
 0x200   :  { %6506 = vmatpush.bf16.msrb.mxu0 %v12869_v62  ;;  %v6300_v28 = vpop.f32.mrf.mxu0  ;;  %v15410_v62 = vld [vmem:[%s24558_s1 + $0x648] sm:$0xf0]  ;;  %v10297_v35 = vor.u32 %v15242_v30, %v10296_v12  ;;  %v10212_v12 = vld [vmem:[%s24558_s1 + $0x48] sm:$0xf]  ;;  %v15221_v30 = vld [vmem:[%s24558_s1 + $0x60] sm:$0xf0] }
 0x201   :  { %6519 = vmatpush.bf16.msrb.mxu1 %v13093_v39  ;;  %v6301_v33 = vadd.f32 %v6300_v28, %v19736_v53  ;;  %v6313_v36 = vpop.f32.mrf.mxu1  ;;  %v10521_v39 = vor.u32 %v15298_v17, %v10520_v14  ;;  %v10969_v53 = vor.u32 %v15410_v62, %v10968_v32  ;;  %v10436_v14 = vld [vmem:[%s24558_s1 + $0x208] sm:$0xf]  ;;  %v15277_v17 = vld [vmem:[%s24558_s1 + $0x220] sm:$0xf0]  ;;  %v10213_v62 = vor.u32 %v15221_v30, %v10212_v12  ;;  %v11920_v12 = vld [vmem:[%s24558_s1 + $0xda0] sm:$0xf] }
 0x202   :  { %6532 = vmatpush.bf16.msrb.mxu2 %v13317_v41  ;;  %v10745_v41 = vor.u32 %v15354_v24, %v10744_v21  ;;  %v10660_v21 = vld [vmem:[%s24558_s1 + $0x3c8] sm:$0xf]  ;;  %v15333_v24 = vld [vmem:[%s24558_s1 + $0x3e0] sm:$0xf0]  ;;  %v15648_v30 = vld [vmem:[%s24558_s1 + $0xdb8] sm:$0xf0] }
 0x203   :  { %6545 = vmatpush.bf16.msrb.mxu3 %v13541_v54  ;;  %6507 = vmatmul.bf16.vlgmr.msrb.gmra.mxu0 %v17420_v13  ;;  %v10492_v54 = vld [vmem:[%s24558_s1 + $0x278] sm:$0xf]  ;;  %v10884_v28 = vld [vmem:[%s24558_s1 + $0x588] sm:$0xf]  ;;  %v15389_v32 = vld [vmem:[%s24558_s1 + $0x5a0] sm:$0xf0] }
 0x204   :  { %6551 = vmatpush.bf16.msra.mxu0 %v10381_v47  ;;  %6520 = vmatmul.bf16.vlgmr.msrb.gmra.mxu1 %v17433_v20  ;;  %v6314_v47 = vadd.f32 %v6313_v36, %v6301_v33  ;;  %v10184_v33 = vld [vmem:[%s24558_s1 + $0x10] sm:$0xf]  ;;  %v10437_v36 = vor.u32 %v15277_v17, %v10436_v14 }
 0x205   :  { %6564 = vmatpush.bf16.msra.mxu1 %v10605_v44  ;;  %6533 = vmatmul.bf16.vlgmr.msrb.gmra.mxu2 %v17431_v19  ;;  %v15291_v44 = vld [vmem:[%s24558_s1 + $0x290] sm:$0xf0] }
 0x206   :  { %6577 = vmatpush.bf16.msra.mxu2 %v10829_v45  ;;  %6546 = vmatmul.bf16.vlgmr.msrb.gmra.mxu3 %v17441_v26  ;;  %v10716_v45 = vld [vmem:[%s24558_s1 + $0x438] sm:$0xf]  ;;  %v10493_v52 = vor.u32 %v15291_v44, %v10492_v54  ;;  %v10885_v54 = vor.u32 %v15389_v32, %v10884_v28  ;;  %v15382_v44 = vld [vmem:[%s24558_s1 + $0x568] sm:$0xf0]  ;;  %v11444_v28 = vld [vmem:[%s24558_s1 + $0x9e8] sm:$0xf]  ;;  %v11921_v32 = vor.u32 %v15648_v30, %v11920_v12 }
 0x207   :  { %6590 = vmatpush.bf16.msra.mxu3 %v11053_v51  ;;  %v10269_v51 = vor.u32 %v15235_v43, %v10268_v42  ;;  %v10717_v63 = vor.u32 %v15347_v48, %v10716_v45  ;;  %v15270_v42 = vld [vmem:[%s24558_s1 + $0x1e8] sm:$0xf0]  ;;  %v10632_v43 = vld [vmem:[%s24558_s1 + $0x390] sm:$0xf]  ;;  %v11276_v48 = vld [vmem:[%s24558_s1 + $0x898] sm:$0xf] }
 0x208   :  { %6552 = vmatpush.bf16.msra.mxu0 %v10353_v57  ;;  %v10941_v57 = vor.u32 %v15403_v50, %v10940_v49  ;;  %v6302_v4 = vpop.f32.mrf.mxu0  ;;  %v15487_v49 = vld [vmem:[%s24558_s1 + $0x8b0] sm:$0xf0]  ;;  %v11500_v50 = vld [vmem:[%s24558_s1 + $0xa58] sm:$0xf] }
 0x209   :  { %6565 = vmatpush.bf16.msra.mxu1 %v10577_v58  ;;  %v6326_v58 = vpop.f32.mrf.mxu2  ;;  %v6315_v29 = vpop.f32.mrf.mxu1  ;;  %v11472_v4 = vld [vmem:[%s24558_s1 + $0xa20] sm:$0xf] }
 0x20a   :  { %6578 = vmatpush.bf16.msra.mxu2 %v10801_v59  ;;  %v15284_v59 = vld [vmem:[%s24558_s1 + $0x258] sm:$0xf0]  ;;  %v6327_v61 = vadd.f32 %v6326_v58, %v6314_v47  ;;  %v10856_v47 = vld [vmem:[%s24558_s1 + $0x550] sm:$0xf]  ;;  %v11948_v58 = vld [vmem:[%s24558_s1 + $0xdd8] sm:$0xf] }
 0x20b   :  { %6591 = vmatpush.bf16.msra.mxu3 %v11025_v1  ;;  %v6339_v1 = vpop.f32.mrf.mxu3  ;;  %v15536_v29 = vld [vmem:[%s24558_s1 + $0xa38] sm:$0xf0] }
 0x20c   :  { %6553 = vmatpush.bf16.msra.mxu0 %v10325_v7  ;;  %v19935_v7 = vadd.f32 %v6339_v1, %v6327_v61  ;;  %v11725_v1 = vor.u32 %v15599_v56, %v11724_v55 }
 0x20d   :  { %6566 = vmatpush.bf16.msra.mxu1 %v10549_v10  ;;  %v10465_v10 = vor.u32 %v15284_v59, %v10464_v6  ;;  %v15655_v59 = vld [vmem:[%s24558_s1 + $0xdf0] sm:$0xf0] }
 0x20e   :  { %6579 = vmatpush.bf16.msra.mxu2 %v10773_v11  ;;  %v10689_v11 = vor.u32 %v15340_v0, %v10688_v60  ;;  %v10857_v60 = vor.u32 %v15382_v44, %v10856_v47  ;;  %v11277_v0 = vor.u32 %v15487_v49, %v11276_v48  ;;  %v11416_v47 = vld [vmem:[%s24558_s1 + $0x9b0] sm:$0xf]  ;;  %v16470_v44 = vld [vmem:[%s24560_s2] sm:$0x7f]  ;;  %v15522_v49 = vld [vmem:[%s24558_s1 + $0x9c8] sm:$0xf0] }
 0x20f   :  { %6592 = vmatpush.bf16.msra.mxu3 %v10997_v16  ;;  %v10913_v16 = vor.u32 %v15396_v3, %v10912_v2  ;;  %v11248_v2 = vld [vmem:[%s24558_s1 + $0x860] sm:$0xf]  ;;  %v15480_v3 = vld [vmem:[%s24558_s1 + $0x878] sm:$0xf0] }
 0x210   :  { %6554 = vmatpush.bf16.msra.mxu0 %v10297_v35  ;;  %v15214_v35 = vld [vmem:[%s24558_s1 + $0x28] sm:$0xf0]  ;;  %v11249_v14 = vor.u32 %v15480_v3, %v11248_v2  ;;  %v15515_v2 = vld [vmem:[%s24558_s1 + $0x990] sm:$0xf0]  ;;  %v11612_v3 = vld [vmem:[%s24558_s1 + $0xb38] sm:$0xf] }
 0x211   :  { %6567 = vmatpush.bf16.msra.mxu1 %v10521_v39  ;;  %v10661_v39 = vor.u32 %v15333_v24, %v10660_v21  ;;  %v6328_v45 = vpop.f32.mrf.mxu2  ;;  %v11220_v21 = vld [vmem:[%s24558_s1 + $0x828] sm:$0xf]  ;;  %v15473_v24 = vld [vmem:[%s24558_s1 + $0x840] sm:$0xf0] }
 0x212   :  { %6580 = vmatpush.bf16.msra.mxu2 %v10745_v41  ;;  %v10408_v41 = vld [vmem:[%s24558_s1 + $0x1d0] sm:$0xf]  ;;  %v1100_v45 = vperm.slane %v16470_v44, 3  ;;  %v15445_v44 = vld [vmem:[%s24558_s1 + $0x760] sm:$0xf0] }
 0x213   :  { %6593 = vmatpush.bf16.msra.mxu3 %v10969_v53  ;;  %v15326_v53 = vld [vmem:[%s24558_s1 + $0x3a8] sm:$0xf0]  ;;  %v10409_v6 = vor.u32 %v15270_v42, %v10408_v41  ;;  %v11221_v41 = vor.u32 %v15473_v24, %v11220_v21  ;;  %v11192_v42 = vld [vmem:[%s24558_s1 + $0x7f0] sm:$0xf] }
 0x214   :  { %6555 = vmatpush.bf16.msra.mxu0 %v10269_v51  ;;  %v6341_v51 = vpop.f32.mrf.mxu3 }
 0x215   :  { %6568 = vmatpush.bf16.msra.mxu1 %v10493_v52  ;;  %v10185_v52 = vor.u32 %v15214_v35, %v10184_v33  ;;  %v11668_v33 = vld [vmem:[%s24558_s1 + $0xba8] sm:$0xf]  ;;  %v15585_v35 = vld [vmem:[%s24558_s1 + $0xbc0] sm:$0xf0]  ;;  %v15578_v51 = vld [vmem:[%s24558_s1 + $0xb88] sm:$0xf0] }
 0x216   :  { %6581 = vmatpush.bf16.msra.mxu2 %v10717_v63  ;;  %v15543_v63 = vld [vmem:[%s24558_s1 + $0xa70] sm:$0xf0] }
 0x217   :  { %6594 = vmatpush.bf16.msra.mxu3 %v10941_v57  ;;  %v10633_v57 = vor.u32 %v15326_v53, %v10632_v43  ;;  %v11501_v61 = vor.u32 %v15543_v63, %v11500_v50  ;;  %v15466_v53 = vld [vmem:[%s24558_s1 + $0x808] sm:$0xf0]  ;;  %v11640_v50 = vld [vmem:[%s24558_s1 + $0xb70] sm:$0xf] }
 0x218   :  { %6556 = vmatpush.bf16.msra.mxu0 %v10241_v5  ;;  %v11949_v5 = vor.u32 %v15655_v59, %v11948_v58  ;;  %v15634_v63 = vld [vmem:[%s24558_s1 + $0xd48] sm:$0xf0]  ;;  %v11193_v55 = vor.u32 %v15466_v53, %v11192_v42  ;;  %v11164_v58 = vld [vmem:[%s24558_s1 + $0x7b8] sm:$0xf]  ;;  %v15459_v59 = vld [vmem:[%s24558_s1 + $0x7d0] sm:$0xf0] }
 0x219   :  { %6569 = vmatpush.bf16.msra.mxu1 %v10465_v10  ;;  %v11696_v10 = vld [vmem:[%s24558_s1 + $0xbe0] sm:$0xf] }
 0x21a   :  { %6582 = vmatpush.bf16.msra.mxu2 %v10689_v11  ;;  %v15592_v11 = vld [vmem:[%s24558_s1 + $0xbf8] sm:$0xf0] }
 0x21b   :  { %6595 = vmatpush.bf16.msra.mxu3 %v10913_v16  ;;  %v11473_v16 = vor.u32 %v15536_v29, %v11472_v4  ;;  %v11697_v17 = vor.u32 %v15592_v11, %v11696_v10  ;;  %v15571_v4 = vld [vmem:[%s24558_s1 + $0xb50] sm:$0xf0]  ;;  %v11165_v11 = vor.u32 %v15459_v59, %v11164_v58 }
 0x21c   :  { %6557 = vmatpush.bf16.msra.mxu0 %v10213_v62  ;;  %v15529_v62 = vld [vmem:[%s24558_s1 + $0xa00] sm:$0xf0]  ;;  %v15627_v29 = vld [vmem:[%s24558_s1 + $0xd10] sm:$0xf0]  ;;  %v11613_v30 = vor.u32 %v15571_v4, %v11612_v3  ;;  %v15550_v3 = vld [vmem:[%s24558_s1 + $0xaa8] sm:$0xf0] }
 0x21d   :  { %6570 = vmatpush.bf16.msra.mxu1 %v10437_v36  ;;  %v11892_v36 = vld [vmem:[%s24558_s1 + $0xd68] sm:$0xf]  ;;  %v11445_v43 = vor.u32 %v15529_v62, %v11444_v28  ;;  %v15508_v28 = vld [vmem:[%s24558_s1 + $0x958] sm:$0xf0]  ;;  %v11752_v4 = vld [vmem:[%s24558_s1 + $0xc50] sm:$0xf] }
 0x21e   :  { %6583 = vmatpush.bf16.msra.mxu2 %v10661_v39  ;;  %v15641_v39 = vld [vmem:[%s24558_s1 + $0xd80] sm:$0xf0]  ;;  %v15564_v62 = vld [vmem:[%s24558_s1 + $0xb18] sm:$0xf0] }
 0x21f   :  { %6596 = vmatpush.bf16.msra.mxu3 %v10885_v54  ;;  %v11669_v54 = vor.u32 %v15585_v35, %v11668_v33  ;;  %v11893_v48 = vor.u32 %v15641_v39, %v11892_v36  ;;  %v11808_v36 = vld [vmem:[%s24558_s1 + $0xcc0] sm:$0xf]  ;;  %v15620_v39 = vld [vmem:[%s24558_s1 + $0xcd8] sm:$0xf0] }
 0x220   :  { %6558 = vmatpush.bf16.msra.mxu0 %v10185_v52  ;;  %v11864_v52 = vld [vmem:[%s24558_s1 + $0xd30] sm:$0xf]  ;;  %v6352_v56 = vpop.f32.mrf.mxu0 }
 0x221   :  { %6571 = vmatpush.bf16.msra.mxu1 %v10409_v6  ;;  %v11417_v6 = vor.u32 %v15522_v49, %v11416_v47  ;;  %v11108_v47 = vld [vmem:[%s24558_s1 + $0x748] sm:$0xf]  ;;  %v11809_v49 = vor.u32 %v15620_v39, %v11808_v36  ;;  %v12144_v39 = vld [vmem:[%s24558_s1 + $0xf60] sm:$0xf] }
 0x222   :  { %6584 = vmatpush.bf16.msra.mxu2 %v10633_v57  ;;  %v11641_v57 = vor.u32 %v15578_v51, %v11640_v50  ;;  %v15501_v50 = vld [vmem:[%s24558_s1 + $0x920] sm:$0xf0]  ;;  %v11556_v51 = vld [vmem:[%s24558_s1 + $0xac8] sm:$0xf] }
 0x223   :  { %6597 = vmatpush.bf16.msra.mxu3 %v10857_v60  ;;  %6559 = vmatmul.bf16.vlgmr.msra.gmra.mxu0 %v16816_v9  ;;  %v11388_v60 = vld [vmem:[%s24558_s1 + $0x978] sm:$0xf] }
 0x224   :  { %6603 = vmatpush.bf16.msrb.mxu0 %v11277_v0  ;;  %6572 = vmatmul.bf16.vlgmr.msra.gmra.mxu1 %v16853_v25  ;;  %v6353_v0 = vadd.f32 %v6352_v56, %v1100_v45  ;;  %v11389_v12 = vor.u32 %v15515_v2, %v11388_v60  ;;  %v11332_v45 = vld [vmem:[%s24558_s1 + $0x908] sm:$0xf]  ;;  %v11109_v56 = vor.u32 %v15445_v44, %v11108_v47  ;;  %v11304_v60 = vld [vmem:[%s24558_s1 + $0x8d0] sm:$0xf]  ;;  %v12592_v47 = vld [vmem:[%s24558_s1 + $0x12e0] sm:$0xf] }
 0x225   :  { %6616 = vmatpush.bf16.msrb.mxu1 %v11501_v61  ;;  %6585 = vmatmul.bf16.vlgmr.msra.gmra.mxu2 %v16814_v8  ;;  %v6365_v61 = vpop.f32.mrf.mxu1  ;;  %v11333_v58 = vor.u32 %v15501_v50, %v11332_v45  ;;  %v15816_v44 = vld [vmem:[%s24558_s1 + $0x12f8] sm:$0xf0]  ;;  %v12816_v45 = vld [vmem:[%s24558_s1 + $0x14a0] sm:$0xf] }
 0x226   :  { %6629 = vmatpush.bf16.msrb.mxu2 %v11725_v1  ;;  %6598 = vmatmul.bf16.vlgmr.msra.gmra.mxu3 %v16830_v15  ;;  %v11865_v1 = vor.u32 %v15634_v63, %v11864_v52  ;;  %v6366_v10 = vadd.f32 %v6365_v61, %v6353_v0  ;;  %v15557_v52 = vld [vmem:[%s24558_s1 + $0xae0] sm:$0xf0]  ;;  %v11780_v63 = vld [vmem:[%s24558_s1 + $0xc88] sm:$0xf]  ;;  %v15494_v0 = vld [vmem:[%s24558_s1 + $0x8e8] sm:$0xf0] }
 0x227   :  { %6642 = vmatpush.bf16.msrb.mxu3 %v11949_v5  ;;  %v11836_v5 = vld [vmem:[%s24558_s1 + $0xcf8] sm:$0xf]  ;;  %v11557_v59 = vor.u32 %v15557_v52, %v11556_v51  ;;  %v11528_v61 = vld [vmem:[%s24558_s1 + $0xa90] sm:$0xf]  ;;  %v12593_v51 = vor.u32 %v15816_v44, %v12592_v47  ;;  %v12116_v52 = vld [vmem:[%s24558_s1 + $0xf28] sm:$0xf] }
 0x228   :  { %6604 = vmatpush.bf16.msrb.mxu0 %v11249_v14  ;;  %v11136_v14 = vld [vmem:[%s24558_s1 + $0x780] sm:$0xf]  ;;  %v6378_v21 = vpop.f32.mrf.mxu2  ;;  %v11837_v24 = vor.u32 %v15627_v29, %v11836_v5  ;;  %v15606_v5 = vld [vmem:[%s24558_s1 + $0xc68] sm:$0xf0] }
 0x229   :  { %6617 = vmatpush.bf16.msrb.mxu1 %v11473_v16  ;;  %v15452_v16 = vld [vmem:[%s24558_s1 + $0x798] sm:$0xf0]  ;;  %v6379_v33 = vadd.f32 %v6378_v21, %v6366_v10  ;;  %v6391_v35 = vpop.f32.mrf.mxu3  ;;  %v12172_v10 = vld [vmem:[%s24558_s1 + $0xf98] sm:$0xf]  ;;  %v11305_v21 = vor.u32 %v15494_v0, %v11304_v60  ;;  %v15865_v60 = vld [vmem:[%s24558_s1 + $0x1480] sm:$0xf0] }
 0x22a   :  { %6630 = vmatpush.bf16.msrb.mxu2 %v11697_v17  ;;  %v11360_v17 = vld [vmem:[%s24558_s1 + $0x940] sm:$0xf] }
 0x22b   :  { %6643 = vmatpush.bf16.msrb.mxu3 %v11921_v32  ;;  %v11584_v32 = vld [vmem:[%s24558_s1 + $0xb00] sm:$0xf]  ;;  %v20136_v42 = vadd.f32 %v6391_v35, %v6379_v33 }
 0x22c   :  { %6605 = vmatpush.bf16.msrb.mxu0 %v11221_v41  ;;  %v11137_v41 = vor.u32 %v15452_v16, %v11136_v14  ;;  %v11585_v53 = vor.u32 %v15564_v62, %v11584_v32  ;;  %v15767_v14 = vld [vmem:[%s24558_s1 + $0x1170] sm:$0xf0]  ;;  %v12620_v16 = vld [vmem:[%s24558_s1 + $0x1318] sm:$0xf]  ;;  %v11753_v62 = vor.u32 %v15606_v5, %v11752_v4  ;;  %v12312_v4 = vld [vmem:[%s24558_s1 + $0x10b0] sm:$0xf] }
 0x22d   :  { %6618 = vmatpush.bf16.msrb.mxu1 %v11445_v43  ;;  %v6354_v43 = vpop.f32.mrf.mxu0  ;;  %v15879_v32 = vld [vmem:[%s24558_s1 + $0x14f0] sm:$0xf0] }
 0x22e   :  { %6631 = vmatpush.bf16.msrb.mxu2 %v11669_v54  ;;  %v11361_v54 = vor.u32 %v15508_v28, %v11360_v17  ;;  %v15823_v17 = vld [vmem:[%s24558_s1 + $0x1330] sm:$0xf0]  ;;  %v12844_v28 = vld [vmem:[%s24558_s1 + $0x14d8] sm:$0xf]  ;;  %v12368_v43 = vld [vmem:[%s24558_s1 + $0x1120] sm:$0xf] }
 0x22f   :  { %6644 = vmatpush.bf16.msrb.mxu3 %v11893_v48  ;;  %v6367_v48 = vpop.f32.mrf.mxu1  ;;  %v12621_v36 = vor.u32 %v15823_v17, %v12620_v16 }
 0x230   :  { %6606 = vmatpush.bf16.msrb.mxu0 %v11193_v55  ;;  %v15613_v55 = vld [vmem:[%s24558_s1 + $0xca0] sm:$0xf0]  ;;  %v15872_v48 = vld [vmem:[%s24558_s1 + $0x14b8] sm:$0xf0] }
 0x231   :  { %6619 = vmatpush.bf16.msrb.mxu1 %v11417_v6  ;;  %v11080_v6 = vld [vmem:[%s24558_s1 + $0x710] sm:$0xf]  ;;  %v11781_v2 = vor.u32 %v15613_v55, %v11780_v63  ;;  %v6393_v29 = vpop.f32.mrf.mxu3  ;;  %v15697_v63 = vld [vmem:[%s24558_s1 + $0xf40] sm:$0xf0]  ;;  %v12340_v55 = vld [vmem:[%s24558_s1 + $0x10e8] sm:$0xf] }
 0x232   :  { %6632 = vmatpush.bf16.msrb.mxu2 %v11641_v57  ;;  %v15438_v57 = vld [vmem:[%s24558_s1 + $0x728] sm:$0xf0]  ;;  %v12117_v0 = vor.u32 %v15697_v63, %v12116_v52  ;;  %v15732_v52 = vld [vmem:[%s24558_s1 + $0x1058] sm:$0xf0]  ;;  %v12480_v63 = vld [vmem:[%s24558_s1 + $0x1200] sm:$0xf] }
 0x233   :  { %6645 = vmatpush.bf16.msrb.mxu3 %v11865_v1  ;;  %v6380_v1 = vpop.f32.mrf.mxu2  ;;  %v15746_v29 = vld [vmem:[%s24558_s1 + $0x10c8] sm:$0xf0] }
 0x234   :  { %6607 = vmatpush.bf16.msrb.mxu0 %v11165_v11  ;;  %v15711_v11 = vld [vmem:[%s24558_s1 + $0xfb0] sm:$0xf0]  ;;  %v12313_v17 = vor.u32 %v15746_v29, %v12312_v4  ;;  %v12228_v4 = vld [vmem:[%s24558_s1 + $0x1008] sm:$0xf] }
 0x235   :  { %6620 = vmatpush.bf16.msrb.mxu1 %v11389_v12  ;;  %v12396_v12 = vld [vmem:[%s24558_s1 + $0x1158] sm:$0xf]  ;;  %v12173_v33 = vor.u32 %v15711_v11, %v12172_v10  ;;  %v12536_v10 = vld [vmem:[%s24558_s1 + $0x1270] sm:$0xf]  ;;  %v15802_v11 = vld [vmem:[%s24558_s1 + $0x1288] sm:$0xf0] }
 0x236   :  { %6633 = vmatpush.bf16.msrb.mxu2 %v11613_v30  ;;  %v11081_v30 = vor.u32 %v15438_v57, %v11080_v6  ;;  %v12397_v35 = vor.u32 %v15767_v14, %v12396_v12  ;;  %v15753_v6 = vld [vmem:[%s24558_s1 + $0x1100] sm:$0xf0]  ;;  %v12564_v57 = vld [vmem:[%s24558_s1 + $0x12a8] sm:$0xf]  ;;  %v12760_v12 = vld [vmem:[%s24558_s1 + $0x1430] sm:$0xf] }
 0x237   :  { %6646 = vmatpush.bf16.msrb.mxu3 %v11837_v24  ;;  %v11529_v24 = vor.u32 %v15550_v3, %v11528_v61  ;;  %v12341_v61 = vor.u32 %v15753_v6, %v12340_v55  ;;  %v15690_v3 = vld [vmem:[%s24558_s1 + $0xf08] sm:$0xf0]  ;;  %v15788_v55 = vld [vmem:[%s24558_s1 + $0x1218] sm:$0xf0] }
 0x238   :  { %6608 = vmatpush.bf16.msrb.mxu0 %v11137_v41  ;;  %v15704_v41 = vld [vmem:[%s24558_s1 + $0xf78] sm:$0xf0] }
 0x239   :  { %6621 = vmatpush.bf16.msrb.mxu1 %v11361_v54  ;;  %v12845_v54 = vor.u32 %v15879_v32, %v12844_v28  ;;  %v15683_v28 = vld [vmem:[%s24558_s1 + $0xed0] sm:$0xf0]  ;;  %v12284_v32 = vld [vmem:[%s24558_s1 + $0x1078] sm:$0xf] }
 0x23a   :  { %6634 = vmatpush.bf16.msrb.mxu2 %v11585_v53  ;;  %v15760_v53 = vld [vmem:[%s24558_s1 + $0x1138] sm:$0xf0] }
 0x23b   :  { %6647 = vmatpush.bf16.msrb.mxu3 %v11809_v49  ;;  %v12145_v49 = vor.u32 %v15704_v41, %v12144_v39  ;;  %v12369_v50 = vor.u32 %v15760_v53, %v12368_v43  ;;  %v12508_v39 = vld [vmem:[%s24558_s1 + $0x1238] sm:$0xf]  ;;  %v15795_v41 = vld [vmem:[%s24558_s1 + $0x1250] sm:$0xf0] }
 0x23c   :  { %6609 = vmatpush.bf16.msrb.mxu0 %v11109_v56  ;;  %v12817_v56 = vor.u32 %v15872_v48, %v12816_v45  ;;  %v12732_v43 = vld [vmem:[%s24558_s1 + $0x13f8] sm:$0xf]  ;;  %v12509_v44 = vor.u32 %v15795_v41, %v12508_v39  ;;  %v12032_v45 = vld [vmem:[%s24558_s1 + $0xe80] sm:$0xf]  ;;  %v15676_v48 = vld [vmem:[%s24558_s1 + $0xe98] sm:$0xf0] }
 0x23d   :  { %6622 = vmatpush.bf16.msrb.mxu1 %v11333_v58  ;;  %v15809_v58 = vld [vmem:[%s24558_s1 + $0x12c0] sm:$0xf0]  ;;  %v15774_v39 = vld [vmem:[%s24558_s1 + $0x11a8] sm:$0xf0]  ;;  %v12648_v41 = vld [vmem:[%s24558_s1 + $0x1350] sm:$0xf] }
 0x23e   :  { %6635 = vmatpush.bf16.msrb.mxu2 %v11557_v59  ;;  %v12788_v59 = vld [vmem:[%s24558_s1 + $0x1468] sm:$0xf]  ;;  %v12565_v1 = vor.u32 %v15809_v58, %v12564_v57  ;;  %v12704_v57 = vld [vmem:[%s24558_s1 + $0x13c0] sm:$0xf]  ;;  %v15844_v58 = vld [vmem:[%s24558_s1 + $0x13d8] sm:$0xf0] }
 0x23f   :  { %6648 = vmatpush.bf16.msrb.mxu3 %v11781_v2  ;;  %v12088_v2 = vld [vmem:[%s24558_s1 + $0xef0] sm:$0xf]  ;;  %v12789_v5 = vor.u32 %v15865_v60, %v12788_v59  ;;  %v12033_v59 = vor.u32 %v15676_v48, %v12032_v45  ;;  %v12705_v29 = vor.u32 %v15844_v58, %v12704_v57  ;;  %v15991_v45 = vld [vmem:[%s24558_s1 + $0x1870] sm:$0xf0]  ;;  %v13516_v48 = vld [vmem:[%s24558_s1 + $0x1a18] sm:$0xf] }
 0x240   :  { %6610 = vmatpush.bf16.msrb.mxu0 %v11081_v30  ;;  %v15858_v30 = vld [vmem:[%s24558_s1 + $0x1448] sm:$0xf0]  ;;  %v12089_v14 = vor.u32 %v15690_v3, %v12088_v2  ;;  %v6404_v16 = vpop.f32.mrf.mxu0  ;;  %v12004_v2 = vld [vmem:[%s24558_s1 + $0xe48] sm:$0xf]  ;;  %v15669_v3 = vld [vmem:[%s24558_s1 + $0xe60] sm:$0xf0] }
 0x241   :  { %6623 = vmatpush.bf16.msrb.mxu1 %v11305_v21  ;;  %v12537_v21 = vor.u32 %v15802_v11, %v12536_v10  ;;  %v15725_v10 = vld [vmem:[%s24558_s1 + $0x1020] sm:$0xf0]  ;;  %v12452_v11 = vld [vmem:[%s24558_s1 + $0x11c8] sm:$0xf]  ;;  %v13040_v58 = vld [vmem:[%s24558_s1 + $0x1660] sm:$0xf] }
 0x242   :  { %6636 = vmatpush.bf16.msrb.mxu2 %v11529_v24  ;;  %v12060_v24 = vld [vmem:[%s24558_s1 + $0xeb8] sm:$0xf] }
 0x243   :  { %6649 = vmatpush.bf16.msrb.mxu3 %v11753_v62  ;;  %6611 = vmatmul.bf16.vlgmr.msrb.gmra.mxu0 %v17005_v37  ;;  %v6405_v62 = vadd.f32 %v6404_v16, %v20136_v42  ;;  %v15851_v42 = vld [vmem:[%s24558_s1 + $0x1410] sm:$0xf0]  ;;  %v12061_v53 = vor.u32 %v15683_v28, %v12060_v24  ;;  %v12005_v16 = vor.u32 %v15669_v3, %v12004_v2  ;;  %v13488_v2 = vld [vmem:[%s24558_s1 + $0x19e0] sm:$0xf]  ;;  %v16040_v3 = vld [vmem:[%s24558_s1 + $0x19f8] sm:$0xf0] }
 0x244   :  { %6655 = vmatpush.bf16.msra.mxu0 %v12173_v33  ;;  %6624 = vmatmul.bf16.vlgmr.msrb.gmra.mxu1 %v17009_v40  ;;  %v6417_v33 = vpop.f32.mrf.mxu1  ;;  %v12229_v24 = vor.u32 %v15725_v10, %v12228_v4  ;;  %v13712_v4 = vld [vmem:[%s24558_s1 + $0x1ba0] sm:$0xf] }
 0x245   :  { %6668 = vmatpush.bf16.msra.mxu1 %v12397_v35  ;;  %6637 = vmatmul.bf16.vlgmr.msrb.gmra.mxu2 %v16997_v34  ;;  %v12761_v35 = vor.u32 %v15858_v30, %v12760_v12  ;;  %v15781_v12 = vld [vmem:[%s24558_s1 + $0x11e0] sm:$0xf0]  ;;  %v12676_v30 = vld [vmem:[%s24558_s1 + $0x1388] sm:$0xf] }
 0x246   :  { %6681 = vmatpush.bf16.msra.mxu2 %v12621_v36  ;;  %6650 = vmatmul.bf16.vlgmr.msrb.gmra.mxu3 %v17007_v38  ;;  %v15739_v36 = vld [vmem:[%s24558_s1 + $0x1090] sm:$0xf0]  ;;  %v12453_v28 = vor.u32 %v15781_v12, %v12452_v11  ;;  %v13489_v11 = vor.u32 %v16040_v3, %v13488_v2  ;;  %v13012_v12 = vld [vmem:[%s24558_s1 + $0x1628] sm:$0xf] }
 0x247   :  { %6694 = vmatpush.bf16.msra.mxu3 %v12845_v54  ;;  %v6418_v54 = vadd.f32 %v6417_v33, %v6405_v62  ;;  %v12285_v47 = vor.u32 %v15739_v36, %v12284_v32  ;;  %v12200_v32 = vld [vmem:[%s24558_s1 + $0xfd0] sm:$0xf]  ;;  %v15718_v62 = vld [vmem:[%s24558_s1 + $0xfe8] sm:$0xf0] }
 0x248   :  { %6656 = vmatpush.bf16.msra.mxu0 %v12145_v49  ;;  %v12256_v49 = vld [vmem:[%s24558_s1 + $0x1040] sm:$0xf]  ;;  %v12424_v33 = vld [vmem:[%s24558_s1 + $0x1190] sm:$0xf] }
 0x249   :  { %6669 = vmatpush.bf16.msra.mxu1 %v12369_v50  ;;  %v6430_v50 = vpop.f32.mrf.mxu2  ;;  %v6443_v6 = vpop.f32.mrf.mxu3 }
 0x24a   :  { %6682 = vmatpush.bf16.msra.mxu2 %v12593_v51  ;;  %v12733_v51 = vor.u32 %v15851_v42, %v12732_v43  ;;  %v15830_v43 = vld [vmem:[%s24558_s1 + $0x1368] sm:$0xf0] }
 0x24b   :  { %6695 = vmatpush.bf16.msra.mxu3 %v12817_v56  ;;  %v6431_v56 = vadd.f32 %v6430_v50, %v6418_v54  ;;  %v13068_v54 = vld [vmem:[%s24558_s1 + $0x1698] sm:$0xf]  ;;  %v12201_v50 = vor.u32 %v15718_v62, %v12200_v32  ;;  %v16089_v32 = vld [vmem:[%s24558_s1 + $0x1b80] sm:$0xf0] }
 0x24c   :  { %6657 = vmatpush.bf16.msra.mxu0 %v12117_v0  ;;  %v6406_v0 = vpop.f32.mrf.mxu0 }
 0x24d   :  { %6670 = vmatpush.bf16.msra.mxu1 %v12341_v61  ;;  %v20335_v60 = vadd.f32 %v6443_v6, %v6431_v56  ;;  %v12257_v61 = vor.u32 %v15732_v52, %v12256_v49  ;;  %v16047_v49 = vld [vmem:[%s24558_s1 + $0x1a30] sm:$0xf0]  ;;  %v13740_v52 = vld [vmem:[%s24558_s1 + $0x1bd8] sm:$0xf]  ;;  %v13264_v0 = vld [vmem:[%s24558_s1 + $0x1820] sm:$0xf] }
 0x24e   :  { %6683 = vmatpush.bf16.msra.mxu2 %v12565_v1  ;;  %v12481_v1 = vor.u32 %v15788_v55, %v12480_v63  ;;  %v16103_v63 = vld [vmem:[%s24558_s1 + $0x1bf0] sm:$0xf0]  ;;  %v12649_v55 = vor.u32 %v15830_v43, %v12648_v41  ;;  %v13517_v57 = vor.u32 %v16047_v49, %v13516_v48  ;;  %v13208_v41 = vld [vmem:[%s24558_s1 + $0x17b0] sm:$0xf] }
 0x24f   :  { %6696 = vmatpush.bf16.msra.mxu3 %v12789_v5  ;;  %v6419_v5 = vpop.f32.mrf.mxu1 }
 0x250   :  { %6658 = vmatpush.bf16.msra.mxu0 %v12089_v14  ;;  %v15837_v14 = vld [vmem:[%s24558_s1 + $0x13a0] sm:$0xf0]  ;;  %v16096_v5 = vld [vmem:[%s24558_s1 + $0x1bb8] sm:$0xf0] }
 0x251   :  { %6671 = vmatpush.bf16.msra.mxu1 %v12313_v17  ;;  %v11976_v17 = vld [vmem:[%s24558_s1 + $0xe10] sm:$0xf]  ;;  %v12677_v36 = vor.u32 %v15837_v14, %v12676_v30  ;;  %v6445_v42 = vpop.f32.mrf.mxu3  ;;  %v15921_v30 = vld [vmem:[%s24558_s1 + $0x1640] sm:$0xf0]  ;;  %v13236_v14 = vld [vmem:[%s24558_s1 + $0x17e8] sm:$0xf] }
 0x252   :  { %6684 = vmatpush.bf16.msra.mxu2 %v12537_v21  ;;  %v15662_v21 = vld [vmem:[%s24558_s1 + $0xe28] sm:$0xf0]  ;;  %v13013_v62 = vor.u32 %v15921_v30, %v13012_v12  ;;  %v15956_v12 = vld [vmem:[%s24558_s1 + $0x1758] sm:$0xf0]  ;;  %v13376_v30 = vld [vmem:[%s24558_s1 + $0x1900] sm:$0xf] }
 0x253   :  { %6697 = vmatpush.bf16.msra.mxu3 %v12761_v35  ;;  %v6432_v35 = vpop.f32.mrf.mxu2  ;;  %v15970_v42 = vld [vmem:[%s24558_s1 + $0x17c8] sm:$0xf0] }
 0x254   :  { %6659 = vmatpush.bf16.msra.mxu0 %v12061_v53  ;;  %v15935_v53 = vld [vmem:[%s24558_s1 + $0x16b0] sm:$0xf0] }
 0x255   :  { %6672 = vmatpush.bf16.msra.mxu1 %v12285_v47  ;;  %v13292_v47 = vld [vmem:[%s24558_s1 + $0x1858] sm:$0xf]  ;;  %v13069_v56 = vor.u32 %v15935_v53, %v13068_v54  ;;  %v13432_v54 = vld [vmem:[%s24558_s1 + $0x1970] sm:$0xf]  ;;  %v16026_v53 = vld [vmem:[%s24558_s1 + $0x1988] sm:$0xf0] }
 0x256   :  { %6685 = vmatpush.bf16.msra.mxu2 %v12509_v44  ;;  %v11977_v44 = vor.u32 %v15662_v21, %v11976_v17  ;;  %v13293_v6 = vor.u32 %v15991_v45, %v13292_v47  ;;  %v15977_v17 = vld [vmem:[%s24558_s1 + $0x1800] sm:$0xf0]  ;;  %v13460_v21 = vld [vmem:[%s24558_s1 + $0x19a8] sm:$0xf]  ;;  %v16082_v45 = vld [vmem:[%s24558_s1 + $0x1b48] sm:$0xf0] }
 0x257   :  { %6698 = vmatpush.bf16.msra.mxu3 %v12733_v51  ;;  %v12425_v51 = vor.u32 %v15774_v39, %v12424_v33  ;;  %v13237_v33 = vor.u32 %v15977_v17, %v13236_v14  ;;  %v15914_v39 = vld [vmem:[%s24558_s1 + $0x1608] sm:$0xf0]  ;;  %v16012_v14 = vld [vmem:[%s24558_s1 + $0x1918] sm:$0xf0] }
 0x258   :  { %6660 = vmatpush.bf16.msra.mxu0 %v12033_v59  ;;  %v15928_v59 = vld [vmem:[%s24558_s1 + $0x1678] sm:$0xf0] }
 0x259   :  { %6673 = vmatpush.bf16.msra.mxu1 %v12257_v61  ;;  %v13741_v61 = vor.u32 %v16103_v63, %v13740_v52  ;;  %v13433_v52 = vor.u32 %v16026_v53, %v13432_v54  ;;  %v12956_v63 = vld [vmem:[%s24558_s1 + $0x15b8] sm:$0xf]  ;;  %v15949_v54 = vld [vmem:[%s24558_s1 + $0x1720] sm:$0xf0]  ;;  %v13348_v53 = vld [vmem:[%s24558_s1 + $0x18c8] sm:$0xf] }
 0x25a   :  { %6686 = vmatpush.bf16.msra.mxu2 %v12481_v1  ;;  %v15984_v1 = vld [vmem:[%s24558_s1 + $0x1838] sm:$0xf0] }
 0x25b   :  { %6699 = vmatpush.bf16.msra.mxu3 %v12705_v29  ;;  %v13041_v29 = vor.u32 %v15928_v59, %v13040_v58  ;;  %v13265_v10 = vor.u32 %v15984_v1, %v13264_v0  ;;  %v13404_v58 = vld [vmem:[%s24558_s1 + $0x1938] sm:$0xf]  ;;  %v16019_v59 = vld [vmem:[%s24558_s1 + $0x1950] sm:$0xf0] }
 0x25c   :  { %6661 = vmatpush.bf16.msra.mxu0 %v12005_v16  ;;  %v13713_v16 = vor.u32 %v16096_v5, %v13712_v4  ;;  %v13628_v0 = vld [vmem:[%s24558_s1 + $0x1af8] sm:$0xf]  ;;  %v13405_v3 = vor.u32 %v16019_v59, %v13404_v58  ;;  %v12928_v4 = vld [vmem:[%s24558_s1 + $0x1580] sm:$0xf]  ;;  %v15900_v5 = vld [vmem:[%s24558_s1 + $0x1598] sm:$0xf0] }
 0x25d   :  { %6674 = vmatpush.bf16.msra.mxu1 %v12229_v24  ;;  %v16033_v24 = vld [vmem:[%s24558_s1 + $0x19c0] sm:$0xf0]  ;;  %v16054_v58 = vld [vmem:[%s24558_s1 + $0x1a68] sm:$0xf0] }
 0x25e   :  { %6687 = vmatpush.bf16.msra.mxu2 %v12453_v28  ;;  %v13684_v28 = vld [vmem:[%s24558_s1 + $0x1b68] sm:$0xf]  ;;  %v13461_v35 = vor.u32 %v16033_v24, %v13460_v21  ;;  %v13600_v21 = vld [vmem:[%s24558_s1 + $0x1ac0] sm:$0xf]  ;;  %v16068_v24 = vld [vmem:[%s24558_s1 + $0x1ad8] sm:$0xf0] }
 0x25f   :  { %6700 = vmatpush.bf16.msra.mxu3 %v12677_v36  ;;  %v12984_v36 = vld [vmem:[%s24558_s1 + $0x15f0] sm:$0xf]  ;;  %v13685_v43 = vor.u32 %v16089_v32, %v13684_v28  ;;  %v12929_v32 = vor.u32 %v15900_v5, %v12928_v4  ;;  %v10606_v4 = vld [vmem:[%s24558_s1 + $0x374] sm:$0xf0]  ;;  %v15372_v5 = vld [vmem:[%s24558_s1 + $0x51c] sm:$0xf] }
 0x260   :  { %6662 = vmatpush.bf16.msra.mxu0 %v11977_v44  ;;  %v6456_v47 = vpop.f32.mrf.mxu0  ;;  %v13656_v44 = vld [vmem:[%s24558_s1 + $0x1b30] sm:$0xf]  ;;  %v12985_v49 = vor.u32 %v15914_v39, %v12984_v36  ;;  %v13377_v36 = vor.u32 %v16012_v14, %v13376_v30  ;;  %v12900_v39 = vld [vmem:[%s24558_s1 + $0x1548] sm:$0xf]  ;;  %v11054_v30 = vld [vmem:[%s24558_s1 + $0x6f4] sm:$0xf0] }
 0x261   :  { %6675 = vmatpush.bf16.msra.mxu1 %v12201_v50  ;;  %v6457_v48 = vadd.f32 %v6456_v47, %v20335_v60  ;;  %v6469_v50 = vpop.f32.mrf.mxu1  ;;  %v13657_v60 = vor.u32 %v16082_v45, %v13656_v44  ;;  %v16005_v47 = vld [vmem:[%s24558_s1 + $0x18e0] sm:$0xf0]  ;;  %v13572_v44 = vld [vmem:[%s24558_s1 + $0x1a88] sm:$0xf] }
 0x262   :  { %6688 = vmatpush.bf16.msra.mxu2 %v12425_v51  ;;  %v13209_v51 = vor.u32 %v15970_v42, %v13208_v41  ;;  %v15893_v41 = vld [vmem:[%s24558_s1 + $0x1560] sm:$0xf0]  ;;  %v13601_v42 = vor.u32 %v16068_v24, %v13600_v21 }
 0x263   :  { %6701 = vmatpush.bf16.msra.mxu3 %v12649_v55  ;;  %6663 = vmatmul.bf16.vlgmr.msra.gmra.mxu0 %v17204_v18  ;;  %v15907_v55 = vld [vmem:[%s24558_s1 + $0x15d0] sm:$0xf0]  ;;  %v16061_v45 = vld [vmem:[%s24558_s1 + $0x1aa0] sm:$0xf0] }
 0x264   :  { %6707 = vmatpush.bf16.msrb.mxu0 %v13069_v56  ;;  %6676 = vmatmul.bf16.vlgmr.msra.gmra.mxu1 %v17217_v23  ;;  %v13180_v56 = vld [vmem:[%s24558_s1 + $0x1778] sm:$0xf]  ;;  %v12957_v1 = vor.u32 %v15907_v55, %v12956_v63  ;;  %v13096_v63 = vld [vmem:[%s24558_s1 + $0x16d0] sm:$0xf]  ;;  %v15942_v55 = vld [vmem:[%s24558_s1 + $0x16e8] sm:$0xf0] }
 0x265   :  { %6720 = vmatpush.bf16.msrb.mxu1 %v13293_v6  ;;  %6689 = vmatmul.bf16.vlgmr.msra.gmra.mxu2 %v17215_v22  ;;  %v6470_v6 = vadd.f32 %v6469_v50, %v6457_v48  ;;  %v12901_v48 = vor.u32 %v15893_v41, %v12900_v39  ;;  %v15886_v50 = vld [vmem:[%s24558_s1 + $0x1528] sm:$0xf0]  ;;  %v15253_v24 = vld [vmem:[%s24558_s1 + $0x164] sm:$0xf]  ;;  %v10802_v39 = vld [vmem:[%s24558_s1 + $0x4fc] sm:$0xf0] }
 0x266   :  { %6733 = vmatpush.bf16.msrb.mxu2 %v13517_v57  ;;  %6702 = vmatmul.bf16.vlgmr.msra.gmra.mxu3 %v17225_v27  ;;  %v15963_v57 = vld [vmem:[%s24558_s1 + $0x1790] sm:$0xf0]  ;;  %v15421_v41 = vld [vmem:[%s24558_s1 + $0x6a4] sm:$0xf] }
 0x267   :  { %6746 = vmatpush.bf16.msrb.mxu3 %v13741_v61  ;;  %v16075_v61 = vld [vmem:[%s24558_s1 + $0x1b10] sm:$0xf0]  ;;  %v13181_v2 = vor.u32 %v15963_v57, %v13180_v56  ;;  %v13320_v56 = vld [vmem:[%s24558_s1 + $0x1890] sm:$0xf] }
 0x268   :  { %6708 = vmatpush.bf16.msrb.mxu0 %v13041_v29  ;;  %v13152_v29 = vld [vmem:[%s24558_s1 + $0x1740] sm:$0xf]  ;;  %v6458_v28 = vpop.f32.mrf.mxu0  ;;  %v13544_v57 = vld [vmem:[%s24558_s1 + $0x1a50] sm:$0xf] }
 0x269   :  { %6721 = vmatpush.bf16.msrb.mxu1 %v13265_v10  ;;  %v13629_v10 = vor.u32 %v16075_v61, %v13628_v0  ;;  %v6495_v17 = vpop.f32.mrf.mxu3  ;;  %v15260_v0 = vld [vmem:[%s24558_s1 + $0x19c] sm:$0xf]  ;;  %v10382_v61 = vld [vmem:[%s24558_s1 + $0x1b4] sm:$0xf0]  ;;  %v13545_v14 = vor.u32 %v16054_v58, %v13544_v57  ;;  %v10354_v28 = vld [vmem:[%s24558_s1 + $0x17c] sm:$0xf0] }
 0x26a   :  { %6734 = vmatpush.bf16.msrb.mxu2 %v13489_v11  ;;  %v6482_v11 = vpop.f32.mrf.mxu2  ;;  %v10298_v57 = vld [vmem:[%s24558_s1 + $0x10c] sm:$0xf0]  ;;  %v15295_v58 = vld [vmem:[%s24558_s1 + $0x2b4] sm:$0xf] }
 0x26b   :  { %6747 = vmatpush.bf16.msrb.mxu3 %v13713_v16  ;;  %v6483_v16 = vadd.f32 %v6482_v11, %v6470_v6  ;;  %v15998_v6 = vld [vmem:[%s24558_s1 + $0x18a8] sm:$0xf0] }
 0x26c   :  { %6709 = vmatpush.bf16.msrb.mxu0 %v13013_v62  ;;  %v6471_v62 = vpop.f32.mrf.mxu1  ;;  %v13321_v11 = vor.u32 %v15998_v6, %v13320_v56  ;;  %v15239_v6 = vld [vmem:[%s24558_s1 + $0xf4] sm:$0xf] }
 0x26d   :  { %6722 = vmatpush.bf16.msrb.mxu1 %v13237_v33  ;;  %v20534_v33 = vadd.f32 %v6495_v17, %v6483_v16  ;;  %v10385_v16 = vor.u32 %v15260_v0, %v10382_v61  ;;  %v10522_v0 = vld [vmem:[%s24558_s1 + $0x2cc] sm:$0xf0]  ;;  %v15351_v61 = vld [vmem:[%s24558_s1 + $0x474] sm:$0xf] }
 0x26e   :  { %6735 = vmatpush.bf16.msrb.mxu2 %v13461_v35  ;;  %v13153_v35 = vor.u32 %v15956_v12, %v13152_v29  ;;  %v10830_v29 = vld [vmem:[%s24558_s1 + $0x534] sm:$0xf0]  ;;  %v15428_v12 = vld [vmem:[%s24558_s1 + $0x6dc] sm:$0xf] }
 0x26f   :  { %6748 = vmatpush.bf16.msrb.mxu3 %v13685_v43  ;;  %v13124_v43 = vld [vmem:[%s24558_s1 + $0x1708] sm:$0xf]  ;;  %v10833_v21 = vor.u32 %v15372_v5, %v10830_v29  ;;  %v11057_v62 = vor.u32 %v15428_v12, %v11054_v30  ;;  %v10301_v29 = vor.u32 %v15239_v6, %v10298_v57  ;;  %v15232_v30 = vld [vmem:[%s24558_s1 + $0xbc] sm:$0xf]  ;;  %v15218_v57 = vld [vmem:[%s24558_s1 + $0x4c] sm:$0xf] }
 0x270   :  { %6710 = vmatpush.bf16.msrb.mxu0 %v12985_v49  ;;  %v12872_v49 = vld [vmem:[%s24558_s1 + $0x1510] sm:$0xf] }
 0x271   :  { %6723 = vmatpush.bf16.msrb.mxu1 %v13209_v51  ;;  %v13125_v51 = vor.u32 %v15949_v54, %v13124_v43  ;;  %v11026_v43 = vld [vmem:[%s24558_s1 + $0x6bc] sm:$0xf0] }
 0x272   :  { %6736 = vmatpush.bf16.msrb.mxu2 %v13433_v52  ;;  %v13349_v52 = vor.u32 %v16005_v47, %v13348_v53  ;;  %v6484_v59 = vpop.f32.mrf.mxu2  ;;  %v15246_v47 = vld [vmem:[%s24558_s1 + $0x12c] sm:$0xf] }
 0x273   :  { %6749 = vmatpush.bf16.msrb.mxu3 %v13657_v60  ;;  %v13573_v60 = vor.u32 %v16061_v45, %v13572_v44  ;;  %v10326_v44 = vld [vmem:[%s24558_s1 + $0x144] sm:$0xf0]  ;;  %v15302_v45 = vld [vmem:[%s24558_s1 + $0x2ec] sm:$0xf] }
 0x274   :  { %6711 = vmatpush.bf16.msrb.mxu0 %v12957_v1  ;;  %v15316_v1 = vld [vmem:[%s24558_s1 + $0x35c] sm:$0xf] }
 0x275   :  { %6724 = vmatpush.bf16.msrb.mxu1 %v13181_v2  ;;  %v6497_v2 = vpop.f32.mrf.mxu3  ;;  %v10609_v17 = vor.u32 %v15316_v1, %v10606_v4  ;;  %v10746_v1 = vld [vmem:[%s24558_s1 + $0x48c] sm:$0xf0] }
 0x276   :  { %6737 = vmatpush.bf16.msrb.mxu2 %v13405_v3  ;;  %v12873_v3 = vor.u32 %v15886_v50, %v12872_v49  ;;  %v10550_v49 = vld [vmem:[%s24558_s1 + $0x304] sm:$0xf0]  ;;  %v15358_v50 = vld [vmem:[%s24558_s1 + $0x4ac] sm:$0xf]  ;;  %v10970_v4 = vld [vmem:[%s24558_s1 + $0x64c] sm:$0xf0]  ;;  %v10749_v12 = vor.u32 %v15351_v61, %v10746_v1 }
 0x277   :  { %6750 = vmatpush.bf16.msrb.mxu3 %v13629_v10  ;;  %v13097_v10 = vor.u32 %v15942_v55, %v13096_v63  ;;  %v10998_v63 = vld [vmem:[%s24558_s1 + $0x684] sm:$0xf0]  ;;  %v10329_v55 = vor.u32 %v15246_v47, %v10326_v44  ;;  %v10553_v56 = vor.u32 %v15302_v45, %v10550_v49  ;;  %v10466_v47 = vld [vmem:[%s24558_s1 + $0x25c] sm:$0xf0]  ;;  %v15337_v44 = vld [vmem:[%s24558_s1 + $0x404] sm:$0xf] }
 0x278   :  { %6712 = vmatpush.bf16.msrb.mxu0 %v12929_v32  ;;  %v15309_v32 = vld [vmem:[%s24558_s1 + $0x324] sm:$0xf]  ;;  %v10690_v45 = vld [vmem:[%s24558_s1 + $0x41c] sm:$0xf0]  ;;  %v10438_v61 = vld [vmem:[%s24558_s1 + $0x224] sm:$0xf0] }
 0x279   :  { %6725 = vmatpush.bf16.msrb.mxu1 %v13153_v35  ;;  %v10578_v35 = vld [vmem:[%s24558_s1 + $0x33c] sm:$0xf0]  ;;  %v10693_v6 = vor.u32 %v15337_v44, %v10690_v45  ;;  %v15330_v1 = vld [vmem:[%s24558_s1 + $0x3cc] sm:$0xf]  ;;  %v11950_v44 = vld [vmem:[%s24558_s1 + $0xdf4] sm:$0xf0] }
 0x27a   :  { %6738 = vmatpush.bf16.msrb.mxu2 %v13377_v36  ;;  %v15365_v36 = vld [vmem:[%s24558_s1 + $0x4e4] sm:$0xf]  ;;  %v10581_v54 = vor.u32 %v15309_v32, %v10578_v35  ;;  %v15400_v32 = vld [vmem:[%s24558_s1 + $0x5fc] sm:$0xf] }
 0x27b   :  { %6751 = vmatpush.bf16.msrb.mxu3 %v13601_v42  ;;  %v10357_v42 = vor.u32 %v15253_v24, %v10354_v28  ;;  %v10805_v53 = vor.u32 %v15365_v36, %v10802_v39  ;;  %v15344_v24 = vld [vmem:[%s24558_s1 + $0x43c] sm:$0xf]  ;;  %v10718_v28 = vld [vmem:[%s24558_s1 + $0x454] sm:$0xf0] }
 0x27c   :  { %6713 = vmatpush.bf16.msrb.mxu0 %v12901_v48  ;;  %v11029_v48 = vor.u32 %v15421_v41, %v11026_v43  ;;  %v10721_v39 = vor.u32 %v15344_v24, %v10718_v28  ;;  %v15225_v41 = vld [vmem:[%s24558_s1 + $0x84] sm:$0xf]  ;;  %v10242_v43 = vld [vmem:[%s24558_s1 + $0x9c] sm:$0xf0]  ;;  %v10858_v24 = vld [vmem:[%s24558_s1 + $0x56c] sm:$0xf0] }
 0x27d   :  { %6726 = vmatpush.bf16.msrb.mxu1 %v13125_v51  ;;  %v10774_v51 = vld [vmem:[%s24558_s1 + $0x4c4] sm:$0xf0] }
 0x27e   :  { %6739 = vmatpush.bf16.msrb.mxu2 %v13349_v52  ;;  %v15414_v52 = vld [vmem:[%s24558_s1 + $0x66c] sm:$0xf] }
 0x27f   :  { %6752 = vmatpush.bf16.msrb.mxu3 %v13573_v60  ;;  %v10777_v60 = vor.u32 %v15358_v50, %v10774_v51  ;;  %v11001_v59 = vor.u32 %v15414_v52, %v10998_v63  ;;  %v15393_v50 = vld [vmem:[%s24558_s1 + $0x5c4] sm:$0xf]  ;;  %v10914_v51 = vld [vmem:[%s24558_s1 + $0x5dc] sm:$0xf0]  ;;  %v10245_v63 = vor.u32 %v15225_v41, %v10242_v43  ;;  %v11502_v41 = vld [vmem:[%s24558_s1 + $0xa74] sm:$0xf0] }
 0x280   :  { %6714 = vmatpush.bf16.msrb.mxu0 %v12873_v3  ;;  %v6508_v2 = vpop.f32.mrf.mxu0  ;;  %v15407_v3 = vld [vmem:[%s24558_s1 + $0x634] sm:$0xf]  ;;  %v15596_v43 = vld [vmem:[%s24558_s1 + $0xc1c] sm:$0xf] }
 0x281   :  { %6727 = vmatpush.bf16.msrb.mxu1 %v13097_v10  ;;  %v6509_v5 = vadd.f32 %v6508_v2, %v20534_v33  ;;  %v6521_v10 = vpop.f32.mrf.mxu1  ;;  %v10973_v33 = vor.u32 %v15407_v3, %v10970_v4  ;;  %v10662_v2 = vld [vmem:[%s24558_s1 + $0x3e4] sm:$0xf0]  ;;  %v15386_v3 = vld [vmem:[%s24558_s1 + $0x58c] sm:$0xf] }
 0x282   :  { %6740 = vmatpush.bf16.msrb.mxu2 %v13321_v11  ;;  %v10525_v11 = vor.u32 %v15295_v58, %v10522_v0  ;;  %v10214_v58 = vld [vmem:[%s24558_s1 + $0x64] sm:$0xf0]  ;;  %v10917_v0 = vor.u32 %v15393_v50, %v10914_v51  ;;  %v15477_v51 = vld [vmem:[%s24558_s1 + $0x864] sm:$0xf] }
 0x283   :  { %6753 = vmatpush.bf16.msrb.mxu3 %v13545_v14  ;;  %6715 = vmatmul.bf16.vlgmr.msrb.gmra.mxu0 %v17420_v13  ;;  %v10270_v14 = vld [vmem:[%s24558_s1 + $0xd4] sm:$0xf0]  ;;  %v10886_v4 = vld [vmem:[%s24558_s1 + $0x5a4] sm:$0xf0] }
 0x284   :  { %6759 = vmatpush.bf16.msra.mxu0 %v10385_v16  ;;  %6728 = vmatmul.bf16.vlgmr.msrb.gmra.mxu1 %v17433_v20  ;;  %v15288_v16 = vld [vmem:[%s24558_s1 + $0x27c] sm:$0xf]  ;;  %v10273_v35 = vor.u32 %v15232_v30, %v10270_v14  ;;  %v15267_v30 = vld [vmem:[%s24558_s1 + $0x1d4] sm:$0xf]  ;;  %v10410_v14 = vld [vmem:[%s24558_s1 + $0x1ec] sm:$0xf0] }
 0x285   :  { %6772 = vmatpush.bf16.msra.mxu1 %v10609_v17  ;;  %6741 = vmatmul.bf16.vlgmr.msrb.gmra.mxu2 %v17431_v19  ;;  %v6522_v17 = vadd.f32 %v6521_v10, %v6509_v5  ;;  %v10217_v5 = vor.u32 %v15218_v57, %v10214_v58  ;;  %v10186_v10 = vld [vmem:[%s24558_s1 + $0x2c] sm:$0xf0]  ;;  %v11698_v57 = vld [vmem:[%s24558_s1 + $0xbfc] sm:$0xf0]  ;;  %v15645_v58 = vld [vmem:[%s24558_s1 + $0xda4] sm:$0xf] }
 0x286   :  { %6785 = vmatpush.bf16.msra.mxu2 %v10833_v21  ;;  %6754 = vmatmul.bf16.vlgmr.msrb.gmra.mxu3 %v17441_v26  ;;  %v10494_v21 = vld [vmem:[%s24558_s1 + $0x294] sm:$0xf0] }
 0x287   :  { %6798 = vmatpush.bf16.msra.mxu3 %v11057_v62  ;;  %v10942_v62 = vld [vmem:[%s24558_s1 + $0x614] sm:$0xf0]  ;;  %v10497_v36 = vor.u32 %v15288_v16, %v10494_v21  ;;  %v15323_v16 = vld [vmem:[%s24558_s1 + $0x394] sm:$0xf] }
 0x288   :  { %6760 = vmatpush.bf16.msra.mxu0 %v10357_v42  ;;  %v15281_v42 = vld [vmem:[%s24558_s1 + $0x244] sm:$0xf]  ;;  %v6510_v52 = vpop.f32.mrf.mxu0  ;;  %v15379_v21 = vld [vmem:[%s24558_s1 + $0x554] sm:$0xf] }
 0x289   :  { %6773 = vmatpush.bf16.msra.mxu1 %v10581_v54  ;;  %v10945_v54 = vor.u32 %v15400_v32, %v10942_v62  ;;  %v6547_v49 = vpop.f32.mrf.mxu3  ;;  %v15484_v32 = vld [vmem:[%s24558_s1 + $0x89c] sm:$0xf]  ;;  %v11278_v62 = vld [vmem:[%s24558_s1 + $0x8b4] sm:$0xf0]  ;;  %v10861_v45 = vor.u32 %v15379_v21, %v10858_v24  ;;  %v11250_v52 = vld [vmem:[%s24558_s1 + $0x87c] sm:$0xf0] }
 0x28a   :  { %6786 = vmatpush.bf16.msra.mxu2 %v10805_v53  ;;  %v6534_v53 = vpop.f32.mrf.mxu2  ;;  %v11194_v21 = vld [vmem:[%s24558_s1 + $0x80c] sm:$0xf0]  ;;  %v15519_v24 = vld [vmem:[%s24558_s1 + $0x9b4] sm:$0xf] }
 0x28b   :  { %6799 = vmatpush.bf16.msra.mxu3 %v11029_v48  ;;  %v6535_v48 = vadd.f32 %v6534_v53, %v6522_v17  ;;  %v10634_v17 = vld [vmem:[%s24558_s1 + $0x3ac] sm:$0xf0] }
 0x28c   :  { %6761 = vmatpush.bf16.msra.mxu0 %v10329_v55  ;;  %v6523_v55 = vpop.f32.mrf.mxu1  ;;  %v10637_v53 = vor.u32 %v15323_v16, %v10634_v17  ;;  %v15463_v16 = vld [vmem:[%s24558_s1 + $0x7f4] sm:$0xf] }
 0x28d   :  { %6774 = vmatpush.bf16.msra.mxu1 %v10553_v56  ;;  %v20733_v56 = vadd.f32 %v6547_v49, %v6535_v48  ;;  %v11281_v48 = vor.u32 %v15484_v32, %v11278_v62 }
 0x28e   :  { %6787 = vmatpush.bf16.msra.mxu2 %v10777_v60  ;;  %v10469_v60 = vor.u32 %v15281_v42, %v10466_v47  ;;  %v11726_v42 = vld [vmem:[%s24558_s1 + $0xc34] sm:$0xf0]  ;;  %v15652_v47 = vld [vmem:[%s24558_s1 + $0xddc] sm:$0xf] }
 0x28f   :  { %6800 = vmatpush.bf16.msra.mxu3 %v11001_v59  ;;  %v15274_v59 = vld [vmem:[%s24558_s1 + $0x20c] sm:$0xf]  ;;  %v11729_v50 = vor.u32 %v15596_v43, %v11726_v42  ;;  %v11953_v55 = vor.u32 %v15652_v47, %v11950_v44  ;;  %v11866_v43 = vld [vmem:[%s24558_s1 + $0xd4c] sm:$0xf0]  ;;  %v11197_v42 = vor.u32 %v15463_v16, %v11194_v21  ;;  %v15456_v44 = vld [vmem:[%s24558_s1 + $0x7bc] sm:$0xf] }
 0x290   :  { %6762 = vmatpush.bf16.msra.mxu0 %v10301_v29  ;;  %v15211_v29 = vld [vmem:[%s24558_s1 + $0x14] sm:$0xf] }
 0x291   :  { %6775 = vmatpush.bf16.msra.mxu1 %v10525_v11  ;;  %v10441_v11 = vor.u32 %v15274_v59, %v10438_v61  ;;  %v11922_v59 = vld [vmem:[%s24558_s1 + $0xdbc] sm:$0xf0] }
 0x292   :  { %6788 = vmatpush.bf16.msra.mxu2 %v10749_v12  ;;  %v10665_v12 = vor.u32 %v15330_v1, %v10662_v2  ;;  %v6536_v28 = vpop.f32.mrf.mxu2  ;;  %v15470_v2 = vld [vmem:[%s24558_s1 + $0x82c] sm:$0xf] }
 0x293   :  { %6801 = vmatpush.bf16.msra.mxu3 %v10973_v33  ;;  %v10889_v33 = vor.u32 %v15386_v3, %v10886_v4  ;;  %v11222_v3 = vld [vmem:[%s24558_s1 + $0x844] sm:$0xf0]  ;;  %v15526_v4 = vld [vmem:[%s24558_s1 + $0x9ec] sm:$0xf]  ;;  %v16471_v28 = vld [vmem:[%s24560_s2] sm:$0x7f] }
 0x294   :  { %6763 = vmatpush.bf16.msra.mxu0 %v10273_v35  ;;  %v15540_v35 = vld [vmem:[%s24558_s1 + $0xa5c] sm:$0xf]  ;;  %v1101_v32 = vperm.slane %v16471_v28, 4  ;;  %v15442_v28 = vld [vmem:[%s24558_s1 + $0x74c] sm:$0xf] }
 0x295   :  { %6776 = vmatpush.bf16.msra.mxu1 %v10497_v36  ;;  %v6549_v36 = vpop.f32.mrf.mxu3  ;;  %v11505_v49 = vor.u32 %v15540_v35, %v11502_v41  ;;  %v11418_v35 = vld [vmem:[%s24558_s1 + $0x9cc] sm:$0xf0]  ;;  %v15631_v41 = vld [vmem:[%s24558_s1 + $0xd34] sm:$0xf] }
 0x296   :  { %6789 = vmatpush.bf16.msra.mxu2 %v10721_v39  ;;  %v10189_v39 = vor.u32 %v15211_v29, %v10186_v10  ;;  %v11446_v29 = vld [vmem:[%s24558_s1 + $0xa04] sm:$0xf0]  ;;  %v15582_v10 = vld [vmem:[%s24558_s1 + $0xbac] sm:$0xf]  ;;  %v15575_v36 = vld [vmem:[%s24558_s1 + $0xb74] sm:$0xf] }
 0x297   :  { %6802 = vmatpush.bf16.msra.mxu3 %v10945_v54  ;;  %v10413_v54 = vor.u32 %v15267_v30, %v10410_v14  ;;  %v11894_v30 = vld [vmem:[%s24558_s1 + $0xd84] sm:$0xf0]  ;;  %v11225_v14 = vor.u32 %v15470_v2, %v11222_v3  ;;  %v15505_v2 = vld [vmem:[%s24558_s1 + $0x944] sm:$0xf] }
 0x298   :  { %6764 = vmatpush.bf16.msra.mxu0 %v10245_v63  ;;  %v15533_v63 = vld [vmem:[%s24558_s1 + $0xa24] sm:$0xf] }
 0x299   :  { %6777 = vmatpush.bf16.msra.mxu1 %v10469_v60  ;;  %v11474_v60 = vld [vmem:[%s24558_s1 + $0xa3c] sm:$0xf0] }
 0x29a   :  { %6790 = vmatpush.bf16.msra.mxu2 %v10693_v6  ;;  %v15589_v6 = vld [vmem:[%s24558_s1 + $0xbe4] sm:$0xf]  ;;  %v11477_v61 = vor.u32 %v15533_v63, %v11474_v60  ;;  %v15568_v63 = vld [vmem:[%s24558_s1 + $0xb3c] sm:$0xf] }
 0x29b   :  { %6803 = vmatpush.bf16.msra.mxu3 %v10917_v0  ;;  %v11253_v0 = vor.u32 %v15477_v51, %v11250_v52  ;;  %v11701_v1 = vor.u32 %v15589_v6, %v11698_v57  ;;  %v11869_v51 = vor.u32 %v15631_v41, %v11866_v43  ;;  %v11390_v52 = vld [vmem:[%s24558_s1 + $0x994] sm:$0xf0]  ;;  %v15624_v60 = vld [vmem:[%s24558_s1 + $0xcfc] sm:$0xf]  ;;  %v15554_v41 = vld [vmem:[%s24558_s1 + $0xacc] sm:$0xf] }
 0x29c   :  { %6765 = vmatpush.bf16.msra.mxu0 %v10217_v5  ;;  %v11925_v5 = vor.u32 %v15645_v58, %v11922_v59  ;;  %v11838_v6 = vld [vmem:[%s24558_s1 + $0xd14] sm:$0xf0]  ;;  %v11558_v43 = vld [vmem:[%s24558_s1 + $0xae4] sm:$0xf0] }
 0x29d   :  { %6778 = vmatpush.bf16.msra.mxu1 %v10441_v11  ;;  %v11670_v11 = vld [vmem:[%s24558_s1 + $0xbc4] sm:$0xf0] }
 0x29e   :  { %6791 = vmatpush.bf16.msra.mxu2 %v10665_v12  ;;  %v15638_v12 = vld [vmem:[%s24558_s1 + $0xd6c] sm:$0xf]  ;;  %v11673_v17 = vor.u32 %v15582_v10, %v11670_v11  ;;  %v11586_v10 = vld [vmem:[%s24558_s1 + $0xb1c] sm:$0xf0] }
 0x29f   :  { %6804 = vmatpush.bf16.msra.mxu3 %v10889_v33  ;;  %v11449_v33 = vor.u32 %v15526_v4, %v11446_v29  ;;  %v11897_v62 = vor.u32 %v15638_v12, %v11894_v30  ;;  %v11841_v4 = vor.u32 %v15624_v60, %v11838_v6  ;;  %v15561_v29 = vld [vmem:[%s24558_s1 + $0xb04] sm:$0xf]  ;;  %v15603_v60 = vld [vmem:[%s24558_s1 + $0xc54] sm:$0xf]  ;;  %v11754_v6 = vld [vmem:[%s24558_s1 + $0xc6c] sm:$0xf0] }
 0x2a0   :  { %6766 = vmatpush.bf16.msra.mxu0 %v10189_v39  ;;  %v11642_v39 = vld [vmem:[%s24558_s1 + $0xb8c] sm:$0xf0]  ;;  %v15617_v30 = vld [vmem:[%s24558_s1 + $0xcc4] sm:$0xf] }
 0x2a1   :  { %6779 = vmatpush.bf16.msra.mxu1 %v10413_v54  ;;  %v6560_v54 = vpop.f32.mrf.mxu0  ;;  %v11645_v47 = vor.u32 %v15575_v36, %v11642_v39  ;;  %v11334_v39 = vld [vmem:[%s24558_s1 + $0x924] sm:$0xf0] }
 0x2a2   :  { %6792 = vmatpush.bf16.msra.mxu2 %v10637_v53  ;;  %v11421_v53 = vor.u32 %v15519_v24, %v11418_v35  ;;  %v11589_v24 = vor.u32 %v15561_v29, %v11586_v10  ;;  %v15876_v29 = vld [vmem:[%s24558_s1 + $0x14dc] sm:$0xf]  ;;  %v12846_v10 = vld [vmem:[%s24558_s1 + $0x14f4] sm:$0xf0] }
 0x2a3   :  { %6805 = vmatpush.bf16.msra.mxu3 %v10861_v45  ;;  %6767 = vmatmul.bf16.vlgmr.msra.gmra.mxu0 %v16816_v9  ;;  %v11166_v45 = vld [vmem:[%s24558_s1 + $0x7d4] sm:$0xf0] }
 0x2a4   :  { %6811 = vmatpush.bf16.msrb.mxu0 %v11281_v48  ;;  %6780 = vmatmul.bf16.vlgmr.msra.gmra.mxu1 %v16853_v25  ;;  %v15512_v48 = vld [vmem:[%s24558_s1 + $0x97c] sm:$0xf]  ;;  %v11169_v58 = vor.u32 %v15456_v44, %v11166_v45  ;;  %v11082_v44 = vld [vmem:[%s24558_s1 + $0x72c] sm:$0xf0] }
 0x2a5   :  { %6824 = vmatpush.bf16.msrb.mxu1 %v11505_v49  ;;  %6793 = vmatmul.bf16.vlgmr.msra.gmra.mxu2 %v16814_v8  ;;  %v6561_v49 = vadd.f32 %v6560_v54, %v1101_v32  ;;  %v11393_v59 = vor.u32 %v15512_v48, %v11390_v52  ;;  %v11110_v32 = vld [vmem:[%s24558_s1 + $0x764] sm:$0xf0]  ;;  %v11561_v48 = vor.u32 %v15554_v41, %v11558_v43 }
 0x2a6   :  { %6837 = vmatpush.bf16.msrb.mxu2 %v11729_v50  ;;  %6806 = vmatmul.bf16.vlgmr.msra.gmra.mxu3 %v16830_v15  ;;  %v6573_v50 = vpop.f32.mrf.mxu1  ;;  %v11782_v54 = vld [vmem:[%s24558_s1 + $0xca4] sm:$0xf0] }
 0x2a7   :  { %6850 = vmatpush.bf16.msrb.mxu3 %v11953_v55  ;;  %v11614_v55 = vld [vmem:[%s24558_s1 + $0xb54] sm:$0xf0]  ;;  %v6574_v57 = vadd.f32 %v6573_v50, %v6561_v49  ;;  %v15491_v49 = vld [vmem:[%s24558_s1 + $0x8d4] sm:$0xf]  ;;  %v11306_v50 = vld [vmem:[%s24558_s1 + $0x8ec] sm:$0xf0] }
 0x2a8   :  { %6812 = vmatpush.bf16.msrb.mxu0 %v11253_v0  ;;  %v11617_v0 = vor.u32 %v15568_v63, %v11614_v55  ;;  %v6586_v3 = vpop.f32.mrf.mxu2  ;;  %v11530_v55 = vld [vmem:[%s24558_s1 + $0xaac] sm:$0xf0] }
 0x2a9   :  { %6825 = vmatpush.bf16.msrb.mxu1 %v11477_v61  ;;  %v15449_v61 = vld [vmem:[%s24558_s1 + $0x784] sm:$0xf]  ;;  %v6587_v11 = vadd.f32 %v6586_v3, %v6574_v57  ;;  %v6599_v12 = vpop.f32.mrf.mxu3  ;;  %v12622_v3 = vld [vmem:[%s24558_s1 + $0x1334] sm:$0xf0] }
 0x2aa   :  { %6838 = vmatpush.bf16.msrb.mxu2 %v11701_v1  ;;  %v11138_v1 = vld [vmem:[%s24558_s1 + $0x79c] sm:$0xf0] }
 0x2ab   :  { %6851 = vmatpush.bf16.msrb.mxu3 %v11925_v5  ;;  %v11362_v5 = vld [vmem:[%s24558_s1 + $0x95c] sm:$0xf0]  ;;  %v11141_v16 = vor.u32 %v15449_v61, %v11138_v1  ;;  %v12398_v1 = vld [vmem:[%s24558_s1 + $0x1174] sm:$0xf0] }
 0x2ac   :  { %6813 = vmatpush.bf16.msrb.mxu0 %v11225_v14  ;;  %v11810_v14 = vld [vmem:[%s24558_s1 + $0xcdc] sm:$0xf0]  ;;  %v11365_v21 = vor.u32 %v15505_v2, %v11362_v5  ;;  %v15820_v2 = vld [vmem:[%s24558_s1 + $0x131c] sm:$0xf] }
 0x2ad   :  { %6826 = vmatpush.bf16.msrb.mxu1 %v11449_v33  ;;  %v20934_v33 = vadd.f32 %v6599_v12, %v6587_v11  ;;  %v11813_v36 = vor.u32 %v15617_v30, %v11810_v14  ;;  %v11757_v11 = vor.u32 %v15603_v60, %v11754_v6  ;;  %v12625_v14 = vor.u32 %v15820_v2, %v12622_v3  ;;  %v12090_v60 = vld [vmem:[%s24558_s1 + $0xf0c] sm:$0xf0]  ;;  %v15743_v6 = vld [vmem:[%s24558_s1 + $0x10b4] sm:$0xf] }
 0x2ae   :  { %6839 = vmatpush.bf16.msrb.mxu2 %v11673_v17  ;;  %v6562_v17 = vpop.f32.mrf.mxu0  ;;  %v6575_v35 = vpop.f32.mrf.mxu1 }
 0x2af   :  { %6852 = vmatpush.bf16.msrb.mxu3 %v11897_v62  ;;  %v15498_v62 = vld [vmem:[%s24558_s1 + $0x90c] sm:$0xf]  ;;  %v12146_v17 = vld [vmem:[%s24558_s1 + $0xf7c] sm:$0xf0]  ;;  %v15869_v35 = vld [vmem:[%s24558_s1 + $0x14a4] sm:$0xf] }
 0x2b0   :  { %6814 = vmatpush.bf16.msrb.mxu0 %v11197_v42  ;;  %v15610_v42 = vld [vmem:[%s24558_s1 + $0xc8c] sm:$0xf]  ;;  %v11337_v45 = vor.u32 %v15498_v62, %v11334_v39  ;;  %v6588_v52 = vpop.f32.mrf.mxu2  ;;  %v12594_v62 = vld [vmem:[%s24558_s1 + $0x12fc] sm:$0xf0] }
 0x2b1   :  { %6827 = vmatpush.bf16.msrb.mxu1 %v11421_v53  ;;  %v11113_v53 = vor.u32 %v15442_v28, %v11110_v32  ;;  %v11785_v63 = vor.u32 %v15610_v42, %v11782_v54  ;;  %v6601_v57 = vpop.f32.mrf.mxu3  ;;  %v12370_v28 = vld [vmem:[%s24558_s1 + $0x113c] sm:$0xf0]  ;;  %v15813_v32 = vld [vmem:[%s24558_s1 + $0x12e4] sm:$0xf]  ;;  %v15694_v42 = vld [vmem:[%s24558_s1 + $0xf2c] sm:$0xf] }
 0x2b2   :  { %6840 = vmatpush.bf16.msrb.mxu2 %v11645_v47  ;;  %v15435_v47 = vld [vmem:[%s24558_s1 + $0x714] sm:$0xf]  ;;  %v12597_v43 = vor.u32 %v15813_v32, %v12594_v62  ;;  %v12118_v54 = vld [vmem:[%s24558_s1 + $0xf44] sm:$0xf0] }
 0x2b3   :  { %6853 = vmatpush.bf16.msrb.mxu3 %v11869_v51  ;;  %v15547_v51 = vld [vmem:[%s24558_s1 + $0xa94] sm:$0xf]  ;;  %v11085_v61 = vor.u32 %v15435_v47, %v11082_v44  ;;  %v12342_v44 = vld [vmem:[%s24558_s1 + $0x1104] sm:$0xf0] }
 0x2b4   :  { %6815 = vmatpush.bf16.msrb.mxu0 %v11169_v58  ;;  %v15708_v58 = vld [vmem:[%s24558_s1 + $0xf9c] sm:$0xf]  ;;  %v11533_v5 = vor.u32 %v15547_v51, %v11530_v55  ;;  %v12121_v51 = vor.u32 %v15694_v42, %v12118_v54  ;;  %v15687_v55 = vld [vmem:[%s24558_s1 + $0xef4] sm:$0xf]  ;;  %v12258_v54 = vld [vmem:[%s24558_s1 + $0x105c] sm:$0xf0] }
 0x2b5   :  { %6828 = vmatpush.bf16.msrb.mxu1 %v11393_v59  ;;  %v12174_v59 = vld [vmem:[%s24558_s1 + $0xfb4] sm:$0xf0]  ;;  %v12093_v2 = vor.u32 %v15687_v55, %v12090_v60  ;;  %v15666_v60 = vld [vmem:[%s24558_s1 + $0xe4c] sm:$0xf] }
 0x2b6   :  { %6841 = vmatpush.bf16.msrb.mxu2 %v11617_v0  ;;  %v15764_v0 = vld [vmem:[%s24558_s1 + $0x115c] sm:$0xf]  ;;  %v12177_v12 = vor.u32 %v15708_v58, %v12174_v59  ;;  %v12314_v58 = vld [vmem:[%s24558_s1 + $0x10cc] sm:$0xf0]  ;;  %v15799_v59 = vld [vmem:[%s24558_s1 + $0x1274] sm:$0xf] }
 0x2b7   :  { %6854 = vmatpush.bf16.msrb.mxu3 %v11841_v4  ;;  %v11309_v4 = vor.u32 %v15491_v49, %v11306_v50  ;;  %v12401_v30 = vor.u32 %v15764_v0, %v12398_v1  ;;  %v15862_v49 = vld [vmem:[%s24558_s1 + $0x146c] sm:$0xf]  ;;  %v12790_v50 = vld [vmem:[%s24558_s1 + $0x1484] sm:$0xf0]  ;;  %v12538_v0 = vld [vmem:[%s24558_s1 + $0x128c] sm:$0xf0] }
 0x2b8   :  { %6816 = vmatpush.bf16.msrb.mxu0 %v11141_v16  ;;  %v15701_v16 = vld [vmem:[%s24558_s1 + $0xf64] sm:$0xf]  ;;  %v12793_v57 = vor.u32 %v15862_v49, %v12790_v50  ;;  %v12762_v1 = vld [vmem:[%s24558_s1 + $0x144c] sm:$0xf0]  ;;  %v12706_v49 = vld [vmem:[%s24558_s1 + $0x13dc] sm:$0xf0] }
 0x2b9   :  { %6829 = vmatpush.bf16.msrb.mxu1 %v11365_v21  ;;  %v15757_v21 = vld [vmem:[%s24558_s1 + $0x1124] sm:$0xf]  ;;  %v12149_v39 = vor.u32 %v15701_v16, %v12146_v17  ;;  %v12286_v16 = vld [vmem:[%s24558_s1 + $0x1094] sm:$0xf0]  ;;  %v15792_v17 = vld [vmem:[%s24558_s1 + $0x123c] sm:$0xf] }
 0x2ba   :  { %6842 = vmatpush.bf16.msrb.mxu2 %v11589_v24  ;;  %v12849_v24 = vor.u32 %v15876_v29, %v12846_v10  ;;  %v12373_v41 = vor.u32 %v15757_v21, %v12370_v28  ;;  %v15680_v29 = vld [vmem:[%s24558_s1 + $0xebc] sm:$0xf]  ;;  %v12062_v10 = vld [vmem:[%s24558_s1 + $0xed4] sm:$0xf0] }
 0x2bb   :  { %6855 = vmatpush.bf16.msrb.mxu3 %v11813_v36  ;;  %v12818_v36 = vld [vmem:[%s24558_s1 + $0x14bc] sm:$0xf0]  ;;  %v12510_v21 = vld [vmem:[%s24558_s1 + $0x1254] sm:$0xf0]  ;;  %v12065_v32 = vor.u32 %v15680_v29, %v12062_v10  ;;  %v11978_v29 = vld [vmem:[%s24558_s1 + $0xe2c] sm:$0xf0] }
 0x2bc   :  { %6817 = vmatpush.bf16.msrb.mxu0 %v11113_v53  ;;  %v15750_v53 = vld [vmem:[%s24558_s1 + $0x10ec] sm:$0xf]  ;;  %v12821_v47 = vor.u32 %v15869_v35, %v12818_v36  ;;  %v12513_v35 = vor.u32 %v15792_v17, %v12510_v21  ;;  %v15673_v36 = vld [vmem:[%s24558_s1 + $0xe84] sm:$0xf]  ;;  %v12426_v21 = vld [vmem:[%s24558_s1 + $0x11ac] sm:$0xf0] }
 0x2bd   :  { %6830 = vmatpush.bf16.msrb.mxu1 %v11337_v45  ;;  %v15806_v45 = vld [vmem:[%s24558_s1 + $0x12ac] sm:$0xf]  ;;  %v12345_v52 = vor.u32 %v15750_v53, %v12342_v44  ;;  %v15785_v53 = vld [vmem:[%s24558_s1 + $0x1204] sm:$0xf] }
 0x2be   :  { %6843 = vmatpush.bf16.msrb.mxu2 %v11561_v48  ;;  %v12566_v48 = vld [vmem:[%s24558_s1 + $0x12c4] sm:$0xf0] }
 0x2bf   :  { %6856 = vmatpush.bf16.msrb.mxu3 %v11785_v63  ;;  %v12569_v63 = vor.u32 %v15806_v45, %v12566_v48  ;;  %v15841_v48 = vld [vmem:[%s24558_s1 + $0x13c4] sm:$0xf] }
 0x2c0   :  { %6818 = vmatpush.bf16.msrb.mxu0 %v11085_v61  ;;  %v15855_v61 = vld [vmem:[%s24558_s1 + $0x1434] sm:$0xf]  ;;  %v6612_v3 = vpop.f32.mrf.mxu0 }
 0x2c1   :  { %6831 = vmatpush.bf16.msrb.mxu1 %v11309_v4  ;;  %v12317_v4 = vor.u32 %v15743_v6, %v12314_v58  ;;  %v12006_v6 = vld [vmem:[%s24558_s1 + $0xe64] sm:$0xf0] }
 0x2c2   :  { %6844 = vmatpush.bf16.msrb.mxu2 %v11533_v5  ;;  %v12541_v5 = vor.u32 %v15799_v59, %v12538_v0  ;;  %v12709_v59 = vor.u32 %v15841_v48, %v12706_v49  ;;  %v12230_v0 = vld [vmem:[%s24558_s1 + $0x1024] sm:$0xf0] }
 0x2c3   :  { %6857 = vmatpush.bf16.msrb.mxu3 %v11757_v11  ;;  %6819 = vmatmul.bf16.vlgmr.msrb.gmra.mxu0 %v17005_v37  ;;  %v15736_v11 = vld [vmem:[%s24558_s1 + $0x107c] sm:$0xf] }
 0x2c4   :  { %6863 = vmatpush.bf16.msra.mxu0 %v12177_v12  ;;  %6832 = vmatmul.bf16.vlgmr.msrb.gmra.mxu1 %v17009_v40  ;;  %v6613_v12 = vadd.f32 %v6612_v3, %v20934_v33  ;;  %v12734_v33 = vld [vmem:[%s24558_s1 + $0x1414] sm:$0xf0]  ;;  %v12289_v62 = vor.u32 %v15736_v11, %v12286_v16  ;;  %v12678_v3 = vld [vmem:[%s24558_s1 + $0x13a4] sm:$0xf0] }
 0x2c5   :  { %6876 = vmatpush.bf16.msra.mxu1 %v12401_v30  ;;  %6845 = vmatmul.bf16.vlgmr.msrb.gmra.mxu2 %v16997_v34  ;;  %v6625_v30 = vpop.f32.mrf.mxu1 }
 0x2c6   :  { %6889 = vmatpush.bf16.msra.mxu2 %v12625_v14  ;;  %6858 = vmatmul.bf16.vlgmr.msrb.gmra.mxu3 %v17007_v38  ;;  %v12765_v14 = vor.u32 %v15855_v61, %v12762_v1  ;;  %v6626_v28 = vadd.f32 %v6625_v30, %v6613_v12  ;;  %v15778_v61 = vld [vmem:[%s24558_s1 + $0x11cc] sm:$0xf]  ;;  %v12454_v1 = vld [vmem:[%s24558_s1 + $0x11e4] sm:$0xf0]  ;;  %v15715_v12 = vld [vmem:[%s24558_s1 + $0xfd4] sm:$0xf] }
 0x2c7   :  { %6902 = vmatpush.bf16.msra.mxu3 %v12849_v24  ;;  %v15848_v24 = vld [vmem:[%s24558_s1 + $0x13fc] sm:$0xf]  ;;  %v12457_v11 = vor.u32 %v15778_v61, %v12454_v1  ;;  %v12202_v30 = vld [vmem:[%s24558_s1 + $0xfec] sm:$0xf0] }
 0x2c8   :  { %6864 = vmatpush.bf16.msra.mxu0 %v12149_v39  ;;  %v12034_v39 = vld [vmem:[%s24558_s1 + $0xe9c] sm:$0xf0]  ;;  %v12737_v42 = vor.u32 %v15848_v24, %v12734_v33  ;;  %v15827_v24 = vld [vmem:[%s24558_s1 + $0x1354] sm:$0xf]  ;;  %v12650_v33 = vld [vmem:[%s24558_s1 + $0x136c] sm:$0xf0] }
 0x2c9   :  { %6877 = vmatpush.bf16.msra.mxu1 %v12373_v41  ;;  %v15729_v41 = vld [vmem:[%s24558_s1 + $0x1044] sm:$0xf]  ;;  %v6651_v45 = vpop.f32.mrf.mxu3  ;;  %v12037_v50 = vor.u32 %v15673_v36, %v12034_v39  ;;  %v13294_v39 = vld [vmem:[%s24558_s1 + $0x1874] sm:$0xf0] }
 0x2ca   :  { %6890 = vmatpush.bf16.msra.mxu2 %v12597_v43  ;;  %v6638_v43 = vpop.f32.mrf.mxu2 }
 0x2cb   :  { %6903 = vmatpush.bf16.msra.mxu3 %v12821_v47  ;;  %v12482_v47 = vld [vmem:[%s24558_s1 + $0x121c] sm:$0xf0]  ;;  %v6639_v44 = vadd.f32 %v6638_v43, %v6626_v28  ;;  %v13518_v43 = vld [vmem:[%s24558_s1 + $0x1a34] sm:$0xf0] }
 0x2cc   :  { %6865 = vmatpush.bf16.msra.mxu0 %v12121_v51  ;;  %v12485_v55 = vor.u32 %v15785_v53, %v12482_v47  ;;  %v16100_v53 = vld [vmem:[%s24558_s1 + $0x1bdc] sm:$0xf]  ;;  %v13742_v47 = vld [vmem:[%s24558_s1 + $0x1bf4] sm:$0xf0] }
 0x2cd   :  { %6878 = vmatpush.bf16.msra.mxu1 %v12345_v52  ;;  %v21133_v51 = vadd.f32 %v6651_v45, %v6639_v44  ;;  %v6614_v52 = vpop.f32.mrf.mxu0  ;;  %v6627_v58 = vpop.f32.mrf.mxu1  ;;  %v12653_v44 = vor.u32 %v15827_v24, %v12650_v33  ;;  %v12986_v24 = vld [vmem:[%s24558_s1 + $0x160c] sm:$0xf0]  ;;  %v15967_v33 = vld [vmem:[%s24558_s1 + $0x17b4] sm:$0xf] }
 0x2ce   :  { %6891 = vmatpush.bf16.msra.mxu2 %v12569_v63  ;;  %v12261_v63 = vor.u32 %v15729_v41, %v12258_v54  ;;  %v16044_v41 = vld [vmem:[%s24558_s1 + $0x1a1c] sm:$0xf]  ;;  %v13042_v52 = vld [vmem:[%s24558_s1 + $0x167c] sm:$0xf0]  ;;  %v16093_v58 = vld [vmem:[%s24558_s1 + $0x1ba4] sm:$0xf] }
 0x2cf   :  { %6904 = vmatpush.bf16.msra.mxu3 %v12793_v57  ;;  %v15722_v57 = vld [vmem:[%s24558_s1 + $0x100c] sm:$0xf]  ;;  %v13521_v49 = vor.u32 %v16044_v41, %v13518_v43  ;;  %v13658_v41 = vld [vmem:[%s24558_s1 + $0x1b4c] sm:$0xf0] }
 0x2d0   :  { %6866 = vmatpush.bf16.msra.mxu0 %v12093_v2  ;;  %v15834_v2 = vld [vmem:[%s24558_s1 + $0x138c] sm:$0xf]  ;;  %v12233_v10 = vor.u32 %v15722_v57, %v12230_v0  ;;  %v13490_v57 = vld [vmem:[%s24558_s1 + $0x19fc] sm:$0xf0] }
 0x2d1   :  { %6879 = vmatpush.bf16.msra.mxu1 %v12317_v4  ;;  %v12009_v4 = vor.u32 %v15666_v60, %v12006_v6  ;;  %v12681_v17 = vor.u32 %v15834_v2, %v12678_v3  ;;  %v6653_v28 = vpop.f32.mrf.mxu3  ;;  %v13266_v60 = vld [vmem:[%s24558_s1 + $0x183c] sm:$0xf0]  ;;  %v16037_v6 = vld [vmem:[%s24558_s1 + $0x19e4] sm:$0xf]  ;;  %v15918_v2 = vld [vmem:[%s24558_s1 + $0x162c] sm:$0xf] }
 0x2d2   :  { %6892 = vmatpush.bf16.msra.mxu2 %v12541_v5  ;;  %v15659_v5 = vld [vmem:[%s24558_s1 + $0xe14] sm:$0xf]  ;;  %v6640_v16 = vpop.f32.mrf.mxu2  ;;  %v13493_v1 = vor.u32 %v16037_v6, %v13490_v57  ;;  %v13014_v3 = vld [vmem:[%s24558_s1 + $0x1644] sm:$0xf0] }
 0x2d3   :  { %6905 = vmatpush.bf16.msra.mxu3 %v12765_v14  ;;  %v15771_v14 = vld [vmem:[%s24558_s1 + $0x1194] sm:$0xf]  ;;  %v11981_v36 = vor.u32 %v15659_v5, %v11978_v29  ;;  %v13238_v29 = vld [vmem:[%s24558_s1 + $0x1804] sm:$0xf0] }
 0x2d4   :  { %6867 = vmatpush.bf16.msra.mxu0 %v12065_v32  ;;  %v15932_v32 = vld [vmem:[%s24558_s1 + $0x169c] sm:$0xf]  ;;  %v12429_v54 = vor.u32 %v15771_v14, %v12426_v21  ;;  %v13017_v14 = vor.u32 %v15918_v2, %v13014_v3  ;;  %v15911_v21 = vld [vmem:[%s24558_s1 + $0x15f4] sm:$0xf]  ;;  %v13154_v3 = vld [vmem:[%s24558_s1 + $0x175c] sm:$0xf0] }
 0x2d5   :  { %6880 = vmatpush.bf16.msra.mxu1 %v12289_v62  ;;  %v13070_v62 = vld [vmem:[%s24558_s1 + $0x16b4] sm:$0xf0] }
 0x2d6   :  { %6893 = vmatpush.bf16.msra.mxu2 %v12513_v35  ;;  %v15988_v35 = vld [vmem:[%s24558_s1 + $0x185c] sm:$0xf]  ;;  %v13073_v45 = vor.u32 %v15932_v32, %v13070_v62  ;;  %v13210_v32 = vld [vmem:[%s24558_s1 + $0x17cc] sm:$0xf0]  ;;  %v16023_v62 = vld [vmem:[%s24558_s1 + $0x1974] sm:$0xf] }
 0x2d7   :  { %6906 = vmatpush.bf16.msra.mxu3 %v12737_v42  ;;  %v12205_v42 = vor.u32 %v15715_v12, %v12202_v30  ;;  %v13297_v48 = vor.u32 %v15988_v35, %v13294_v39  ;;  %v16086_v12 = vld [vmem:[%s24558_s1 + $0x1b6c] sm:$0xf]  ;;  %v13686_v30 = vld [vmem:[%s24558_s1 + $0x1b84] sm:$0xf0]  ;;  %v13434_v35 = vld [vmem:[%s24558_s1 + $0x198c] sm:$0xf0] }
 0x2d8   :  { %6868 = vmatpush.bf16.msra.mxu0 %v12037_v50  ;;  %v15925_v50 = vld [vmem:[%s24558_s1 + $0x1664] sm:$0xf]  ;;  %v13689_v28 = vor.u32 %v16086_v12, %v13686_v30  ;;  %v16079_v39 = vld [vmem:[%s24558_s1 + $0x1b34] sm:$0xf]  ;;  %v13602_v12 = vld [vmem:[%s24558_s1 + $0x1adc] sm:$0xf0] }
 0x2d9   :  { %6881 = vmatpush.bf16.msra.mxu1 %v12261_v63  ;;  %v15981_v63 = vld [vmem:[%s24558_s1 + $0x1824] sm:$0xf]  ;;  %v13045_v0 = vor.u32 %v15925_v50, %v13042_v52  ;;  %v13182_v50 = vld [vmem:[%s24558_s1 + $0x1794] sm:$0xf0]  ;;  %v16016_v52 = vld [vmem:[%s24558_s1 + $0x193c] sm:$0xf] }
 0x2da   :  { %6894 = vmatpush.bf16.msra.mxu2 %v12485_v55  ;;  %v13745_v55 = vor.u32 %v16100_v53, %v13742_v47  ;;  %v13269_v61 = vor.u32 %v15981_v63, %v13266_v60  ;;  %v13213_v53 = vor.u32 %v15967_v33, %v13210_v32  ;;  %v13437_v47 = vor.u32 %v16023_v62, %v13434_v35  ;;  %v13406_v63 = vld [vmem:[%s24558_s1 + $0x1954] sm:$0xf0]  ;;  %v15890_v33 = vld [vmem:[%s24558_s1 + $0x154c] sm:$0xf]  ;;  %v13126_v35 = vld [vmem:[%s24558_s1 + $0x1724] sm:$0xf0] }
 0x2db   :  { %6907 = vmatpush.bf16.msra.mxu3 %v12709_v59  ;;  %v13714_v59 = vld [vmem:[%s24558_s1 + $0x1bbc] sm:$0xf0]  ;;  %v13630_v60 = vld [vmem:[%s24558_s1 + $0x1b14] sm:$0xf0]  ;;  %v15946_v32 = vld [vmem:[%s24558_s1 + $0x170c] sm:$0xf] }
 0x2dc   :  { %6869 = vmatpush.bf16.msra.mxu0 %v12009_v4  ;;  %v15974_v4 = vld [vmem:[%s24558_s1 + $0x17ec] sm:$0xf]  ;;  %v13717_v5 = vor.u32 %v16093_v58, %v13714_v59  ;;  %v13409_v58 = vor.u32 %v16016_v52, %v13406_v63  ;;  %v15897_v59 = vld [vmem:[%s24558_s1 + $0x1584] sm:$0xf]  ;;  %v16051_v52 = vld [vmem:[%s24558_s1 + $0x1a54] sm:$0xf] }
 0x2dd   :  { %6882 = vmatpush.bf16.msra.mxu1 %v12233_v10  ;;  %v16030_v10 = vld [vmem:[%s24558_s1 + $0x19ac] sm:$0xf]  ;;  %v13241_v16 = vor.u32 %v15974_v4, %v13238_v29  ;;  %v16009_v4 = vld [vmem:[%s24558_s1 + $0x1904] sm:$0xf]  ;;  %v13546_v63 = vld [vmem:[%s24558_s1 + $0x1a6c] sm:$0xf0] }
 0x2de   :  { %6895 = vmatpush.bf16.msra.mxu2 %v12457_v11  ;;  %v13462_v11 = vld [vmem:[%s24558_s1 + $0x19c4] sm:$0xf0] }
 0x2df   :  { %6908 = vmatpush.bf16.msra.mxu3 %v12681_v17  ;;  %v13465_v17 = vor.u32 %v16030_v10, %v13462_v11  ;;  %v16065_v11 = vld [vmem:[%s24558_s1 + $0x1ac4] sm:$0xf] }
 0x2e0   :  { %6870 = vmatpush.bf16.msra.mxu0 %v11981_v36  ;;  %v6664_v36 = vpop.f32.mrf.mxu0  ;;  %v13605_v62 = vor.u32 %v16065_v11, %v13602_v12 }
 0x2e1   :  { %6883 = vmatpush.bf16.msra.mxu1 %v12205_v42  ;;  %v6665_v43 = vadd.f32 %v6664_v36, %v21133_v51  ;;  %v12989_v42 = vor.u32 %v15911_v21, %v12986_v24  ;;  %v13661_v51 = vor.u32 %v16079_v39, %v13658_v41  ;;  %v16002_v36 = vld [vmem:[%s24558_s1 + $0x18cc] sm:$0xf]  ;;  %v13350_v39 = vld [vmem:[%s24558_s1 + $0x18e4] sm:$0xf0] }
 0x2e2   :  { %6896 = vmatpush.bf16.msra.mxu2 %v12429_v54  ;;  %v6677_v54 = vpop.f32.mrf.mxu1  ;;  %v16058_v41 = vld [vmem:[%s24558_s1 + $0x1a8c] sm:$0xf] }
 0x2e3   :  { %6909 = vmatpush.bf16.msra.mxu3 %v12653_v44  ;;  %6871 = vmatmul.bf16.vlgmr.msra.gmra.mxu0 %v17204_v18  ;;  %v15904_v44 = vld [vmem:[%s24558_s1 + $0x15bc] sm:$0xf] }
 0x2e4   :  { %6915 = vmatpush.bf16.msrb.mxu0 %v13073_v45  ;;  %6884 = vmatmul.bf16.vlgmr.msra.gmra.mxu1 %v17217_v23  ;;  %v12958_v45 = vld [vmem:[%s24558_s1 + $0x15d4] sm:$0xf0] }
 0x2e5   :  { %6928 = vmatpush.bf16.msrb.mxu1 %v13297_v48  ;;  %6897 = vmatmul.bf16.vlgmr.msra.gmra.mxu2 %v17215_v22  ;;  %v15960_v48 = vld [vmem:[%s24558_s1 + $0x177c] sm:$0xf]  ;;  %v12961_v6 = vor.u32 %v15904_v44, %v12958_v45  ;;  %v13353_v44 = vor.u32 %v16002_v36, %v13350_v39  ;;  %v15939_v45 = vld [vmem:[%s24558_s1 + $0x16d4] sm:$0xf] }
 0x2e6   :  { %6941 = vmatpush.bf16.msrb.mxu2 %v13521_v49  ;;  %6910 = vmatmul.bf16.vlgmr.msra.gmra.mxu3 %v17225_v27  ;;  %v6678_v49 = vadd.f32 %v6677_v54, %v6665_v43  ;;  %v13185_v57 = vor.u32 %v15960_v48, %v13182_v50  ;;  %v13574_v43 = vld [vmem:[%s24558_s1 + $0x1aa4] sm:$0xf0]  ;;  %v15883_v54 = vld [vmem:[%s24558_s1 + $0x1514] sm:$0xf]  ;;  %v13098_v48 = vld [vmem:[%s24558_s1 + $0x16ec] sm:$0xf0] }
 0x2e7   :  { %6954 = vmatpush.bf16.msrb.mxu3 %v13745_v55  ;;  %v16072_v55 = vld [vmem:[%s24558_s1 + $0x1afc] sm:$0xf]  ;;  %v13322_v50 = vld [vmem:[%s24558_s1 + $0x18ac] sm:$0xf0] }
 0x2e8   :  { %6916 = vmatpush.bf16.msrb.mxu0 %v13045_v0  ;;  %v12930_v0 = vld [vmem:[%s24558_s1 + $0x159c] sm:$0xf0]  ;;  %v6690_v2 = vpop.f32.mrf.mxu2  ;;  %v6666_v30 = vpop.f32.mrf.mxu0 }
 0x2e9   :  { %6929 = vmatpush.bf16.msrb.mxu1 %v13269_v61  ;;  %v15953_v61 = vld [vmem:[%s24558_s1 + $0x1744] sm:$0xf]  ;;  %v6691_v29 = vadd.f32 %v6690_v2, %v6678_v49  ;;  %v6703_v10 = vpop.f32.mrf.mxu3  ;;  %v13577_v49 = vor.u32 %v16058_v41, %v13574_v43  ;;  %v13101_v2 = vor.u32 %v15939_v45, %v13098_v48  ;;  %v10360_v30 = vld [vmem:[%s24558_s1 + $0x168] sm:$0xf]  ;;  %v10332_v41 = vld [vmem:[%s24558_s1 + $0x130] sm:$0xf] }
 0x2ea   :  { %6942 = vmatpush.bf16.msrb.mxu2 %v13493_v1  ;;  %v13633_v1 = vor.u32 %v16072_v55, %v13630_v60  ;;  %v13157_v21 = vor.u32 %v15953_v61, %v13154_v3  ;;  %v10388_v60 = vld [vmem:[%s24558_s1 + $0x1a0] sm:$0xf]  ;;  %v15250_v43 = vld [vmem:[%s24558_s1 + $0x148] sm:$0xf0]  ;;  %v11004_v45 = vld [vmem:[%s24558_s1 + $0x670] sm:$0xf] }
 0x2eb   :  { %6955 = vmatpush.bf16.msrb.mxu3 %v13717_v5  ;;  %v13378_v5 = vld [vmem:[%s24558_s1 + $0x191c] sm:$0xf0]  ;;  %v15418_v48 = vld [vmem:[%s24558_s1 + $0x688] sm:$0xf0] }
 0x2ec   :  { %6917 = vmatpush.bf16.msrb.mxu0 %v13017_v14  ;;  %v12933_v14 = vor.u32 %v15897_v59, %v12930_v0  ;;  %v13381_v24 = vor.u32 %v16009_v4, %v13378_v5  ;;  %v15320_v0 = vld [vmem:[%s24558_s1 + $0x378] sm:$0xf0]  ;;  %v10836_v61 = vld [vmem:[%s24558_s1 + $0x520] sm:$0xf] }
 0x2ed   :  { %6930 = vmatpush.bf16.msrb.mxu1 %v13241_v16  ;;  %v6679_v16 = vpop.f32.mrf.mxu1  ;;  %v11060_v4 = vld [vmem:[%s24558_s1 + $0x6e0] sm:$0xf]  ;;  %v15432_v5 = vld [vmem:[%s24558_s1 + $0x6f8] sm:$0xf0] }
 0x2ee   :  { %6943 = vmatpush.bf16.msrb.mxu2 %v13465_v17  ;;  %v21332_v17 = vadd.f32 %v6703_v10, %v6691_v29  ;;  %v13549_v29 = vor.u32 %v16051_v52, %v13546_v63  ;;  %v10584_v16 = vld [vmem:[%s24558_s1 + $0x328] sm:$0xf]  ;;  %v10304_v52 = vld [vmem:[%s24558_s1 + $0xf8] sm:$0xf]  ;;  %v15243_v63 = vld [vmem:[%s24558_s1 + $0x110] sm:$0xf0] }
 0x2ef   :  { %6956 = vmatpush.bf16.msrb.mxu3 %v13689_v28  ;;  %v12902_v28 = vld [vmem:[%s24558_s1 + $0x1564] sm:$0xf0] }
 0x2f0   :  { %6918 = vmatpush.bf16.msrb.mxu0 %v12989_v42  ;;  %v12905_v42 = vor.u32 %v15890_v33, %v12902_v28  ;;  %v6692_v55 = vpop.f32.mrf.mxu2  ;;  %v10808_v33 = vld [vmem:[%s24558_s1 + $0x4e8] sm:$0xf]  ;;  %v15369_v28 = vld [vmem:[%s24558_s1 + $0x500] sm:$0xf0] }
 0x2f1   :  { %6931 = vmatpush.bf16.msrb.mxu1 %v13213_v53  ;;  %v12874_v53 = vld [vmem:[%s24558_s1 + $0x152c] sm:$0xf0]  ;;  %v10809_v39 = vor.u32 %v15369_v28, %v10808_v33  ;;  %v10528_v55 = vld [vmem:[%s24558_s1 + $0x2b8] sm:$0xf] }
 0x2f2   :  { %6944 = vmatpush.bf16.msrb.mxu2 %v13437_v47  ;;  %v13129_v47 = vor.u32 %v15946_v32, %v13126_v35  ;;  %v12877_v59 = vor.u32 %v15883_v54, %v12874_v53  ;;  %v11032_v32 = vld [vmem:[%s24558_s1 + $0x6a8] sm:$0xf]  ;;  %v15306_v53 = vld [vmem:[%s24558_s1 + $0x308] sm:$0xf0] }
 0x2f3   :  { %6957 = vmatpush.bf16.msrb.mxu3 %v13661_v51  ;;  %v15995_v51 = vld [vmem:[%s24558_s1 + $0x1894] sm:$0xf] }
 0x2f4   :  { %6919 = vmatpush.bf16.msrb.mxu0 %v12961_v6  ;;  %v15264_v6 = vld [vmem:[%s24558_s1 + $0x1b8] sm:$0xf0]  ;;  %v13325_v3 = vor.u32 %v15995_v51, %v13322_v50  ;;  %v10333_v51 = vor.u32 %v15250_v43, %v10332_v41  ;;  %v15285_v43 = vld [vmem:[%s24558_s1 + $0x260] sm:$0xf0] }
 0x2f5   :  { %6932 = vmatpush.bf16.msrb.mxu1 %v13185_v57  ;;  %v10612_v57 = vld [vmem:[%s24558_s1 + $0x360] sm:$0xf]  ;;  %v10389_v10 = vor.u32 %v15264_v6, %v10388_v60  ;;  %v11005_v60 = vor.u32 %v15418_v48, %v11004_v45  ;;  %v15299_v6 = vld [vmem:[%s24558_s1 + $0x2d0] sm:$0xf0]  ;;  %v15397_v45 = vld [vmem:[%s24558_s1 + $0x5e0] sm:$0xf0] }
 0x2f6   :  { %6945 = vmatpush.bf16.msrb.mxu2 %v13409_v58  ;;  %v6705_v58 = vpop.f32.mrf.mxu3  ;;  %v10613_v11 = vor.u32 %v15320_v0, %v10612_v57  ;;  %v10752_v57 = vld [vmem:[%s24558_s1 + $0x478] sm:$0xf] }
 0x2f7   :  { %6958 = vmatpush.bf16.msrb.mxu3 %v13633_v1  ;;  %v15376_v1 = vld [vmem:[%s24558_s1 + $0x538] sm:$0xf0]  ;;  %v15355_v58 = vld [vmem:[%s24558_s1 + $0x490] sm:$0xf0]  ;;  %v10976_v0 = vld [vmem:[%s24558_s1 + $0x638] sm:$0xf] }
 0x2f8   :  { %6920 = vmatpush.bf16.msrb.mxu0 %v12933_v14  ;;  %v10837_v12 = vor.u32 %v15376_v1, %v10836_v61  ;;  %v15257_v14 = vld [vmem:[%s24558_s1 + $0x180] sm:$0xf0]  ;;  %v15411_v61 = vld [vmem:[%s24558_s1 + $0x650] sm:$0xf0] }
 0x2f9   :  { %6933 = vmatpush.bf16.msrb.mxu1 %v13157_v21  ;;  %v11061_v21 = vor.u32 %v15432_v5, %v11060_v4  ;;  %v10361_v35 = vor.u32 %v15257_v14, %v10360_v30  ;;  %v10529_v4 = vor.u32 %v15299_v6, %v10528_v55  ;;  %v10753_v5 = vor.u32 %v15355_v58, %v10752_v57  ;;  %v15292_v30 = vld [vmem:[%s24558_s1 + $0x298] sm:$0xf0]  ;;  %v10724_v14 = vld [vmem:[%s24558_s1 + $0x440] sm:$0xf]  ;;  %v10220_v55 = vld [vmem:[%s24558_s1 + $0x50] sm:$0xf] }
 0x2fa   :  { %6946 = vmatpush.bf16.msrb.mxu2 %v13381_v24  ;;  %v15313_v24 = vld [vmem:[%s24558_s1 + $0x340] sm:$0xf0]  ;;  %v10444_v6 = vld [vmem:[%s24558_s1 + $0x210] sm:$0xf]  ;;  %v15278_v58 = vld [vmem:[%s24558_s1 + $0x228] sm:$0xf0] }
 0x2fb   :  { %6959 = vmatpush.bf16.msrb.mxu3 %v13605_v62  ;;  %v15425_v62 = vld [vmem:[%s24558_s1 + $0x6c0] sm:$0xf0]  ;;  %v10585_v36 = vor.u32 %v15313_v24, %v10584_v16  ;;  %v15348_v16 = vld [vmem:[%s24558_s1 + $0x458] sm:$0xf0] }
 0x2fc   :  { %6921 = vmatpush.bf16.msrb.mxu0 %v12905_v42  ;;  %v10556_v42 = vld [vmem:[%s24558_s1 + $0x2f0] sm:$0xf]  ;;  %v11033_v54 = vor.u32 %v15425_v62, %v11032_v32  ;;  %v15404_v24 = vld [vmem:[%s24558_s1 + $0x618] sm:$0xf0]  ;;  %v10725_v32 = vor.u32 %v15348_v16, %v10724_v14  ;;  %v10248_v62 = vld [vmem:[%s24558_s1 + $0x88] sm:$0xf] }
 0x2fd   :  { %6934 = vmatpush.bf16.msrb.mxu1 %v13129_v47  ;;  %v10780_v47 = vld [vmem:[%s24558_s1 + $0x4b0] sm:$0xf]  ;;  %v10864_v14 = vld [vmem:[%s24558_s1 + $0x558] sm:$0xf]  ;;  %v15383_v16 = vld [vmem:[%s24558_s1 + $0x570] sm:$0xf0] }
 0x2fe   :  { %6947 = vmatpush.bf16.msrb.mxu2 %v13353_v44  ;;  %v15362_v44 = vld [vmem:[%s24558_s1 + $0x4c8] sm:$0xf0] }
 0x2ff   :  { %6960 = vmatpush.bf16.msrb.mxu3 %v13577_v49  ;;  %v10557_v49 = vor.u32 %v15306_v53, %v10556_v42  ;;  %v10781_v50 = vor.u32 %v15362_v44, %v10780_v47  ;;  %v10696_v42 = vld [vmem:[%s24558_s1 + $0x408] sm:$0xf] }
 0x300   :  { %6922 = vmatpush.bf16.msrb.mxu0 %v12877_v59  ;;  %v6716_v59 = vpop.f32.mrf.mxu0  ;;  %v10920_v44 = vld [vmem:[%s24558_s1 + $0x5c8] sm:$0xf] }
 0x301   :  { %6935 = vmatpush.bf16.msrb.mxu1 %v13101_v2  ;;  %v6717_v1 = vadd.f32 %v6716_v59, %v21332_v17  ;;  %v10305_v2 = vor.u32 %v15243_v63, %v10304_v52  ;;  %v10977_v17 = vor.u32 %v15411_v61, %v10976_v0  ;;  %v10921_v57 = vor.u32 %v15397_v45, %v10920_v44  ;;  %v10668_v59 = vld [vmem:[%s24558_s1 + $0x3d0] sm:$0xf]  ;;  %v15334_v0 = vld [vmem:[%s24558_s1 + $0x3e8] sm:$0xf0] }
 0x302   :  { %6948 = vmatpush.bf16.msrb.mxu2 %v13325_v3  ;;  %v6729_v3 = vpop.f32.mrf.mxu1  ;;  %v10892_v61 = vld [vmem:[%s24558_s1 + $0x590] sm:$0xf] }
 0x303   :  { %6961 = vmatpush.bf16.msrb.mxu3 %v13549_v29  ;;  %6923 = vmatmul.bf16.vlgmr.msrb.gmra.mxu0 %v17420_v13  ;;  %v10276_v29 = vld [vmem:[%s24558_s1 + $0xc0] sm:$0xf] }
 0x304   :  { %6967 = vmatpush.bf16.msra.mxu0 %v10389_v10  ;;  %6936 = vmatmul.bf16.vlgmr.msrb.gmra.mxu1 %v17433_v20  ;;  %v15236_v10 = vld [vmem:[%s24558_s1 + $0xd8] sm:$0xf0] }
 0x305   :  { %6980 = vmatpush.bf16.msra.mxu1 %v10613_v11  ;;  %6949 = vmatmul.bf16.vlgmr.msrb.gmra.mxu2 %v17431_v19  ;;  %v10500_v11 = vld [vmem:[%s24558_s1 + $0x280] sm:$0xf]  ;;  %v10277_v33 = vor.u32 %v15236_v10, %v10276_v29  ;;  %v10669_v29 = vor.u32 %v15334_v0, %v10668_v59  ;;  %v10416_v10 = vld [vmem:[%s24558_s1 + $0x1d8] sm:$0xf] }
 0x306   :  { %6993 = vmatpush.bf16.msra.mxu2 %v10837_v12  ;;  %6962 = vmatmul.bf16.vlgmr.msrb.gmra.mxu3 %v17441_v26  ;;  %v6730_v12 = vadd.f32 %v6729_v3, %v6717_v1  ;;  %v10501_v28 = vor.u32 %v15292_v30, %v10500_v11  ;;  %v15390_v1 = vld [vmem:[%s24558_s1 + $0x5a8] sm:$0xf0]  ;;  %v10192_v3 = vld [vmem:[%s24558_s1 + $0x18] sm:$0xf]  ;;  %v15271_v11 = vld [vmem:[%s24558_s1 + $0x1f0] sm:$0xf0] }
 0x307   :  { %7006 = vmatpush.bf16.msra.mxu3 %v11061_v21  ;;  %v10948_v21 = vld [vmem:[%s24558_s1 + $0x600] sm:$0xf]  ;;  %v15327_v30 = vld [vmem:[%s24558_s1 + $0x3b0] sm:$0xf0] }
 0x308   :  { %6968 = vmatpush.bf16.msra.mxu0 %v10361_v35  ;;  %v15229_v35 = vld [vmem:[%s24558_s1 + $0xa0] sm:$0xf0]  ;;  %v6742_v41 = vpop.f32.mrf.mxu2  ;;  %v6718_v48 = vpop.f32.mrf.mxu0 }
 0x309   :  { %6981 = vmatpush.bf16.msra.mxu1 %v10585_v36  ;;  %v10472_v36 = vld [vmem:[%s24558_s1 + $0x248] sm:$0xf]  ;;  %v6743_v53 = vadd.f32 %v6742_v41, %v6730_v12  ;;  %v6755_v47 = vpop.f32.mrf.mxu3  ;;  %v10893_v12 = vor.u32 %v15390_v1, %v10892_v61  ;;  %v10417_v41 = vor.u32 %v15271_v11, %v10416_v10  ;;  %v11228_v61 = vld [vmem:[%s24558_s1 + $0x830] sm:$0xf]  ;;  %v15474_v1 = vld [vmem:[%s24558_s1 + $0x848] sm:$0xf0] }
 0x30a   :  { %6994 = vmatpush.bf16.msra.mxu2 %v10809_v39  ;;  %v10949_v39 = vor.u32 %v15404_v24, %v10948_v21  ;;  %v10473_v52 = vor.u32 %v15285_v43, %v10472_v36  ;;  %v11284_v24 = vld [vmem:[%s24558_s1 + $0x8a0] sm:$0xf]  ;;  %v11256_v48 = vld [vmem:[%s24558_s1 + $0x868] sm:$0xf]  ;;  %v11900_v10 = vld [vmem:[%s24558_s1 + $0xd70] sm:$0xf] }
 0x30b   :  { %7007 = vmatpush.bf16.msra.mxu3 %v11033_v54  ;;  %v15341_v54 = vld [vmem:[%s24558_s1 + $0x420] sm:$0xf0]  ;;  %v11732_v36 = vld [vmem:[%s24558_s1 + $0xc20] sm:$0xf]  ;;  %v15642_v11 = vld [vmem:[%s24558_s1 + $0xd88] sm:$0xf0] }
 0x30c   :  { %6969 = vmatpush.bf16.msra.mxu0 %v10333_v51  ;;  %v10249_v51 = vor.u32 %v15229_v35, %v10248_v62  ;;  %v10697_v63 = vor.u32 %v15341_v54, %v10696_v42  ;;  %v15544_v35 = vld [vmem:[%s24558_s1 + $0xa78] sm:$0xf0]  ;;  %v11956_v42 = vld [vmem:[%s24558_s1 + $0xde0] sm:$0xf] }
 0x30d   :  { %6982 = vmatpush.bf16.msra.mxu1 %v10557_v49  ;;  %v6731_v49 = vpop.f32.mrf.mxu1  ;;  %v15656_v54 = vld [vmem:[%s24558_s1 + $0xdf8] sm:$0xf0] }
 0x30e   :  { %6995 = vmatpush.bf16.msra.mxu2 %v10781_v50  ;;  %v21531_v50 = vadd.f32 %v6755_v47, %v6743_v53  ;;  %v10865_v53 = vor.u32 %v15383_v16, %v10864_v14  ;;  %v11480_v49 = vld [vmem:[%s24558_s1 + $0xa28] sm:$0xf]  ;;  %v15467_v14 = vld [vmem:[%s24558_s1 + $0x810] sm:$0xf0] }
 0x30f   :  { %7008 = vmatpush.bf16.msra.mxu3 %v11005_v60  ;;  %v15222_v60 = vld [vmem:[%s24558_s1 + $0x68] sm:$0xf0] }
 0x310   :  { %6970 = vmatpush.bf16.msra.mxu0 %v10305_v2  ;;  %v10221_v2 = vor.u32 %v15222_v60, %v10220_v55  ;;  %v6744_v21 = vpop.f32.mrf.mxu2  ;;  %v11704_v55 = vld [vmem:[%s24558_s1 + $0xbe8] sm:$0xf]  ;;  %v15593_v60 = vld [vmem:[%s24558_s1 + $0xc00] sm:$0xf0] }
 0x311   :  { %6983 = vmatpush.bf16.msra.mxu1 %v10529_v4  ;;  %v15215_v4 = vld [vmem:[%s24558_s1 + $0x30] sm:$0xf0]  ;;  %v11705_v0 = vor.u32 %v15593_v60, %v11704_v55  ;;  %v11901_v21 = vor.u32 %v15642_v11, %v11900_v10 }
 0x312   :  { %6996 = vmatpush.bf16.msra.mxu2 %v10753_v5  ;;  %v10445_v5 = vor.u32 %v15278_v58, %v10444_v6  ;;  %v10193_v62 = vor.u32 %v15215_v4, %v10192_v3  ;;  %v11928_v6 = vld [vmem:[%s24558_s1 + $0xda8] sm:$0xf]  ;;  %v15530_v4 = vld [vmem:[%s24558_s1 + $0xa08] sm:$0xf0] }
 0x313   :  { %7009 = vmatpush.bf16.msra.mxu3 %v10977_v17  ;;  %v10640_v17 = vld [vmem:[%s24558_s1 + $0x398] sm:$0xf] }
 0x314   :  { %6971 = vmatpush.bf16.msra.mxu0 %v10277_v33  ;;  %v15488_v33 = vld [vmem:[%s24558_s1 + $0x8b8] sm:$0xf0]  ;;  %v10641_v43 = vor.u32 %v15327_v30, %v10640_v17  ;;  %v11229_v17 = vor.u32 %v15474_v1, %v11228_v61  ;;  %v15509_v61 = vld [vmem:[%s24558_s1 + $0x960] sm:$0xf0]  ;;  %v11592_v1 = vld [vmem:[%s24558_s1 + $0xb08] sm:$0xf] }
 0x315   :  { %6984 = vmatpush.bf16.msra.mxu1 %v10501_v28  ;;  %v11508_v28 = vld [vmem:[%s24558_s1 + $0xa60] sm:$0xf]  ;;  %v11285_v47 = vor.u32 %v15488_v33, %v11284_v24  ;;  %v11648_v24 = vld [vmem:[%s24558_s1 + $0xb78] sm:$0xf]  ;;  %v15579_v33 = vld [vmem:[%s24558_s1 + $0xb90] sm:$0xf0] }
 0x316   :  { %6997 = vmatpush.bf16.msra.mxu2 %v10725_v32  ;;  %v6757_v32 = vpop.f32.mrf.mxu3  ;;  %v11509_v44 = vor.u32 %v15544_v35, %v11508_v28  ;;  %v11872_v28 = vld [vmem:[%s24558_s1 + $0xd38] sm:$0xf] }
 0x317   :  { %7010 = vmatpush.bf16.msra.mxu3 %v10949_v39  ;;  %v15600_v39 = vld [vmem:[%s24558_s1 + $0xc38] sm:$0xf0]  ;;  %v15635_v32 = vld [vmem:[%s24558_s1 + $0xd50] sm:$0xf0] }
 0x318   :  { %6972 = vmatpush.bf16.msra.mxu0 %v10249_v51  ;;  %v11733_v45 = vor.u32 %v15600_v39, %v11732_v36  ;;  %v15481_v51 = vld [vmem:[%s24558_s1 + $0x880] sm:$0xf0]  ;;  %v11649_v39 = vor.u32 %v15579_v33, %v11648_v24  ;;  %v15558_v24 = vld [vmem:[%s24558_s1 + $0xae8] sm:$0xf0]  ;;  %v11788_v33 = vld [vmem:[%s24558_s1 + $0xc90] sm:$0xf] }
 0x319   :  { %6985 = vmatpush.bf16.msra.mxu1 %v10473_v52  ;;  %v11957_v52 = vor.u32 %v15656_v54, %v11956_v42  ;;  %v11257_v58 = vor.u32 %v15481_v51, %v11256_v48  ;;  %v11396_v42 = vld [vmem:[%s24558_s1 + $0x980] sm:$0xf]  ;;  %v15572_v48 = vld [vmem:[%s24558_s1 + $0xb58] sm:$0xf0] }
 0x31a   :  { %6998 = vmatpush.bf16.msra.mxu2 %v10697_v63  ;;  %v15537_v63 = vld [vmem:[%s24558_s1 + $0xa40] sm:$0xf0]  ;;  %v11844_v51 = vld [vmem:[%s24558_s1 + $0xd00] sm:$0xf] }
 0x31b   :  { %7011 = vmatpush.bf16.msra.mxu3 %v10921_v57  ;;  %v15649_v57 = vld [vmem:[%s24558_s1 + $0xdc0] sm:$0xf0]  ;;  %v11481_v59 = vor.u32 %v15537_v63, %v11480_v49  ;;  %v15628_v49 = vld [vmem:[%s24558_s1 + $0xd18] sm:$0xf0] }
 0x31c   :  { %6973 = vmatpush.bf16.msra.mxu0 %v10221_v2  ;;  %v11452_v2 = vld [vmem:[%s24558_s1 + $0x9f0] sm:$0xf]  ;;  %v11929_v3 = vor.u32 %v15649_v57, %v11928_v6  ;;  %v11144_v6 = vld [vmem:[%s24558_s1 + $0x788] sm:$0xf]  ;;  %v15453_v57 = vld [vmem:[%s24558_s1 + $0x7a0] sm:$0xf0] }
 0x31d   :  { %6986 = vmatpush.bf16.msra.mxu1 %v10445_v5  ;;  %v11676_v5 = vld [vmem:[%s24558_s1 + $0xbb0] sm:$0xf]  ;;  %v11145_v10 = vor.u32 %v15453_v57, %v11144_v6  ;;  %v15824_v6 = vld [vmem:[%s24558_s1 + $0x1338] sm:$0xf0] }
 0x31e   :  { %6999 = vmatpush.bf16.msra.mxu2 %v10669_v29  ;;  %v15586_v29 = vld [vmem:[%s24558_s1 + $0xbc8] sm:$0xf0] }
 0x31f   :  { %7012 = vmatpush.bf16.msra.mxu3 %v10893_v12  ;;  %v11200_v12 = vld [vmem:[%s24558_s1 + $0x7f8] sm:$0xf]  ;;  %v11677_v30 = vor.u32 %v15586_v29, %v11676_v5  ;;  %v11816_v5 = vld [vmem:[%s24558_s1 + $0xcc8] sm:$0xf]  ;;  %v15621_v29 = vld [vmem:[%s24558_s1 + $0xce0] sm:$0xf0] }
 0x320   :  { %6974 = vmatpush.bf16.msra.mxu0 %v10193_v62  ;;  %v11201_v62 = vor.u32 %v15467_v14, %v11200_v12  ;;  %v6768_v35 = vpop.f32.mrf.mxu0  ;;  %v15446_v14 = vld [vmem:[%s24558_s1 + $0x768] sm:$0xf0] }
 0x321   :  { %6987 = vmatpush.bf16.msra.mxu1 %v10417_v41  ;;  %v11172_v41 = vld [vmem:[%s24558_s1 + $0x7c0] sm:$0xf] }
 0x322   :  { %7000 = vmatpush.bf16.msra.mxu2 %v10641_v43  ;;  %v15460_v43 = vld [vmem:[%s24558_s1 + $0x7d8] sm:$0xf0] }
 0x323   :  { %7013 = vmatpush.bf16.msra.mxu3 %v10865_v53  ;;  %6975 = vmatmul.bf16.vlgmr.msra.gmra.mxu0 %v16816_v9  ;;  %v11424_v9 = vld [vmem:[%s24558_s1 + $0x9b8] sm:$0xf]  ;;  %v6781_v53 = vpop.f32.mrf.mxu1  ;;  %v11173_v63 = vor.u32 %v15460_v43, %v11172_v41  ;;  %v15495_v43 = vld [vmem:[%s24558_s1 + $0x8f0] sm:$0xf0] }
 0x324   :  { %7019 = vmatpush.bf16.msrb.mxu0 %v11285_v47  ;;  %6988 = vmatmul.bf16.vlgmr.msra.gmra.mxu1 %v16853_v25  ;;  %v15523_v25 = vld [vmem:[%s24558_s1 + $0x9d0] sm:$0xf0]  ;;  %v11873_v47 = vor.u32 %v15635_v32, %v11872_v28  ;;  %v15614_v28 = vld [vmem:[%s24558_s1 + $0xca8] sm:$0xf0]  ;;  %v11312_v41 = vld [vmem:[%s24558_s1 + $0x8d8] sm:$0xf] }
 0x325   :  { %7032 = vmatpush.bf16.msrb.mxu1 %v11509_v44  ;;  %7001 = vmatmul.bf16.vlgmr.msra.gmra.mxu2 %v16814_v8  ;;  %v11453_v8 = vor.u32 %v15530_v4, %v11452_v2  ;;  %v11425_v36 = vor.u32 %v15523_v25, %v11424_v9  ;;  %v15516_v44 = vld [vmem:[%s24558_s1 + $0x998] sm:$0xf0]  ;;  %v15565_v2 = vld [vmem:[%s24558_s1 + $0xb20] sm:$0xf0]  ;;  %v11340_v9 = vld [vmem:[%s24558_s1 + $0x910] sm:$0xf]  ;;  %v11313_v57 = vor.u32 %v15495_v43, %v11312_v41 }
 0x326   :  { %7045 = vmatpush.bf16.msrb.mxu2 %v11733_v45  ;;  %7014 = vmatmul.bf16.vlgmr.msra.gmra.mxu3 %v16830_v15  ;;  %v16472_v15 = vld [vmem:[%s24560_s2] sm:$0x7f]  ;;  %v11397_v55 = vor.u32 %v15516_v44, %v11396_v42  ;;  %v11564_v25 = vld [vmem:[%s24558_s1 + $0xad0] sm:$0xf]  ;;  %v11536_v42 = vld [vmem:[%s24558_s1 + $0xa98] sm:$0xf] }
 0x327   :  { %7058 = vmatpush.bf16.msrb.mxu3 %v11957_v52  ;;  %v1102_v16 = vperm.slane %v16472_v15, 5  ;;  %v11620_v45 = vld [vmem:[%s24558_s1 + $0xb40] sm:$0xf]  ;;  %v11760_v44 = vld [vmem:[%s24558_s1 + $0xc58] sm:$0xf] }
 0x328   :  { %7020 = vmatpush.bf16.msrb.mxu0 %v11257_v58  ;;  %v11621_v60 = vor.u32 %v15572_v48, %v11620_v45  ;;  %v11368_v58 = vld [vmem:[%s24558_s1 + $0x948] sm:$0xf]  ;;  %v15607_v45 = vld [vmem:[%s24558_s1 + $0xc70] sm:$0xf0]  ;;  %v12096_v43 = vld [vmem:[%s24558_s1 + $0xef8] sm:$0xf] }
 0x329   :  { %7033 = vmatpush.bf16.msrb.mxu1 %v11481_v59  ;;  %v6769_v54 = vadd.f32 %v6768_v35, %v1102_v16  ;;  %v6794_v59 = vpop.f32.mrf.mxu2  ;;  %v6807_v4 = vpop.f32.mrf.mxu3  ;;  %v11369_v12 = vor.u32 %v15509_v61, %v11368_v58  ;;  %v11817_v16 = vor.u32 %v15621_v29, %v11816_v5  ;;  %v15439_v35 = vld [vmem:[%s24558_s1 + $0x730] sm:$0xf0]  ;;  %v11761_v61 = vor.u32 %v15607_v45, %v11760_v44  ;;  %v15705_v5 = vld [vmem:[%s24558_s1 + $0xf80] sm:$0xf0]  ;;  %v12376_v29 = vld [vmem:[%s24558_s1 + $0x1128] sm:$0xf] }
 0x32a   :  { %7046 = vmatpush.bf16.msrb.mxu2 %v11705_v0  ;;  %v11845_v0 = vor.u32 %v15628_v49, %v11844_v51  ;;  %v12180_v51 = vld [vmem:[%s24558_s1 + $0xfa0] sm:$0xf]  ;;  %v15712_v49 = vld [vmem:[%s24558_s1 + $0xfb8] sm:$0xf0]  ;;  %v15859_v44 = vld [vmem:[%s24558_s1 + $0x1450] sm:$0xf0] }
 0x32b   :  { %7059 = vmatpush.bf16.msrb.mxu3 %v11929_v3  ;;  %v6782_v52 = vadd.f32 %v6781_v53, %v6769_v54  ;;  %v6783_v15 = vpop.f32.mrf.mxu1  ;;  %v11789_v53 = vor.u32 %v15614_v28, %v11788_v33  ;;  %v15754_v28 = vld [vmem:[%s24558_s1 + $0x1108] sm:$0xf0] }
 0x32c   :  { %7021 = vmatpush.bf16.msrb.mxu0 %v11229_v17  ;;  %v6770_v17 = vpop.f32.mrf.mxu0 }
 0x32d   :  { %7034 = vmatpush.bf16.msrb.mxu1 %v11453_v8  ;;  %v6795_v3 = vadd.f32 %v6794_v59, %v6782_v52  ;;  %v11593_v8 = vor.u32 %v15565_v2, %v11592_v1  ;;  %v12404_v52 = vld [vmem:[%s24558_s1 + $0x1160] sm:$0xf]  ;;  %v12181_v1 = vor.u32 %v15712_v49, %v12180_v51  ;;  %v15761_v17 = vld [vmem:[%s24558_s1 + $0x1140] sm:$0xf0] }
 0x32e   :  { %7047 = vmatpush.bf16.msrb.mxu2 %v11677_v30  ;;  %v11116_v30 = vld [vmem:[%s24558_s1 + $0x750] sm:$0xf]  ;;  %v12852_v59 = vld [vmem:[%s24558_s1 + $0x14e0] sm:$0xf]  ;;  %v12377_v15 = vor.u32 %v15761_v17, %v12376_v29  ;;  %v15677_v29 = vld [vmem:[%s24558_s1 + $0xea0] sm:$0xf0] }
 0x32f   :  { %7060 = vmatpush.bf16.msrb.mxu3 %v11901_v21  ;;  %v21732_v11 = vadd.f32 %v6807_v4, %v6795_v3  ;;  %v15502_v21 = vld [vmem:[%s24558_s1 + $0x928] sm:$0xf0]  ;;  %v11117_v32 = vor.u32 %v15446_v14, %v11116_v30  ;;  %v12152_v4 = vld [vmem:[%s24558_s1 + $0xf68] sm:$0xf]  ;;  %v15873_v14 = vld [vmem:[%s24558_s1 + $0x14c0] sm:$0xf0] }
 0x330   :  { %7022 = vmatpush.bf16.msrb.mxu0 %v11201_v62  ;;  %v11088_v62 = vld [vmem:[%s24558_s1 + $0x718] sm:$0xf]  ;;  %v12824_v30 = vld [vmem:[%s24558_s1 + $0x14a8] sm:$0xf] }
 0x331   :  { %7035 = vmatpush.bf16.msrb.mxu1 %v11425_v36  ;;  %v11341_v36 = vor.u32 %v15502_v21, %v11340_v9  ;;  %v6796_v54 = vpop.f32.mrf.mxu2  ;;  %v6809_v48 = vpop.f32.mrf.mxu3  ;;  %v12153_v9 = vor.u32 %v15705_v5, %v12152_v4  ;;  %v12124_v21 = vld [vmem:[%s24558_s1 + $0xf30] sm:$0xf]  ;;  %v12825_v33 = vor.u32 %v15873_v14, %v12824_v30  ;;  %v12040_v5 = vld [vmem:[%s24558_s1 + $0xe88] sm:$0xf]  ;;  %v15789_v14 = vld [vmem:[%s24558_s1 + $0x1220] sm:$0xf0] }
 0x332   :  { %7048 = vmatpush.bf16.msrb.mxu2 %v11649_v39  ;;  %v11565_v39 = vor.u32 %v15558_v24, %v11564_v25  ;;  %v15698_v25 = vld [vmem:[%s24558_s1 + $0xf48] sm:$0xf0]  ;;  %v12348_v24 = vld [vmem:[%s24558_s1 + $0x10f0] sm:$0xf]  ;;  %v12544_v54 = vld [vmem:[%s24558_s1 + $0x1278] sm:$0xf] }
 0x333   :  { %7061 = vmatpush.bf16.msrb.mxu3 %v11873_v47  ;;  %v15551_v47 = vld [vmem:[%s24558_s1 + $0xab0] sm:$0xf0]  ;;  %v12488_v30 = vld [vmem:[%s24558_s1 + $0x1208] sm:$0xf] }
 0x334   :  { %7023 = vmatpush.bf16.msrb.mxu0 %v11173_v63  ;;  %v11089_v63 = vor.u32 %v15439_v35, %v11088_v62  ;;  %v11537_v58 = vor.u32 %v15551_v47, %v11536_v42  ;;  %v15810_v62 = vld [vmem:[%s24558_s1 + $0x12c8] sm:$0xf0]  ;;  %v12796_v35 = vld [vmem:[%s24558_s1 + $0x1470] sm:$0xf]  ;;  %v15691_v42 = vld [vmem:[%s24558_s1 + $0xf10] sm:$0xf0] }
 0x335   :  { %7036 = vmatpush.bf16.msrb.mxu1 %v11397_v55  ;;  %v15768_v55 = vld [vmem:[%s24558_s1 + $0x1178] sm:$0xf0]  ;;  %v12768_v47 = vld [vmem:[%s24558_s1 + $0x1438] sm:$0xf]  ;;  %v12097_v45 = vor.u32 %v15691_v42, %v12096_v43  ;;  %v12460_v43 = vld [vmem:[%s24558_s1 + $0x11d0] sm:$0xf] }
 0x336   :  { %7049 = vmatpush.bf16.msrb.mxu2 %v11621_v60  ;;  %v12628_v60 = vld [vmem:[%s24558_s1 + $0x1320] sm:$0xf]  ;;  %v12405_v2 = vor.u32 %v15768_v55, %v12404_v52  ;;  %v15782_v42 = vld [vmem:[%s24558_s1 + $0x11e8] sm:$0xf0] }
 0x337   :  { %7062 = vmatpush.bf16.msrb.mxu3 %v11845_v0  ;;  %v15880_v0 = vld [vmem:[%s24558_s1 + $0x14f8] sm:$0xf0]  ;;  %v12629_v3 = vor.u32 %v15824_v6, %v12628_v60  ;;  %v12068_v52 = vld [vmem:[%s24558_s1 + $0xec0] sm:$0xf] }
 0x338   :  { %7024 = vmatpush.bf16.msrb.mxu0 %v11145_v10  ;;  %v12853_v10 = vor.u32 %v15880_v0, %v12852_v59  ;;  %v12292_v55 = vld [vmem:[%s24558_s1 + $0x1080] sm:$0xf]  ;;  %v15796_v0 = vld [vmem:[%s24558_s1 + $0x1258] sm:$0xf0] }
 0x339   :  { %7037 = vmatpush.bf16.msrb.mxu1 %v11369_v12  ;;  %v12600_v12 = vld [vmem:[%s24558_s1 + $0x12e8] sm:$0xf]  ;;  %v12516_v59 = vld [vmem:[%s24558_s1 + $0x1240] sm:$0xf] }
 0x33a   :  { %7050 = vmatpush.bf16.msrb.mxu2 %v11593_v8  ;;  %v15817_v8 = vld [vmem:[%s24558_s1 + $0x1300] sm:$0xf0]  ;;  %v12517_v4 = vor.u32 %v15796_v0, %v12516_v59  ;;  %v13300_v59 = vld [vmem:[%s24558_s1 + $0x1860] sm:$0xf] }
 0x33b   :  { %7063 = vmatpush.bf16.msrb.mxu3 %v11817_v16  ;;  %v12601_v16 = vor.u32 %v15817_v8, %v12600_v12  ;;  %v15733_v8 = vld [vmem:[%s24558_s1 + $0x1060] sm:$0xf0] }
 0x33c   :  { %7025 = vmatpush.bf16.msrb.mxu0 %v11117_v32  ;;  %v12572_v32 = vld [vmem:[%s24558_s1 + $0x12b0] sm:$0xf] }
 0x33d   :  { %7038 = vmatpush.bf16.msrb.mxu1 %v11341_v36  ;;  %v12125_v36 = vor.u32 %v15698_v25, %v12124_v21  ;;  %v12573_v41 = vor.u32 %v15810_v62, %v12572_v32  ;;  %v15845_v21 = vld [vmem:[%s24558_s1 + $0x13e0] sm:$0xf0]  ;;  %v12041_v25 = vor.u32 %v15677_v29, %v12040_v5  ;;  %v12489_v32 = vor.u32 %v15789_v14, %v12488_v30  ;;  %v12012_v62 = vld [vmem:[%s24558_s1 + $0xe50] sm:$0xf]  ;;  %v16104_v5 = vld [vmem:[%s24558_s1 + $0x1bf8] sm:$0xf0] }
 0x33e   :  { %7051 = vmatpush.bf16.msrb.mxu2 %v11565_v39  ;;  %v12349_v39 = vor.u32 %v15754_v28, %v12348_v24  ;;  %v15929_v30 = vld [vmem:[%s24558_s1 + $0x1680] sm:$0xf0]  ;;  %v13272_v14 = vld [vmem:[%s24558_s1 + $0x1828] sm:$0xf] }
 0x33f   :  { %7064 = vmatpush.bf16.msrb.mxu3 %v11789_v53  ;;  %v15803_v53 = vld [vmem:[%s24558_s1 + $0x1290] sm:$0xf0] }
 0x340   :  { %7026 = vmatpush.bf16.msrb.mxu0 %v11089_v63  ;;  %v6820_v48 = vpop.f32.mrf.mxu0  ;;  %v12545_v49 = vor.u32 %v15803_v53, %v12544_v54  ;;  %v15684_v63 = vld [vmem:[%s24558_s1 + $0xed8] sm:$0xf0]  ;;  %v11984_v54 = vld [vmem:[%s24558_s1 + $0xe18] sm:$0xf]  ;;  %v15663_v53 = vld [vmem:[%s24558_s1 + $0xe30] sm:$0xf0] }
 0x341   :  { %7039 = vmatpush.bf16.msrb.mxu1 %v11313_v57  ;;  %v6821_v60 = vadd.f32 %v6820_v48, %v21732_v11  ;;  %v6833_v6 = vpop.f32.mrf.mxu1  ;;  %v12769_v57 = vor.u32 %v15859_v44, %v12768_v47  ;;  %v15852_v11 = vld [vmem:[%s24558_s1 + $0x1418] sm:$0xf0]  ;;  %v12461_v44 = vor.u32 %v15782_v42, %v12460_v43  ;;  %v15719_v48 = vld [vmem:[%s24558_s1 + $0xff0] sm:$0xf0]  ;;  %v11985_v0 = vor.u32 %v15663_v53, %v11984_v54  ;;  %v13468_v43 = vld [vmem:[%s24558_s1 + $0x19b0] sm:$0xf] }
 0x342   :  { %7052 = vmatpush.bf16.msrb.mxu2 %v11537_v58  ;;  %v15740_v58 = vld [vmem:[%s24558_s1 + $0x1098] sm:$0xf0]  ;;  %v16034_v42 = vld [vmem:[%s24558_s1 + $0x19c8] sm:$0xf0]  ;;  %v13216_v53 = vld [vmem:[%s24558_s1 + $0x17b8] sm:$0xf] }
 0x343   :  { %7065 = vmatpush.bf16.msrb.mxu3 %v11761_v61  ;;  %7027 = vmatmul.bf16.vlgmr.msrb.gmra.mxu0 %v17005_v37  ;;  %v12320_v37 = vld [vmem:[%s24558_s1 + $0x10b8] sm:$0xf]  ;;  %v12740_v61 = vld [vmem:[%s24558_s1 + $0x1400] sm:$0xf]  ;;  %v13469_v54 = vor.u32 %v16034_v42, %v13468_v43  ;;  %v15950_v43 = vld [vmem:[%s24558_s1 + $0x1728] sm:$0xf0] }
 0x344   :  { %7071 = vmatpush.bf16.msra.mxu0 %v12181_v1  ;;  %7040 = vmatmul.bf16.vlgmr.msrb.gmra.mxu1 %v17009_v40  ;;  %v15747_v40 = vld [vmem:[%s24558_s1 + $0x10d0] sm:$0xf0]  ;;  %v6834_v1 = vadd.f32 %v6833_v6, %v6821_v60  ;;  %v12741_v12 = vor.u32 %v15852_v11, %v12740_v61  ;;  %v15992_v61 = vld [vmem:[%s24558_s1 + $0x1878] sm:$0xf0]  ;;  %v13524_v11 = vld [vmem:[%s24558_s1 + $0x1a20] sm:$0xf] }
 0x345   :  { %7084 = vmatpush.bf16.msra.mxu1 %v12405_v2  ;;  %7053 = vmatmul.bf16.vlgmr.msrb.gmra.mxu2 %v16997_v34  ;;  %v15866_v34 = vld [vmem:[%s24558_s1 + $0x1488] sm:$0xf0]  ;;  %v12321_v51 = vor.u32 %v15747_v40, %v12320_v37  ;;  %v12069_v2 = vor.u32 %v15684_v63, %v12068_v52  ;;  %v12684_v37 = vld [vmem:[%s24558_s1 + $0x1390] sm:$0xf]  ;;  %v15775_v63 = vld [vmem:[%s24558_s1 + $0x11b0] sm:$0xf0] }
 0x346   :  { %7097 = vmatpush.bf16.msra.mxu2 %v12629_v3  ;;  %7066 = vmatmul.bf16.vlgmr.msrb.gmra.mxu3 %v17007_v38  ;;  %v12797_v38 = vor.u32 %v15866_v34, %v12796_v35  ;;  %v12293_v3 = vor.u32 %v15740_v58, %v12292_v55  ;;  %v15670_v35 = vld [vmem:[%s24558_s1 + $0xe68] sm:$0xf0]  ;;  %v12236_v34 = vld [vmem:[%s24558_s1 + $0x1010] sm:$0xf]  ;;  %v12656_v55 = vld [vmem:[%s24558_s1 + $0x1358] sm:$0xf] }
 0x347   :  { %7110 = vmatpush.bf16.msra.mxu3 %v12853_v10  ;;  %v12264_v10 = vld [vmem:[%s24558_s1 + $0x1048] sm:$0xf]  ;;  %v12013_v40 = vor.u32 %v15670_v35, %v12012_v62  ;;  %v15831_v60 = vld [vmem:[%s24558_s1 + $0x1370] sm:$0xf0]  ;;  %v15936_v58 = vld [vmem:[%s24558_s1 + $0x16b8] sm:$0xf0] }
 0x348   :  { %7072 = vmatpush.bf16.msra.mxu0 %v12153_v9  ;;  %v6846_v17 = vpop.f32.mrf.mxu2  ;;  %v12265_v28 = vor.u32 %v15733_v8, %v12264_v10  ;;  %v12657_v29 = vor.u32 %v15831_v60, %v12656_v55  ;;  %v13048_v8 = vld [vmem:[%s24558_s1 + $0x1668] sm:$0xf]  ;;  %v13020_v35 = vld [vmem:[%s24558_s1 + $0x1630] sm:$0xf] }
 0x349   :  { %7085 = vmatpush.bf16.msra.mxu1 %v12377_v15  ;;  %v6847_v9 = vadd.f32 %v6846_v17, %v6834_v1  ;;  %v6859_v15 = vpop.f32.mrf.mxu3  ;;  %v16048_v1 = vld [vmem:[%s24558_s1 + $0x1a38] sm:$0xf0]  ;;  %v13301_v17 = vor.u32 %v15992_v61, %v13300_v59  ;;  %v13188_v59 = vld [vmem:[%s24558_s1 + $0x1780] sm:$0xf]  ;;  %v13356_v42 = vld [vmem:[%s24558_s1 + $0x18d0] sm:$0xf] }
 0x34a   :  { %7098 = vmatpush.bf16.msra.mxu2 %v12601_v16  ;;  %v12712_v16 = vld [vmem:[%s24558_s1 + $0x13c8] sm:$0xf]  ;;  %v15964_v61 = vld [vmem:[%s24558_s1 + $0x1798] sm:$0xf0] }
 0x34b   :  { %7111 = vmatpush.bf16.msra.mxu3 %v12825_v33  ;;  %v21931_v24 = vadd.f32 %v6859_v15, %v6847_v9  ;;  %v6822_v33 = vpop.f32.mrf.mxu0  ;;  %v15985_v15 = vld [vmem:[%s24558_s1 + $0x1840] sm:$0xf0] }
 0x34c   :  { %7073 = vmatpush.bf16.msra.mxu0 %v12125_v36  ;;  %v6835_v36 = vpop.f32.mrf.mxu1  ;;  %v16097_v33 = vld [vmem:[%s24558_s1 + $0x1bc0] sm:$0xf0] }
 0x34d   :  { %7086 = vmatpush.bf16.msra.mxu1 %v12349_v39  ;;  %v12713_v39 = vor.u32 %v15845_v21, %v12712_v16  ;;  %v13496_v16 = vld [vmem:[%s24558_s1 + $0x19e8] sm:$0xf]  ;;  %v16041_v21 = vld [vmem:[%s24558_s1 + $0x1a00] sm:$0xf0]  ;;  %v13244_v36 = vld [vmem:[%s24558_s1 + $0x17f0] sm:$0xf] }
 0x34e   :  { %7099 = vmatpush.bf16.msra.mxu2 %v12573_v41  ;;  %v15726_v41 = vld [vmem:[%s24558_s1 + $0x1028] sm:$0xf0]  ;;  %v13497_v62 = vor.u32 %v16041_v21, %v13496_v16  ;;  %v13608_v21 = vld [vmem:[%s24558_s1 + $0x1ac8] sm:$0xf] }
 0x34f   :  { %7112 = vmatpush.bf16.msra.mxu3 %v12797_v38  ;;  %v15838_v38 = vld [vmem:[%s24558_s1 + $0x13a8] sm:$0xf0]  ;;  %v12237_v47 = vor.u32 %v15726_v41, %v12236_v34 }
 0x350   :  { %7074 = vmatpush.bf16.msra.mxu0 %v12097_v45  ;;  %v12208_v45 = vld [vmem:[%s24558_s1 + $0xfd8] sm:$0xf]  ;;  %v12685_v52 = vor.u32 %v15838_v38, %v12684_v37  ;;  %v15922_v34 = vld [vmem:[%s24558_s1 + $0x1648] sm:$0xf0] }
 0x351   :  { %7087 = vmatpush.bf16.msra.mxu1 %v12321_v51  ;;  %v12432_v51 = vld [vmem:[%s24558_s1 + $0x1198] sm:$0xf]  ;;  %v6861_v6 = vpop.f32.mrf.mxu3  ;;  %v15978_v41 = vld [vmem:[%s24558_s1 + $0x1808] sm:$0xf0]  ;;  %v13021_v38 = vor.u32 %v15922_v34, %v13020_v35  ;;  %v12908_v34 = vld [vmem:[%s24558_s1 + $0x1550] sm:$0xf] }
 0x352   :  { %7100 = vmatpush.bf16.msra.mxu2 %v12545_v49  ;;  %v6848_v49 = vpop.f32.mrf.mxu2  ;;  %v16090_v37 = vld [vmem:[%s24558_s1 + $0x1b88] sm:$0xf0] }
 0x353   :  { %7113 = vmatpush.bf16.msra.mxu3 %v12769_v57  ;;  %v13076_v57 = vld [vmem:[%s24558_s1 + $0x16a0] sm:$0xf]  ;;  %v16083_v49 = vld [vmem:[%s24558_s1 + $0x1b50] sm:$0xf0] }
 0x354   :  { %7075 = vmatpush.bf16.msra.mxu0 %v12069_v2  ;;  %v12209_v2 = vor.u32 %v15719_v48, %v12208_v45  ;;  %v13077_v10 = vor.u32 %v15936_v58, %v13076_v57  ;;  %v16027_v45 = vld [vmem:[%s24558_s1 + $0x1990] sm:$0xf0]  ;;  %v12964_v57 = vld [vmem:[%s24558_s1 + $0x15c0] sm:$0xf]  ;;  %v15908_v58 = vld [vmem:[%s24558_s1 + $0x15d8] sm:$0xf0] }
 0x355   :  { %7088 = vmatpush.bf16.msra.mxu1 %v12293_v3  ;;  %v12433_v3 = vor.u32 %v15775_v63, %v12432_v51  ;;  %v13664_v51 = vld [vmem:[%s24558_s1 + $0x1b38] sm:$0xf] }
 0x356   :  { %7101 = vmatpush.bf16.msra.mxu2 %v12517_v4  ;;  %v13748_v4 = vld [vmem:[%s24558_s1 + $0x1be0] sm:$0xf] }
 0x357   :  { %7114 = vmatpush.bf16.msra.mxu3 %v12741_v12  ;;  %v13525_v12 = vor.u32 %v16048_v1, %v13524_v11  ;;  %v13749_v9 = vor.u32 %v16104_v5, %v13748_v4  ;;  %v13412_v11 = vld [vmem:[%s24558_s1 + $0x1940] sm:$0xf]  ;;  %v16020_v1 = vld [vmem:[%s24558_s1 + $0x1958] sm:$0xf0]  ;;  %v12965_v4 = vor.u32 %v15908_v58, %v12964_v57  ;;  %v13189_v5 = vor.u32 %v15964_v61, %v13188_v59  ;;  %v16167_v58 = vld [vmem:[%s24561_s3 + $0x1ec] sm:$0xf0] }
 0x358   :  { %7076 = vmatpush.bf16.msra.mxu0 %v12041_v25  ;;  %v13720_v25 = vld [vmem:[%s24558_s1 + $0x1ba8] sm:$0xf]  ;;  %v14120_v59 = vld [vmem:[%s24561_s3 + $0x2e0] sm:$0xf] }
 0x359   :  { %7089 = vmatpush.bf16.msra.mxu1 %v12265_v28  ;;  %v13049_v28 = vor.u32 %v15929_v30, %v13048_v8 }
 0x35a   :  { %7102 = vmatpush.bf16.msra.mxu2 %v12489_v32  ;;  %v13273_v32 = vor.u32 %v15985_v15, %v13272_v14  ;;  %v15957_v14 = vld [vmem:[%s24558_s1 + $0x1760] sm:$0xf0] }
 0x35b   :  { %7115 = vmatpush.bf16.msra.mxu3 %v12713_v39  ;;  %v13721_v39 = vor.u32 %v16097_v33, %v13720_v25  ;;  %v16013_v15 = vld [vmem:[%s24558_s1 + $0x1920] sm:$0xf0] }
 0x35c   :  { %7077 = vmatpush.bf16.msra.mxu0 %v12013_v40  ;;  %v13245_v40 = vor.u32 %v15978_v41, %v13244_v36  ;;  %v16069_v25 = vld [vmem:[%s24558_s1 + $0x1ae0] sm:$0xf0]  ;;  %v15894_v36 = vld [vmem:[%s24558_s1 + $0x1568] sm:$0xf0] }
 0x35d   :  { %7090 = vmatpush.bf16.msra.mxu1 %v12237_v47  ;;  %v15971_v47 = vld [vmem:[%s24558_s1 + $0x17d0] sm:$0xf0]  ;;  %v13609_v41 = vor.u32 %v16069_v25, %v13608_v21  ;;  %v14232_v21 = vld [vmem:[%s24561_s3 + $0x3c0] sm:$0xf]  ;;  %v16227_v25 = vld [vmem:[%s24561_s3 + $0x3cc] sm:$0xf0] }
 0x35e   :  { %7103 = vmatpush.bf16.msra.mxu2 %v12461_v44  ;;  %v13440_v44 = vld [vmem:[%s24558_s1 + $0x1978] sm:$0xf]  ;;  %v13217_v60 = vor.u32 %v15971_v47, %v13216_v53  ;;  %v15943_v47 = vld [vmem:[%s24558_s1 + $0x16f0] sm:$0xf0] }
 0x35f   :  { %7116 = vmatpush.bf16.msra.mxu3 %v12685_v52  ;;  %v13441_v6 = vor.u32 %v16027_v45, %v13440_v44  ;;  %v13328_v44 = vld [vmem:[%s24558_s1 + $0x1898] sm:$0xf] }
 0x360   :  { %7078 = vmatpush.bf16.msra.mxu0 %v11985_v0  ;;  %v6872_v48 = vpop.f32.mrf.mxu0 }
 0x361   :  { %7091 = vmatpush.bf16.msra.mxu1 %v12209_v2  ;;  %v6873_v52 = vadd.f32 %v6872_v48, %v21931_v24  ;;  %v6885_v55 = vpop.f32.mrf.mxu1  ;;  %v13665_v24 = vor.u32 %v16083_v49, %v13664_v51  ;;  %v13636_v2 = vld [vmem:[%s24558_s1 + $0x1b00] sm:$0xf]  ;;  %v15999_v48 = vld [vmem:[%s24558_s1 + $0x18b0] sm:$0xf0]  ;;  %v13552_v51 = vld [vmem:[%s24558_s1 + $0x1a58] sm:$0xf] }
 0x362   :  { %7104 = vmatpush.bf16.msra.mxu2 %v12433_v3  ;;  %v16076_v3 = vld [vmem:[%s24558_s1 + $0x1b18] sm:$0xf0]  ;;  %v16055_v49 = vld [vmem:[%s24558_s1 + $0x1a70] sm:$0xf0] }
 0x363   :  { %7117 = vmatpush.bf16.msra.mxu3 %v12657_v29  ;;  %7079 = vmatmul.bf16.vlgmr.msra.gmra.mxu0 %v17204_v18  ;;  %v13692_v18 = vld [vmem:[%s24558_s1 + $0x1b70] sm:$0xf]  ;;  %v22091_v0 = vadd.f32 %v6885_v55, %v6873_v52  ;;  %v13413_v29 = vor.u32 %v16020_v1, %v13412_v11  ;;  %v13637_v8 = vor.u32 %v16076_v3, %v13636_v2  ;;  %v14248_v1 = vld [vmem:[%s24561_s3 + $0x3e0] sm:$0xf] }
 0x364   :  { %7123 = vmatpush.bf16.msrb.mxu0 %v13077_v10  ;;  %7092 = vmatmul.bf16.vlgmr.msra.gmra.mxu1 %v17217_v23  ;;  %v15915_v23 = vld [vmem:[%s24558_s1 + $0x1610] sm:$0xf0]  ;;  %v12936_v10 = vld [vmem:[%s24558_s1 + $0x1588] sm:$0xf]  ;;  %v16135_v55 = vld [vmem:[%s24561_s3 + $0xec] sm:$0xf0]  ;;  %v13329_v11 = vor.u32 %v15999_v48, %v13328_v44  ;;  %v13553_v3 = vor.u32 %v16055_v49, %v13552_v51 }
 0x365   :  { %7136 = vmatpush.bf16.msrb.mxu1 %v13301_v17  ;;  %7105 = vmatmul.bf16.vlgmr.msra.gmra.mxu2 %v17215_v22  ;;  %v12992_v22 = vld [vmem:[%s24558_s1 + $0x15f8] sm:$0xf]  ;;  %v15901_v17 = vld [vmem:[%s24558_s1 + $0x15a0] sm:$0xf0]  ;;  %v16231_v2 = vld [vmem:[%s24561_s3 + $0x3ec] sm:$0xf0] }
 0x366   :  { %7149 = vmatpush.bf16.msrb.mxu2 %v13525_v12  ;;  %7118 = vmatmul.bf16.vlgmr.msra.gmra.mxu3 %v17225_v27  ;;  %v13693_v27 = vor.u32 %v16090_v37, %v13692_v18  ;;  %v12993_v63 = vor.u32 %v15915_v23, %v12992_v22  ;;  %v13160_v12 = vld [vmem:[%s24558_s1 + $0x1748] sm:$0xf]  ;;  %v16006_v18 = vld [vmem:[%s24558_s1 + $0x18e8] sm:$0xf0]  ;;  %v13580_v37 = vld [vmem:[%s24558_s1 + $0x1a90] sm:$0xf] }
 0x367   :  { %7162 = vmatpush.bf16.msrb.mxu3 %v13749_v9  ;;  %v13384_v9 = vld [vmem:[%s24558_s1 + $0x1908] sm:$0xf]  ;;  %v15887_v22 = vld [vmem:[%s24558_s1 + $0x1530] sm:$0xf0]  ;;  %v13357_v53 = vor.u32 %v16006_v18, %v13356_v42  ;;  %v16223_v42 = vld [vmem:[%s24561_s3 + $0x3ac] sm:$0xf0] }
 0x368   :  { %7124 = vmatpush.bf16.msrb.mxu0 %v13049_v28  ;;  %v22117_v30 = vpop.f32.mrf.mxu2  ;;  %v6874_v33 = vpop.f32.mrf.mxu0  ;;  %v12937_v28 = vor.u32 %v15901_v17, %v12936_v10  ;;  %v13385_v35 = vor.u32 %v16013_v15, %v13384_v9  ;;  %v13848_v10 = vld [vmem:[%s24561_s3 + $0xc0] sm:$0xf]  ;;  %v16131_v17 = vld [vmem:[%s24561_s3 + $0xcc] sm:$0xf0] }
 0x369   :  { %7137 = vmatpush.bf16.msrb.mxu1 %v13273_v32  ;;  %v22128_v16 = vpop.f32.mrf.mxu3  ;;  %v6887_v32 = vpop.f32.mrf.mxu1  ;;  %v14104_v9 = vld [vmem:[%s24561_s3 + $0x2c0] sm:$0xf]  ;;  %v16195_v15 = vld [vmem:[%s24561_s3 + $0x2cc] sm:$0xf0]  ;;  %v13849_v33 = vor.u32 %v16131_v17, %v13848_v10 }
 0x36a   :  { %7150 = vmatpush.bf16.msrb.mxu2 %v13497_v62  ;;  %v13161_v62 = vor.u32 %v15957_v14, %v13160_v12  ;;  %v13976_v12 = vld [vmem:[%s24561_s3 + $0x1c0] sm:$0xf]  ;;  %v16163_v14 = vld [vmem:[%s24561_s3 + $0x1cc] sm:$0xf0]  ;;  %v14105_v32 = vor.u32 %v16195_v15, %v14104_v9 }
 0x36b   :  { %7163 = vmatpush.bf16.msrb.mxu3 %v13721_v39  ;;  %v13132_v39 = vld [vmem:[%s24558_s1 + $0x1710] sm:$0xf]  ;;  %v13800_v49 = vld [vmem:[%s24561_s3 + $0x60] sm:$0xf] }
 0x36c   :  { %7125 = vmatpush.bf16.msrb.mxu0 %v13021_v38  ;;  %v16062_v38 = vld [vmem:[%s24558_s1 + $0x1aa8] sm:$0xf0]  ;;  %v13133_v23 = vor.u32 %v15950_v43, %v13132_v39  ;;  %v16159_v39 = vld [vmem:[%s24561_s3 + $0x1ac] sm:$0xf0]  ;;  %v14040_v10 = vld [vmem:[%s24561_s3 + $0x240] sm:$0xf] }
 0x36d   :  { %7138 = vmatpush.bf16.msrb.mxu1 %v13245_v40  ;;  %v12909_v40 = vor.u32 %v15894_v36, %v12908_v34  ;;  %v13581_v45 = vor.u32 %v16062_v38, %v13580_v37  ;;  %v13960_v34 = vld [vmem:[%s24561_s3 + $0x1a0] sm:$0xf]  ;;  %v14233_v36 = vor.u32 %v16227_v25, %v14232_v21  ;;  %v16191_v43 = vld [vmem:[%s24561_s3 + $0x2ac] sm:$0xf0] }
 0x36e   :  { %7151 = vmatpush.bf16.msrb.mxu2 %v13469_v54  ;;  %v12880_v54 = vld [vmem:[%s24558_s1 + $0x1518] sm:$0xf]  ;;  %v13961_v37 = vor.u32 %v16159_v39, %v13960_v34  ;;  %v16179_v17 = vld [vmem:[%s24561_s3 + $0x24c] sm:$0xf0] }
 0x36f   :  { %7164 = vmatpush.bf16.msrb.mxu3 %v13693_v27  ;;  %v13104_v27 = vld [vmem:[%s24558_s1 + $0x16d8] sm:$0xf]  ;;  %v12881_v57 = vor.u32 %v15887_v22, %v12880_v54  ;;  %v16155_v54 = vld [vmem:[%s24561_s3 + $0x18c] sm:$0xf0]  ;;  %v14072_v22 = vld [vmem:[%s24561_s3 + $0x280] sm:$0xf] }
 0x370   :  { %7126 = vmatpush.bf16.msrb.mxu0 %v12993_v63  ;;  %v6900_v52 = vpop.f32.mrf.mxu2  ;;  %v13864_v63 = vld [vmem:[%s24561_s3 + $0xe0] sm:$0xf]  ;;  %v13105_v61 = vor.u32 %v15943_v47, %v13104_v27  ;;  %v16219_v47 = vld [vmem:[%s24561_s3 + $0x38c] sm:$0xf0] }
 0x371   :  { %7139 = vmatpush.bf16.msrb.mxu1 %v13217_v60  ;;  %v13992_v60 = vld [vmem:[%s24561_s3 + $0x1e0] sm:$0xf]  ;;  %v16119_v52 = vld [vmem:[%s24561_s3 + $0x6c] sm:$0xf0] }
 0x372   :  { %7152 = vmatpush.bf16.msrb.mxu2 %v13441_v6  ;;  %v6913_v6 = vpop.f32.mrf.mxu3  ;;  %v14200_v27 = vld [vmem:[%s24561_s3 + $0x380] sm:$0xf]  ;;  %v16143_v34 = vld [vmem:[%s24561_s3 + $0x12c] sm:$0xf0] }
 0x373   :  { %7165 = vmatpush.bf16.msrb.mxu3 %v13665_v24  ;;  %v16199_v24 = vld [vmem:[%s24561_s3 + $0x2ec] sm:$0xf0]  ;;  %v14056_v6 = vld [vmem:[%s24561_s3 + $0x260] sm:$0xf] }
 0x374   :  { %7127 = vmatpush.bf16.msrb.mxu0 %v12965_v4  ;;  %v13865_v4 = vor.u32 %v16135_v55, %v13864_v63  ;;  %v13928_v63 = vld [vmem:[%s24561_s3 + $0x160] sm:$0xf]  ;;  %v14201_v55 = vor.u32 %v16219_v47, %v14200_v27  ;;  %v16175_v39 = vld [vmem:[%s24561_s3 + $0x22c] sm:$0xf0] }
 0x375   :  { %7140 = vmatpush.bf16.msrb.mxu1 %v13189_v5  ;;  %v13993_v5 = vor.u32 %v16167_v58, %v13992_v60  ;;  %v16151_v60 = vld [vmem:[%s24561_s3 + $0x16c] sm:$0xf0]  ;;  %v14184_v58 = vld [vmem:[%s24561_s3 + $0x360] sm:$0xf] }
 0x376   :  { %7153 = vmatpush.bf16.msrb.mxu2 %v13413_v29  ;;  %v14121_v29 = vor.u32 %v16199_v24, %v14120_v59  ;;  %v16215_v59 = vld [vmem:[%s24561_s3 + $0x36c] sm:$0xf0]  ;;  %v13801_v24 = vor.u32 %v16119_v52, %v13800_v49  ;;  %v14376_v47 = vld [vmem:[%s24561_s3 + $0x4e0] sm:$0xf] }
 0x377   :  { %7166 = vmatpush.bf16.msrb.mxu3 %v13637_v8  ;;  %v14249_v8 = vor.u32 %v16231_v2, %v14248_v1  ;;  %v13784_v1 = vld [vmem:[%s24561_s3 + $0x40] sm:$0xf]  ;;  %v16115_v2 = vld [vmem:[%s24561_s3 + $0x4c] sm:$0xf0] }
 0x378   :  { %7128 = vmatpush.bf16.msrb.mxu0 %v12937_v28  ;;  %v13977_v28 = vor.u32 %v16163_v14, %v13976_v12  ;;  %v16211_v14 = vld [vmem:[%s24561_s3 + $0x34c] sm:$0xf0]  ;;  %v13785_v15 = vor.u32 %v16115_v2, %v13784_v1 }
 0x379   :  { %7141 = vmatpush.bf16.msrb.mxu1 %v13161_v62  ;;  %v13832_v62 = vld [vmem:[%s24561_s3 + $0xa0] sm:$0xf]  ;;  %v16295_v52 = vld [vmem:[%s24561_s3 + $0x5ec] sm:$0xf0] }
 0x37a   :  { %7154 = vmatpush.bf16.msrb.mxu2 %v13385_v35  ;;  %v16127_v35 = vld [vmem:[%s24561_s3 + $0xac] sm:$0xf0] }
 0x37b   :  { %7167 = vmatpush.bf16.msrb.mxu3 %v13609_v41  ;;  %v14088_v41 = vld [vmem:[%s24561_s3 + $0x2a0] sm:$0xf]  ;;  %v13833_v18 = vor.u32 %v16127_v35, %v13832_v62 }
 0x37c   :  { %7129 = vmatpush.bf16.msrb.mxu0 %v12909_v40  ;;  %v14089_v38 = vor.u32 %v16191_v43, %v14088_v41  ;;  %v13944_v40 = vld [vmem:[%s24561_s3 + $0x180] sm:$0xf]  ;;  %v16207_v43 = vld [vmem:[%s24561_s3 + $0x32c] sm:$0xf0] }
 0x37d   :  { %7142 = vmatpush.bf16.msrb.mxu1 %v13133_v23  ;;  %v16187_v23 = vld [vmem:[%s24561_s3 + $0x28c] sm:$0xf0]  ;;  %v13945_v48 = vor.u32 %v16155_v54, %v13944_v40  ;;  %v13896_v62 = vld [vmem:[%s24561_s3 + $0x120] sm:$0xf] }
 0x37e   :  { %7155 = vmatpush.bf16.msrb.mxu2 %v13357_v53  ;;  %v14073_v51 = vor.u32 %v16187_v23, %v14072_v22  ;;  %v14152_v41 = vld [vmem:[%s24561_s3 + $0x320] sm:$0xf]  ;;  %v16171_v54 = vld [vmem:[%s24561_s3 + $0x20c] sm:$0xf0] }
 0x37f   :  { %7168 = vmatpush.bf16.msrb.mxu3 %v13581_v45  ;;  %v14008_v40 = vld [vmem:[%s24561_s3 + $0x200] sm:$0xf]  ;;  %v16203_v23 = vld [vmem:[%s24561_s3 + $0x30c] sm:$0xf0] }
 0x380   :  { %7130 = vmatpush.bf16.msrb.mxu0 %v12881_v57  ;;  %v22278_v53 = vpop.f32.mrf.mxu0  ;;  %v16183_v57 = vld [vmem:[%s24561_s3 + $0x26c] sm:$0xf0]  ;;  %v14136_v22 = vld [vmem:[%s24561_s3 + $0x300] sm:$0xf] }
 0x381   :  { %7143 = vmatpush.bf16.msrb.mxu1 %v13105_v61  ;;  %v22286_v45 = vpop.f32.mrf.mxu1  ;;  %v13929_v61 = vor.u32 %v16151_v60, %v13928_v63  ;;  %v16133_v63 = vld [vmem:[%s24561_s3 + $0xe4] sm:$0xf]  ;;  %v7175_v60 = vmax.f32 %v18339_v31, 0.0  ;;  %v16259_v31 = vld [vmem:[%s24561_s3 + $0x4cc] sm:$0xf0] }
 0x382   :  { %7156 = vmatpush.bf16.msrb.mxu2 %v13329_v11  ;;  %v14057_v11 = vor.u32 %v16183_v57, %v14056_v6  ;;  %v7176_v6 = vmax.f32 %v19137_v46, 0.0  ;;  %v14488_v46 = vld [vmem:[%s24561_s3 + $0x5c0] sm:$0xf] }
 0x383   :  { %7169 = vmatpush.bf16.msrb.mxu3 %v13553_v3  ;;  %7131 = vmatmul.bf16.vlgmr.msrb.gmra.mxu0 %v17420_v13  ;;  %v14216_v13 = vld [vmem:[%s24561_s3 + $0x3a0] sm:$0xf] }
 0x384   :  { %8403 = vmatpush.bf16.msra.mxu0 %v13865_v4  ;;  %7144 = vmatmul.bf16.vlgmr.msrb.gmra.mxu1 %v17433_v20  ;;  %v16123_v20 = vld [vmem:[%s24561_s3 + $0x8c] sm:$0xf0]  ;;  %v13912_v3 = vld [vmem:[%s24561_s3 + $0x140] sm:$0xf]  ;;  %v14185_v4 = vor.u32 %v16215_v59, %v14184_v58  ;;  %v14009_v58 = vor.u32 %v16171_v54, %v14008_v40  ;;  %v7177_v59 = vmax.f32 %v19935_v7, 0.0 }
 0x385   :  { %8416 = vmatpush.bf16.msra.mxu1 %v13993_v5  ;;  %7157 = vmatmul.bf16.vlgmr.msrb.gmra.mxu2 %v17431_v19  ;;  %v13816_v19 = vld [vmem:[%s24561_s3 + $0x80] sm:$0xf]  ;;  %v16291_v7 = vld [vmem:[%s24561_s3 + $0x5cc] sm:$0xf0] }
 0x386   :  { %8429 = vmatpush.bf16.msra.mxu2 %v14121_v29  ;;  %7170 = vmatmul.bf16.vlgmr.msrb.gmra.mxu3 %v17441_v26  ;;  %v14217_v26 = vor.u32 %v16223_v42, %v14216_v13  ;;  %v13817_v44 = vor.u32 %v16123_v20, %v13816_v19  ;;  %v16147_v29 = vld [vmem:[%s24561_s3 + $0x14c] sm:$0xf0]  ;;  %v13752_v42 = vld [vmem:[%s24561_s3] sm:$0xf] }
 0x387   :  { %8442 = vmatpush.bf16.msra.mxu3 %v14249_v8  ;;  %v14168_v8 = vld [vmem:[%s24561_s3 + $0x340] sm:$0xf]  ;;  %v13913_v25 = vor.u32 %v16147_v29, %v13912_v3  ;;  %v16139_v20 = vld [vmem:[%s24561_s3 + $0x10c] sm:$0xf0]  ;;  %v22428_v29 = vpack.c.bf16 %v7175_v60, %v7175_v60 }
 0x388   :  { %8404 = vmatpush.bf16.msra.mxu0 %v13849_v33  ;;  %v22321_v5 = vpop.f32.mrf.mxu2  ;;  %v6926_v9 = vpop.f32.mrf.mxu0  ;;  %v14041_v33 = vor.u32 %v16179_v17, %v14040_v10  ;;  %v14169_v35 = vor.u32 %v16211_v14, %v14168_v8  ;;  %v13880_v19 = vld [vmem:[%s24561_s3 + $0x100] sm:$0xf]  ;;  %v22430_v10 = vpack.c.bf16 %v7176_v6, %v7176_v6  ;;  %v22432_v17 = vpack.c.bf16 %v7177_v59, %v7177_v59  ;;  %v16243_v6 = vld [vmem:[%s24561_s3 + $0x44c] sm:$0xf0]  ;;  %v16113_v59 = vld [vmem:[%s24561_s3 + $0x44] sm:$0xf] }
 0x389   :  { %8417 = vmatpush.bf16.msra.mxu1 %v13977_v28  ;;  %v22332_v12 = vpop.f32.mrf.mxu3  ;;  %v6939_v21 = vpop.f32.mrf.mxu1  ;;  %v13768_v28 = vld [vmem:[%s24561_s3 + $0x20] sm:$0xf]  ;;  %v13881_v57 = vor.u32 %v16139_v20, %v13880_v19  ;;  %v14489_v9 = vor.u32 %v16291_v7, %v14488_v46  ;;  %v13818_v19 = vld [vmem:[%s24561_s3 + $0x90] sm:$0xf0] }
 0x38a   :  { %8430 = vmatpush.bf16.msra.mxu2 %v14105_v32  ;;  %v16111_v32 = vld [vmem:[%s24561_s3 + $0x2c] sm:$0xf0]  ;;  %v14360_v3 = vld [vmem:[%s24561_s3 + $0x4c0] sm:$0xf] }
 0x38b   :  { %8443 = vmatpush.bf16.msra.mxu3 %v14233_v36  ;;  %v14024_v36 = vld [vmem:[%s24561_s3 + $0x220] sm:$0xf]  ;;  %v13769_v13 = vor.u32 %v16111_v32, %v13768_v28  ;;  %v14361_v8 = vor.u32 %v16259_v31, %v14360_v3  ;;  %v16287_v28 = vld [vmem:[%s24561_s3 + $0x5ac] sm:$0xf0]  ;;  %v16125_v32 = vld [vmem:[%s24561_s3 + $0xa4] sm:$0xf] }
 0x38c   :  { %8405 = vmatpush.bf16.msra.mxu0 %v13833_v18  ;;  %v16107_v18 = vld [vmem:[%s24561_s3 + $0xc] sm:$0xf0]  ;;  %v14344_v21 = vld [vmem:[%s24561_s3 + $0x4a0] sm:$0xf] }
 0x38d   :  { %8418 = vmatpush.bf16.msra.mxu1 %v13961_v37  ;;  %v13897_v37 = vor.u32 %v16143_v34, %v13896_v62  ;;  %v13753_v49 = vor.u32 %v16107_v18, %v13752_v42  ;;  %v13834_v62 = vld [vmem:[%s24561_s3 + $0xb0] sm:$0xf0]  ;;  %v14328_v34 = vld [vmem:[%s24561_s3 + $0x480] sm:$0xf]  ;;  %v6899_v18 = vadd.f32 %v22117_v30, %v22091_v0  ;;  %v16247_v30 = vld [vmem:[%s24561_s3 + $0x46c] sm:$0xf0] }
 0x38e   :  { %8431 = vmatpush.bf16.msra.mxu2 %v14089_v38  ;;  %v14025_v38 = vor.u32 %v16175_v39, %v14024_v36  ;;  %v13837_v39 = vor.u32 %v16125_v32, %v13834_v62  ;;  %v14312_v0 = vld [vmem:[%s24561_s3 + $0x460] sm:$0xf]  ;;  %v16235_v62 = vld [vmem:[%s24561_s3 + $0x40c] sm:$0xf0] }
 0x38f   :  { %8444 = vmatpush.bf16.msra.mxu3 %v14217_v26  ;;  %v14153_v26 = vor.u32 %v16207_v43, %v14152_v41  ;;  %v16251_v41 = vld [vmem:[%s24561_s3 + $0x48c] sm:$0xf0]  ;;  %v14456_v43 = vld [vmem:[%s24561_s3 + $0x580] sm:$0xf] }
 0x390   :  { %8406 = vmatpush.bf16.msra.mxu0 %v13817_v44  ;;  %v6952_v27 = vpop.f32.mrf.mxu2  ;;  %v16263_v44 = vld [vmem:[%s24561_s3 + $0x4ec] sm:$0xf0]  ;;  %v14329_v20 = vor.u32 %v16251_v41, %v14328_v34  ;;  %v14296_v60 = vld [vmem:[%s24561_s3 + $0x440] sm:$0xf]  ;;  %v16105_v41 = vld [vmem:[%s24561_s3 + $0x4] sm:$0xf] }
 0x391   :  { %8419 = vmatpush.bf16.msra.mxu1 %v13945_v48  ;;  %v14504_v48 = vld [vmem:[%s24561_s3 + $0x5e0] sm:$0xf]  ;;  %v16267_v34 = vld [vmem:[%s24561_s3 + $0x50c] sm:$0xf0] }
 0x392   :  { %8432 = vmatpush.bf16.msra.mxu2 %v14073_v51  ;;  %v6965_v51 = vpop.f32.mrf.mxu3  ;;  %v14505_v1 = vor.u32 %v16295_v52, %v14504_v48  ;;  %v16117_v48 = vld [vmem:[%s24561_s3 + $0x64] sm:$0xf] }
 0x393   :  { %8445 = vmatpush.bf16.msra.mxu3 %v14201_v55  ;;  %v13866_v55 = vld [vmem:[%s24561_s3 + $0xf0] sm:$0xf0] }
 0x394   :  { %8407 = vmatpush.bf16.msra.mxu0 %v13801_v24  ;;  %v7178_v24 = vmax.f32 %v20733_v56, 0.0  ;;  %v13869_v2 = vor.u32 %v16133_v63, %v13866_v55  ;;  %v16129_v56 = vld [vmem:[%s24561_s3 + $0xc4] sm:$0xf]  ;;  %v13802_v51 = vld [vmem:[%s24561_s3 + $0x70] sm:$0xf0]  ;;  %v14313_v63 = vor.u32 %v16247_v30, %v14312_v0 }
 0x395   :  { %8420 = vmatpush.bf16.msra.mxu1 %v13929_v61  ;;  %v14137_v61 = vor.u32 %v16203_v23, %v14136_v22  ;;  %v14440_v22 = vld [vmem:[%s24561_s3 + $0x560] sm:$0xf]  ;;  %v13805_v55 = vor.u32 %v16117_v48, %v13802_v51  ;;  %v16257_v48 = vld [vmem:[%s24561_s3 + $0x4c4] sm:$0xf]  ;;  %v14362_v51 = vld [vmem:[%s24561_s3 + $0x4d0] sm:$0xf0] }
 0x396   :  { %8433 = vmatpush.bf16.msra.mxu2 %v14057_v11  ;;  %v14377_v11 = vor.u32 %v16263_v44, %v14376_v47  ;;  %v22434_v14 = vpack.c.bf16 %v7178_v24, %v7178_v24  ;;  %v6912_v47 = vadd.f32 %v22128_v16, %v6899_v18  ;;  %v16279_v44 = vld [vmem:[%s24561_s3 + $0x56c] sm:$0xf0]  ;;  %v13786_v24 = vld [vmem:[%s24561_s3 + $0x50] sm:$0xf0] }
 0x397   :  { %8446 = vmatpush.bf16.msra.mxu3 %v14185_v4  ;;  %v13850_v4 = vld [vmem:[%s24561_s3 + $0xd0] sm:$0xf0]  ;;  %v14441_v16 = vor.u32 %v16279_v44, %v14440_v22  ;;  %v13789_v7 = vor.u32 %v16113_v59, %v13786_v24 }
 0x398   :  { %8408 = vmatpush.bf16.msra.mxu0 %v13785_v15  ;;  %v13853_v15 = vor.u32 %v16129_v56, %v13850_v4  ;;  %v6925_v52 = vadd.f32 %v22278_v53, %v6912_v47  ;;  %v16275_v53 = vld [vmem:[%s24561_s3 + $0x54c] sm:$0xf0]  ;;  %v14280_v56 = vld [vmem:[%s24561_s3 + $0x420] sm:$0xf]  ;;  %v14122_v18 = vld [vmem:[%s24561_s3 + $0x2f0] sm:$0xf0] }
 0x399   :  { %8421 = vmatpush.bf16.msra.mxu1 %v13913_v25  ;;  %v16255_v25 = vld [vmem:[%s24561_s3 + $0x4ac] sm:$0xf0]  ;;  %v14106_v47 = vld [vmem:[%s24561_s3 + $0x2d0] sm:$0xf0] }
 0x39a   :  { %8434 = vmatpush.bf16.msra.mxu2 %v14041_v33  ;;  %v14472_v33 = vld [vmem:[%s24561_s3 + $0x5a0] sm:$0xf]  ;;  %v16239_v4 = vld [vmem:[%s24561_s3 + $0x42c] sm:$0xf0]  ;;  %v14234_v44 = vld [vmem:[%s24561_s3 + $0x3d0] sm:$0xf0] }
 0x39b   :  { %8447 = vmatpush.bf16.msra.mxu3 %v14169_v35  ;;  %v14345_v35 = vor.u32 %v16255_v25, %v14344_v21  ;;  %v14473_v36 = vor.u32 %v16287_v28, %v14472_v33  ;;  %v16109_v21 = vld [vmem:[%s24561_s3 + $0x24] sm:$0xf]  ;;  %v13770_v25 = vld [vmem:[%s24561_s3 + $0x30] sm:$0xf0]  ;;  %v14281_v33 = vor.u32 %v16239_v4, %v14280_v56  ;;  %v14264_v28 = vld [vmem:[%s24561_s3 + $0x400] sm:$0xf] }
 0x39c   :  { %8409 = vmatpush.bf16.msra.mxu0 %v13769_v13  ;;  %v16473_v13 = vld [vmem:[%s24560_s2] sm:$0x7f]  ;;  %v13773_v32 = vor.u32 %v16109_v21, %v13770_v25  ;;  %v14346_v59 = vld [vmem:[%s24561_s3 + $0x4b0] sm:$0xf0] }
 0x39d   :  { %8422 = vmatpush.bf16.msra.mxu1 %v13897_v37  ;;  %v1103_v42 = vperm.slane %v16473_v13, 6  ;;  %v16283_v37 = vld [vmem:[%s24561_s3 + $0x58c] sm:$0xf0]  ;;  %v16197_v13 = vld [vmem:[%s24561_s3 + $0x2e4] sm:$0xf] }
 0x39e   :  { %8435 = vmatpush.bf16.msra.mxu2 %v14025_v38  ;;  %v16121_v38 = vld [vmem:[%s24561_s3 + $0x84] sm:$0xf]  ;;  %v14125_v30 = vor.u32 %v16197_v13, %v14122_v18  ;;  %v14330_v56 = vld [vmem:[%s24561_s3 + $0x490] sm:$0xf0] }
 0x39f   :  { %8448 = vmatpush.bf16.msra.mxu3 %v14153_v26  ;;  %v14457_v26 = vor.u32 %v16283_v37, %v14456_v43  ;;  %v13821_v54 = vor.u32 %v16121_v38, %v13818_v19  ;;  %v13754_v43 = vld [vmem:[%s24561_s3 + $0x10] sm:$0xf0]  ;;  %v14265_v38 = vor.u32 %v16235_v62, %v14264_v28  ;;  %v16261_v19 = vld [vmem:[%s24561_s3 + $0x4e4] sm:$0xf] }
 0x3a0   :  { %8410 = vmatpush.bf16.msra.mxu0 %v13753_v49  ;;  %v6976_v40 = vpop.f32.mrf.mxu0  ;;  %v14250_v37 = vld [vmem:[%s24561_s3 + $0x3f0] sm:$0xf0]  ;;  %v16213_v25 = vld [vmem:[%s24561_s3 + $0x364] sm:$0xf] }
 0x3a1   :  { %8423 = vmatpush.bf16.msra.mxu1 %v13881_v57  ;;  %v6977_v23 = vadd.f32 %v6976_v40, %v1103_v42  ;;  %v6989_v27 = vpop.f32.mrf.mxu1  ;;  %v14424_v57 = vld [vmem:[%s24561_s3 + $0x540] sm:$0xf]  ;;  %v7179_v40 = vmax.f32 %v21531_v50, 0.0  ;;  %v16225_v50 = vld [vmem:[%s24561_s3 + $0x3c4] sm:$0xf] }
 0x3a2   :  { %8436 = vmatpush.bf16.msra.mxu2 %v14009_v58  ;;  %v14425_v46 = vor.u32 %v16275_v53, %v14424_v57  ;;  %v16221_v57 = vld [vmem:[%s24561_s3 + $0x3a4] sm:$0xf]  ;;  %v14058_v21 = vld [vmem:[%s24561_s3 + $0x270] sm:$0xf0] }
 0x3a3   :  { %8449 = vmatpush.bf16.msra.mxu3 %v14137_v61  ;;  %8411 = vmatmul.bf16.vlgmr.msra.gmra.mxu0 %v22428_v29  ;;  %v6990_v49 = vadd.f32 %v6989_v27, %v6977_v23  ;;  %v16193_v23 = vld [vmem:[%s24561_s3 + $0x2c4] sm:$0xf]  ;;  %v14298_v18 = vld [vmem:[%s24561_s3 + $0x450] sm:$0xf0] }
 0x3a4   :  { %8455 = vmatpush.bf16.msrb.mxu0 %v14377_v11  ;;  %8424 = vmatmul.bf16.vlgmr.msra.gmra.mxu1 %v22430_v10  ;;  %v16253_v53 = vld [vmem:[%s24561_s3 + $0x4a4] sm:$0xf] }
 0x3a5   :  { %8468 = vmatpush.bf16.msrb.mxu1 %v14505_v1  ;;  %8437 = vmatmul.bf16.vlgmr.msra.gmra.mxu2 %v22432_v17  ;;  %v6938_v1 = vadd.f32 %v22286_v45, %v6925_v52  ;;  %v14408_v45 = vld [vmem:[%s24561_s3 + $0x520] sm:$0xf] }
 0x3a6   :  { %8450 = vmatmul.bf16.vlgmr.msra.gmra.mxu3 %v22434_v14 }
 0x3a7   :  { %8494 = vmatpush.bf16.msrb.mxu3 %v13869_v2  ;;  %v14297_v2 = vor.u32 %v16243_v6, %v14296_v60  ;;  %v14365_v60 = vor.u32 %v16257_v48, %v14362_v51  ;;  %v14090_v6 = vld [vmem:[%s24561_s3 + $0x2b0] sm:$0xf0]  ;;  %v16201_v51 = vld [vmem:[%s24561_s3 + $0x304] sm:$0xf] }
 0x3a8   :  { %8456 = vmatpush.bf16.msrb.mxu0 %v14361_v8  ;;  %v7002_v58 = vpop.f32.mrf.mxu2  ;;  %v6978_v31 = vpop.f32.mrf.mxu0  ;;  %v14010_v48 = vld [vmem:[%s24561_s3 + $0x210] sm:$0xf0] }
 0x3a9   :  { %8469 = vmatpush.bf16.msrb.mxu1 %v14489_v9  ;;  %v7003_v61 = vadd.f32 %v7002_v58, %v6990_v49  ;;  %v7015_v11 = vpop.f32.mrf.mxu3  ;;  %v6991_v8 = vpop.f32.mrf.mxu1  ;;  %v6951_v9 = vadd.f32 %v22321_v5, %v6938_v1  ;;  %v22597_v49 = vpack.c.bf16 %v7179_v40, %v7179_v40  ;;  %v14218_v58 = vld [vmem:[%s24561_s3 + $0x3b0] sm:$0xf0]  ;;  %v14349_v1 = vor.u32 %v16253_v53, %v14346_v59  ;;  %v16217_v31 = vld [vmem:[%s24561_s3 + $0x384] sm:$0xf]  ;;  %v14536_v40 = vld [vmem:[%s24561_s3 + $0x620] sm:$0xf] }
 0x3aa   :  { %v16181_v8 = vld [vmem:[%s24561_s3 + $0x264] sm:$0xf] }
 0x3ab   :  { %8495 = vmatpush.bf16.msrb.mxu3 %v13853_v15  ;;  %v22520_v3 = vadd.f32 %v7015_v11, %v7003_v61  ;;  %v16271_v15 = vld [vmem:[%s24561_s3 + $0x52c] sm:$0xf0]  ;;  %v14221_v61 = vor.u32 %v16221_v57, %v14218_v58  ;;  %v16185_v11 = vld [vmem:[%s24561_s3 + $0x284] sm:$0xf]  ;;  %v14061_v62 = vor.u32 %v16181_v8, %v14058_v21 }
 0x3ac   :  { %8457 = vmatpush.bf16.msrb.mxu0 %v14345_v35  ;;  %v14409_v5 = vor.u32 %v16271_v15, %v14408_v45  ;;  %v14392_v35 = vld [vmem:[%s24561_s3 + $0x500] sm:$0xf]  ;;  %v16233_v58 = vld [vmem:[%s24561_s3 + $0x404] sm:$0xf] }
 0x3ad   :  { %8470 = vmatpush.bf16.msrb.mxu1 %v14473_v36  ;;  %v16161_v21 = vld [vmem:[%s24561_s3 + $0x1c4] sm:$0xf] }
 0x3af   :  { %8496 = vmatpush.bf16.msrb.mxu3 %v13837_v39  ;;  %v6964_v39 = vadd.f32 %v22332_v12, %v6951_v9  ;;  %v16229_v12 = vld [vmem:[%s24561_s3 + $0x3e4] sm:$0xf] }
 0x3b0   :  { %8458 = vmatpush.bf16.msrb.mxu0 %v14329_v20  ;;  %v7004_v36 = vpop.f32.mrf.mxu2  ;;  %v14378_v20 = vld [vmem:[%s24561_s3 + $0x4f0] sm:$0xf0]  ;;  %v14253_v22 = vor.u32 %v16229_v12, %v14250_v37 }
 0x3b1   :  { %8471 = vmatpush.bf16.msrb.mxu1 %v14457_v26  ;;  %v7017_v42 = vpop.f32.mrf.mxu3  ;;  %v14393_v26 = vor.u32 %v16267_v34, %v14392_v35  ;;  %v7180_v0 = vmax.f32 %v6964_v39, 0.0  ;;  %v14381_v27 = vor.u32 %v16261_v19, %v14378_v20  ;;  %v16177_v34 = vld [vmem:[%s24561_s3 + $0x244] sm:$0xf]  ;;  %v14042_v39 = vld [vmem:[%s24561_s3 + $0x250] sm:$0xf0] }
 0x3b2   :  { %v16241_v42 = vld [vmem:[%s24561_s3 + $0x444] sm:$0xf]  ;;  %v14045_v37 = vor.u32 %v16177_v34, %v14042_v39  ;;  %v16164_v34 = vld [vmem:[%s24561_s3 + $0x1d4] sm:$0xf0]  ;;  %v14538_v39 = vld [vmem:[%s24561_s3 + $0x630] sm:$0xf0] }
 0x3b3   :  { %8497 = vmatpush.bf16.msrb.mxu3 %v13821_v54  ;;  %v13757_v54 = vor.u32 %v16105_v41, %v13754_v43  ;;  %v22599_v52 = vpack.c.bf16 %v7180_v0, %v7180_v0  ;;  %v16209_v41 = vld [vmem:[%s24561_s3 + $0x344] sm:$0xf]  ;;  %v14170_v43 = vld [vmem:[%s24561_s3 + $0x350] sm:$0xf0] }
 0x3b4   :  { %8459 = vmatpush.bf16.msrb.mxu0 %v14313_v63  ;;  %v14109_v63 = vor.u32 %v16193_v23, %v14106_v47  ;;  %v16173_v19 = vld [vmem:[%s24561_s3 + $0x224] sm:$0xf]  ;;  %v14026_v0 = vld [vmem:[%s24561_s3 + $0x230] sm:$0xf0] }
 0x3b5   :  { %8472 = vmatpush.bf16.msrb.mxu1 %v14441_v16  ;;  %v14237_v16 = vor.u32 %v16225_v50, %v14234_v44  ;;  %v16237_v47 = vld [vmem:[%s24561_s3 + $0x424] sm:$0xf]  ;;  %v14282_v50 = vld [vmem:[%s24561_s3 + $0x430] sm:$0xf0] }
 0x3b6   :  { %v16169_v44 = vld [vmem:[%s24561_s3 + $0x204] sm:$0xf]  ;;  %v14285_v57 = vor.u32 %v16237_v47, %v14282_v50 }
 0x3b7   :  { %8498 = vmatpush.bf16.msrb.mxu3 %v13805_v55  ;;  %v16189_v55 = vld [vmem:[%s24561_s3 + $0x2a4] sm:$0xf] }
 0x3b8   :  { %8460 = vmatpush.bf16.msrb.mxu0 %v14297_v2  ;;  %v14093_v24 = vor.u32 %v16189_v55, %v14090_v6  ;;  %v14074_v2 = vld [vmem:[%s24561_s3 + $0x290] sm:$0xf0]  ;;  %v16299_v6 = vld [vmem:[%s24561_s3 + $0x60c] sm:$0xf0]  ;;  %v16153_v50 = vld [vmem:[%s24561_s3 + $0x184] sm:$0xf] }
 0x3b9   :  { %8473 = vmatpush.bf16.msrb.mxu1 %v14425_v46  ;;  %v14202_v46 = vld [vmem:[%s24561_s3 + $0x390] sm:$0xf0]  ;;  %v14077_v4 = vor.u32 %v16185_v11, %v14074_v2  ;;  %v16136_v2 = vld [vmem:[%s24561_s3 + $0xf4] sm:$0xf0] }
 0x3ba   :  { %v14205_v45 = vor.u32 %v16217_v31, %v14202_v46  ;;  %v14138_v55 = vld [vmem:[%s24561_s3 + $0x310] sm:$0xf0] }
 0x3bb   :  { %8499 = vmatpush.bf16.msrb.mxu3 %v13789_v7  ;;  %v16249_v7 = vld [vmem:[%s24561_s3 + $0x484] sm:$0xf]  ;;  %v14266_v11 = vld [vmem:[%s24561_s3 + $0x410] sm:$0xf0] }
 0x3bc   :  { %8461 = vmatpush.bf16.msrb.mxu0 %v14281_v33  ;;  %v14333_v15 = vor.u32 %v16249_v7, %v14330_v56  ;;  %v14186_v33 = vld [vmem:[%s24561_s3 + $0x370] sm:$0xf0]  ;;  %v14000_v7 = vld [vmem:[%s24561_s3 + $0x1e8] sm:$0xf]  ;;  %v16168_v56 = vld [vmem:[%s24561_s3 + $0x1f4] sm:$0xf0]  ;;  %v14269_v8 = vor.u32 %v16233_v58, %v14266_v11 }
 0x3bd   :  { %8474 = vmatpush.bf16.msrb.mxu1 %v14409_v5  ;;  %v16245_v5 = vld [vmem:[%s24561_s3 + $0x464] sm:$0xf]  ;;  %v14189_v35 = vor.u32 %v16213_v25, %v14186_v33  ;;  %v13978_v25 = vld [vmem:[%s24561_s3 + $0x1d0] sm:$0xf0]  ;;  %v14001_v33 = vor.u32 %v16168_v56, %v14000_v7  ;;  %v16152_v7 = vld [vmem:[%s24561_s3 + $0x174] sm:$0xf0] }
 0x3bf   :  { %8500 = vmatpush.bf16.msrb.mxu3 %v13773_v32  ;;  %v14314_v32 = vld [vmem:[%s24561_s3 + $0x470] sm:$0xf0] }
 0x3c0   :  { %8462 = vmatpush.bf16.msrb.mxu0 %v14265_v38  ;;  %v22643_v9 = vpop.f32.mrf.mxu0  ;;  %v14317_v36 = vor.u32 %v16245_v5, %v14314_v32  ;;  %v14173_v38 = vor.u32 %v16209_v41, %v14170_v43  ;;  %v13856_v5 = vld [vmem:[%s24561_s3 + $0xc8] sm:$0xf]  ;;  %v16132_v32 = vld [vmem:[%s24561_s3 + $0xd4] sm:$0xf0] }
 0x3c1   :  { %8475 = vmatpush.bf16.msrb.mxu1 %v14393_v26  ;;  %v22654_v28 = vpop.f32.mrf.mxu1  ;;  %v16303_v26 = vld [vmem:[%s24561_s3 + $0x62c] sm:$0xf0]  ;;  %v13857_v43 = vor.u32 %v16132_v32, %v13856_v5  ;;  %v13792_v5 = vld [vmem:[%s24561_s3 + $0x48] sm:$0xf]  ;;  %v16116_v32 = vld [vmem:[%s24561_s3 + $0x54] sm:$0xf0] }
 0x3c3   :  { %8501 = vmatpush.bf16.msrb.mxu3 %v13757_v54  ;;  %8463 = vmatmul.bf16.vlgmr.msrb.gmra.mxu0 %v22597_v49  ;;  %v14301_v54 = vor.u32 %v16241_v42, %v14298_v18  ;;  %v13840_v42 = vld [vmem:[%s24561_s3 + $0xa8] sm:$0xf]  ;;  %v16157_v18 = vld [vmem:[%s24561_s3 + $0x1a4] sm:$0xf] }
 0x3c4   :  { %8520 = vmatpush.bf16.msra.mxu0 %v14125_v30  ;;  %8476 = vmatmul.bf16.vlgmr.msrb.gmra.mxu1 %v22599_v52  ;;  %v16205_v30 = vld [vmem:[%s24561_s3 + $0x324] sm:$0xf] }
 0x3c5   :  { %8533 = vmatpush.bf16.msra.mxu1 %v14253_v22  ;;  %v14154_v22 = vld [vmem:[%s24561_s3 + $0x330] sm:$0xf0] }
 0x3c6   :  { %8502 = vmatmul.bf16.vlgmr.msrb.gmra.mxu3 %v22428_v29 }
 0x3c7   :  { %8546 = vmatpush.bf16.msra.mxu3 %v14381_v27  ;;  %v14537_v27 = vor.u32 %v16303_v26, %v14536_v40  ;;  %v16160_v40 = vld [vmem:[%s24561_s3 + $0x1b4] sm:$0xf0] }
 0x3c8   :  { %8521 = vmatpush.bf16.msra.mxu0 %v14109_v63  ;;  %v22674_v13 = vpop.f32.mrf.mxu2  ;;  %v7030_v20 = vpop.f32.mrf.mxu0  ;;  %v14029_v63 = vor.u32 %v16173_v19, %v14026_v0  ;;  %v16128_v19 = vld [vmem:[%s24561_s3 + $0xb4] sm:$0xf0]  ;;  %v14522_v0 = vld [vmem:[%s24561_s3 + $0x610] sm:$0xf0] }
 0x3c9   :  { %8534 = vmatpush.bf16.msra.mxu1 %v14237_v16  ;;  %v22682_v12 = vpop.f32.mrf.mxu3  ;;  %v7043_v23 = vpop.f32.mrf.mxu1  ;;  %8487 = vmatpush.bf16.msrb.mxu2 %v14537_v27  ;;  %v14157_v16 = vor.u32 %v16205_v30, %v14154_v22  ;;  %v13968_v20 = vld [vmem:[%s24561_s3 + $0x1a8] sm:$0xf]  ;;  %v13841_v27 = vor.u32 %v16128_v19, %v13840_v42  ;;  %v16112_v19 = vld [vmem:[%s24561_s3 + $0x34] sm:$0xf0] }
 0x3ca   :  { %v14128_v30 = vld [vmem:[%s24561_s3 + $0x2e8] sm:$0xf]  ;;  %v16200_v23 = vld [vmem:[%s24561_s3 + $0x2f4] sm:$0xf0] }
 0x3cb   :  { %8547 = vmatpush.bf16.msra.mxu3 %v14365_v60  ;;  %v14520_v60 = vld [vmem:[%s24561_s3 + $0x600] sm:$0xf]  ;;  %v14129_v47 = vor.u32 %v16200_v23, %v14128_v30  ;;  %v13776_v42 = vld [vmem:[%s24561_s3 + $0x28] sm:$0xf]  ;;  %v16144_v30 = vld [vmem:[%s24561_s3 + $0x134] sm:$0xf0] }
 0x3cc   :  { %8522 = vmatpush.bf16.msra.mxu0 %v14093_v24  ;;  %v14521_v59 = vor.u32 %v16299_v6, %v14520_v60  ;;  %v16165_v24 = vld [vmem:[%s24561_s3 + $0x1e4] sm:$0xf]  ;;  %v14112_v6 = vld [vmem:[%s24561_s3 + $0x2c8] sm:$0xf] }
 0x3cd   :  { %8535 = vmatpush.bf16.msra.mxu1 %v14221_v61  ;;  %v13994_v61 = vld [vmem:[%s24561_s3 + $0x1f0] sm:$0xf0]  ;;  %v14064_v23 = vld [vmem:[%s24561_s3 + $0x268] sm:$0xf] }
 0x3ce   :  { %v13997_v46 = vor.u32 %v16165_v24, %v13994_v61  ;;  %8488 = vmatpush.bf16.msrb.mxu2 %v14521_v59  ;;  %v13808_v59 = vld [vmem:[%s24561_s3 + $0x68] sm:$0xf]  ;;  %v16120_v24 = vld [vmem:[%s24561_s3 + $0x74] sm:$0xf0] }
 0x3cf   :  { %8548 = vmatpush.bf16.msra.mxu3 %v14349_v1  ;;  %v13872_v1 = vld [vmem:[%s24561_s3 + $0xe8] sm:$0xf] }
 0x3d0   :  { %8523 = vmatpush.bf16.msra.mxu0 %v14077_v4  ;;  %v7056_v53 = vpop.f32.mrf.mxu2  ;;  %v14013_v4 = vor.u32 %v16169_v44, %v14010_v48  ;;  %v13969_v44 = vor.u32 %v16160_v40, %v13968_v20  ;;  %v13824_v48 = vld [vmem:[%s24561_s3 + $0x88] sm:$0xf]  ;;  %v16141_v40 = vld [vmem:[%s24561_s3 + $0x124] sm:$0xf] }
 0x3d1   :  { %8536 = vmatpush.bf16.msra.mxu1 %v14205_v45  ;;  %v7069_v31 = vpop.f32.mrf.mxu3  ;;  %v14141_v45 = vor.u32 %v16201_v51, %v14138_v55  ;;  %v16124_v51 = vld [vmem:[%s24561_s3 + $0x94] sm:$0xf0] }
 0x3d2   :  { %8507 = vmatpush.bf16.msra.mxu2 %v13997_v46  ;;  %v16156_v55 = vld [vmem:[%s24561_s3 + $0x194] sm:$0xf0]  ;;  %v13825_v53 = vor.u32 %v16124_v51, %v13824_v48  ;;  %v16149_v31 = vld [vmem:[%s24561_s3 + $0x164] sm:$0xf]  ;;  %v13930_v46 = vld [vmem:[%s24561_s3 + $0x170] sm:$0xf0] }
 0x3d3   :  { %8549 = vmatpush.bf16.msra.mxu3 %v14333_v15  ;;  %v13873_v15 = vor.u32 %v16136_v2, %v13872_v1  ;;  %v13936_v2 = vld [vmem:[%s24561_s3 + $0x168] sm:$0xf]  ;;  %v13933_v56 = vor.u32 %v16149_v31, %v13930_v46 }
 0x3d4   :  { %8524 = vmatpush.bf16.msra.mxu0 %v14061_v62  ;;  %v13984_v62 = vld [vmem:[%s24561_s3 + $0x1c8] sm:$0xf] }
 0x3d5   :  { %8537 = vmatpush.bf16.msra.mxu1 %v14189_v35  ;;  %v13981_v35 = vor.u32 %v16161_v21, %v13978_v25  ;;  %v16145_v21 = vld [vmem:[%s24561_s3 + $0x144] sm:$0xf]  ;;  %v13914_v25 = vld [vmem:[%s24561_s3 + $0x150] sm:$0xf0] }
 0x3d7   :  { %8550 = vmatpush.bf16.msra.mxu3 %v14317_v36  ;;  %v16301_v36 = vld [vmem:[%s24561_s3 + $0x624] sm:$0xf]  ;;  %8508 = vmatpush.bf16.msra.mxu2 %v13981_v35  ;;  %v7029_v35 = vadd.f32 %v22643_v9, %v22520_v3  ;;  %v13793_v9 = vor.u32 %v16116_v32, %v13792_v5 }
 0x3d8   :  { %8525 = vmatpush.bf16.msra.mxu0 %v14045_v37  ;;  %v14541_v41 = vor.u32 %v16301_v36, %v14538_v39  ;;  %v13962_v37 = vld [vmem:[%s24561_s3 + $0x1b0] sm:$0xf0]  ;;  %v16148_v36 = vld [vmem:[%s24561_s3 + $0x154] sm:$0xf0] }
 0x3d9   :  { %8538 = vmatpush.bf16.msra.mxu1 %v14173_v38  ;;  %v13985_v38 = vor.u32 %v16164_v34, %v13984_v62  ;;  %v13965_v26 = vor.u32 %v16157_v18, %v13962_v37  ;;  %v13917_v62 = vor.u32 %v16145_v21, %v13914_v25  ;;  %v13920_v34 = vld [vmem:[%s24561_s3 + $0x148] sm:$0xf]  ;;  %v16292_v25 = vld [vmem:[%s24561_s3 + $0x5d4] sm:$0xf0] }
 0x3da   :  { %v14496_v21 = vld [vmem:[%s24561_s3 + $0x5c8] sm:$0xf] }
 0x3db   :  { %8551 = vmatpush.bf16.msra.mxu3 %v14301_v54  ;;  %v16297_v54 = vld [vmem:[%s24561_s3 + $0x604] sm:$0xf]  ;;  %8509 = vmatpush.bf16.msra.mxu2 %v13965_v26  ;;  %v13898_v26 = vld [vmem:[%s24561_s3 + $0x130] sm:$0xf0] }
 0x3dc   :  { %8526 = vmatpush.bf16.msra.mxu0 %v14029_v63  ;;  %v14525_v22 = vor.u32 %v16297_v54, %v14522_v0  ;;  %v13946_v63 = vld [vmem:[%s24561_s3 + $0x190] sm:$0xf0]  ;;  %v7042_v54 = vadd.f32 %v22654_v28, %v7029_v35  ;;  %v13904_v0 = vld [vmem:[%s24561_s3 + $0x128] sm:$0xf]  ;;  %v14497_v35 = vor.u32 %v16292_v25, %v14496_v21  ;;  %v16304_v21 = vld [vmem:[%s24561_s3 + $0x634] sm:$0xf0] }
 0x3dd   :  { %8539 = vmatpush.bf16.msra.mxu1 %v14157_v16  ;;  %v13952_v16 = vld [vmem:[%s24561_s3 + $0x188] sm:$0xf]  ;;  %v13949_v60 = vor.u32 %v16153_v50, %v13946_v63  ;;  %v16108_v50 = vld [vmem:[%s24561_s3 + $0x14] sm:$0xf0]  ;;  %v13905_v51 = vor.u32 %v16144_v30, %v13904_v0 }
 0x3de   :  { %v13953_v11 = vor.u32 %v16156_v55, %v13952_v16  ;;  %v13760_v28 = vld [vmem:[%s24561_s3 + $0x8] sm:$0xf]  ;;  %v16140_v63 = vld [vmem:[%s24561_s3 + $0x114] sm:$0xf0]  ;;  %v16137_v16 = vld [vmem:[%s24561_s3 + $0x104] sm:$0xf] }
 0x3df   :  { %8552 = vmatpush.bf16.msra.mxu3 %v14285_v57  ;;  %v16196_v57 = vld [vmem:[%s24561_s3 + $0x2d4] sm:$0xf0]  ;;  %8510 = vmatpush.bf16.msra.mxu2 %v13949_v60  ;;  %v13882_v55 = vld [vmem:[%s24561_s3 + $0x110] sm:$0xf0]  ;;  %v7055_v60 = vadd.f32 %v22674_v13, %v7042_v54  ;;  %v14048_v13 = vld [vmem:[%s24561_s3 + $0x248] sm:$0xf] }
 0x3e0   :  { %8527 = vmatpush.bf16.msra.mxu0 %v14013_v4  ;;  %v22831_v58 = vpop.f32.mrf.mxu0  ;;  %v14113_v61 = vor.u32 %v16196_v57, %v14112_v6  ;;  %v14096_v4 = vld [vmem:[%s24561_s3 + $0x2a8] sm:$0xf]  ;;  %v16264_v57 = vld [vmem:[%s24561_s3 + $0x4f4] sm:$0xf0] }
 0x3e1   :  { %8540 = vmatpush.bf16.msra.mxu1 %v14141_v45  ;;  %v22839_v1 = vpop.f32.mrf.mxu1  ;;  %v16192_v45 = vld [vmem:[%s24561_s3 + $0x2b4] sm:$0xf0]  ;;  %v14384_v6 = vld [vmem:[%s24561_s3 + $0x4e8] sm:$0xf] }
 0x3e3   :  { %8553 = vmatpush.bf16.msra.mxu3 %v14269_v8  ;;  %8528 = vmatmul.bf16.vlgmr.msra.gmra.mxu0 %v22432_v17  ;;  %v13809_v8 = vor.u32 %v16120_v24, %v13808_v59  ;;  %v13885_v59 = vor.u32 %v16137_v16, %v13882_v55  ;;  %v16296_v24 = vld [vmem:[%s24561_s3 + $0x5f4] sm:$0xf0] }
 0x3e4   :  { %8541 = vmatmul.bf16.vlgmr.msra.gmra.mxu1 %v22434_v14  ;;  %8578 = vmatpush.bf16.msrb.mxu0 %v14541_v41  ;;  %v14080_v41 = vld [vmem:[%s24561_s3 + $0x288] sm:$0xf]  ;;  %v16276_v16 = vld [vmem:[%s24561_s3 + $0x554] sm:$0xf0] }
 0x3e5   :  { %8585 = vmatpush.bf16.msrb.mxu1 %v13873_v15  ;;  %v14097_v15 = vor.u32 %v16192_v45, %v14096_v4  ;;  %8511 = vmatpush.bf16.msra.mxu2 %v13933_v56  ;;  %v14385_v56 = vor.u32 %v16264_v57, %v14384_v6  ;;  %v7068_v4 = vadd.f32 %v22682_v12, %v7055_v60  ;;  %v14032_v12 = vld [vmem:[%s24561_s3 + $0x228] sm:$0xf] }
 0x3e6   :  { %8554 = vmatmul.bf16.vlgmr.msra.gmra.mxu3 %v22597_v49 }
 0x3e7   :  { %8598 = vmatpush.bf16.msrb.mxu3 %v14001_v33  ;;  %v13937_v33 = vor.u32 %v16152_v7, %v13936_v2  ;;  %v13761_v2 = vor.u32 %v16108_v50, %v13760_v28  ;;  %v7081_v5 = vadd.f32 %v22831_v58, %v7068_v4  ;;  %v14480_v58 = vld [vmem:[%s24561_s3 + $0x5a8] sm:$0xf] }
 0x3e8   :  { %8579 = vmatpush.bf16.msrb.mxu0 %v14525_v22  ;;  %v22879_v39 = vpop.f32.mrf.mxu2  ;;  %v7082_v18 = vpop.f32.mrf.mxu0  ;;  %v13901_v22 = vor.u32 %v16141_v40, %v13898_v26  ;;  %v16252_v40 = vld [vmem:[%s24561_s3 + $0x494] sm:$0xf0]  ;;  %v14272_v4 = vld [vmem:[%s24561_s3 + $0x408] sm:$0xf] }
 0x3e9   :  { %8586 = vmatpush.bf16.msrb.mxu1 %v13857_v43  ;;  %v16188_v43 = vld [vmem:[%s24561_s3 + $0x294] sm:$0xf0]  ;;  %v22887_v3 = vpop.f32.mrf.mxu3  ;;  %v7095_v20 = vpop.f32.mrf.mxu1  ;;  %8512 = vmatpush.bf16.msra.mxu2 %v13917_v62 }
 0x3ea   :  { %v14081_v37 = vor.u32 %v16188_v43, %v14080_v41  ;;  %v16288_v41 = vld [vmem:[%s24561_s3 + $0x5b4] sm:$0xf0]  ;;  %v14016_v43 = vld [vmem:[%s24561_s3 + $0x208] sm:$0xf] }
 0x3eb   :  { %8599 = vmatpush.bf16.msrb.mxu3 %v13985_v38  ;;  %v13921_v38 = vor.u32 %v16148_v36, %v13920_v34  ;;  %v14352_v34 = vld [vmem:[%s24561_s3 + $0x4a8] sm:$0xf]  ;;  %v16256_v36 = vld [vmem:[%s24561_s3 + $0x4b4] sm:$0xf0] }
 0x3ec   :  { %8611 = vmatpush.bf16.msra.mxu0 %v14129_v47  ;;  %v13777_v47 = vor.u32 %v16112_v19, %v13776_v42  ;;  %v7094_v42 = vadd.f32 %v22839_v1, %v7081_v5  ;;  %v14481_v19 = vor.u32 %v16288_v41, %v14480_v58  ;;  %v14336_v20 = vld [vmem:[%s24561_s3 + $0x488] sm:$0xf]  ;;  %v16284_v26 = vld [vmem:[%s24561_s3 + $0x594] sm:$0xf0]  ;;  %v14258_v58 = vld [vmem:[%s24561_s3 + $0x3f8] sm:$0xf0] }
 0x3ed   :  { %8587 = vmatpush.bf16.msrb.mxu1 %v13841_v27  ;;  %v16184_v27 = vld [vmem:[%s24561_s3 + $0x274] sm:$0xf0]  ;;  %8513 = vmatpush.bf16.msra.mxu2 %v13901_v22  ;;  %v14464_v1 = vld [vmem:[%s24561_s3 + $0x588] sm:$0xf]  ;;  %v16289_v41 = vld [vmem:[%s24561_s3 + $0x5c4] sm:$0xf] }
 0x3ee   :  { %v14065_v48 = vor.u32 %v16184_v27, %v14064_v23  ;;  %v14465_v30 = vor.u32 %v16284_v26, %v14464_v1  ;;  %v14320_v22 = vld [vmem:[%s24561_s3 + $0x468] sm:$0xf]  ;;  %v16248_v23 = vld [vmem:[%s24561_s3 + $0x474] sm:$0xf0] }
 0x3ef   :  { %8600 = vmatpush.bf16.msrb.mxu3 %v13969_v44  ;;  %v13888_v44 = vld [vmem:[%s24561_s3 + $0x108] sm:$0xf]  ;;  %v14321_v50 = vor.u32 %v16248_v23, %v14320_v22  ;;  %v16268_v5 = vld [vmem:[%s24561_s3 + $0x514] sm:$0xf0]  ;;  %v16285_v22 = vld [vmem:[%s24561_s3 + $0x5a4] sm:$0xf] }
 0x3f0   :  { %8612 = vmatpush.bf16.msra.mxu0 %v14113_v61  ;;  %v7108_v61 = vpop.f32.mrf.mxu2  ;;  %v13889_v7 = vor.u32 %v16140_v63, %v13888_v44  ;;  %v14432_v63 = vld [vmem:[%s24561_s3 + $0x548] sm:$0xf]  ;;  %v14474_v23 = vld [vmem:[%s24561_s3 + $0x5b0] sm:$0xf0] }
 0x3f1   :  { %8588 = vmatpush.bf16.msrb.mxu1 %v13825_v53  ;;  %v14512_v53 = vld [vmem:[%s24561_s3 + $0x5e8] sm:$0xf]  ;;  %v7121_v31 = vpop.f32.mrf.mxu3  ;;  %8514 = vmatpush.bf16.msra.mxu2 %v13885_v59 }
 0x3f2   :  { %v14513_v45 = vor.u32 %v16296_v24, %v14512_v53  ;;  %v14433_v24 = vor.u32 %v16276_v16, %v14432_v63  ;;  %v14288_v61 = vld [vmem:[%s24561_s3 + $0x428] sm:$0xf]  ;;  %v16272_v31 = vld [vmem:[%s24561_s3 + $0x534] sm:$0xf0]  ;;  %v16281_v63 = vld [vmem:[%s24561_s3 + $0x584] sm:$0xf] }
 0x3f3   :  { %8601 = vmatpush.bf16.msrb.mxu3 %v13953_v11  ;;  %v16180_v11 = vld [vmem:[%s24561_s3 + $0x254] sm:$0xf0]  ;;  %v14458_v16 = vld [vmem:[%s24561_s3 + $0x590] sm:$0xf0] }
 0x3f4   :  { %8613 = vmatpush.bf16.msra.mxu0 %v14097_v15  ;;  %v14049_v46 = vor.u32 %v16180_v11, %v14048_v13  ;;  %v16260_v15 = vld [vmem:[%s24561_s3 + $0x4d4] sm:$0xf0] }
 0x3f5   :  { %8589 = vmatpush.bf16.msrb.mxu1 %v13809_v8  ;;  %v14368_v8 = vld [vmem:[%s24561_s3 + $0x4c8] sm:$0xf]  ;;  %v16240_v13 = vld [vmem:[%s24561_s3 + $0x434] sm:$0xf0] }
 0x3f6   :  { %v14369_v62 = vor.u32 %v16260_v15, %v14368_v8  ;;  %v16236_v8 = vld [vmem:[%s24561_s3 + $0x414] sm:$0xf0]  ;;  %v14544_v15 = vld [vmem:[%s24561_s3 + $0x628] sm:$0xf] }
 0x3f7   :  { %8602 = vmatpush.bf16.msrb.mxu3 %v13937_v33  ;;  %v16176_v33 = vld [vmem:[%s24561_s3 + $0x234] sm:$0xf0] }
 0x3f8   :  { %8614 = vmatpush.bf16.msra.mxu0 %v14081_v37  ;;  %v14033_v32 = vor.u32 %v16176_v33, %v14032_v12  ;;  %v14353_v37 = vor.u32 %v16256_v36, %v14352_v34  ;;  %v14400_v33 = vld [vmem:[%s24561_s3 + $0x508] sm:$0xf]  ;;  %v16230_v34 = vld [vmem:[%s24561_s3 + $0x3ec] sm:$0xf] }
 0x3f9   :  { %8590 = vmatpush.bf16.msrb.mxu1 %v13793_v9  ;;  %v16172_v9 = vld [vmem:[%s24561_s3 + $0x214] sm:$0xf0]  ;;  %v14261_v1 = vor.u32 %v16230_v34, %v14258_v58  ;;  %v16162_v34 = vld [vmem:[%s24561_s3 + $0x1cc] sm:$0xf]  ;;  %v13986_v58 = vld [vmem:[%s24561_s3 + $0x1d8] sm:$0xf0] }
 0x3fa   :  { %v14017_v18 = vor.u32 %v16172_v9, %v14016_v43  ;;  %v14490_v43 = vld [vmem:[%s24561_s3 + $0x5d0] sm:$0xf0]  ;;  %v14545_v9 = vor.u32 %v16304_v21, %v14544_v15  ;;  %v16214_v15 = vld [vmem:[%s24561_s3 + $0x36c] sm:$0xf] }
 0x3fb   :  { %8603 = vmatpush.bf16.msrb.mxu3 %v13921_v38  ;;  %v7107_v38 = vadd.f32 %v22879_v39, %v7094_v42  ;;  %v14337_v39 = vor.u32 %v16252_v40, %v14336_v20  ;;  %v14401_v20 = vor.u32 %v16268_v5, %v14400_v33  ;;  %v14493_v26 = vor.u32 %v16289_v41, %v14490_v43  ;;  %v16273_v33 = vld [vmem:[%s24561_s3 + $0x544] sm:$0xf]  ;;  %v14426_v5 = vld [vmem:[%s24561_s3 + $0x550] sm:$0xf0] }
 0x3fc   :  { %8615 = vmatpush.bf16.msra.mxu0 %v14065_v48  ;;  %v14304_v48 = vld [vmem:[%s24561_s3 + $0x448] sm:$0xf] }
 0x3fd   :  { %8591 = vmatpush.bf16.msrb.mxu1 %v13777_v47  ;;  %v7120_v54 = vadd.f32 %v22887_v3, %v7107_v38  ;;  %v14448_v47 = vld [vmem:[%s24561_s3 + $0x568] sm:$0xf]  ;;  %v16280_v3 = vld [vmem:[%s24561_s3 + $0x574] sm:$0xf0] }
 0x3fe   :  { %v14449_v44 = vor.u32 %v16280_v3, %v14448_v47  ;;  %v16300_v38 = vld [vmem:[%s24561_s3 + $0x614] sm:$0xf0] }
 0x3ff   :  { %8604 = vmatpush.bf16.msrb.mxu3 %v13905_v51  ;;  %v16244_v51 = vld [vmem:[%s24561_s3 + $0x454] sm:$0xf0] }
 0x400   :  { %8616 = vmatpush.bf16.msra.mxu0 %v14049_v46  ;;  %v7132_v0 = vpop.f32.mrf.mxu0  ;;  %v14305_v6 = vor.u32 %v16244_v51, %v14304_v48  ;;  %v16222_v48 = vld [vmem:[%s24561_s3 + $0x3ac] sm:$0xf]  ;;  %v14226_v51 = vld [vmem:[%s24561_s3 + $0x3b8] sm:$0xf0] }
 0x401   :  { %8592 = vmatpush.bf16.msrb.mxu1 %v13761_v2  ;;  %v7145_v27 = vpop.f32.mrf.mxu1  ;;  %v7133_v28 = vadd.f32 %v7132_v0, %v7120_v54  ;;  %v14416_v2 = vld [vmem:[%s24561_s3 + $0x528] sm:$0xf]  ;;  %v14114_v54 = vld [vmem:[%s24561_s3 + $0x2d8] sm:$0xf0]  ;;  %v16226_v0 = vld [vmem:[%s24561_s3 + $0x3cc] sm:$0xf] }
 0x402   :  { %v14417_v12 = vor.u32 %v16272_v31, %v14416_v2 }
 0x403   :  { %8605 = vmatpush.bf16.msrb.mxu3 %v13889_v7  ;;  %v7146_v55 = vadd.f32 %v7145_v27, %v7133_v28  ;;  %v16293_v7 = vld [vmem:[%s24561_s3 + $0x5e4] sm:$0xf]  ;;  %v14477_v28 = vor.u32 %v16285_v22, %v14474_v23  ;;  %v16174_v23 = vld [vmem:[%s24561_s3 + $0x22c] sm:$0xf] }
 0x404   :  { %8593 = vmatmul.bf16.vlgmr.msrb.gmra.mxu1 %v22428_v29  ;;  %8617 = vmatpush.bf16.msra.mxu0 %v14033_v32 }
 0x405   :  { %8637 = vmatpush.bf16.msra.mxu1 %v14385_v56  ;;  %v14506_v56 = vld [vmem:[%s24561_s3 + $0x5f0] sm:$0xf0] }
 0x406   :  { %8606 = vmatmul.bf16.vlgmr.msrb.gmra.mxu3 %v22430_v10  ;;  %v14509_v32 = vor.u32 %v16293_v7, %v14506_v56  ;;  %v14002_v7 = vld [vmem:[%s24561_s3 + $0x1f8] sm:$0xf0] }
 0x407   :  { %8650 = vmatpush.bf16.msra.mxu3 %v14513_v45  ;;  %v14289_v45 = vor.u32 %v16240_v13, %v14288_v61  ;;  %v14210_v61 = vld [vmem:[%s24561_s3 + $0x398] sm:$0xf0]  ;;  %v16277_v13 = vld [vmem:[%s24561_s3 + $0x564] sm:$0xf] }
 0x408   :  { %8618 = vmatpush.bf16.msra.mxu0 %v14017_v18  ;;  %v7158_v60 = vpop.f32.mrf.mxu2  ;;  %v7134_v59 = vpop.f32.mrf.mxu0  ;;  %v14273_v18 = vor.u32 %v16236_v8, %v14272_v4  ;;  %v14066_v8 = vld [vmem:[%s24561_s3 + $0x278] sm:$0xf0] }
 0x409   :  { %8638 = vmatpush.bf16.msra.mxu1 %v14369_v62  ;;  %v7159_v57 = vadd.f32 %v7158_v60, %v7146_v55  ;;  %v7171_v53 = vpop.f32.mrf.mxu3  ;;  %v7147_v11 = vpop.f32.mrf.mxu1  ;;  %v16198_v62 = vld [vmem:[%s24561_s3 + $0x2ec] sm:$0xf]  ;;  %v23137_v60 = vld [vmem:[%s24562_s4] sm:$0xf]  ;;  %v14082_v59 = vld [vmem:[%s24561_s3 + $0x298] sm:$0xf0] }
 0x40a   :  { %v14442_v11 = vld [vmem:[%s24561_s3 + $0x570] sm:$0xf0]  ;;  %v7391_v2 = vperm.slane %v23137_v60, 0 }
 0x40b   :  { %8651 = vmatpush.bf16.msra.mxu3 %v14497_v35  ;;  %v7172_v46 = vadd.f32 %v7171_v53, %v7159_v57  ;;  %v14130_v35 = vld [vmem:[%s24561_s3 + $0x2f8] sm:$0xf0]  ;;  %v14461_v57 = vor.u32 %v16281_v63, %v14458_v16  ;;  %v16186_v53 = vld [vmem:[%s24561_s3 + $0x28c] sm:$0xf]  ;;  %v14445_v4 = vor.u32 %v16277_v13, %v14442_v11  ;;  %v14256_v16 = vld [vmem:[%s24561_s3 + $0x3e8] sm:$0xf] }
 0x40c   :  { %v14133_v40 = vor.u32 %v16198_v62, %v14130_v35  ;;  %v14085_v31 = vor.u32 %v16186_v53, %v14082_v59  ;;  %v16154_v53 = vld [vmem:[%s24561_s3 + $0x18c] sm:$0xf]  ;;  %v13954_v59 = vld [vmem:[%s24561_s3 + $0x198] sm:$0xf0] }
 0x40d   :  { %8639 = vmatpush.bf16.msra.mxu1 %v14353_v37  ;;  %v7181_v25 = vmax.f32 %v7172_v46, 0.0  ;;  %v14528_v37 = vld [vmem:[%s24561_s3 + $0x608] sm:$0xf]  ;;  %v16166_v46 = vld [vmem:[%s24561_s3 + $0x1ec] sm:$0xf] }
 0x40e   :  { %v14529_v27 = vor.u32 %v16300_v38, %v14528_v37  ;;  %v14005_v62 = vor.u32 %v16166_v46, %v14002_v7  ;;  %v16210_v37 = vld [vmem:[%s24561_s3 + $0x34c] sm:$0xf]  ;;  %v14178_v38 = vld [vmem:[%s24561_s3 + $0x358] sm:$0xf0] }
 0x40f   :  { %8652 = vmatpush.bf16.msra.mxu3 %v14481_v19  ;;  %v23075_v36 = vpack.c.bf16 %v7181_v25, %v7181_v25  ;;  %v16170_v13 = vld [vmem:[%s24561_s3 + $0x20c] sm:$0xf]  ;;  %v14018_v11 = vld [vmem:[%s24561_s3 + $0x218] sm:$0xf0] }
 0x410   :  { %v7160_v42 = vpop.f32.mrf.mxu2  ;;  %v14146_v46 = vld [vmem:[%s24561_s3 + $0x318] sm:$0xf0]  ;;  %v16302_v7 = vld [vmem:[%s24561_s3 + $0x62c] sm:$0xf] }
 0x411   :  { %8640 = vmatpush.bf16.msra.mxu1 %v14337_v39  ;;  %v7173_v19 = vpop.f32.mrf.mxu3  ;;  %14550 = vmatmul.msk.bf16.vlgmr.msrb.gmra.mxu2 %vm8399_vm0, %v23075_v36  ;;  %v16194_v39 = vld [vmem:[%s24561_s3 + $0x2cc] sm:$0xf] }
 0x412   :  { %8559 = vmatpush.bf16.msrb.mxu2 %v14509_v32  ;;  %14551 = vmatmul.msk.bf16.vlgmr.msrb.gmra.mxu0 %vm8399_vm0, %v23075_v36  ;;  %v14117_v47 = vor.u32 %v16194_v39, %v14114_v54  ;;  %v16178_v42 = vld [vmem:[%s24561_s3 + $0x24c] sm:$0xf]  ;;  %v16269_v19 = vld [vmem:[%s24561_s3 + $0x524] sm:$0xf]  ;;  %v13970_v39 = vld [vmem:[%s24561_s3 + $0x1b8] sm:$0xf0] }
 0x413   :  { %8653 = vmatpush.bf16.msra.mxu3 %v14465_v30  ;;  %v14242_v30 = vld [vmem:[%s24561_s3 + $0x3d8] sm:$0xf0]  ;;  %8669 = vmatpush.bf16.msrb.mxu0 %v14545_v9  ;;  %v14429_v9 = vor.u32 %v16273_v33, %v14426_v5 }
 0x414   :  { %v14245_v3 = vor.u32 %v16226_v0, %v14242_v30  ;;  %v14181_v30 = vor.u32 %v16210_v37, %v14178_v38 }
 0x415   :  { %8641 = vmatpush.bf16.msra.mxu1 %v14321_v50  ;;  %v16190_v50 = vld [vmem:[%s24561_s3 + $0x2ac] sm:$0xf] }
 0x416   :  { %8560 = vmatpush.bf16.msrb.mxu2 %v14493_v26  ;;  %v16158_v26 = vld [vmem:[%s24561_s3 + $0x1ac] sm:$0xf] }
 0x417   :  { %8654 = vmatpush.bf16.msra.mxu3 %v14449_v44  ;;  %v14098_v44 = vld [vmem:[%s24561_s3 + $0x2b8] sm:$0xf0]  ;;  %8670 = vmatpush.bf16.msrb.mxu0 %v14529_v27  ;;  %v13973_v63 = vor.u32 %v16158_v26, %v13970_v39  ;;  %v14192_v39 = vld [vmem:[%s24561_s3 + $0x368] sm:$0xf] }
 0x418   :  { %v14101_v55 = vor.u32 %v16190_v50, %v14098_v44  ;;  %v14034_v27 = vld [vmem:[%s24561_s3 + $0x238] sm:$0xf0] }
 0x419   :  { %8642 = vmatpush.bf16.msra.mxu1 %v14305_v6  ;;  %v14229_v6 = vor.u32 %v16222_v48, %v14226_v51  ;;  %v14162_v44 = vld [vmem:[%s24561_s3 + $0x338] sm:$0xf0]  ;;  %v16265_v48 = vld [vmem:[%s24561_s3 + $0x504] sm:$0xf]  ;;  %v14394_v51 = vld [vmem:[%s24561_s3 + $0x510] sm:$0xf0] }
 0x41a   :  { %8561 = vmatpush.bf16.msrb.mxu2 %v14477_v28 }
 0x41b   :  { %8655 = vmatpush.bf16.msra.mxu3 %v14433_v24  ;;  %v16218_v24 = vld [vmem:[%s24561_s3 + $0x38c] sm:$0xf] }
 0x41c   :  { %v14213_v56 = vor.u32 %v16218_v24, %v14210_v61  ;;  %v14397_v61 = vor.u32 %v16265_v48, %v14394_v51 }
 0x41d   :  { %8643 = vmatpush.bf16.msra.mxu1 %v14289_v45  ;;  %v16182_v45 = vld [vmem:[%s24561_s3 + $0x26c] sm:$0xf] }
 0x41e   :  { %8562 = vmatpush.bf16.msrb.mxu2 %v14461_v57  ;;  %v14069_v35 = vor.u32 %v16182_v45, %v14066_v8  ;;  %v14037_v57 = vor.u32 %v16174_v23, %v14034_v27  ;;  %v14240_v45 = vld [vmem:[%s24561_s3 + $0x3c8] sm:$0xf]  ;;  %v16228_v8 = vld [vmem:[%s24561_s3 + $0x3d4] sm:$0xf0]  ;;  %v14514_v23 = vld [vmem:[%s24561_s3 + $0x5f8] sm:$0xf0] }
 0x41f   :  { %8656 = vmatpush.bf16.msra.mxu3 %v14417_v12  ;;  %v14194_v12 = vld [vmem:[%s24561_s3 + $0x378] sm:$0xf0] }
 0x420   :  { %v8412_v21 = vpop.f32.mrf.mxu0  ;;  %v14197_v43 = vor.u32 %v16214_v15, %v14194_v12  ;;  %v14021_v15 = vor.u32 %v16170_v13, %v14018_v11 }
 0x421   :  { %8644 = vmatpush.bf16.msra.mxu1 %v14273_v18  ;;  %v8425_v25 = vpop.f32.mrf.mxu1  ;;  %v8413_v32 = vadd.f32 %v8412_v21, %v7391_v2  ;;  %8515 = vmatmul.bf16.vlgmr.msra.gmra.mxu2 %v22430_v10  ;;  %v14050_v18 = vld [vmem:[%s24561_s3 + $0x258] sm:$0xf0]  ;;  %v16202_v2 = vld [vmem:[%s24561_s3 + $0x30c] sm:$0xf] }
 0x422   :  { %8563 = vmatpush.bf16.msrb.mxu2 %v14445_v4  ;;  %8619 = vmatmul.bf16.vlgmr.msra.gmra.mxu0 %v22432_v17  ;;  %v13957_v4 = vor.u32 %v16154_v53, %v13954_v59  ;;  %v16150_v21 = vld [vmem:[%s24561_s3 + $0x16c] sm:$0xf]  ;;  %v14149_v5 = vor.u32 %v16202_v2, %v14146_v46  ;;  %v14160_v53 = vld [vmem:[%s24561_s3 + $0x328] sm:$0xf]  ;;  %v16204_v46 = vld [vmem:[%s24561_s3 + $0x314] sm:$0xf0] }
 0x423   :  { %8657 = vmatpush.bf16.msra.mxu3 %v14401_v20  ;;  %v8426_v41 = vadd.f32 %v8425_v25, %v8413_v32  ;;  %v14410_v20 = vld [vmem:[%s24561_s3 + $0x530] sm:$0xf0]  ;;  %8689 = vmatpush.bf16.msra.mxu0 %v14005_v62  ;;  %v13938_v25 = vld [vmem:[%s24561_s3 + $0x178] sm:$0xf0]  ;;  %v14241_v62 = vor.u32 %v16228_v8, %v14240_v45  ;;  %v14144_v2 = vld [vmem:[%s24561_s3 + $0x308] sm:$0xf] }
 0x424   :  { %8645 = vmatmul.bf16.vlgmr.msra.gmra.mxu1 %v22597_v49  ;;  %v14413_v22 = vor.u32 %v16269_v19, %v14410_v20  ;;  %v14208_v19 = vld [vmem:[%s24561_s3 + $0x388] sm:$0xf]  ;;  %v16220_v20 = vld [vmem:[%s24561_s3 + $0x394] sm:$0xf0]  ;;  %v13874_v45 = vld [vmem:[%s24561_s3 + $0xf8] sm:$0xf0] }
 0x425   :  { %8702 = vmatpush.bf16.msrb.mxu1 %v14133_v40  ;;  %v13989_v40 = vor.u32 %v16162_v34, %v13986_v58  ;;  %v14530_v34 = vld [vmem:[%s24561_s3 + $0x618] sm:$0xf0]  ;;  %v13941_v58 = vor.u32 %v16150_v21, %v13938_v25  ;;  %v14145_v25 = vor.u32 %v16204_v46, %v14144_v2  ;;  %v14572_v46 = vld [vmem:[%s24563_s5 + $0x20] sm:$0xf] }
 0x426   :  { %8658 = vmatmul.bf16.vlgmr.msra.gmra.mxu3 %v22599_v52  ;;  %8564 = vmatpush.bf16.msrb.mxu2 %v14429_v9  ;;  %v16146_v9 = vld [vmem:[%s24561_s3 + $0x14c] sm:$0xf]  ;;  %v14466_v21 = vld [vmem:[%s24561_s3 + $0x598] sm:$0xf0] }
 0x427   :  { %8715 = vmatpush.bf16.msrb.mxu3 %v14261_v1  ;;  %v14053_v1 = vor.u32 %v16178_v42, %v14050_v18  ;;  %8690 = vmatpush.bf16.msra.mxu0 %v13989_v40  ;;  %v13922_v42 = vld [vmem:[%s24561_s3 + $0x158] sm:$0xf0]  ;;  %v16142_v40 = vld [vmem:[%s24561_s3 + $0x12c] sm:$0xf] }
 0x428   :  { %v8438_v54 = vpop.f32.mrf.mxu2  ;;  %v8414_v28 = vpop.f32.mrf.mxu0  ;;  %v13925_v38 = vor.u32 %v16146_v9, %v13922_v42  ;;  %v14636_v42 = vld [vmem:[%s24563_s5 + $0xa0] sm:$0xf] }
 0x429   :  { %8703 = vmatpush.bf16.msrb.mxu1 %v14117_v47  ;;  %v8451_v0 = vpop.f32.mrf.mxu3  ;;  %v16206_v47 = vld [vmem:[%s24561_s3 + $0x32c] sm:$0xf]  ;;  %v8427_v50 = vpop.f32.mrf.mxu1  ;;  %v14176_v28 = vld [vmem:[%s24561_s3 + $0x348] sm:$0xf] }
 0x42a   :  { %8565 = vmatpush.bf16.msrb.mxu2 %v14413_v22  ;;  %v14165_v24 = vor.u32 %v16206_v47, %v14162_v44  ;;  %v16294_v22 = vld [vmem:[%s24561_s3 + $0x5ec] sm:$0xf]  ;;  %v16212_v50 = vld [vmem:[%s24561_s3 + $0x354] sm:$0xf0] }
 0x42b   :  { %8716 = vmatpush.bf16.msrb.mxu3 %v14245_v3  ;;  %v8439_v3 = vadd.f32 %v8438_v54, %v8426_v41  ;;  %8691 = vmatpush.bf16.msra.mxu0 %v13973_v63  ;;  %v14224_v41 = vld [vmem:[%s24561_s3 + $0x3a8] sm:$0xf]  ;;  %v16216_v54 = vld [vmem:[%s24561_s3 + $0x374] sm:$0xf0]  ;;  %v14517_v51 = vor.u32 %v16294_v22, %v14514_v23  ;;  %v16290_v63 = vld [vmem:[%s24561_s3 + $0x5cc] sm:$0xf] }
 0x42c   :  { %v14193_v27 = vor.u32 %v16216_v54, %v14192_v39  ;;  %v16323_v39 = vld [vmem:[%s24563_s5 + $0x8c] sm:$0xf0]  ;;  %v16122_v54 = vld [vmem:[%s24561_s3 + $0x8c] sm:$0xf]  ;;  %v14418_v23 = vld [vmem:[%s24561_s3 + $0x538] sm:$0xf0] }
 0x42d   :  { %8704 = vmatpush.bf16.msrb.mxu1 %v14101_v55  ;;  %v16232_v55 = vld [vmem:[%s24561_s3 + $0x3f4] sm:$0xf0]  ;;  %v16270_v22 = vld [vmem:[%s24561_s3 + $0x52c] sm:$0xf] }
 0x42e   :  { %8566 = vmatpush.bf16.msrb.mxu2 %v14397_v61  ;;  %v14482_v61 = vld [vmem:[%s24561_s3 + $0x5b8] sm:$0xf0] }
 0x42f   :  { %8717 = vmatpush.bf16.msrb.mxu3 %v14229_v6  ;;  %v23238_v6 = vadd.f32 %v8451_v0, %v8439_v3  ;;  %8692 = vmatpush.bf16.msra.mxu0 %v13957_v4  ;;  %v16138_v0 = vld [vmem:[%s24561_s3 + $0x10c] sm:$0xf] }
 0x430   :  { %v8440_v12 = vpop.f32.mrf.mxu2 }
 0x431   :  { %8705 = vmatpush.bf16.msrb.mxu1 %v14085_v31  ;;  %v14257_v31 = vor.u32 %v16232_v55, %v14256_v16  ;;  %v8453_v33 = vpop.f32.mrf.mxu3  ;;  %8567 = vmatmul.bf16.vlgmr.msrb.gmra.mxu2 %v22599_v52  ;;  %v14498_v16 = vld [vmem:[%s24561_s3 + $0x5d8] sm:$0xf0] }
 0x432   :  { %14552 = vmatmul.msk.bf16.vlgmr.msrb.gmra.mxu0 %vm8399_vm0, %v23075_v36  ;;  %v14501_v59 = vor.u32 %v16290_v63, %v14498_v16  ;;  %v14652_v33 = vld [vmem:[%s24563_s5 + $0xc0] sm:$0xf]  ;;  %v14402_v63 = vld [vmem:[%s24561_s3 + $0x518] sm:$0xf0] }
 0x433   :  { %8718 = vmatpush.bf16.msrb.mxu3 %v14213_v56  ;;  %v14546_v56 = vld [vmem:[%s24561_s3 + $0x638] sm:$0xf0]  ;;  %8624 = vmatpush.bf16.msra.mxu2 %v14257_v31 }
 0x434   :  { %v14549_v32 = vor.u32 %v16302_v7, %v14546_v56  ;;  %8693 = vmatpush.bf16.msra.mxu0 %v13941_v58  ;;  %v16335_v7 = vld [vmem:[%s24563_s5 + $0xec] sm:$0xf0]  ;;  %v14450_v58 = vld [vmem:[%s24561_s3 + $0x578] sm:$0xf0] }
 0x435   :  { %8706 = vmatpush.bf16.msrb.mxu1 %v14069_v35  ;;  %v16298_v35 = vld [vmem:[%s24561_s3 + $0x60c] sm:$0xf] }
 0x436   :  { %v14533_v18 = vor.u32 %v16298_v35, %v14530_v34  ;;  %v16331_v35 = vld [vmem:[%s24563_s5 + $0xcc] sm:$0xf0]  ;;  %v16278_v34 = vld [vmem:[%s24561_s3 + $0x56c] sm:$0xf] }
 0x437   :  { %8719 = vmatpush.bf16.msrb.mxu3 %v14197_v43  ;;  %v16224_v43 = vld [vmem:[%s24561_s3 + $0x3b4] sm:$0xf0]  ;;  %8625 = vmatpush.bf16.msra.mxu2 %v14241_v62  ;;  %v13858_v62 = vld [vmem:[%s24561_s3 + $0xd8] sm:$0xf0] }
 0x438   :  { %v14225_v37 = vor.u32 %v16224_v43, %v14224_v41  ;;  %8694 = vmatpush.bf16.msra.mxu0 %v13925_v38  ;;  %v14653_v41 = vor.u32 %v16331_v35, %v14652_v33  ;;  %v16126_v38 = vld [vmem:[%s24561_s3 + $0xac] sm:$0xf]  ;;  %v14670_v33 = vld [vmem:[%s24563_s5 + $0xf0] sm:$0xf0]  ;;  %v14386_v35 = vld [vmem:[%s24561_s3 + $0x4f8] sm:$0xf0] }
 0x439   :  { %8707 = vmatpush.bf16.msrb.mxu1 %v14053_v1  ;;  %v13906_v1 = vld [vmem:[%s24561_s3 + $0x138] sm:$0xf0] }
 0x43a   :  { %v13909_v26 = vor.u32 %v16142_v40, %v13906_v1  ;;  %v16274_v40 = vld [vmem:[%s24561_s3 + $0x54c] sm:$0xf]  ;;  %v14434_v1 = vld [vmem:[%s24561_s3 + $0x558] sm:$0xf0] }
 0x43b   :  { %8720 = vmatpush.bf16.msrb.mxu3 %v14181_v30  ;;  %8626 = vmatpush.bf16.msra.mxu2 %v14225_v37  ;;  %v13890_v30 = vld [vmem:[%s24561_s3 + $0x118] sm:$0xf0]  ;;  %v14453_v37 = vor.u32 %v16278_v34, %v14450_v58 }
 0x43c   :  { %8695 = vmatpush.bf16.msra.mxu0 %v13909_v26  ;;  %v13893_v3 = vor.u32 %v16138_v0, %v13890_v30  ;;  %v14620_v26 = vld [vmem:[%s24563_s5 + $0x80] sm:$0xf]  ;;  %v13826_v0 = vld [vmem:[%s24561_s3 + $0x98] sm:$0xf0] }
 0x43d   :  { %8708 = vmatpush.bf16.msrb.mxu1 %v14037_v57  ;;  %v14177_v57 = vor.u32 %v16212_v50, %v14176_v28  ;;  %v14621_v30 = vor.u32 %v16323_v39, %v14620_v26  ;;  %v14421_v28 = vor.u32 %v16270_v22, %v14418_v23  ;;  %v16118_v50 = vld [vmem:[%s24561_s3 + $0x6c] sm:$0xf]  ;;  %v16321_v39 = vld [vmem:[%s24563_s5 + $0x84] sm:$0xf]  ;;  %v14606_v23 = vld [vmem:[%s24563_s5 + $0x70] sm:$0xf0] }
 0x43e   :  { %v16317_v22 = vld [vmem:[%s24563_s5 + $0x64] sm:$0xf] }
 0x43f   :  { %8721 = vmatpush.bf16.msrb.mxu3 %v14165_v24  ;;  %v16286_v24 = vld [vmem:[%s24561_s3 + $0x5ac] sm:$0xf] }
 0x440   :  { %v8464_v47 = vpop.f32.mrf.mxu0  ;;  %8696 = vmatpush.bf16.msra.mxu0 %v13893_v3  ;;  %v14485_v4 = vor.u32 %v16286_v24, %v14482_v61  ;;  %v16319_v3 = vld [vmem:[%s24563_s5 + $0x6c] sm:$0xf0] }
 0x441   :  { %8709 = vmatpush.bf16.msrb.mxu1 %v14021_v15  ;;  %v8465_v44 = vadd.f32 %v8464_v47, %v23238_v6  ;;  %v8477_v48 = vpop.f32.mrf.mxu1  ;;  %v16208_v6 = vld [vmem:[%s24561_s3 + $0x334] sm:$0xf0]  ;;  %v16282_v15 = vld [vmem:[%s24561_s3 + $0x58c] sm:$0xf]  ;;  %v14604_v47 = vld [vmem:[%s24563_s5 + $0x60] sm:$0xf] }
 0x442   :  { %v14161_v11 = vor.u32 %v16208_v6, %v14160_v53  ;;  %v16114_v6 = vld [vmem:[%s24561_s3 + $0x4c] sm:$0xf]  ;;  %v16315_v24 = vld [vmem:[%s24563_s5 + $0x4c] sm:$0xf0] }
 0x443   :  { %8722 = vmatpush.bf16.msrb.mxu3 %v14149_v5  ;;  %v23342_v55 = vadd.f32 %v8477_v48, %v8465_v44  ;;  %8697 = vmatmul.bf16.vlgmr.msra.gmra.mxu0 %v22430_v10  ;;  %v14668_v10 = vld [vmem:[%s24563_s5 + $0xe0] sm:$0xf]  ;;  %v14469_v5 = vor.u32 %v16282_v15, %v14466_v21  ;;  %v13810_v44 = vld [vmem:[%s24561_s3 + $0x78] sm:$0xf0]  ;;  %v14605_v48 = vor.u32 %v16319_v3, %v14604_v47  ;;  %v16307_v15 = vld [vmem:[%s24563_s5 + $0xc] sm:$0xf0] }
 0x444   :  { %8710 = vmatmul.bf16.vlgmr.msrb.gmra.mxu1 %v22432_v17  ;;  %v14209_v17 = vor.u32 %v16220_v20, %v14208_v19  ;;  %8741 = vmatpush.bf16.msrb.mxu0 %v14517_v51  ;;  %v14669_v8 = vor.u32 %v16335_v7, %v14668_v10  ;;  %v13842_v19 = vld [vmem:[%s24561_s3 + $0xb8] sm:$0xf0]  ;;  %v16266_v51 = vld [vmem:[%s24561_s3 + $0x50c] sm:$0xf]  ;;  %v13813_v16 = vor.u32 %v16118_v50, %v13810_v44  ;;  %v16313_v44 = vld [vmem:[%s24563_s5 + $0x44] sm:$0xf] }
 0x445   :  { %8760 = vmatpush.bf16.msra.mxu1 %v14549_v32  ;;  %v16130_v32 = vld [vmem:[%s24561_s3 + $0xcc] sm:$0xf]  ;;  %v14405_v53 = vor.u32 %v16266_v51, %v14402_v63  ;;  %v13778_v7 = vld [vmem:[%s24561_s3 + $0x38] sm:$0xf0] }
 0x446   :  { %8723 = vmatmul.bf16.vlgmr.msrb.gmra.mxu3 %v22434_v14  ;;  %8627 = vmatpush.bf16.msra.mxu2 %v14209_v17  ;;  %v13861_v9 = vor.u32 %v16130_v32, %v13858_v62  ;;  %v13845_v17 = vor.u32 %v16126_v38, %v13842_v19  ;;  %v16110_v10 = vld [vmem:[%s24561_s3 + $0x2c] sm:$0xf]  ;;  %v16325_v38 = vld [vmem:[%s24563_s5 + $0xa4] sm:$0xf]  ;;  %v14638_v19 = vld [vmem:[%s24563_s5 + $0xb0] sm:$0xf0] }
 0x447   :  { %9389 = vmatpush.bf16.msra.mxu3 %v14669_v8  ;;  %v14556_v8 = vld [vmem:[%s24563_s5] sm:$0xf]  ;;  %v16262_v62 = vld [vmem:[%s24561_s3 + $0x4ec] sm:$0xf]  ;;  %v14641_v26 = vor.u32 %v16325_v38, %v14638_v19  ;;  %v14322_v3 = vld [vmem:[%s24561_s3 + $0x478] sm:$0xf0] }
 0x448   :  { %v8466_v31 = vpop.f32.mrf.mxu0  ;;  %8742 = vmatpush.bf16.msrb.mxu0 %v14501_v59  ;;  %v13794_v59 = vld [vmem:[%s24561_s3 + $0x58] sm:$0xf0]  ;;  %v16246_v47 = vld [vmem:[%s24561_s3 + $0x46c] sm:$0xf]  ;;  %v14732_v38 = vld [vmem:[%s24563_s5 + $0x160] sm:$0xf] }
 0x449   :  { %8761 = vmatpush.bf16.msra.mxu1 %v14533_v18  ;;  %v23357_v13 = vpop.f32.mrf.mxu3  ;;  %v8479_v56 = vpop.f32.mrf.mxu1  ;;  %v16327_v18 = vld [vmem:[%s24563_s5 + $0xac] sm:$0xf0]  ;;  %v13797_v31 = vor.u32 %v16114_v6, %v13794_v59  ;;  %v14325_v50 = vor.u32 %v16246_v47, %v14322_v3  ;;  %v16242_v51 = vld [vmem:[%s24561_s3 + $0x44c] sm:$0xf]  ;;  %v14306_v63 = vld [vmem:[%s24561_s3 + $0x458] sm:$0xf0] }
 0x44a   :  { %8628 = vmatpush.bf16.msra.mxu2 %v14193_v27  ;;  %v14637_v20 = vor.u32 %v16327_v18, %v14636_v42  ;;  %v13829_v27 = vor.u32 %v16122_v54, %v13826_v0  ;;  %v16311_v56 = vld [vmem:[%s24563_s5 + $0x2c] sm:$0xf0]  ;;  %v16258_v42 = vld [vmem:[%s24561_s3 + $0x4cc] sm:$0xf]  ;;  %v14370_v18 = vld [vmem:[%s24561_s3 + $0x4d8] sm:$0xf0]  ;;  %v14309_v6 = vor.u32 %v16242_v51, %v14306_v63 }
 0x44b   :  { %9390 = vmatpush.bf16.msra.mxu3 %v14653_v41  ;;  %v14389_v41 = vor.u32 %v16262_v62, %v14386_v35  ;;  %v16250_v0 = vld [vmem:[%s24561_s3 + $0x48c] sm:$0xf]  ;;  %v16309_v59 = vld [vmem:[%s24563_s5 + $0x24] sm:$0xf]  ;;  %v14780_v62 = vld [vmem:[%s24563_s5 + $0x1c0] sm:$0xf] }
 0x44c   :  { %8743 = vmatpush.bf16.msrb.mxu0 %v14485_v4  ;;  %v14573_v4 = vor.u32 %v16311_v56, %v14572_v46  ;;  %v16363_v35 = vld [vmem:[%s24563_s5 + $0x1cc] sm:$0xf0]  ;;  %v14788_v3 = vld [vmem:[%s24563_s5 + $0x1c8] sm:$0xf] }
 0x44d   :  { %v16351_v19 = vld [vmem:[%s24563_s5 + $0x16c] sm:$0xf0] }
 0x44e   :  { %8629 = vmatpush.bf16.msra.mxu2 %v14177_v57  ;;  %v14588_v57 = vld [vmem:[%s24563_s5 + $0x40] sm:$0xf] }
 0x44f   :  { %9391 = vmatpush.bf16.msra.mxu3 %v14637_v20  ;;  %v14589_v2 = vor.u32 %v16315_v24, %v14588_v57  ;;  %v14574_v24 = vld [vmem:[%s24563_s5 + $0x30] sm:$0xf0] }
 0x450   :  { %8744 = vmatpush.bf16.msrb.mxu0 %v14469_v5  ;;  %v14577_v46 = vor.u32 %v16309_v59, %v14574_v24  ;;  %v14924_v59 = vld [vmem:[%s24563_s5 + $0x2e0] sm:$0xf]  ;;  %v16399_v24 = vld [vmem:[%s24563_s5 + $0x2ec] sm:$0xf0] }
 0x451   :  { %v8505_v43 = vpop.f32.mrf.mxu3 }
 0x452   :  { %8630 = vmatpush.bf16.msra.mxu2 %v14161_v11  ;;  %v16329_v43 = vld [vmem:[%s24563_s5 + $0xc4] sm:$0xf] }
 0x453   :  { %9392 = vmatpush.bf16.msra.mxu3 %v14621_v30  ;;  %v14338_v30 = vld [vmem:[%s24561_s3 + $0x498] sm:$0xf0] }
 0x454   :  { %14553 = vmatmul.msk.bf16.vlgmr.msra.gmra.mxu1 %vm8399_vm0, %v23075_v36  ;;  %v16134_v36 = vld [vmem:[%s24561_s3 + $0xec] sm:$0xf]  ;;  %8745 = vmatpush.bf16.msrb.mxu0 %v14453_v37 }
 0x455   :  { %v13877_v12 = vor.u32 %v16134_v36, %v13874_v45  ;;  %v13781_v36 = vor.u32 %v16110_v10, %v13778_v7  ;;  %v16106_v45 = vld [vmem:[%s24561_s3 + $0xc] sm:$0xf]  ;;  %v16305_v10 = vld [vmem:[%s24563_s5 + $0x4] sm:$0xf]  ;;  %v14558_v7 = vld [vmem:[%s24563_s5 + $0x10] sm:$0xf0] }
 0x456   :  { %8631 = vmatpush.bf16.msra.mxu2 %v14145_v25  ;;  %v14557_v25 = vor.u32 %v16307_v15, %v14556_v8  ;;  %v14274_v8 = vld [vmem:[%s24561_s3 + $0x418] sm:$0xf0]  ;;  %v14561_v15 = vor.u32 %v16305_v10, %v14558_v7  ;;  %v7392_v10 = vperm.slane %v23137_v60, 1 }
 0x457   :  { %9393 = vmatpush.bf16.msra.mxu3 %v14605_v48  ;;  %v14590_v48 = vld [vmem:[%s24563_s5 + $0x50] sm:$0xf0] }
 0x459   :  { %8632 = vmatmul.bf16.vlgmr.msra.gmra.mxu2 %v22434_v14  ;;  %v14437_v14 = vor.u32 %v16274_v40, %v14434_v1  ;;  %v14373_v40 = vor.u32 %v16258_v42, %v14370_v18  ;;  %v16254_v1 = vld [vmem:[%s24561_s3 + $0x4ac] sm:$0xf]  ;;  %v14748_v42 = vld [vmem:[%s24563_s5 + $0x180] sm:$0xf]  ;;  %v16355_v18 = vld [vmem:[%s24563_s5 + $0x18c] sm:$0xf0] }
 0x45a   :  { %8676 = vmatpush.bf16.msrb.mxu2 %v13877_v12  ;;  %v16333_v12 = vld [vmem:[%s24563_s5 + $0xe4] sm:$0xf] }
 0x45b   :  { %8746 = vmatpush.bf16.msrb.mxu0 %v14437_v14  ;;  %9394 = vmatpush.bf16.msra.mxu3 %v14589_v2  ;;  %v14673_v34 = vor.u32 %v16333_v12, %v14670_v33  ;;  %v14622_v14 = vld [vmem:[%s24563_s5 + $0x90] sm:$0xf0]  ;;  %v16238_v2 = vld [vmem:[%s24561_s3 + $0x42c] sm:$0xf] }
 0x45e   :  { %8677 = vmatpush.bf16.msrb.mxu2 %v13861_v9  ;;  %v14654_v9 = vld [vmem:[%s24563_s5 + $0xd0] sm:$0xf0] }
 0x45f   :  { %8747 = vmatpush.bf16.msrb.mxu0 %v14421_v28  ;;  %9395 = vmatpush.bf16.msra.mxu3 %v14573_v4  ;;  %v14657_v37 = vor.u32 %v16329_v43, %v14654_v9  ;;  %v14609_v28 = vor.u32 %v16317_v22, %v14606_v23  ;;  %v16359_v43 = vld [vmem:[%s24563_s5 + $0x1ac] sm:$0xf0] }
 0x460   :  { %v23470_v61 = vpop.f32.mrf.mxu0 }
 0x461   :  { %v23472_v11 = vpop.f32.mrf.mxu1 }
 0x462   :  { %8678 = vmatpush.bf16.msrb.mxu2 %v13845_v17  ;;  %v14354_v17 = vld [vmem:[%s24561_s3 + $0x4b8] sm:$0xf0] }
 0x463   :  { %8748 = vmatpush.bf16.msrb.mxu0 %v14405_v53  ;;  %9396 = vmatpush.bf16.msra.mxu3 %v14557_v25  ;;  %v14357_v54 = vor.u32 %v16254_v1, %v14354_v17  ;;  %v7393_v53 = vperm.slane %v23137_v60, 2  ;;  %v16367_v25 = vld [vmem:[%s24563_s5 + $0x1ec] sm:$0xf0] }
 0x464   :  { %v16347_v1 = vld [vmem:[%s24563_s5 + $0x14c] sm:$0xf0] }
 0x465   :  { %v16395_v60 = vld [vmem:[%s24563_s5 + $0x2cc] sm:$0xf0] }
 0x466   :  { %8679 = vmatpush.bf16.msrb.mxu2 %v13829_v27  ;;  %8749 = vmatmul.bf16.vlgmr.msrb.gmra.mxu0 %v22599_v52  ;;  %v13762_v52 = vld [vmem:[%s24561_s3 + $0x18] sm:$0xf0]  ;;  %v14341_v27 = vor.u32 %v16250_v0, %v14338_v30  ;;  %v16368_v0 = vld [vmem:[%s24563_s5 + $0x1f4] sm:$0xf0]  ;;  %v14700_v30 = vld [vmem:[%s24563_s5 + $0x120] sm:$0xf] }
 0x467   :  { %v13765_v58 = vor.u32 %v16106_v45, %v13762_v52  ;;  %9441 = vmatpush.bf16.msrb.mxu3 %v14673_v34  ;;  %v14796_v52 = vld [vmem:[%s24563_s5 + $0x1e0] sm:$0xf]  ;;  %v14781_v34 = vor.u32 %v16363_v35, %v14780_v62  ;;  %v8504_v35 = vadd.f32 %v23357_v13, %v7392_v10  ;;  %v16389_v13 = vld [vmem:[%s24563_s5 + $0x2a4] sm:$0xf] }
 0x468   :  { %v8531_v5 = vpop.f32.mrf.mxu0 }
 0x469   :  { %v23496_v21 = vpop.f32.mrf.mxu3  ;;  %v8544_v32 = vpop.f32.mrf.mxu1  ;;  %v14797_v5 = vor.u32 %v16367_v25, %v14796_v52  ;;  %v14910_v25 = vld [vmem:[%s24563_s5 + $0x2d0] sm:$0xf0] }
 0x46a   :  { %8680 = vmatpush.bf16.msrb.mxu2 %v13813_v16  ;;  %v14593_v16 = vor.u32 %v16313_v44, %v14590_v48  ;;  %v16339_v44 = vld [vmem:[%s24563_s5 + $0x10c] sm:$0xf0] }
 0x46b   :  { %9442 = vmatpush.bf16.msrb.mxu3 %v14657_v37  ;;  %9402 = vmatpush.bf16.msrb.mxu1 %v14797_v5  ;;  %v14749_v37 = vor.u32 %v16355_v18, %v14748_v42  ;;  %v14894_v18 = vld [vmem:[%s24563_s5 + $0x2b0] sm:$0xf0] }
 0x46e   :  { %8681 = vmatpush.bf16.msrb.mxu2 %v13797_v31  ;;  %v14290_v31 = vld [vmem:[%s24561_s3 + $0x438] sm:$0xf0] }
 0x46f   :  { %9443 = vmatpush.bf16.msrb.mxu3 %v14641_v26  ;;  %v14293_v4 = vor.u32 %v16238_v2, %v14290_v31  ;;  %9403 = vmatpush.bf16.msrb.mxu1 %v14781_v34  ;;  %v16397_v2 = vld [vmem:[%s24563_s5 + $0x2e4] sm:$0xf]  ;;  %v14925_v31 = vor.u32 %v16399_v24, %v14924_v59  ;;  %v14740_v34 = vld [vmem:[%s24563_s5 + $0x168] sm:$0xf]  ;;  %v16398_v59 = vld [vmem:[%s24563_s5 + $0x2ec] sm:$0xf] }
 0x470   :  { %v14844_v24 = vld [vmem:[%s24563_s5 + $0x240] sm:$0xf] }
 0x471   :  { %v8557_v20 = vpop.f32.mrf.mxu3 }
 0x472   :  { %8682 = vmatpush.bf16.msrb.mxu2 %v13781_v36  ;;  %v16234_v36 = vld [vmem:[%s24561_s3 + $0x40c] sm:$0xf]  ;;  %v14733_v20 = vor.u32 %v16351_v19, %v14732_v38  ;;  %v14724_v19 = vld [vmem:[%s24563_s5 + $0x148] sm:$0xf] }
 0x473   :  { %v14277_v32 = vor.u32 %v16234_v36, %v14274_v8  ;;  %v16356_v36 = vld [vmem:[%s24563_s5 + $0x194] sm:$0xf0]  ;;  %v14908_v8 = vld [vmem:[%s24563_s5 + $0x2c0] sm:$0xf] }
 0x474   :  { %v14909_v52 = vor.u32 %v16395_v60, %v14908_v8 }
 0x476   :  { %8683 = vmatpush.bf16.msrb.mxu2 %v13765_v58 }
 0x479   :  { %8684 = vmatmul.bf16.vlgmr.msrb.gmra.mxu2 %v22428_v29  ;;  %v14625_v29 = vor.u32 %v16321_v39, %v14622_v14 }
 0x47a   :  { %8728 = vmatpush.bf16.msra.mxu2 %v14389_v41  ;;  %v14764_v41 = vld [vmem:[%s24563_s5 + $0x1a0] sm:$0xf] }
 0x47b   :  { %9444 = vmatpush.bf16.msrb.mxu3 %v14625_v29  ;;  %v14765_v9 = vor.u32 %v16359_v43, %v14764_v41  ;;  %v16343_v29 = vld [vmem:[%s24563_s5 + $0x12c] sm:$0xf0]  ;;  %v14892_v41 = vld [vmem:[%s24563_s5 + $0x2a0] sm:$0xf] }
 0x47c   :  { %v16391_v43 = vld [vmem:[%s24563_s5 + $0x2ac] sm:$0xf0] }
 0x47d   :  { %9404 = vmatpush.bf16.msrb.mxu1 %v14765_v9  ;;  %v14893_v42 = vor.u32 %v16391_v43, %v14892_v41 }
 0x47e   :  { %8729 = vmatpush.bf16.msra.mxu2 %v14373_v40  ;;  %v14716_v40 = vld [vmem:[%s24563_s5 + $0x140] sm:$0xf] }
 0x47f   :  { %9445 = vmatpush.bf16.msrb.mxu3 %v14609_v28  ;;  %v14717_v17 = vor.u32 %v16347_v1, %v14716_v40  ;;  %v16364_v28 = vld [vmem:[%s24563_s5 + $0x1d4] sm:$0xf0]  ;;  %v14897_v40 = vor.u32 %v16389_v13, %v14894_v18  ;;  %v14876_v1 = vld [vmem:[%s24563_s5 + $0x280] sm:$0xf] }
 0x480   :  { %v14812_v13 = vld [vmem:[%s24563_s5 + $0x200] sm:$0xf] }
 0x481   :  { %v8594_v57 = vpop.f32.mrf.mxu1  ;;  %9405 = vmatpush.bf16.msrb.mxu1 %v14749_v37 }
 0x482   :  { %8730 = vmatpush.bf16.msra.mxu2 %v14357_v54  ;;  %v8595_v56 = vadd.f32 %v8594_v57, %v7393_v53  ;;  %v14804_v54 = vld [vmem:[%s24563_s5 + $0x1e8] sm:$0xf]  ;;  %v14789_v57 = vor.u32 %v16364_v28, %v14788_v3  ;;  %v16344_v28 = vld [vmem:[%s24563_s5 + $0x134] sm:$0xf0] }
 0x483   :  { %9446 = vmatpush.bf16.msrb.mxu3 %v14593_v16  ;;  %v14772_v53 = vld [vmem:[%s24563_s5 + $0x1a8] sm:$0xf] }
 0x484   :  { %v14708_v3 = vld [vmem:[%s24563_s5 + $0x128] sm:$0xf] }
 0x485   :  { %9406 = vmatpush.bf16.msrb.mxu1 %v14733_v20  ;;  %v16348_v20 = vld [vmem:[%s24563_s5 + $0x154] sm:$0xf0] }
 0x486   :  { %8731 = vmatpush.bf16.msra.mxu2 %v14341_v27  ;;  %v14805_v27 = vor.u32 %v16368_v0, %v14804_v54  ;;  %v14878_v54 = vld [vmem:[%s24563_s5 + $0x290] sm:$0xf0] }
 0x487   :  { %9447 = vmatpush.bf16.msrb.mxu3 %v14577_v46  ;;  %v14926_v46 = vld [vmem:[%s24563_s5 + $0x2f0] sm:$0xf0] }
 0x489   :  { %v8607_v45 = vpop.f32.mrf.mxu3  ;;  %v8596_v33 = vpop.f32.mrf.mxu1  ;;  %9407 = vmatpush.bf16.msrb.mxu1 %v14717_v17  ;;  %v16387_v17 = vld [vmem:[%s24563_s5 + $0x28c] sm:$0xf0] }
 0x48a   :  { %8732 = vmatpush.bf16.msra.mxu2 %v14325_v50  ;;  %v23605_v12 = vadd.f32 %v8607_v45, %v8595_v56  ;;  %v14684_v50 = vld [vmem:[%s24563_s5 + $0x100] sm:$0xf]  ;;  %v14929_v45 = vor.u32 %v16397_v2, %v14926_v46  ;;  %v16379_v2 = vld [vmem:[%s24563_s5 + $0x24c] sm:$0xf0] }
 0x48b   :  { %9448 = vmatpush.bf16.msrb.mxu3 %v14561_v15  ;;  %v14685_v51 = vor.u32 %v16339_v44, %v14684_v50  ;;  %v16393_v15 = vld [vmem:[%s24563_s5 + $0x2c4] sm:$0xf]  ;;  %v14845_v10 = vor.u32 %v16379_v2, %v14844_v24 }
 0x48c   :  { %v14913_v5 = vor.u32 %v16393_v15, %v14910_v25  ;;  %v14828_v15 = vld [vmem:[%s24563_s5 + $0x220] sm:$0xf] }
 0x48e   :  { %8733 = vmatpush.bf16.msra.mxu2 %v14309_v6  ;;  %v16360_v6 = vld [vmem:[%s24563_s5 + $0x1b4] sm:$0xf0] }
 0x48f   :  { %v14773_v56 = vor.u32 %v16360_v6, %v14772_v53  ;;  %v16340_v6 = vld [vmem:[%s24563_s5 + $0x114] sm:$0xf0] }
 0x491   :  { %v8609_v58 = vpop.f32.mrf.mxu3 }
 0x492   :  { %8734 = vmatpush.bf16.msra.mxu2 %v14293_v4  ;;  %v14756_v4 = vld [vmem:[%s24563_s5 + $0x188] sm:$0xf]  ;;  %v16352_v58 = vld [vmem:[%s24563_s5 + $0x174] sm:$0xf0] }
 0x493   :  { %v14757_v62 = vor.u32 %v16356_v36, %v14756_v4  ;;  %v14741_v38 = vor.u32 %v16352_v58, %v14740_v34 }
 0x494   :  { %v8490_v39 = vpop.f32.mrf.mxu2 }
 0x495   :  { %v8491_v14 = vadd.f32 %v8490_v39, %v23342_v55  ;;  %v14701_v55 = vor.u32 %v16343_v29, %v14700_v30  ;;  %v16385_v39 = vld [vmem:[%s24563_s5 + $0x284] sm:$0xf]  ;;  %v14860_v29 = vld [vmem:[%s24563_s5 + $0x260] sm:$0xf] }
 0x496   :  { %8735 = vmatpush.bf16.msra.mxu2 %v14277_v32  ;;  %v14881_v30 = vor.u32 %v16385_v39, %v14878_v54  ;;  %v16386_v39 = vld [vmem:[%s24563_s5 + $0x28c] sm:$0xf] }
 0x497   :  { %v8767_v22 = vmax.f32 %v8491_v14, 0.0  ;;  %9408 = vmatpush.bf16.msrb.mxu1 %v14701_v55  ;;  %v14877_v14 = vor.u32 %v16387_v17, %v14876_v1 }
 0x499   :  { %8736 = vmatmul.bf16.vlgmr.msra.gmra.mxu2 %v22597_v49  ;;  %v23632_v49 = vpop.f32.mrf.mxu0  ;;  %v23655_v47 = vpack.c.bf16 %v8767_v22, %v8767_v22  ;;  %v16383_v22 = vld [vmem:[%s24563_s5 + $0x26c] sm:$0xf0] }
 0x49a   :  { %9415 = vmatpush.bf16.msrb.mxu2 %v14925_v31  ;;  %v14861_v50 = vor.u32 %v16383_v22, %v14860_v29  ;;  %v16377_v31 = vld [vmem:[%s24563_s5 + $0x244] sm:$0xf]  ;;  %v16382_v22 = vld [vmem:[%s24563_s5 + $0x26c] sm:$0xf] }
 0x49b   :  { %9397 = vmatmul.bf16.vlgmr.msra.gmra.mxu3 %v23655_v47  ;;  %9409 = vmatpush.bf16.msrb.mxu1 %v14685_v51 }
 0x49c   :  { %v8492_v16 = vpop.f32.mrf.mxu2  ;;  %9506 = vmatpush.bf16.msra.mxu3 %v14805_v27  ;;  %v14725_v27 = vor.u32 %v16348_v20, %v14724_v19  ;;  %v14814_v20 = vld [vmem:[%s24563_s5 + $0x210] sm:$0xf0] }
 0x49d   :  { %v14709_v16 = vor.u32 %v16344_v28, %v14708_v3 }
 0x49e   :  { %9416 = vmatpush.bf16.msrb.mxu2 %v14909_v52  ;;  %v16373_v52 = vld [vmem:[%s24563_s5 + $0x224] sm:$0xf] }
 0x49f   :  { %9467 = vmatpush.bf16.msra.mxu1 %v14929_v45 }
 0x4a0   :  { %9507 = vmatpush.bf16.msra.mxu3 %v14789_v57  ;;  %v14692_v57 = vld [vmem:[%s24563_s5 + $0x108] sm:$0xf] }
 0x4a1   :  { %v23640_v26 = vpop.f32.mrf.mxu1  ;;  %v8583_v23 = vpop.f32.mrf.mxu0  ;;  %v14693_v36 = vor.u32 %v16340_v6, %v14692_v57  ;;  %v16370_v57 = vld [vmem:[%s24563_s5 + $0x20c] sm:$0xf]  ;;  %v14822_v6 = vld [vmem:[%s24563_s5 + $0x218] sm:$0xf0] }
 0x4a2   :  { %9417 = vmatpush.bf16.msrb.mxu2 %v14893_v42  ;;  %v16381_v23 = vld [vmem:[%s24563_s5 + $0x264] sm:$0xf]  ;;  %v14825_v2 = vor.u32 %v16370_v57, %v14822_v6 }
 0x4a3   :  { %9468 = vmatpush.bf16.msra.mxu1 %v14913_v5  ;;  %v14918_v5 = vld [vmem:[%s24563_s5 + $0x2d8] sm:$0xf0]  ;;  %v16369_v42 = vld [vmem:[%s24563_s5 + $0x204] sm:$0xf] }
 0x4a4   :  { %v8516_v32 = vpop.f32.mrf.mxu2  ;;  %9508 = vmatpush.bf16.msra.mxu3 %v14773_v56  ;;  %v14846_v56 = vld [vmem:[%s24563_s5 + $0x250] sm:$0xf0]  ;;  %v14817_v1 = vor.u32 %v16369_v42, %v14814_v20 }
 0x4a5   :  { %v8517_v9 = vadd.f32 %v8516_v32, %v8504_v35  ;;  %v14849_v45 = vor.u32 %v16377_v31, %v14846_v56  ;;  %v16403_v56 = vld [vmem:[%s24563_s5 + $0x30c] sm:$0xf0] }
 0x4a6   :  { %9418 = vmatpush.bf16.msrb.mxu2 %v14877_v14  ;;  %v14886_v14 = vld [vmem:[%s24563_s5 + $0x298] sm:$0xf0] }
 0x4a7   :  { %9469 = vmatpush.bf16.msra.mxu1 %v14897_v40  ;;  %v8530_v0 = vadd.f32 %v23470_v61, %v8517_v9  ;;  %v14862_v61 = vld [vmem:[%s24563_s5 + $0x270] sm:$0xf0]  ;;  %v16371_v9 = vld [vmem:[%s24563_s5 + $0x20c] sm:$0xf0]  ;;  %v14889_v29 = vor.u32 %v16386_v39, %v14886_v14 }
 0x4a8   :  { %9509 = vmatpush.bf16.msra.mxu3 %v14757_v62  ;;  %v14865_v44 = vor.u32 %v16381_v23, %v14862_v61  ;;  %v14830_v62 = vld [vmem:[%s24563_s5 + $0x230] sm:$0xf0]  ;;  %v14813_v19 = vor.u32 %v16371_v9, %v14812_v13  ;;  %v14870_v23 = vld [vmem:[%s24563_s5 + $0x278] sm:$0xf0]  ;;  %v16404_v13 = vld [vmem:[%s24563_s5 + $0x314] sm:$0xf0] }
 0x4a9   :  { %v23669_v48 = vpop.f32.mrf.mxu3  ;;  %v8648_v63 = vpop.f32.mrf.mxu1  ;;  %v8543_v51 = vadd.f32 %v23472_v11, %v8530_v0  ;;  %v14934_v11 = vld [vmem:[%s24563_s5 + $0x2f8] sm:$0xf0]  ;;  %v14833_v58 = vor.u32 %v16373_v52, %v14830_v62  ;;  %v16361_v52 = vld [vmem:[%s24563_s5 + $0x1c4] sm:$0xf]  ;;  %v16334_v9 = vld [vmem:[%s24563_s5 + $0xec] sm:$0xf] }
 0x4aa   :  { %v23691_v7 = vpop.f32.mrf.mxu0  ;;  %9419 = vmatpush.bf16.msrb.mxu2 %v14861_v50  ;;  %v14937_v60 = vor.u32 %v16398_v59, %v14934_v11  ;;  %v14854_v61 = vld [vmem:[%s24563_s5 + $0x258] sm:$0xf0]  ;;  %v14750_v39 = vld [vmem:[%s24563_s5 + $0x190] sm:$0xf0] }
 0x4ab   :  { %9449 = vmatmul.bf16.vlgmr.msrb.gmra.mxu3 %v23655_v47  ;;  %9470 = vmatpush.bf16.msra.mxu1 %v14881_v30  ;;  %v8556_v46 = vadd.f32 %v23496_v21, %v8543_v51  ;;  %v16375_v21 = vld [vmem:[%s24563_s5 + $0x22c] sm:$0xf0]  ;;  %v14838_v51 = vld [vmem:[%s24563_s5 + $0x238] sm:$0xf0]  ;;  %v8621_v59 = vadd.f32 %v23691_v7, %v23605_v12  ;;  %v16401_v12 = vld [vmem:[%s24563_s5 + $0x304] sm:$0xf] }
 0x4ac   :  { %v8518_v55 = vpop.f32.mrf.mxu2  ;;  %9510 = vmatpush.bf16.msra.mxu3 %v14741_v38  ;;  %v14829_v32 = vor.u32 %v16375_v21, %v14828_v15  ;;  %v14902_v38 = vld [vmem:[%s24563_s5 + $0x2b8] sm:$0xf0]  ;;  %v16336_v15 = vld [vmem:[%s24563_s5 + $0xf4] sm:$0xf0] }
 0x4ad   :  { %v14873_v55 = vor.u32 %v16382_v22, %v14870_v23  ;;  %v16324_v22 = vld [vmem:[%s24563_s5 + $0x94] sm:$0xf0] }
 0x4ae   :  { %9420 = vmatpush.bf16.msrb.mxu2 %v14845_v10  ;;  %v14940_v10 = vld [vmem:[%s24563_s5 + $0x300] sm:$0xf] }
 0x4af   :  { %9471 = vmatpush.bf16.msra.mxu1 %v14865_v44  ;;  %v16374_v44 = vld [vmem:[%s24563_s5 + $0x22c] sm:$0xf]  ;;  %v14941_v7 = vor.u32 %v16403_v56, %v14940_v10  ;;  %v16316_v10 = vld [vmem:[%s24563_s5 + $0x54] sm:$0xf0] }
 0x4b0   :  { %9511 = vmatpush.bf16.msra.mxu3 %v14725_v27  ;;  %v16378_v27 = vld [vmem:[%s24563_s5 + $0x24c] sm:$0xf] }
 0x4b1   :  { %v8661_v33 = vpop.f32.mrf.mxu3  ;;  %v14857_v50 = vor.u32 %v16378_v27, %v14854_v61  ;;  %9435 = vmatpush.bf16.msra.mxu0 %v14941_v7  ;;  %v14734_v27 = vld [vmem:[%s24563_s5 + $0x170] sm:$0xf0]  ;;  %v16326_v56 = vld [vmem:[%s24563_s5 + $0xac] sm:$0xf] }
 0x4b2   :  { %v8622_v37 = vpop.f32.mrf.mxu0  ;;  %v16394_v33 = vld [vmem:[%s24563_s5 + $0x2cc] sm:$0xf]  ;;  %9421 = vmatpush.bf16.msrb.mxu2 %v14829_v32 }
 0x4b3   :  { %9472 = vmatpush.bf16.msra.mxu1 %v14849_v45  ;;  %v14921_v43 = vor.u32 %v16394_v33, %v14918_v5  ;;  %v16390_v37 = vld [vmem:[%s24563_s5 + $0x2ac] sm:$0xf]  ;;  %v14660_v5 = vld [vmem:[%s24563_s5 + $0xc8] sm:$0xf] }
 0x4b4   :  { %v8568_v4 = vpop.f32.mrf.mxu2  ;;  %9512 = vmatpush.bf16.msra.mxu3 %v14709_v16  ;;  %v14905_v17 = vor.u32 %v16390_v37, %v14902_v38  ;;  %v14841_v16 = vor.u32 %v16374_v44, %v14838_v51  ;;  %v14678_v37 = vld [vmem:[%s24563_s5 + $0xf8] sm:$0xf0]  ;;  %v16330_v44 = vld [vmem:[%s24563_s5 + $0xcc] sm:$0xf] }
 0x4b5   :  { %v8569_v8 = vadd.f32 %v8568_v4, %v8556_v46  ;;  %v14798_v4 = vld [vmem:[%s24563_s5 + $0x1f0] sm:$0xf0]  ;;  %v14662_v51 = vld [vmem:[%s24563_s5 + $0xd8] sm:$0xf0] }
 0x4b6   :  { %9422 = vmatpush.bf16.msrb.mxu2 %v14813_v19  ;;  %v14681_v19 = vor.u32 %v16334_v9, %v14678_v37  ;;  %v14598_v37 = vld [vmem:[%s24563_s5 + $0x58] sm:$0xf0] }
 0x4b7   :  { %v8582_v25 = vadd.f32 %v23632_v49, %v8569_v8  ;;  %9473 = vmatpush.bf16.msra.mxu1 %v14833_v58  ;;  %v16357_v58 = vld [vmem:[%s24563_s5 + $0x1a4] sm:$0xf] }
 0x4b8   :  { %9513 = vmatpush.bf16.msra.mxu3 %v14693_v36 }
 0x4b9   :  { %v8768_v41 = vmax.f32 %v8582_v25, 0.0 }
 0x4ba   :  { %v23769_v63 = vpop.f32.mrf.mxu0 }
 0x4bb   :  { %v23828_v18 = vpack.c.bf16 %v8768_v41, %v8768_v41  ;;  %9474 = vmatpush.bf16.msra.mxu1 %v14817_v1  ;;  %v14766_v41 = vld [vmem:[%s24563_s5 + $0x1b0] sm:$0xf0]  ;;  %v16328_v1 = vld [vmem:[%s24563_s5 + $0xb4] sm:$0xf0] }
 0x4bc   :  { %9571 = vmatpush.bf16.msrb.mxu3 %v14937_v60  ;;  %v8570_v40 = vpop.f32.mrf.mxu2  ;;  %v14676_v60 = vld [vmem:[%s24563_s5 + $0xe8] sm:$0xf]  ;;  %v14769_v20 = vor.u32 %v16357_v58, %v14766_v41  ;;  %v16308_v41 = vld [vmem:[%s24563_s5 + $0x14] sm:$0xf0] }
 0x4bd   :  { %9410 = vmatmul.bf16.vlgmr.msrb.gmra.mxu1 %v23828_v18  ;;  %9514 = vmatmul.bf16.vlgmr.msra.gmra.mxu3 %v23828_v18  ;;  %v14677_v33 = vor.u32 %v16336_v15, %v14676_v60  ;;  %v14644_v40 = vld [vmem:[%s24563_s5 + $0xa8] sm:$0xf]  ;;  %v16312_v15 = vld [vmem:[%s24563_s5 + $0x34] sm:$0xf0] }
 0x4be   :  { %v14645_v14 = vor.u32 %v16328_v1, %v14644_v40  ;;  %v16306_v1 = vld [vmem:[%s24563_s5 + $0xc] sm:$0xf] }
 0x4c0   :  { %9572 = vmatpush.bf16.msrb.mxu3 %v14921_v43  ;;  %v14948_v43 = vld [vmem:[%s24563_s5 + $0x308] sm:$0xf] }
 0x4c1   :  { %v23774_v53 = vpop.f32.mrf.mxu1  ;;  %v14949_v42 = vor.u32 %v16404_v13, %v14948_v43  ;;  %v16318_v43 = vld [vmem:[%s24563_s5 + $0x6c] sm:$0xf]  ;;  %v14614_v13 = vld [vmem:[%s24563_s5 + $0x78] sm:$0xf0] }
 0x4c2   :  { %v8674_v35 = vpop.f32.mrf.mxu0  ;;  %v14617_v9 = vor.u32 %v16318_v43, %v14614_v13  ;;  %v14820_v13 = vld [vmem:[%s24563_s5 + $0x208] sm:$0xf] }
 0x4c3   :  { %v16332_v35 = vld [vmem:[%s24563_s5 + $0xd4] sm:$0xf0]  ;;  %9539 = vmatpush.bf16.msrb.mxu1 %v14949_v42  ;;  %v16314_v42 = vld [vmem:[%s24563_s5 + $0x4c] sm:$0xf] }
 0x4c4   :  { %9573 = vmatpush.bf16.msrb.mxu3 %v14905_v17  ;;  %v14661_v38 = vor.u32 %v16332_v35, %v14660_v5  ;;  %v16353_v17 = vld [vmem:[%s24563_s5 + $0x184] sm:$0xf]  ;;  %v14564_v35 = vld [vmem:[%s24563_s5 + $0x8] sm:$0xf] }
 0x4c5   :  { %v16337_v5 = vld [vmem:[%s24563_s5 + $0x104] sm:$0xf] }
 0x4c8   :  { %9574 = vmatpush.bf16.msrb.mxu3 %v14889_v29  ;;  %v14628_v29 = vld [vmem:[%s24563_s5 + $0x88] sm:$0xf] }
 0x4c9   :  { %v23817_v34 = vpop.f32.mrf.mxu3  ;;  %v8713_v49 = vpop.f32.mrf.mxu1  ;;  %v14629_v61 = vor.u32 %v16324_v22, %v14628_v29 }
 0x4ca   :  { %v23847_v54 = vpop.f32.mrf.mxu0 }
 0x4cc   :  { %9575 = vmatpush.bf16.msrb.mxu3 %v14873_v55  ;;  %v16349_v55 = vld [vmem:[%s24563_s5 + $0x164] sm:$0xf] }
 0x4d0   :  { %9576 = vmatpush.bf16.msrb.mxu3 %v14857_v50  ;;  %v16320_v50 = vld [vmem:[%s24563_s5 + $0x74] sm:$0xf0] }
 0x4d1   :  { %v8726_v0 = vpop.f32.mrf.mxu3  ;;  %v23849_v30 = vpop.f32.mrf.mxu1 }
 0x4d2   :  { %v8700_v3 = vpop.f32.mrf.mxu0  ;;  %v14753_v0 = vor.u32 %v16353_v17, %v14750_v39  ;;  %v14566_v17 = vld [vmem:[%s24563_s5 + $0x18] sm:$0xf0] }
 0x4d3   :  { %v14737_v3 = vor.u32 %v16349_v55, %v14734_v27  ;;  %v14569_v39 = vor.u32 %v16306_v1, %v14566_v17  ;;  %v16400_v55 = vld [vmem:[%s24563_s5 + $0x2f4] sm:$0xf0]  ;;  %v16366_v27 = vld [vmem:[%s24563_s5 + $0x1ec] sm:$0xf] }
 0x4d4   :  { %9577 = vmatpush.bf16.msrb.mxu3 %v14841_v16  ;;  %v16474_v16 = vld [vmem:[%s24562_s4] sm:$0xf] }
 0x4d5   :  { %v7394_v57 = vperm.slane %v16474_v16, 3  ;;  %v16362_v16 = vld [vmem:[%s24563_s5 + $0x1cc] sm:$0xf] }
 0x4d8   :  { %9578 = vmatpush.bf16.msrb.mxu3 %v14825_v2  ;;  %v14596_v2 = vld [vmem:[%s24563_s5 + $0x48] sm:$0xf] }
 0x4d9   :  { %v8765_v28 = vpop.f32.mrf.mxu1 }
 0x4da   :  { %v14612_v28 = vld [vmem:[%s24563_s5 + $0x68] sm:$0xf] }
 0x4db   :  { %v14613_v6 = vor.u32 %v16320_v50, %v14612_v28 }
 0x4dc   :  { %v8633_v11 = vpop.f32.mrf.mxu2 }
 0x4dd   :  { %v8634_v24 = vadd.f32 %v8633_v11, %v8621_v59  ;;  %v14665_v59 = vor.u32 %v16330_v44, %v14662_v51  ;;  %v16345_v11 = vld [vmem:[%s24563_s5 + $0x144] sm:$0xf]  ;;  %v14916_v44 = vld [vmem:[%s24563_s5 + $0x2c8] sm:$0xf]  ;;  %v16396_v51 = vld [vmem:[%s24563_s5 + $0x2d4] sm:$0xf0] }
 0x4df   :  { %v8647_v31 = vadd.f32 %v23640_v26, %v8634_v24  ;;  %v14942_v26 = vld [vmem:[%s24563_s5 + $0x310] sm:$0xf0] }
 0x4e0   :  { %v14945_v45 = vor.u32 %v16401_v12, %v14942_v26  ;;  %v14718_v24 = vld [vmem:[%s24563_s5 + $0x150] sm:$0xf0]  ;;  %v14646_v12 = vld [vmem:[%s24563_s5 + $0xb8] sm:$0xf0]  ;;  %v14597_v26 = vor.u32 %v16316_v10, %v14596_v2  ;;  %v16358_v2 = vld [vmem:[%s24563_s5 + $0x1ac] sm:$0xf] }
 0x4e1   :  { %v8660_v46 = vadd.f32 %v23669_v48, %v8647_v31  ;;  %v16365_v48 = vld [vmem:[%s24563_s5 + $0x1e4] sm:$0xf] }
 0x4e2   :  { %v14801_v8 = vor.u32 %v16365_v48, %v14798_v4  ;;  %9487 = vmatpush.bf16.msra.mxu2 %v14945_v45  ;;  %v14649_v48 = vor.u32 %v16326_v56, %v14646_v12  ;;  %v14702_v45 = vld [vmem:[%s24563_s5 + $0x130] sm:$0xf0]  ;;  %v14884_v56 = vld [vmem:[%s24563_s5 + $0x288] sm:$0xf]  ;;  %v16388_v12 = vld [vmem:[%s24563_s5 + $0x294] sm:$0xf0] }
 0x4e3   :  { %v8673_v36 = vadd.f32 %v23769_v63, %v8660_v46  ;;  %v14782_v63 = vld [vmem:[%s24563_s5 + $0x1d0] sm:$0xf0]  ;;  %v23924_v49 = vpop.f32.mrf.mxu0  ;;  %v14721_v46 = vor.u32 %v16345_v11, %v14718_v24  ;;  %v14900_v11 = vld [vmem:[%s24563_s5 + $0x2a8] sm:$0xf]  ;;  %v16392_v24 = vld [vmem:[%s24563_s5 + $0x2b4] sm:$0xf0] }
 0x4e4   :  { %v8635_v21 = vpop.f32.mrf.mxu2  ;;  %9454 = vmatpush.bf16.msrb.mxu0 %v14801_v8  ;;  %v14785_v62 = vor.u32 %v16361_v52, %v14782_v63  ;;  %v14580_v8 = vld [vmem:[%s24563_s5 + $0x28] sm:$0xf] }
 0x4e5   :  { %v8769_v25 = vmax.f32 %v8673_v36, 0.0  ;;  %v16341_v36 = vld [vmem:[%s24563_s5 + $0x124] sm:$0xf]  ;;  %v14630_v21 = vld [vmem:[%s24563_s5 + $0x98] sm:$0xf0]  ;;  %v14581_v63 = vor.u32 %v16312_v15, %v14580_v8 }
 0x4e6   :  { %v14705_v60 = vor.u32 %v16341_v36, %v14702_v45  ;;  %v14868_v45 = vld [vmem:[%s24563_s5 + $0x268] sm:$0xf]  ;;  %v16384_v8 = vld [vmem:[%s24563_s5 + $0x274] sm:$0xf0]  ;;  %v14742_v15 = vld [vmem:[%s24563_s5 + $0x178] sm:$0xf0] }
 0x4e7   :  { %v23913_v32 = vpack.c.bf16 %v8769_v25, %v8769_v25 }
 0x4e8   :  { %9455 = vmatpush.bf16.msrb.mxu0 %v14785_v62  ;;  %v14686_v62 = vld [vmem:[%s24563_s5 + $0x110] sm:$0xf0] }
 0x4e9   :  { %9423 = vmatmul.bf16.vlgmr.msrb.gmra.mxu2 %v23913_v32  ;;  %9475 = vmatmul.bf16.vlgmr.msra.gmra.mxu1 %v23913_v32  ;;  %v14689_v58 = vor.u32 %v16337_v5, %v14686_v62 }
 0x4ea   :  { %9579 = vmatmul.bf16.vlgmr.msrb.gmra.mxu3 %v23913_v32  ;;  %9493 = vmatpush.bf16.msrb.mxu2 %v14677_v33 }
 0x4eb   :  { %9545 = vmatpush.bf16.msra.mxu1 %v14681_v19  ;;  %v8752_v23 = vpop.f32.mrf.mxu0  ;;  %v16310_v19 = vld [vmem:[%s24563_s5 + $0x2c] sm:$0xf] }
 0x4ec   :  { %9456 = vmatpush.bf16.msrb.mxu0 %v14769_v20  ;;  %v14582_v20 = vld [vmem:[%s24563_s5 + $0x38] sm:$0xf0]  ;;  %v14932_v23 = vld [vmem:[%s24563_s5 + $0x2e8] sm:$0xf] }
 0x4ed   :  { %v14585_v40 = vor.u32 %v16310_v19, %v14582_v20  ;;  %v14950_v19 = vld [vmem:[%s24563_s5 + $0x318] sm:$0xf0] }
 0x4ee   :  { %9494 = vmatpush.bf16.msrb.mxu2 %v14661_v38  ;;  %v14601_v38 = vor.u32 %v16314_v42, %v14598_v37  ;;  %v16338_v42 = vld [vmem:[%s24563_s5 + $0x10c] sm:$0xf]  ;;  %v14694_v37 = vld [vmem:[%s24563_s5 + $0x118] sm:$0xf0] }
 0x4ef   :  { %9546 = vmatpush.bf16.msra.mxu1 %v14665_v59  ;;  %v14697_v1 = vor.u32 %v16338_v42, %v14694_v37  ;;  %v16433_v37 = vld [vmem:[%s24565_s7 + $0xe4] sm:$0xf] }
 0x4f0   :  { %9457 = vmatpush.bf16.msrb.mxu0 %v14753_v0 }
 0x4f2   :  { %9495 = vmatpush.bf16.msrb.mxu2 %v14645_v14 }
 0x4f3   :  { %9547 = vmatpush.bf16.msra.mxu1 %v14649_v48 }
 0x4f4   :  { %9458 = vmatpush.bf16.msrb.mxu0 %v14737_v3 }
 0x4f6   :  { %9496 = vmatpush.bf16.msrb.mxu2 %v14629_v61  ;;  %v14806_v61 = vld [vmem:[%s24563_s5 + $0x1f8] sm:$0xf0] }
 0x4f7   :  { %v14809_v50 = vor.u32 %v16366_v27, %v14806_v61 }
 0x4f8   :  { %9459 = vmatpush.bf16.msrb.mxu0 %v14721_v46  ;;  %v14901_v46 = vor.u32 %v16392_v24, %v14900_v11 }
 0x4fa   :  { %9497 = vmatpush.bf16.msrb.mxu2 %v14613_v6  ;;  %v14917_v6 = vor.u32 %v16396_v51, %v14916_v44  ;;  %v16436_v44 = vld [vmem:[%s24565_s7 + $0xf4] sm:$0xf0]  ;;  %v15000_v51 = vld [vmem:[%s24565_s7 + $0x50] sm:$0xf] }
 0x4fc   :  { %v8685_v31 = vpop.f32.mrf.mxu2  ;;  %9460 = vmatpush.bf16.msrb.mxu0 %v14705_v60  ;;  %v16350_v60 = vld [vmem:[%s24563_s5 + $0x16c] sm:$0xf] }
 0x4fd   :  { %v8686_v7 = vadd.f32 %v8685_v31, %v7394_v57  ;;  %v14790_v57 = vld [vmem:[%s24563_s5 + $0x1d8] sm:$0xf0] }
 0x4fe   :  { %9498 = vmatpush.bf16.msrb.mxu2 %v14597_v26  ;;  %v14793_v59 = vor.u32 %v16362_v16, %v14790_v57  ;;  %v14774_v31 = vld [vmem:[%s24563_s5 + $0x1b8] sm:$0xf0]  ;;  %v16416_v16 = vld [vmem:[%s24565_s7 + $0x54] sm:$0xf0] }
 0x4ff   :  { %v8699_v4 = vadd.f32 %v23847_v54, %v8686_v7  ;;  %v16322_v54 = vld [vmem:[%s24563_s5 + $0x8c] sm:$0xf]  ;;  %v14777_v10 = vor.u32 %v16358_v2, %v14774_v31  ;;  %v14758_v26 = vld [vmem:[%s24563_s5 + $0x198] sm:$0xf0]  ;;  %v15001_v24 = vor.u32 %v16416_v16, %v15000_v51  ;;  %v15064_v2 = vld [vmem:[%s24565_s7 + $0xd0] sm:$0xf] }
 0x500   :  { %v14633_v25 = vor.u32 %v16322_v54, %v14630_v21  ;;  %9461 = vmatpush.bf16.msrb.mxu0 %v14689_v58  ;;  %v16354_v7 = vld [vmem:[%s24563_s5 + $0x18c] sm:$0xf]  ;;  %v14869_v54 = vor.u32 %v16384_v8, %v14868_v45  ;;  %v14745_v21 = vor.u32 %v16350_v60, %v14742_v15  ;;  %v16376_v58 = vld [vmem:[%s24563_s5 + $0x234] sm:$0xf0]  ;;  %v15048_v8 = vld [vmem:[%s24565_s7 + $0xb0] sm:$0xf] }
 0x501   :  { %v8712_v52 = vadd.f32 %v23774_v53, %v8699_v4  ;;  %v14885_v4 = vor.u32 %v16388_v12, %v14884_v56  ;;  %v14761_v36 = vor.u32 %v16354_v7, %v14758_v26  ;;  %v16432_v31 = vld [vmem:[%s24565_s7 + $0xd4] sm:$0xf0]  ;;  %v15056_v7 = vld [vmem:[%s24565_s7 + $0xc0] sm:$0xf]  ;;  %v16430_v26 = vld [vmem:[%s24565_s7 + $0xc4] sm:$0xf0] }
 0x502   :  { %9548 = vmatpush.bf16.msra.mxu1 %v14633_v25  ;;  %9499 = vmatpush.bf16.msrb.mxu2 %v14581_v63  ;;  %v16380_v63 = vld [vmem:[%s24563_s5 + $0x254] sm:$0xf0]  ;;  %v16346_v25 = vld [vmem:[%s24563_s5 + $0x14c] sm:$0xf]  ;;  %v15065_v56 = vor.u32 %v16432_v31, %v15064_v2  ;;  %v14976_v15 = vld [vmem:[%s24565_s7 + $0x20] sm:$0xf] }
 0x503   :  { %v8725_v33 = vadd.f32 %v23817_v34, %v8712_v52  ;;  %v14565_v34 = vor.u32 %v16308_v41, %v14564_v35  ;;  %v14852_v52 = vld [vmem:[%s24563_s5 + $0x248] sm:$0xf]  ;;  %v16342_v41 = vld [vmem:[%s24563_s5 + $0x12c] sm:$0xf]  ;;  %v16428_v60 = vld [vmem:[%s24565_s7 + $0xb4] sm:$0xf0] }
 0x504   :  { %v8687_v53 = vpop.f32.mrf.mxu2  ;;  %v14853_v62 = vor.u32 %v16380_v63, %v14852_v52  ;;  %v15049_v52 = vor.u32 %v16428_v60, %v15048_v8  ;;  %v16427_v51 = vld [vmem:[%s24565_s7 + $0xb4] sm:$0xf]  ;;  %v15050_v16 = vld [vmem:[%s24565_s7 + $0xb8] sm:$0xf0]  ;;  %v15136_v2 = vld [vmem:[%s24565_s7 + $0x160] sm:$0xf] }
 0x505   :  { %v14836_v53 = vld [vmem:[%s24563_s5 + $0x228] sm:$0xf]  ;;  %v16423_v8 = vld [vmem:[%s24565_s7 + $0x94] sm:$0xf]  ;;  %v15034_v60 = vld [vmem:[%s24565_s7 + $0x98] sm:$0xf0] }
 0x506   :  { %9549 = vmatpush.bf16.msra.mxu1 %v14617_v9  ;;  %9500 = vmatpush.bf16.msrb.mxu2 %v14565_v34  ;;  %v14837_v34 = vor.u32 %v16376_v58, %v14836_v53  ;;  %v16372_v9 = vld [vmem:[%s24563_s5 + $0x214] sm:$0xf0]  ;;  %v14960_v53 = vld [vmem:[%s24565_s7] sm:$0xf]  ;;  %v16406_v58 = vld [vmem:[%s24565_s7 + $0x4] sm:$0xf0] }
 0x507   :  { %v16450_v31 = vld [vmem:[%s24565_s7 + $0x164] sm:$0xf0] }
 0x50a   :  { %9550 = vmatpush.bf16.msra.mxu1 %v14601_v38  ;;  %v16402_v38 = vld [vmem:[%s24563_s5 + $0x30c] sm:$0xf] }
 0x50b   :  { %v14953_v17 = vor.u32 %v16402_v38, %v14950_v19  ;;  %v15074_v38 = vld [vmem:[%s24565_s7 + $0xe8] sm:$0xf0] }
 0x50c   :  { %v15077_v19 = vor.u32 %v16433_v37, %v15074_v38  ;;  %v16443_v37 = vld [vmem:[%s24565_s7 + $0x134] sm:$0xf]  ;;  %v15114_v38 = vld [vmem:[%s24565_s7 + $0x138] sm:$0xf0] }
 0x50e   :  { %9551 = vmatpush.bf16.msra.mxu1 %v14585_v40  ;;  %v14821_v40 = vor.u32 %v16372_v9, %v14820_v13 }
 0x512   :  { %9552 = vmatpush.bf16.msra.mxu1 %v14569_v39  ;;  %v24175_v39 = vld [vmem:[%s24564_s6] sm:$0xf] }
 0x51c   :  { %v8737_v14 = vpop.f32.mrf.mxu2 }
 0x51d   :  { %v8738_v0 = vadd.f32 %v8737_v14, %v8725_v33  ;;  %v14726_v33 = vld [vmem:[%s24563_s5 + $0x158] sm:$0xf0]  ;;  %v8877_v14 = vperm.slane %v24175_v39, 0 }
 0x51e   :  { %v9398_v48 = vpop.f32.mrf.mxu3  ;;  %v14729_v35 = vor.u32 %v16346_v25, %v14726_v33  ;;  %v14968_v25 = vld [vmem:[%s24565_s7 + $0x10] sm:$0xf]  ;;  %v16408_v33 = vld [vmem:[%s24565_s7 + $0x14] sm:$0xf0] }
 0x51f   :  { %v8751_v29 = vadd.f32 %v23924_v49, %v8738_v0 }
 0x521   :  { %v8764_v22 = vadd.f32 %v23849_v30, %v8751_v29  ;;  %v14933_v30 = vor.u32 %v16400_v55, %v14932_v23  ;;  %v9399_v29 = vadd.f32 %v9398_v48, %v8877_v14  ;;  %v14984_v48 = vld [vmem:[%s24565_s7 + $0x30] sm:$0xf]  ;;  %v16431_v14 = vld [vmem:[%s24565_s7 + $0xd4] sm:$0xf] }
 0x523   :  { %v8770_v3 = vmax.f32 %v8764_v22, 0.0 }
 0x524   :  { %v8739_v49 = vpop.f32.mrf.mxu2 }
 0x525   :  { %v24069_v28 = vpack.c.bf16 %v8770_v3, %v8770_v3  ;;  %v15016_v3 = vld [vmem:[%s24565_s7 + $0x70] sm:$0xf] }
 0x526   :  { %v9400_v5 = vpop.f32.mrf.mxu3 }
 0x527   :  { %14954 = vmatmul.msk.bf16.vlgmr.msra.gmra.mxu0 %vm9385_vm1, %v24069_v28  ;;  %14955 = vmatmul.msk.bf16.vlgmr.msra.gmra.mxu2 %vm9385_vm1, %v24069_v28 }
 0x528   :  { %14956 = vmatmul.msk.bf16.vlgmr.msrb.gmra.mxu1 %vm9385_vm1, %v24069_v28  ;;  %9519 = vmatpush.bf16.msra.mxu0 %v14933_v30  ;;  %v16418_v30 = vld [vmem:[%s24565_s7 + $0x64] sm:$0xf0] }
 0x529   :  { %9558 = vmatpush.bf16.msra.mxu2 %v14809_v50  ;;  %v15080_v50 = vld [vmem:[%s24565_s7 + $0xf0] sm:$0xf] }
 0x52a   :  { %v15081_v57 = vor.u32 %v16436_v44, %v15080_v50  ;;  %v16422_v44 = vld [vmem:[%s24565_s7 + $0x84] sm:$0xf0] }
 0x52c   :  { %9520 = vmatpush.bf16.msra.mxu0 %v14917_v6  ;;  %v15072_v6 = vld [vmem:[%s24565_s7 + $0xe0] sm:$0xf]  ;;  %9927 = vmatpush.bf16.msrb.mxu1 %v15081_v57 }
 0x52d   :  { %9559 = vmatpush.bf16.msra.mxu2 %v14793_v59  ;;  %v16434_v59 = vld [vmem:[%s24565_s7 + $0xe4] sm:$0xf0] }
 0x52e   :  { %v24170_v20 = vpop.f32.mrf.mxu3  ;;  %v15073_v11 = vor.u32 %v16434_v59, %v15072_v6  ;;  %v15053_v6 = vor.u32 %v16427_v51, %v15050_v16  ;;  %v16451_v59 = vld [vmem:[%s24565_s7 + $0x174] sm:$0xf]  ;;  %v16438_v51 = vld [vmem:[%s24565_s7 + $0x104] sm:$0xf0] }
 0x530   :  { %9521 = vmatpush.bf16.msra.mxu0 %v14901_v46  ;;  %v14992_v46 = vld [vmem:[%s24565_s7 + $0x40] sm:$0xf]  ;;  %9928 = vmatpush.bf16.msrb.mxu1 %v15073_v11  ;;  %v15146_v11 = vld [vmem:[%s24565_s7 + $0x178] sm:$0xf0] }
 0x531   :  { %9560 = vmatpush.bf16.msra.mxu2 %v14777_v10  ;;  %v16414_v10 = vld [vmem:[%s24565_s7 + $0x44] sm:$0xf0] }
 0x532   :  { %v14993_v12 = vor.u32 %v16414_v10, %v14992_v46  ;;  %v15137_v46 = vor.u32 %v16450_v31, %v15136_v2  ;;  %v16425_v10 = vld [vmem:[%s24565_s7 + $0xa4] sm:$0xf]  ;;  %v15018_v2 = vld [vmem:[%s24565_s7 + $0x78] sm:$0xf0] }
 0x533   :  { %v16437_v31 = vld [vmem:[%s24565_s7 + $0x104] sm:$0xf] }
 0x534   :  { %9522 = vmatpush.bf16.msra.mxu0 %v14885_v4  ;;  %v16412_v4 = vld [vmem:[%s24565_s7 + $0x34] sm:$0xf0]  ;;  %9929 = vmatpush.bf16.msrb.mxu1 %v15065_v56  ;;  %v15042_v56 = vld [vmem:[%s24565_s7 + $0xa8] sm:$0xf0] }
 0x535   :  { %9561 = vmatpush.bf16.msra.mxu2 %v14761_v36  ;;  %v15057_v36 = vor.u32 %v16430_v26, %v15056_v7  ;;  %v14985_v45 = vor.u32 %v16412_v4, %v14984_v48  ;;  %v15045_v7 = vor.u32 %v16425_v10, %v15042_v56  ;;  %v15138_v26 = vld [vmem:[%s24565_s7 + $0x168] sm:$0xf0]  ;;  %v15128_v4 = vld [vmem:[%s24565_s7 + $0x150] sm:$0xf] }
 0x536   :  { %v9452_v0 = vpop.f32.mrf.mxu3  ;;  %v15090_v56 = vld [vmem:[%s24565_s7 + $0x108] sm:$0xf0] }
 0x537   :  { %9462 = vmatmul.bf16.vlgmr.msrb.gmra.mxu0 %v23828_v18  ;;  %9501 = vmatmul.bf16.vlgmr.msrb.gmra.mxu2 %v23655_v47  ;;  %v15066_v0 = vld [vmem:[%s24565_s7 + $0xd8] sm:$0xf0] }
 0x538   :  { %9553 = vmatmul.bf16.vlgmr.msra.gmra.mxu1 %v23655_v47  ;;  %9523 = vmatpush.bf16.msra.mxu0 %v14869_v54  ;;  %v14710_v47 = vld [vmem:[%s24563_s5 + $0x138] sm:$0xf0]  ;;  %v16410_v54 = vld [vmem:[%s24565_s7 + $0x24] sm:$0xf0] }
 0x539   :  { %9562 = vmatpush.bf16.msra.mxu2 %v14745_v21  ;;  %v14713_v43 = vor.u32 %v16342_v41, %v14710_v47  ;;  %9930 = vmatpush.bf16.msrb.mxu1 %v15057_v36  ;;  %v14977_v63 = vor.u32 %v16410_v54, %v14976_v15  ;;  %v16435_v47 = vld [vmem:[%s24565_s7 + $0xf4] sm:$0xf]  ;;  %v16448_v36 = vld [vmem:[%s24565_s7 + $0x154] sm:$0xf0]  ;;  %v15037_v54 = vor.u32 %v16423_v8, %v15034_v60 }
 0x53a   :  { %v9411_v22 = vpop.f32.mrf.mxu1  ;;  %v16447_v15 = vld [vmem:[%s24565_s7 + $0x154] sm:$0xf] }
 0x53b   :  { %v24180_v23 = vadd.f32 %v9411_v22, %v9399_v29  ;;  %v15069_v29 = vor.u32 %v16431_v14, %v15066_v0  ;;  %v15032_v22 = vld [vmem:[%s24565_s7 + $0x90] sm:$0xf]  ;;  %v16441_v0 = vld [vmem:[%s24565_s7 + $0x124] sm:$0xf]  ;;  %v16415_v60 = vld [vmem:[%s24565_s7 + $0x54] sm:$0xf] }
 0x53c   :  { %9524 = vmatpush.bf16.msra.mxu0 %v14853_v62  ;;  %v14969_v62 = vor.u32 %v16408_v33, %v14968_v25  ;;  %v15120_v25 = vld [vmem:[%s24565_s7 + $0x140] sm:$0xf]  ;;  %v16446_v33 = vld [vmem:[%s24565_s7 + $0x144] sm:$0xf0] }
 0x53d   :  { %9563 = vmatpush.bf16.msra.mxu2 %v14729_v35  ;;  %9931 = vmatpush.bf16.msrb.mxu1 %v15049_v52  ;;  %v15130_v52 = vld [vmem:[%s24565_s7 + $0x158] sm:$0xf0] }
 0x540   :  { %9525 = vmatpush.bf16.msra.mxu0 %v14837_v34  ;;  %v24182_v55 = vpop.f32.mrf.mxu3  ;;  %v15082_v34 = vld [vmem:[%s24565_s7 + $0xf8] sm:$0xf0] }
 0x541   :  { %9564 = vmatpush.bf16.msra.mxu2 %v14713_v43  ;;  %v14961_v43 = vor.u32 %v16406_v58, %v14960_v53  ;;  %v15085_v13 = vor.u32 %v16435_v47, %v15082_v34  ;;  %v16421_v53 = vld [vmem:[%s24565_s7 + $0x84] sm:$0xf]  ;;  %v15026_v58 = vld [vmem:[%s24565_s7 + $0x88] sm:$0xf0] }
 0x542   :  { %v9413_v27 = vpop.f32.mrf.mxu1  ;;  %v16445_v47 = vld [vmem:[%s24565_s7 + $0x144] sm:$0xf]  ;;  %v15122_v34 = vld [vmem:[%s24565_s7 + $0x148] sm:$0xf0] }
 0x543   :  { %v16424_v27 = vld [vmem:[%s24565_s7 + $0x94] sm:$0xf0] }
 0x544   :  { %9526 = vmatpush.bf16.msra.mxu0 %v14821_v40  ;;  %v15040_v40 = vld [vmem:[%s24565_s7 + $0xa0] sm:$0xf] }
 0x545   :  { %9565 = vmatpush.bf16.msra.mxu2 %v14697_v1  ;;  %v16426_v1 = vld [vmem:[%s24565_s7 + $0xa4] sm:$0xf0] }
 0x547   :  { %9527 = vmatmul.bf16.vlgmr.msra.gmra.mxu0 %v23913_v32  ;;  %v16420_v32 = vld [vmem:[%s24565_s7 + $0x74] sm:$0xf0] }
 0x548   :  { %9591 = vmatpush.bf16.msrb.mxu0 %v14953_v17  ;;  %9566 = vmatmul.bf16.vlgmr.msra.gmra.mxu2 %v23828_v18  ;;  %v9517_v61 = vpop.f32.mrf.mxu3  ;;  %v15008_v18 = vld [vmem:[%s24565_s7 + $0x60] sm:$0xf]  ;;  %v15017_v49 = vor.u32 %v16420_v32, %v15016_v3  ;;  %v15041_v17 = vor.u32 %v16426_v1, %v15040_v40  ;;  %v16429_v3 = vld [vmem:[%s24565_s7 + $0xc4] sm:$0xf]  ;;  %v15058_v32 = vld [vmem:[%s24565_s7 + $0xc8] sm:$0xf0] }
 0x549   :  { %v15033_v61 = vor.u32 %v16424_v27, %v15032_v22  ;;  %v15104_v40 = vld [vmem:[%s24565_s7 + $0x120] sm:$0xf]  ;;  %v16442_v1 = vld [vmem:[%s24565_s7 + $0x124] sm:$0xf0] }
 0x54a   :  { %9932 = vmatpush.bf16.msrb.mxu1 %v15041_v17  ;;  %v15105_v17 = vor.u32 %v16442_v1, %v15104_v40  ;;  %v16409_v1 = vld [vmem:[%s24565_s7 + $0x24] sm:$0xf] }
 0x54c   :  { %9914 = vmatpush.bf16.msra.mxu0 %v15017_v49  ;;  %v15144_v49 = vld [vmem:[%s24565_s7 + $0x170] sm:$0xf] }
 0x54e   :  { %9933 = vmatpush.bf16.msrb.mxu1 %v15033_v61 }
 0x557   :  { %14957 = vmatmul.msk.bf16.vlgmr.msrb.gmra.mxu0 %vm9385_vm1, %v24069_v28  ;;  %v15009_v28 = vor.u32 %v16418_v30, %v15008_v18  ;;  %v15061_v18 = vor.u32 %v16429_v3, %v15058_v32  ;;  %v16452_v30 = vld [vmem:[%s24565_s7 + $0x174] sm:$0xf0]  ;;  %v15096_v32 = vld [vmem:[%s24565_s7 + $0x110] sm:$0xf] }
 0x558   :  { %v15145_v50 = vor.u32 %v16452_v30, %v15144_v49  ;;  %v16439_v49 = vld [vmem:[%s24565_s7 + $0x114] sm:$0xf]  ;;  %v15098_v30 = vld [vmem:[%s24565_s7 + $0x118] sm:$0xf0] }
 0x559   :  { %9915 = vmatpush.bf16.msra.mxu0 %v15009_v28  ;;  %v15024_v28 = vld [vmem:[%s24565_s7 + $0x80] sm:$0xf] }
 0x55a   :  { %v15025_v57 = vor.u32 %v16422_v44, %v15024_v28  ;;  %9940 = vmatpush.bf16.msrb.mxu2 %v15145_v50  ;;  %v15101_v28 = vor.u32 %v16439_v49, %v15098_v30  ;;  %v15088_v44 = vld [vmem:[%s24565_s7 + $0x100] sm:$0xf] }
 0x55c   :  { %9934 = vmatpush.bf16.msrb.mxu1 %v15025_v57  ;;  %v15089_v57 = vor.u32 %v16438_v51, %v15088_v44  ;;  %v8880_v44 = vperm.slane %v24175_v39, 3 }
 0x55d   :  { %9916 = vmatpush.bf16.msra.mxu0 %v15001_v24  ;;  %v15149_v24 = vor.u32 %v16451_v59, %v15146_v11  ;;  %v16454_v59 = vld [vmem:[%s24565_s7 + $0x184] sm:$0xf0] }
 0x55e   :  { %9941 = vmatpush.bf16.msrb.mxu2 %v15137_v46 }
 0x560   :  { %9992 = vmatpush.bf16.msra.mxu1 %v15149_v24  ;;  %v16419_v24 = vld [vmem:[%s24565_s7 + $0x74] sm:$0xf] }
 0x561   :  { %9917 = vmatpush.bf16.msra.mxu0 %v14993_v12  ;;  %v16449_v12 = vld [vmem:[%s24565_s7 + $0x164] sm:$0xf]  ;;  %v15021_v10 = vor.u32 %v16419_v24, %v15018_v2 }
 0x562   :  { %v15141_v48 = vor.u32 %v16449_v12, %v15138_v26  ;;  %v8878_v26 = vperm.slane %v24175_v39, 1 }
 0x564   :  { %9993 = vmatpush.bf16.msra.mxu1 %v15141_v48  ;;  %v16417_v48 = vld [vmem:[%s24565_s7 + $0x64] sm:$0xf]  ;;  %v9451_v8 = vadd.f32 %v24170_v20, %v8878_v26  ;;  %v14994_v20 = vld [vmem:[%s24565_s7 + $0x48] sm:$0xf0]  ;;  %v16458_v26 = vld [vmem:[%s24567_s9 + $0x18] sm:$0xff] }
 0x565   :  { %9918 = vmatpush.bf16.msra.mxu0 %v14985_v45  ;;  %v15129_v45 = vor.u32 %v16448_v36, %v15128_v4  ;;  %v15010_v4 = vld [vmem:[%s24565_s7 + $0x68] sm:$0xf0] }
 0x566   :  { %v24252_v21 = vpop.f32.mrf.mxu1  ;;  %v15013_v36 = vor.u32 %v16417_v48, %v15010_v4  ;;  %v16457_v48 = vld [vmem:[%s24567_s9 + $0x10] sm:$0xff] }
 0x567   :  { %9942 = vmatpush.bf16.msrb.mxu2 %v15129_v45 }
 0x569   :  { %9919 = vmatpush.bf16.msra.mxu0 %v14977_v63  ;;  %v15133_v63 = vor.u32 %v16447_v15, %v15130_v52  ;;  %v15002_v15 = vld [vmem:[%s24565_s7 + $0x58] sm:$0xf0] }
 0x56a   :  { %v15005_v52 = vor.u32 %v16415_v60, %v15002_v15 }
 0x56b   :  { %9994 = vmatpush.bf16.msra.mxu1 %v15133_v63 }
 0x56c   :  { %v24260_v5 = vpop.f32.mrf.mxu2 }
 0x56d   :  { %v24262_v35 = vpop.f32.mrf.mxu3  ;;  %9920 = vmatpush.bf16.msra.mxu0 %v14969_v62  ;;  %v15121_v62 = vor.u32 %v16446_v33, %v15120_v25  ;;  %v9425_v14 = vadd.f32 %v24260_v5, %v24180_v23  ;;  %v16440_v23 = vld [vmem:[%s24565_s7 + $0x114] sm:$0xf0] }
 0x56e   :  { %v9478_v41 = vpop.f32.mrf.mxu1  ;;  %v15097_v5 = vor.u32 %v16440_v23, %v15096_v32  ;;  %v16405_v23 = vld [vmem:[%s24565_s7 + $0x4] sm:$0xf] }
 0x56f   :  { %9943 = vmatpush.bf16.msrb.mxu2 %v15121_v62  ;;  %v15029_v41 = vor.u32 %v16421_v53, %v15026_v58  ;;  %v16413_v62 = vld [vmem:[%s24565_s7 + $0x44] sm:$0xf] }
 0x570   :  { %v14997_v53 = vor.u32 %v16413_v62, %v14994_v20 }
 0x571   :  { %9921 = vmatpush.bf16.msra.mxu0 %v14961_v43  ;;  %v15125_v43 = vor.u32 %v16445_v47, %v15122_v34  ;;  %v15154_v47 = vld [vmem:[%s24565_s7 + $0x188] sm:$0xf0] }
 0x573   :  { %9995 = vmatpush.bf16.msra.mxu1 %v15125_v43 }
 0x574   :  { %v9426_v9 = vpop.f32.mrf.mxu2 }
 0x575   :  { %v9582_v42 = vpop.f32.mrf.mxu3  ;;  %9979 = vmatpush.bf16.msrb.mxu0 %v15085_v13  ;;  %v15112_v13 = vld [vmem:[%s24565_s7 + $0x130] sm:$0xf]  ;;  %v16444_v9 = vld [vmem:[%s24565_s7 + $0x134] sm:$0xf0] }
 0x576   :  { %v15113_v42 = vor.u32 %v16444_v9, %v15112_v13  ;;  %v8879_v13 = vperm.slane %v24175_v39, 2  ;;  %v16411_v9 = vld [vmem:[%s24565_s7 + $0x34] sm:$0xf]  ;;  %v16462_v39 = vld [vmem:[%s24567_s9 + $0x38] sm:$0xff] }
 0x578   :  { %9944 = vmatpush.bf16.msrb.mxu2 %v15113_v42  ;;  %v14986_v42 = vld [vmem:[%s24565_s7 + $0x38] sm:$0xf0] }
 0x579   :  { %9980 = vmatpush.bf16.msrb.mxu0 %v15077_v19  ;;  %v15117_v19 = vor.u32 %v16443_v37, %v15114_v38  ;;  %v14989_v38 = vor.u32 %v16411_v9, %v14986_v42 }
 0x57b   :  { %9996 = vmatpush.bf16.msra.mxu1 %v15117_v19 }
 0x57c   :  { %9945 = vmatpush.bf16.msrb.mxu2 %v15105_v17  ;;  %v14978_v17 = vld [vmem:[%s24565_s7 + $0x28] sm:$0xf0] }
 0x57d   :  { %9981 = vmatpush.bf16.msrb.mxu0 %v15069_v29  ;;  %v15106_v29 = vld [vmem:[%s24565_s7 + $0x128] sm:$0xf0] }
 0x57e   :  { %v15109_v27 = vor.u32 %v16441_v0, %v15106_v29  ;;  %v16407_v29 = vld [vmem:[%s24565_s7 + $0x14] sm:$0xf] }
 0x580   :  { %9997 = vmatpush.bf16.msra.mxu1 %v15109_v27  ;;  %9946 = vmatpush.bf16.msrb.mxu2 %v15097_v5  ;;  %v14962_v5 = vld [vmem:[%s24565_s7 + $0x8] sm:$0xf0] }
 0x581   :  { %9982 = vmatpush.bf16.msrb.mxu0 %v15061_v18  ;;  %v14965_v30 = vor.u32 %v16405_v23, %v14962_v5 }
 0x584   :  { %9998 = vmatpush.bf16.msra.mxu1 %v15101_v28  ;;  %9947 = vmatpush.bf16.msrb.mxu2 %v15089_v57 }
 0x585   :  { %9983 = vmatpush.bf16.msrb.mxu0 %v15053_v6  ;;  %v15152_v6 = vld [vmem:[%s24565_s7 + $0x180] sm:$0xf] }
 0x586   :  { %v15153_v11 = vor.u32 %v16454_v59, %v15152_v6 }
 0x588   :  { %9960 = vmatpush.bf16.msra.mxu3 %v15153_v11 }
 0x589   :  { %9984 = vmatpush.bf16.msrb.mxu0 %v15045_v7  ;;  %v15093_v7 = vor.u32 %v16437_v31, %v15090_v56 }
 0x58b   :  { %9999 = vmatpush.bf16.msra.mxu1 %v15093_v7 }
 0x58c   :  { %9966 = vmatpush.bf16.msrb.mxu3 %v15021_v10 }
 0x58d   :  { %9985 = vmatpush.bf16.msrb.mxu0 %v15037_v54 }
 0x590   :  { %9967 = vmatpush.bf16.msrb.mxu3 %v15013_v36 }
 0x591   :  { %9986 = vmatpush.bf16.msrb.mxu0 %v15029_v41  ;;  %v16453_v41 = vld [vmem:[%s24565_s7 + $0x184] sm:$0xf] }
 0x594   :  { %9968 = vmatpush.bf16.msrb.mxu3 %v15005_v52 }
 0x598   :  { %9969 = vmatpush.bf16.msrb.mxu3 %v14997_v53  ;;  %v16465_v53 = vld [vmem:[%s24567_s9 + $0x50] sm:$0xff] }
 0x59c   :  { %9970 = vmatpush.bf16.msrb.mxu3 %v14989_v38 }
 0x5a4   :  { %v9437_v22 = vpop.f32.mrf.mxu0 }
 0x5a5   :  { %v9438_v61 = vadd.f32 %v9437_v22, %v9425_v14  ;;  %v24410_v3 = vpop.f32.mrf.mxu1  ;;  %v14981_v14 = vor.u32 %v16409_v1, %v14978_v17  ;;  %v14970_v22 = vld [vmem:[%s24565_s7 + $0x18] sm:$0xf0] }
 0x5a7   :  { %v9597_v18 = vmax.f32 %v9438_v61, 0.0  ;;  %9971 = vmatpush.bf16.msrb.mxu3 %v14981_v14  ;;  %v14973_v61 = vor.u32 %v16407_v29, %v14970_v22 }
 0x5a9   :  { %v24424_v50 = vpack.c.bf16 %v9597_v18, %v9597_v18 }
 0x5aa   :  { %v9489_v16 = vpop.f32.mrf.mxu2 }
 0x5ab   :  { %9922 = vmatmul.bf16.vlgmr.msra.gmra.mxu0 %v24424_v50  ;;  %9972 = vmatpush.bf16.msrb.mxu3 %v14973_v61 }
 0x5ac   :  { %v9439_v46 = vpop.f32.mrf.mxu0 }
 0x5ad   :  { %v9543_v12 = vpop.f32.mrf.mxu1 }
 0x5ae   :  { %v16460_v12 = vld [vmem:[%s24567_s9 + $0x28] sm:$0xff] }
 0x5af   :  { %9973 = vmatpush.bf16.msrb.mxu3 %v14965_v30 }
 0x5b2   :  { %v9491_v45 = vpop.f32.mrf.mxu2 }
 0x5b3   :  { %v16456_v45 = vld [vmem:[%s24567_s9 + $0x8] sm:$0xff] }
 0x5b4   :  { %v9463_v54 = vpop.f32.mrf.mxu0 }
 0x5b5   :  { %v9464_v63 = vadd.f32 %v9463_v54, %v9451_v8  ;;  %v9554_v25 = vpop.f32.mrf.mxu1  ;;  %v16455_v8 = vld [vmem:[%s24567_s9] sm:$0xff] }
 0x5b6   :  { %v9555_v6 = vadd.f32 %v9554_v25, %v8880_v44  ;;  %v10046_v54 = vld [vmem:[%s24567_s9 + $0x60] sm:$0xf] }
 0x5b7   :  { %v9477_v33 = vadd.f32 %v24252_v21, %v9464_v63  ;;  %v15157_v21 = vor.u32 %v16453_v41, %v15154_v47  ;;  %v10100_v52 = vunpack.c.l.b16 %v10046_v54  ;;  %v16464_v47 = vld [vmem:[%s24567_s9 + $0x48] sm:$0xff] }
 0x5b9   :  { %v9490_v58 = vadd.f32 %v9489_v16, %v9477_v33  ;;  %10012 = vmatpush.bf16.msra.mxu2 %v15157_v21  ;;  %v10113_v63 = vpack.c.b16 %v10100_v52, %v10100_v52  ;;  %v16466_v33 = vld [vmem:[%s24567_s9 + $0x58] sm:$0xff] }
 0x5ba   :  { %v9502_v34 = vpop.f32.mrf.mxu2 }
 0x5bb   :  { %v9598_v43 = vmax.f32 %v9490_v58, 0.0  ;;  %v9503_v0 = vadd.f32 %v9502_v34, %v8879_v13  ;;  %v10132_v25 = vsel %vm10130_vm2, %v10113_v63, 0  ;;  %v9655_v58 = vld [vmem:[%s24568_s8] sm:$0x3] }
 0x5bc   :  { %v9465_v37 = vpop.f32.mrf.mxu0  ;;  %v9657_v34 = vperm.slane %v9655_v58, 0 }
 0x5bd   :  { %v9602_v19 = vpack.c.bf16 %v9598_v43, %v9598_v43  ;;  %v9556_v40 = vpop.f32.mrf.mxu1  ;;  %v9516_v32 = vadd.f32 %v24182_v55, %v9503_v0  ;;  %v16463_v43 = vld [vmem:[%s24567_s9 + $0x40] sm:$0xff]  ;;  %v9658_v0 = vperm.slane %v9655_v58, 1 }
 0x5bf   :  { %9935 = vmatmul.bf16.vlgmr.msrb.gmra.mxu1 %v9602_v19  ;;  %9987 = vmatmul.bf16.vlgmr.msrb.gmra.mxu0 %v9602_v19 }
 0x5c2   :  { %v9504_v27 = vpop.f32.mrf.mxu2 }
 0x5c4   :  { %v9528_v18 = vpop.f32.mrf.mxu0 }
 0x5c5   :  { %v9529_v49 = vadd.f32 %v9528_v18, %v9516_v32 }
 0x5c7   :  { %v9542_v28 = vadd.f32 %v24410_v3, %v9529_v49 }
 0x5c9   :  { %v9599_v51 = vmax.f32 %v9542_v28, 0.0  ;;  %v16467_v28 = vld [vmem:[%s24566_s10] ss:$0 sm:$0xff] }
 0x5cb   :  { %v9603_v16 = vpack.c.bf16 %v9599_v51, %v9599_v51  ;;  %v9567_v55 = vpop.f32.mrf.mxu2 }
 0x5cc   :  { %v9530_v57 = vpop.f32.mrf.mxu0  ;;  %v9568_v59 = vadd.f32 %v9567_v55, %v9555_v6 }
 0x5cd   :  { %9948 = vmatmul.bf16.vlgmr.msrb.gmra.mxu2 %v9603_v16 }
 0x5ce   :  { %v9581_v24 = vadd.f32 %v24262_v35, %v9568_v59  ;;  %10134 = vmatpush.bf16.msrb.mxu2 %v16462_v39  ;;  %v16461_v35 = vld [vmem:[%s24567_s9 + $0x30] sm:$0xff] }
 0x5cf   :  { %10000 = vmatmul.bf16.vlgmr.msra.gmra.mxu1 %v9603_v16 }
 0x5d2   :  { %10135 = vmatpush.bf16.msrb.mxu2 %v16461_v35 }
 0x5d3   :  { %v9569_v11 = vpop.f32.mrf.mxu2 }
 0x5d4   :  { %v9593_v2 = vpop.f32.mrf.mxu0 }
 0x5d5   :  { %v9594_v31 = vadd.f32 %v9593_v2, %v9581_v24 }
 0x5d6   :  { %10136 = vmatpush.bf16.msrb.mxu2 %v16460_v12 }
 0x5d7   :  { %v9600_v46 = vmax.f32 %v9594_v31, 0.0 }
 0x5d9   :  { %v9604_v10 = vpack.c.bf16 %v9600_v46, %v9600_v46 }
 0x5db   :  { %15158 = vmatmul.msk.bf16.vlgmr.msra.gmra.mxu3 %vm9385_vm1, %v9604_v10 }
 0x5dc   :  { %v9595_v3 = vpop.f32.mrf.mxu0  ;;  %10150 = vmatpush.bf16.msra.mxu3 %v10132_v25 }
 0x5dd   :  { %15159 = vmatmul.msk.bf16.vlgmr.msra.gmra.mxu2 %vm9385_vm1, %v9604_v10 }
 0x5e0   :  { %10151 = vmatpush.bf16.msra.mxu3 %v16466_v33 }
 0x5e4   :  { %10152 = vmatpush.bf16.msra.mxu3 %v16465_v53 }
 0x5e8   :  { %10153 = vmatpush.bf16.msra.mxu3 %v16464_v47 }
 0x5eb   :  { %9974 = vmatmul.bf16.vlgmr.msrb.gmra.mxu3 %v24424_v50  ;;  %v16459_v50 = vld [vmem:[%s24567_s9 + $0x20] sm:$0xff] }
 0x5ec   :  { %10137 = vmatpush.bf16.msrb.mxu2 %v16459_v50  ;;  %10154 = vmatpush.bf16.msra.mxu3 %v16463_v43 }
 0x5f0   :  { %10138 = vmatpush.bf16.msrb.mxu2 %v16458_v26 }
 0x5f4   :  { %10139 = vmatpush.bf16.msrb.mxu2 %v16457_v48 }
 0x5f8   :  { %10140 = vmatpush.bf16.msrb.mxu2 %v16456_v45 }
 0x5fc   :  { %10141 = vmatpush.bf16.msrb.mxu2 %v16455_v8 }
 0x628   :  { %v9923_v56 = vpop.f32.mrf.mxu0 }
 0x629   :  { %v9924_v13 = vadd.f32 %v9923_v56, %v9657_v34 }
 0x630   :  { %v9925_v7 = vpop.f32.mrf.mxu0 }
 0x63c   :  { %v9936_v4 = vpop.f32.mrf.mxu1  ;;  %v9988_v36 = vpop.f32.mrf.mxu0 }
 0x63d   :  { %v9937_v9 = vadd.f32 %v9936_v4, %v9924_v13 }
 0x644   :  { %v9938_v60 = vpop.f32.mrf.mxu1  ;;  %v9990_v15 = vpop.f32.mrf.mxu0 }
 0x64c   :  { %v10001_v62 = vpop.f32.mrf.mxu1 }
 0x650   :  { %v9949_v20 = vpop.f32.mrf.mxu2 }
 0x651   :  { %v9950_v42 = vadd.f32 %v9949_v20, %v9937_v9 }
 0x654   :  { %v10003_v41 = vpop.f32.mrf.mxu1 }
 0x658   :  { %v9951_v21 = vpop.f32.mrf.mxu2 }
 0x65e   :  { %v9962_v37 = vpop.f32.mrf.mxu3 }
 0x65f   :  { %v9963_v38 = vadd.f32 %v9962_v37, %v9950_v42 }
 0x660   :  { %v10014_v19 = vpop.f32.mrf.mxu2 }
 0x661   :  { %v10018_v40 = vmax.f32 %v9963_v38, 0.0 }
 0x663   :  { %v10020_v1 = vpack.c.bf16 %v10018_v40, %v10018_v40 }
 0x665   :  { %10142 = vmatmul.bf16.vlgmr.msrb.gmra.mxu2 %v10020_v1 }
 0x666   :  { %v9964_v17 = vpop.f32.mrf.mxu3 }
 0x668   :  { %v10016_v14 = vpop.f32.mrf.mxu2 }
 0x66e   :  { %v9975_v29 = vpop.f32.mrf.mxu3 }
 0x66f   :  { %v9976_v22 = vadd.f32 %v9975_v29, %v9658_v0 }
 0x671   :  { %v9989_v27 = vadd.f32 %v9988_v36, %v9976_v22 }
 0x673   :  { %v10002_v61 = vadd.f32 %v10001_v62, %v9989_v27 }
 0x675   :  { %v10015_v32 = vadd.f32 %v10014_v19, %v10002_v61 }
 0x676   :  { %v9977_v23 = vpop.f32.mrf.mxu3 }
 0x677   :  { %v10019_v5 = vmax.f32 %v10015_v32, 0.0 }
 0x679   :  { %v10021_v18 = vpack.c.bf16 %v10019_v5, %v10019_v5 }
 0x67b   :  { %15208 = vmatmul.msk.bf16.vlgmr.msra.gmra.mxu3 %vm10126_vm3, %v10021_v18 }
 0x6e8   :  { %v10143_v49 = vpop.f32.mrf.mxu2 }
 0x6e9   :  { %v10144_v44 = vadd.f32 %v16467_v28, %v10143_v49 }
 0x6f0   :  { %v10145_v30 = vpop.f32.mrf.mxu2 }
 0x6fe   :  { %v10156_v51 = vpop.f32.mrf.mxu3 }
 0x6ff   :  { %v10157_v16 = vadd.f32 %v10156_v51, %v10144_v44 }
 0x701   :  { %10161 = vst.msk [vmem:[%s24569_s11] sm:$0xff] %vm10160_vm4, %v10157_v16 }
 0x706   :  { %v10158_v55 = vpop.f32.mrf.mxu3 }

</bundles_post_ra>
